<compile_context>
chip_gen: v5e
topology: v5e:2x2
jax: 0.10.0
libtpu: 0.0.40
codegen_flags: <defaults>
</compile_context>

<pallas_src>
import functools

import jax
import jax.numpy as jnp
import numpy as np
from jax.experimental import pallas as pl
from jax.experimental.pallas import tpu as pltpu

_BN_EPS = 1e-5


# ----------------------------------------------------------------------------
# Fused block kernel
# ----------------------------------------------------------------------------
def _pad1_hw(a):
    """Zero-pad an (H, W, C) VMEM tile by 1 on each spatial side."""
    h, w, c = a.shape
    zc = jnp.zeros((h, 1, c), a.dtype)
    a = jnp.concatenate([zc, a, zc], axis=1)
    zr = jnp.zeros((1, w + 2, c), a.dtype)
    return jnp.concatenate([zr, a, zr], axis=0)


def _dsc_compute(a, w_ref, b_ref):
    """Fused dsc: depthwise3x3 + pointwise1x1 + BN + ReLU (stride 1).

    a     : (H, W, Cin) float32 activation tile (VMEM value)
    w_ref : (9, Cin, Cout) bf16 folded weights  W[k,c,o] = wd[k,c]*wp[c,o]*bn_scale[o]
    b_ref : (1, Cout) f32 folded bias (conv biases + BN shift)
    returns (H*W, Cout) float32 (post-ReLU)
    """
    h, w, _ = a.shape
    cout = w_ref.shape[-1]
    ap = _pad1_hw(a)                      # (H+2, W+2, Cin) f32
    wk = w_ref[...]                       # (9, Cin, Cout) bf16
    acc = jnp.zeros((h * w, cout), jnp.float32)
    k = 0
    for kh in range(3):                   # 9 accumulated MXU matmuls (folded depthwise)
        for kw in range(3):
            tap = ap[kh:kh + h, kw:kw + w, :].reshape(h * w, -1).astype(jnp.bfloat16)
            acc = acc + jnp.dot(tap, wk[k], preferred_element_type=jnp.float32)
            k += 1
    return jnp.maximum(acc + b_ref[...], 0.0)


def _block_kernel(has_sc, x_ref, w1_ref, b1_ref, w2_ref, b2_ref, w3_ref, b3_ref,
                  *rest):
    """Whole residual block for one batch element, entirely in VMEM.

    x_ref : (1, H, W, Cin) bf16
    w*_ref: (9, C, C') bf16 folded dsc weights,  b*_ref: (1, C') f32 folded bias
    rest  : [ws_ref (Cin, C2) bf16, bs_ref (1, C2) f32,]  out_ref (1, H, W, C2) f32
    """
    if has_sc:
        ws_ref, bs_ref, out_ref = rest
    else:
        (out_ref,) = rest

    x = x_ref[0].astype(jnp.float32)                      # (H, W, Cin)
    h, w, _ = x.shape

    a1 = _dsc_compute(x, w1_ref, b1_ref)                  # (H*W, C0)
    a2 = _dsc_compute(a1.reshape(h, w, -1), w2_ref, b2_ref)
    a3 = _dsc_compute(a2.reshape(h, w, -1), w3_ref, b3_ref)

    if has_sc:                                            # fused 1x1 shortcut + BN + ReLU
        xs = x.reshape(h * w, -1).astype(jnp.bfloat16)
        sc = jnp.maximum(
            jnp.dot(xs, ws_ref[...], preferred_element_type=jnp.float32) + bs_ref[...],
            0.0)
    else:                                                 # identity residual (Cin == C2)
        sc = x.reshape(h * w, -1)

    out_ref[0] = (a3 + sc).reshape(h, w, -1).astype(out_ref.dtype)


# ----------------------------------------------------------------------------
# Wrappers
# ----------------------------------------------------------------------------
def _block_pallas(x_nhwc, fold, has_sc):
    n, h, w, cin = x_nhwc.shape
    c0 = fold["w1"].shape[-1]
    c1 = fold["w2"].shape[-1]
    c2 = fold["w3"].shape[-1]

    inputs = [x_nhwc.astype(jnp.bfloat16),
              fold["w1"], fold["b1"], fold["w2"], fold["b2"], fold["w3"], fold["b3"]]
    in_specs = [
        pl.BlockSpec((1, h, w, cin), lambda i: (i, 0, 0, 0)),
        pl.BlockSpec((9, cin, c0), lambda i: (0, 0, 0)),
        pl.BlockSpec((1, c0), lambda i: (0, 0)),
        pl.BlockSpec((9, c0, c1), lambda i: (0, 0, 0)),
        pl.BlockSpec((1, c1), lambda i: (0, 0)),
        pl.BlockSpec((9, c1, c2), lambda i: (0, 0, 0)),
        pl.BlockSpec((1, c2), lambda i: (0, 0)),
    ]
    if has_sc:
        inputs += [fold["ws"], fold["bs"]]
        in_specs += [pl.BlockSpec((cin, c2), lambda i: (0, 0)),
                     pl.BlockSpec((1, c2), lambda i: (0, 0))]

    return pl.pallas_call(
        functools.partial(_block_kernel, has_sc),
        out_shape=jax.ShapeDtypeStruct((n, h, w, c2), jnp.float32),
        grid=(n,),
        in_specs=in_specs,
        out_specs=pl.BlockSpec((1, h, w, c2), lambda i: (i, 0, 0, 0)),
        compiler_params=pltpu.CompilerParams(
            dimension_semantics=("parallel",),
            vmem_limit_bytes=64 * 1024 * 1024),
    )(*inputs)


def block_forward(x_nhwc, blk):
    """One DFANet `block` in NHWC layout: (N, H, W, Cin) -> (N, Ho, Wo, Cout2)."""
    has_sc = blk["fold"]["ws"] is not None
    if not has_sc:
        assert blk["stride"] == 1 and x_nhwc.shape[-1] == blk["fold"]["w3"].shape[-1]
    y = _block_pallas(x_nhwc, blk["fold"], has_sc)
    s = blk["stride"]
    if s != 1:
        # stride-s 3x3(pad 1) / 1x1 conv outputs equal the stride-1 outputs at the
        # kept positions, so subsampling the fused full-res result is exact.
        y = y[:, ::s, ::s, :]
    return y


def block_forward_nchw(x_nchw, blk):
    x = jnp.transpose(x_nchw, (0, 2, 3, 1))
    y = block_forward(x, blk)
    return jnp.transpose(y, (0, 3, 1, 2))


# ----------------------------------------------------------------------------
# Parameter init (mirrors the torch module) + folding into kernel parameters
# ----------------------------------------------------------------------------
def _init_bn(key, c):
    k = jax.random.split(key, 4)
    return dict(
        gamma=1.0 + 0.1 * jax.random.normal(k[0], (c,), jnp.float32),
        beta=0.1 * jax.random.normal(k[1], (c,), jnp.float32),
        mean=0.1 * jax.random.normal(k[2], (c,), jnp.float32),
        var=0.5 + 0.5 * jnp.abs(jax.random.normal(k[3], (c,), jnp.float32)),
    )


def _init_dsc(key, cin, cout):
    k = jax.random.split(key, 5)
    return dict(
        wd=0.2 * jax.random.normal(k[0], (9, cin), jnp.float32),          # depthwise 3x3
        bd=0.1 * jax.random.normal(k[1], (cin,), jnp.float32),
        wp=jax.random.normal(k[2], (cin, cout), jnp.float32) / float(np.sqrt(cin)),
        bp=0.1 * jax.random.normal(k[3], (cout,), jnp.float32),
        bn=_init_bn(k[4], cout),
    )


def _init_shortcut(key, cin, cout):
    k = jax.random.split(key, 3)
    return dict(
        w=jax.random.normal(k[0], (cin, cout), jnp.float32) / float(np.sqrt(cin)),
        b=0.1 * jax.random.normal(k[1], (cout,), jnp.float32),
        bn=_init_bn(k[2], cout),
    )


def _bn_affine(bn):
    scale = bn["gamma"] / jnp.sqrt(bn["var"] + _BN_EPS)
    shift = bn["beta"] - bn["mean"] * scale
    return scale, shift


def _fold_dsc(p):
    """Fold depthwise*pointwise*BN into (9,Cin,Cout) bf16 weights + (1,Cout) f32 bias."""
    scale, shift = _bn_affine(p["bn"])
    w = (p["wd"][:, :, None] * p["wp"][None, :, :]) * scale[None, None, :]
    b = scale * (p["bp"] + p["bd"] @ p["wp"]) + shift
    return w.astype(jnp.bfloat16), b.reshape(1, -1).astype(jnp.float32)


def _fold_shortcut(p):
    scale, shift = _bn_affine(p["bn"])
    w = p["w"] * scale[None, :]
    b = scale * p["b"] + shift
    return w.astype(jnp.bfloat16), b.reshape(1, -1).astype(jnp.float32)


def init_block(key, in_channels, out_channels, stride, down_sampling=False):
    k = jax.random.split(key, 4)
    conv1 = _init_dsc(k[0], in_channels, out_channels[0])
    conv2 = _init_dsc(k[1], out_channels[0], out_channels[1])
    conv3 = _init_dsc(k[2], out_channels[1], out_channels[2])
    shortcut = (_init_shortcut(k[3], in_channels, out_channels[2])
                if (down_sampling or in_channels != out_channels[2]) else None)

    w1, b1 = _fold_dsc(conv1)
    w2, b2 = _fold_dsc(conv2)
    w3, b3 = _fold_dsc(conv3)
    fold = dict(w1=w1, b1=b1, w2=w2, b2=b2, w3=w3, b3=b3, ws=None, bs=None)
    if shortcut is not None:
        fold["ws"], fold["bs"] = _fold_shortcut(shortcut)

    return dict(stride=stride, conv1=conv1, conv2=conv2, conv3=conv3,
                shortcut=shortcut, fold=fold)


# ----------------------------------------------------------------------------
# Pure-JAX reference (verifies the Pallas kernels against torch semantics)
# ----------------------------------------------------------------------------
def _dsc_ref(x, p, stride):
    cin = x.shape[-1]
    wfd = p["wd"].reshape(3, 3, cin)[:, :, None, :]                    # HWIO depthwise
    dw = jax.lax.conv_general_dilated(
        x, wfd, (stride, stride), ((1, 1), (1, 1)),
        dimension_numbers=("NHWC", "HWIO", "NHWC"),
        feature_group_count=cin) + p["bd"]
    y = jnp.einsum("nhwc,cd->nhwd", dw, p["wp"],
                   precision=jax.lax.Precision.HIGHEST) + p["bp"]
    scale, shift = _bn_affine(p["bn"])
    return jnp.maximum(y * scale + shift, 0.0)


def _shortcut_ref(x, p, stride):
    xs = x[:, ::stride, ::stride, :]
    y = jnp.einsum("nhwc,cd->nhwd", xs, p["w"],
                   precision=jax.lax.Precision.HIGHEST) + p["b"]
    scale, shift = _bn_affine(p["bn"])
    return jnp.maximum(y * scale + shift, 0.0)


def block_ref(x, blk):
    y = _dsc_ref(x, blk["conv1"], 1)
    y = _dsc_ref(y, blk["conv2"], 1)
    y = _dsc_ref(y, blk["conv3"], blk["stride"])
    sc = (_shortcut_ref(x, blk["shortcut"], blk["stride"])
          if blk["shortcut"] is not None else x)
    return y + sc


# ----------------------------------------------------------------------------
if __name__ == "__main__":
    key = jax.random.PRNGKey(0)
    kx, k1, k2 = jax.random.split(key, 3)

    # NCHW input, consistent with block(in_channels=4, out_channels=[12,12,48], stride=2)
    x = jax.random.normal(kx, (2, 4, 16, 16), jnp.float32)

    blk1 = init_block(k1, 4, [12, 12, 48], stride=2, down_sampling=True)     # proj shortcut
    blk2 = init_block(k2, 48, [12, 12, 48], stride=1, down_sampling=False)   # identity shortcut

    @jax.jit
    def forward(x_nchw):
        h = jnp.transpose(x_nchw, (0, 2, 3, 1))          # NCHW -> NHWC
        h = block_forward(h, blk1)
        h = block_forward(h, blk2)
        return jnp.transpose(h, (0, 3, 1, 2))            # NHWC -> NCHW

    y = jax.block_until_ready(forward(x))
    assert y.shape == (2, 48, 8, 8), y.shape

    def forward_ref(x_nchw):
        h = jnp.transpose(x_nchw, (0, 2, 3, 1))
        h = block_ref(h, blk1)
        h = block_ref(h, blk2)
        return jnp.transpose(h, (0, 3, 1, 2))

    y_ref = jax.block_until_ready(forward_ref(x))
    np.testing.assert_allclose(np.asarray(y), np.asarray(y_ref),
                               rtol=2e-2, atol=2e-2)
    print("KERNEL_OK")
</pallas_src>

<mosaic_0001>
module attributes {stable_mosaic.version = 11 : i64} {
  func.func @_block_kernel(%arg0: i32, %arg1: memref<1x16x16x4xbf16, #tpu.memory_space<vmem>>, %arg2: memref<9x4x12xbf16, #tpu.memory_space<vmem>>, %arg3: memref<1x12xf32, #tpu.memory_space<vmem>>, %arg4: memref<9x12x12xbf16, #tpu.memory_space<vmem>>, %arg5: memref<1x12xf32, #tpu.memory_space<vmem>>, %arg6: memref<9x12x48xbf16, #tpu.memory_space<vmem>>, %arg7: memref<1x48xf32, #tpu.memory_space<vmem>>, %arg8: memref<4x48xbf16, #tpu.memory_space<vmem>>, %arg9: memref<1x48xf32, #tpu.memory_space<vmem>>, %arg10: memref<1x16x16x48xf32, #tpu.memory_space<vmem>>) attributes {dimension_semantics = [#tpu.dimension_semantics<parallel>], iteration_bounds = array<i64: 2>, scalar_prefetch = 0 : i64, scratch_operands = 0 : i64, tpu.core_type = #tpu.core_type<tc>, window_params = [{transform_indices = @transform_0, window_bounds = array<i64: 1, 16, 16, 4>}, {pipeline_mode = #tpu.pipeline_mode<synchronous>, transform_indices = @transform_1, window_bounds = array<i64: 9, 4, 12>}, {pipeline_mode = #tpu.pipeline_mode<synchronous>, transform_indices = @transform_2, window_bounds = array<i64: 1, 12>}, {pipeline_mode = #tpu.pipeline_mode<synchronous>, transform_indices = @transform_3, window_bounds = array<i64: 9, 12, 12>}, {pipeline_mode = #tpu.pipeline_mode<synchronous>, transform_indices = @transform_4, window_bounds = array<i64: 1, 12>}, {pipeline_mode = #tpu.pipeline_mode<synchronous>, transform_indices = @transform_5, window_bounds = array<i64: 9, 12, 48>}, {pipeline_mode = #tpu.pipeline_mode<synchronous>, transform_indices = @transform_6, window_bounds = array<i64: 1, 48>}, {pipeline_mode = #tpu.pipeline_mode<synchronous>, transform_indices = @transform_7, window_bounds = array<i64: 4, 48>}, {pipeline_mode = #tpu.pipeline_mode<synchronous>, transform_indices = @transform_8, window_bounds = array<i64: 1, 48>}, {transform_indices = @transform_9, window_bounds = array<i64: 1, 16, 16, 48>}]} {
    %c0 = arith.constant 0 : index
    %c0_0 = arith.constant 0 : index
    %c0_1 = arith.constant 0 : index
    %c0_2 = arith.constant 0 : index
    %0 = vector.load %arg1[%c0, %c0_0, %c0_1, %c0_2] : memref<1x16x16x4xbf16, #tpu.memory_space<vmem>>, vector<1x16x16x4xbf16>
    %1 = vector.shape_cast %0 : vector<1x16x16x4xbf16> to vector<16x16x4xbf16>
    %2 = arith.extf %1 : vector<16x16x4xbf16> to vector<16x16x4xf32>
    %cst = arith.constant 0.000000e+00 : f32
    %3 = vector.broadcast %cst : f32 to vector<16x1x4xf32>
    %4 = tpu.concatenate %3, %2, %3 in 1 : vector<16x1x4xf32>, vector<16x16x4xf32>, vector<16x1x4xf32> -> vector<16x18x4xf32>
    %cst_3 = arith.constant 0.000000e+00 : f32
    %5 = vector.broadcast %cst_3 : f32 to vector<1x18x4xf32>
    %6 = tpu.concatenate %5, %4, %5 in 0 : vector<1x18x4xf32>, vector<16x18x4xf32>, vector<1x18x4xf32> -> vector<18x18x4xf32>
    %c0_4 = arith.constant 0 : index
    %c0_5 = arith.constant 0 : index
    %c0_6 = arith.constant 0 : index
    %7 = vector.load %arg2[%c0_4, %c0_5, %c0_6] : memref<9x4x12xbf16, #tpu.memory_space<vmem>>, vector<9x4x12xbf16>
    %cst_7 = arith.constant 0.000000e+00 : f32
    %8 = vector.broadcast %cst_7 : f32 to vector<256x12xf32>
    %9 = vector.extract_strided_slice %6 {offsets = [0, 0, 0], sizes = [16, 16, 4], strides = [1, 1, 1]} : vector<18x18x4xf32> to vector<16x16x4xf32>
    %10 = vector.shape_cast %9 : vector<16x16x4xf32> to vector<256x4xf32>
    %11 = arith.truncf %10 : vector<256x4xf32> to vector<256x4xbf16>
    %12 = vector.extract_strided_slice %7 {offsets = [0, 0, 0], sizes = [1, 4, 12], strides = [1, 1, 1]} : vector<9x4x12xbf16> to vector<1x4x12xbf16>
    %13 = vector.shape_cast %12 : vector<1x4x12xbf16> to vector<4x12xbf16>
    %cst_8 = arith.constant dense<0.000000e+00> : vector<256x12xf32>
    %14 = tpu.matmul %11, %13, %cst_8 {dimension_numbers = #tpu.dot_dimension_numbers<[1], [0], [0], [1], [0, 0, 1, 1], [], []>} : vector<256x4xbf16>, vector<4x12xbf16>, vector<256x12xf32> -> vector<256x12xf32>
    %15 = arith.addf %8, %14 : vector<256x12xf32>
    %16 = vector.extract_strided_slice %6 {offsets = [0, 1, 0], sizes = [16, 16, 4], strides = [1, 1, 1]} : vector<18x18x4xf32> to vector<16x16x4xf32>
    %17 = vector.shape_cast %16 : vector<16x16x4xf32> to vector<256x4xf32>
    %18 = arith.truncf %17 : vector<256x4xf32> to vector<256x4xbf16>
    %19 = vector.extract_strided_slice %7 {offsets = [1, 0, 0], sizes = [1, 4, 12], strides = [1, 1, 1]} : vector<9x4x12xbf16> to vector<1x4x12xbf16>
    %20 = vector.shape_cast %19 : vector<1x4x12xbf16> to vector<4x12xbf16>
    %cst_9 = arith.constant dense<0.000000e+00> : vector<256x12xf32>
    %21 = tpu.matmul %18, %20, %cst_9 {dimension_numbers = #tpu.dot_dimension_numbers<[1], [0], [0], [1], [0, 0, 1, 1], [], []>} : vector<256x4xbf16>, vector<4x12xbf16>, vector<256x12xf32> -> vector<256x12xf32>
    %22 = arith.addf %15, %21 : vector<256x12xf32>
    %23 = vector.extract_strided_slice %6 {offsets = [0, 2, 0], sizes = [16, 16, 4], strides = [1, 1, 1]} : vector<18x18x4xf32> to vector<16x16x4xf32>
    %24 = vector.shape_cast %23 : vector<16x16x4xf32> to vector<256x4xf32>
    %25 = arith.truncf %24 : vector<256x4xf32> to vector<256x4xbf16>
    %26 = vector.extract_strided_slice %7 {offsets = [2, 0, 0], sizes = [1, 4, 12], strides = [1, 1, 1]} : vector<9x4x12xbf16> to vector<1x4x12xbf16>
    %27 = vector.shape_cast %26 : vector<1x4x12xbf16> to vector<4x12xbf16>
    %cst_10 = arith.constant dense<0.000000e+00> : vector<256x12xf32>
    %28 = tpu.matmul %25, %27, %cst_10 {dimension_numbers = #tpu.dot_dimension_numbers<[1], [0], [0], [1], [0, 0, 1, 1], [], []>} : vector<256x4xbf16>, vector<4x12xbf16>, vector<256x12xf32> -> vector<256x12xf32>
    %29 = arith.addf %22, %28 : vector<256x12xf32>
    %30 = vector.extract_strided_slice %6 {offsets = [1, 0, 0], sizes = [16, 16, 4], strides = [1, 1, 1]} : vector<18x18x4xf32> to vector<16x16x4xf32>
    %31 = vector.shape_cast %30 : vector<16x16x4xf32> to vector<256x4xf32>
    %32 = arith.truncf %31 : vector<256x4xf32> to vector<256x4xbf16>
    %33 = vector.extract_strided_slice %7 {offsets = [3, 0, 0], sizes = [1, 4, 12], strides = [1, 1, 1]} : vector<9x4x12xbf16> to vector<1x4x12xbf16>
    %34 = vector.shape_cast %33 : vector<1x4x12xbf16> to vector<4x12xbf16>
    %cst_11 = arith.constant dense<0.000000e+00> : vector<256x12xf32>
    %35 = tpu.matmul %32, %34, %cst_11 {dimension_numbers = #tpu.dot_dimension_numbers<[1], [0], [0], [1], [0, 0, 1, 1], [], []>} : vector<256x4xbf16>, vector<4x12xbf16>, vector<256x12xf32> -> vector<256x12xf32>
    %36 = arith.addf %29, %35 : vector<256x12xf32>
    %37 = vector.extract_strided_slice %6 {offsets = [1, 1, 0], sizes = [16, 16, 4], strides = [1, 1, 1]} : vector<18x18x4xf32> to vector<16x16x4xf32>
    %38 = vector.shape_cast %37 : vector<16x16x4xf32> to vector<256x4xf32>
    %39 = arith.truncf %38 : vector<256x4xf32> to vector<256x4xbf16>
    %40 = vector.extract_strided_slice %7 {offsets = [4, 0, 0], sizes = [1, 4, 12], strides = [1, 1, 1]} : vector<9x4x12xbf16> to vector<1x4x12xbf16>
    %41 = vector.shape_cast %40 : vector<1x4x12xbf16> to vector<4x12xbf16>
    %cst_12 = arith.constant dense<0.000000e+00> : vector<256x12xf32>
    %42 = tpu.matmul %39, %41, %cst_12 {dimension_numbers = #tpu.dot_dimension_numbers<[1], [0], [0], [1], [0, 0, 1, 1], [], []>} : vector<256x4xbf16>, vector<4x12xbf16>, vector<256x12xf32> -> vector<256x12xf32>
    %43 = arith.addf %36, %42 : vector<256x12xf32>
    %44 = vector.extract_strided_slice %6 {offsets = [1, 2, 0], sizes = [16, 16, 4], strides = [1, 1, 1]} : vector<18x18x4xf32> to vector<16x16x4xf32>
    %45 = vector.shape_cast %44 : vector<16x16x4xf32> to vector<256x4xf32>
    %46 = arith.truncf %45 : vector<256x4xf32> to vector<256x4xbf16>
    %47 = vector.extract_strided_slice %7 {offsets = [5, 0, 0], sizes = [1, 4, 12], strides = [1, 1, 1]} : vector<9x4x12xbf16> to vector<1x4x12xbf16>
    %48 = vector.shape_cast %47 : vector<1x4x12xbf16> to vector<4x12xbf16>
    %cst_13 = arith.constant dense<0.000000e+00> : vector<256x12xf32>
    %49 = tpu.matmul %46, %48, %cst_13 {dimension_numbers = #tpu.dot_dimension_numbers<[1], [0], [0], [1], [0, 0, 1, 1], [], []>} : vector<256x4xbf16>, vector<4x12xbf16>, vector<256x12xf32> -> vector<256x12xf32>
    %50 = arith.addf %43, %49 : vector<256x12xf32>
    %51 = vector.extract_strided_slice %6 {offsets = [2, 0, 0], sizes = [16, 16, 4], strides = [1, 1, 1]} : vector<18x18x4xf32> to vector<16x16x4xf32>
    %52 = vector.shape_cast %51 : vector<16x16x4xf32> to vector<256x4xf32>
    %53 = arith.truncf %52 : vector<256x4xf32> to vector<256x4xbf16>
    %54 = vector.extract_strided_slice %7 {offsets = [6, 0, 0], sizes = [1, 4, 12], strides = [1, 1, 1]} : vector<9x4x12xbf16> to vector<1x4x12xbf16>
    %55 = vector.shape_cast %54 : vector<1x4x12xbf16> to vector<4x12xbf16>
    %cst_14 = arith.constant dense<0.000000e+00> : vector<256x12xf32>
    %56 = tpu.matmul %53, %55, %cst_14 {dimension_numbers = #tpu.dot_dimension_numbers<[1], [0], [0], [1], [0, 0, 1, 1], [], []>} : vector<256x4xbf16>, vector<4x12xbf16>, vector<256x12xf32> -> vector<256x12xf32>
    %57 = arith.addf %50, %56 : vector<256x12xf32>
    %58 = vector.extract_strided_slice %6 {offsets = [2, 1, 0], sizes = [16, 16, 4], strides = [1, 1, 1]} : vector<18x18x4xf32> to vector<16x16x4xf32>
    %59 = vector.shape_cast %58 : vector<16x16x4xf32> to vector<256x4xf32>
    %60 = arith.truncf %59 : vector<256x4xf32> to vector<256x4xbf16>
    %61 = vector.extract_strided_slice %7 {offsets = [7, 0, 0], sizes = [1, 4, 12], strides = [1, 1, 1]} : vector<9x4x12xbf16> to vector<1x4x12xbf16>
    %62 = vector.shape_cast %61 : vector<1x4x12xbf16> to vector<4x12xbf16>
    %cst_15 = arith.constant dense<0.000000e+00> : vector<256x12xf32>
    %63 = tpu.matmul %60, %62, %cst_15 {dimension_numbers = #tpu.dot_dimension_numbers<[1], [0], [0], [1], [0, 0, 1, 1], [], []>} : vector<256x4xbf16>, vector<4x12xbf16>, vector<256x12xf32> -> vector<256x12xf32>
    %64 = arith.addf %57, %63 : vector<256x12xf32>
    %65 = vector.extract_strided_slice %6 {offsets = [2, 2, 0], sizes = [16, 16, 4], strides = [1, 1, 1]} : vector<18x18x4xf32> to vector<16x16x4xf32>
    %66 = vector.shape_cast %65 : vector<16x16x4xf32> to vector<256x4xf32>
    %67 = arith.truncf %66 : vector<256x4xf32> to vector<256x4xbf16>
    %68 = vector.extract_strided_slice %7 {offsets = [8, 0, 0], sizes = [1, 4, 12], strides = [1, 1, 1]} : vector<9x4x12xbf16> to vector<1x4x12xbf16>
    %69 = vector.shape_cast %68 : vector<1x4x12xbf16> to vector<4x12xbf16>
    %cst_16 = arith.constant dense<0.000000e+00> : vector<256x12xf32>
    %70 = tpu.matmul %67, %69, %cst_16 {dimension_numbers = #tpu.dot_dimension_numbers<[1], [0], [0], [1], [0, 0, 1, 1], [], []>} : vector<256x4xbf16>, vector<4x12xbf16>, vector<256x12xf32> -> vector<256x12xf32>
    %71 = arith.addf %64, %70 : vector<256x12xf32>
    %c0_17 = arith.constant 0 : index
    %c0_18 = arith.constant 0 : index
    %72 = vector.load %arg3[%c0_17, %c0_18] : memref<1x12xf32, #tpu.memory_space<vmem>>, vector<1x12xf32>
    %73 = vector.broadcast %72 : vector<1x12xf32> to vector<256x12xf32>
    %74 = arith.addf %71, %73 : vector<256x12xf32>
    %cst_19 = arith.constant 0.000000e+00 : f32
    %75 = vector.broadcast %cst_19 : f32 to vector<256x12xf32>
    %76 = arith.maximumf %74, %75 : vector<256x12xf32>
    %77 = vector.shape_cast %76 : vector<256x12xf32> to vector<16x16x12xf32>
    %cst_20 = arith.constant 0.000000e+00 : f32
    %78 = vector.broadcast %cst_20 : f32 to vector<16x1x12xf32>
    %79 = tpu.concatenate %78, %77, %78 in 1 : vector<16x1x12xf32>, vector<16x16x12xf32>, vector<16x1x12xf32> -> vector<16x18x12xf32>
    %cst_21 = arith.constant 0.000000e+00 : f32
    %80 = vector.broadcast %cst_21 : f32 to vector<1x18x12xf32>
    %81 = tpu.concatenate %80, %79, %80 in 0 : vector<1x18x12xf32>, vector<16x18x12xf32>, vector<1x18x12xf32> -> vector<18x18x12xf32>
    %c0_22 = arith.constant 0 : index
    %c0_23 = arith.constant 0 : index
    %c0_24 = arith.constant 0 : index
    %82 = vector.load %arg4[%c0_22, %c0_23, %c0_24] : memref<9x12x12xbf16, #tpu.memory_space<vmem>>, vector<9x12x12xbf16>
    %cst_25 = arith.constant 0.000000e+00 : f32
    %83 = vector.broadcast %cst_25 : f32 to vector<256x12xf32>
    %84 = vector.extract_strided_slice %81 {offsets = [0, 0, 0], sizes = [16, 16, 12], strides = [1, 1, 1]} : vector<18x18x12xf32> to vector<16x16x12xf32>
    %85 = vector.shape_cast %84 : vector<16x16x12xf32> to vector<256x12xf32>
    %86 = arith.truncf %85 : vector<256x12xf32> to vector<256x12xbf16>
    %87 = vector.extract_strided_slice %82 {offsets = [0, 0, 0], sizes = [1, 12, 12], strides = [1, 1, 1]} : vector<9x12x12xbf16> to vector<1x12x12xbf16>
    %88 = vector.shape_cast %87 : vector<1x12x12xbf16> to vector<12x12xbf16>
    %cst_26 = arith.constant dense<0.000000e+00> : vector<256x12xf32>
    %89 = tpu.matmul %86, %88, %cst_26 {dimension_numbers = #tpu.dot_dimension_numbers<[1], [0], [0], [1], [0, 0, 1, 1], [], []>} : vector<256x12xbf16>, vector<12x12xbf16>, vector<256x12xf32> -> vector<256x12xf32>
    %90 = arith.addf %83, %89 : vector<256x12xf32>
    %91 = vector.extract_strided_slice %81 {offsets = [0, 1, 0], sizes = [16, 16, 12], strides = [1, 1, 1]} : vector<18x18x12xf32> to vector<16x16x12xf32>
    %92 = vector.shape_cast %91 : vector<16x16x12xf32> to vector<256x12xf32>
    %93 = arith.truncf %92 : vector<256x12xf32> to vector<256x12xbf16>
    %94 = vector.extract_strided_slice %82 {offsets = [1, 0, 0], sizes = [1, 12, 12], strides = [1, 1, 1]} : vector<9x12x12xbf16> to vector<1x12x12xbf16>
    %95 = vector.shape_cast %94 : vector<1x12x12xbf16> to vector<12x12xbf16>
    %cst_27 = arith.constant dense<0.000000e+00> : vector<256x12xf32>
    %96 = tpu.matmul %93, %95, %cst_27 {dimension_numbers = #tpu.dot_dimension_numbers<[1], [0], [0], [1], [0, 0, 1, 1], [], []>} : vector<256x12xbf16>, vector<12x12xbf16>, vector<256x12xf32> -> vector<256x12xf32>
    %97 = arith.addf %90, %96 : vector<256x12xf32>
    %98 = vector.extract_strided_slice %81 {offsets = [0, 2, 0], sizes = [16, 16, 12], strides = [1, 1, 1]} : vector<18x18x12xf32> to vector<16x16x12xf32>
    %99 = vector.shape_cast %98 : vector<16x16x12xf32> to vector<256x12xf32>
    %100 = arith.truncf %99 : vector<256x12xf32> to vector<256x12xbf16>
    %101 = vector.extract_strided_slice %82 {offsets = [2, 0, 0], sizes = [1, 12, 12], strides = [1, 1, 1]} : vector<9x12x12xbf16> to vector<1x12x12xbf16>
    %102 = vector.shape_cast %101 : vector<1x12x12xbf16> to vector<12x12xbf16>
    %cst_28 = arith.constant dense<0.000000e+00> : vector<256x12xf32>
    %103 = tpu.matmul %100, %102, %cst_28 {dimension_numbers = #tpu.dot_dimension_numbers<[1], [0], [0], [1], [0, 0, 1, 1], [], []>} : vector<256x12xbf16>, vector<12x12xbf16>, vector<256x12xf32> -> vector<256x12xf32>
    %104 = arith.addf %97, %103 : vector<256x12xf32>
    %105 = vector.extract_strided_slice %81 {offsets = [1, 0, 0], sizes = [16, 16, 12], strides = [1, 1, 1]} : vector<18x18x12xf32> to vector<16x16x12xf32>
    %106 = vector.shape_cast %105 : vector<16x16x12xf32> to vector<256x12xf32>
    %107 = arith.truncf %106 : vector<256x12xf32> to vector<256x12xbf16>
    %108 = vector.extract_strided_slice %82 {offsets = [3, 0, 0], sizes = [1, 12, 12], strides = [1, 1, 1]} : vector<9x12x12xbf16> to vector<1x12x12xbf16>
    %109 = vector.shape_cast %108 : vector<1x12x12xbf16> to vector<12x12xbf16>
    %cst_29 = arith.constant dense<0.000000e+00> : vector<256x12xf32>
    %110 = tpu.matmul %107, %109, %cst_29 {dimension_numbers = #tpu.dot_dimension_numbers<[1], [0], [0], [1], [0, 0, 1, 1], [], []>} : vector<256x12xbf16>, vector<12x12xbf16>, vector<256x12xf32> -> vector<256x12xf32>
    %111 = arith.addf %104, %110 : vector<256x12xf32>
    %112 = vector.extract_strided_slice %81 {offsets = [1, 1, 0], sizes = [16, 16, 12], strides = [1, 1, 1]} : vector<18x18x12xf32> to vector<16x16x12xf32>
    %113 = vector.shape_cast %112 : vector<16x16x12xf32> to vector<256x12xf32>
    %114 = arith.truncf %113 : vector<256x12xf32> to vector<256x12xbf16>
    %115 = vector.extract_strided_slice %82 {offsets = [4, 0, 0], sizes = [1, 12, 12], strides = [1, 1, 1]} : vector<9x12x12xbf16> to vector<1x12x12xbf16>
    %116 = vector.shape_cast %115 : vector<1x12x12xbf16> to vector<12x12xbf16>
    %cst_30 = arith.constant dense<0.000000e+00> : vector<256x12xf32>
    %117 = tpu.matmul %114, %116, %cst_30 {dimension_numbers = #tpu.dot_dimension_numbers<[1], [0], [0], [1], [0, 0, 1, 1], [], []>} : vector<256x12xbf16>, vector<12x12xbf16>, vector<256x12xf32> -> vector<256x12xf32>
    %118 = arith.addf %111, %117 : vector<256x12xf32>
    %119 = vector.extract_strided_slice %81 {offsets = [1, 2, 0], sizes = [16, 16, 12], strides = [1, 1, 1]} : vector<18x18x12xf32> to vector<16x16x12xf32>
    %120 = vector.shape_cast %119 : vector<16x16x12xf32> to vector<256x12xf32>
    %121 = arith.truncf %120 : vector<256x12xf32> to vector<256x12xbf16>
    %122 = vector.extract_strided_slice %82 {offsets = [5, 0, 0], sizes = [1, 12, 12], strides = [1, 1, 1]} : vector<9x12x12xbf16> to vector<1x12x12xbf16>
    %123 = vector.shape_cast %122 : vector<1x12x12xbf16> to vector<12x12xbf16>
    %cst_31 = arith.constant dense<0.000000e+00> : vector<256x12xf32>
    %124 = tpu.matmul %121, %123, %cst_31 {dimension_numbers = #tpu.dot_dimension_numbers<[1], [0], [0], [1], [0, 0, 1, 1], [], []>} : vector<256x12xbf16>, vector<12x12xbf16>, vector<256x12xf32> -> vector<256x12xf32>
    %125 = arith.addf %118, %124 : vector<256x12xf32>
    %126 = vector.extract_strided_slice %81 {offsets = [2, 0, 0], sizes = [16, 16, 12], strides = [1, 1, 1]} : vector<18x18x12xf32> to vector<16x16x12xf32>
    %127 = vector.shape_cast %126 : vector<16x16x12xf32> to vector<256x12xf32>
    %128 = arith.truncf %127 : vector<256x12xf32> to vector<256x12xbf16>
    %129 = vector.extract_strided_slice %82 {offsets = [6, 0, 0], sizes = [1, 12, 12], strides = [1, 1, 1]} : vector<9x12x12xbf16> to vector<1x12x12xbf16>
    %130 = vector.shape_cast %129 : vector<1x12x12xbf16> to vector<12x12xbf16>
    %cst_32 = arith.constant dense<0.000000e+00> : vector<256x12xf32>
    %131 = tpu.matmul %128, %130, %cst_32 {dimension_numbers = #tpu.dot_dimension_numbers<[1], [0], [0], [1], [0, 0, 1, 1], [], []>} : vector<256x12xbf16>, vector<12x12xbf16>, vector<256x12xf32> -> vector<256x12xf32>
    %132 = arith.addf %125, %131 : vector<256x12xf32>
    %133 = vector.extract_strided_slice %81 {offsets = [2, 1, 0], sizes = [16, 16, 12], strides = [1, 1, 1]} : vector<18x18x12xf32> to vector<16x16x12xf32>
    %134 = vector.shape_cast %133 : vector<16x16x12xf32> to vector<256x12xf32>
    %135 = arith.truncf %134 : vector<256x12xf32> to vector<256x12xbf16>
    %136 = vector.extract_strided_slice %82 {offsets = [7, 0, 0], sizes = [1, 12, 12], strides = [1, 1, 1]} : vector<9x12x12xbf16> to vector<1x12x12xbf16>
    %137 = vector.shape_cast %136 : vector<1x12x12xbf16> to vector<12x12xbf16>
    %cst_33 = arith.constant dense<0.000000e+00> : vector<256x12xf32>
    %138 = tpu.matmul %135, %137, %cst_33 {dimension_numbers = #tpu.dot_dimension_numbers<[1], [0], [0], [1], [0, 0, 1, 1], [], []>} : vector<256x12xbf16>, vector<12x12xbf16>, vector<256x12xf32> -> vector<256x12xf32>
    %139 = arith.addf %132, %138 : vector<256x12xf32>
    %140 = vector.extract_strided_slice %81 {offsets = [2, 2, 0], sizes = [16, 16, 12], strides = [1, 1, 1]} : vector<18x18x12xf32> to vector<16x16x12xf32>
    %141 = vector.shape_cast %140 : vector<16x16x12xf32> to vector<256x12xf32>
    %142 = arith.truncf %141 : vector<256x12xf32> to vector<256x12xbf16>
    %143 = vector.extract_strided_slice %82 {offsets = [8, 0, 0], sizes = [1, 12, 12], strides = [1, 1, 1]} : vector<9x12x12xbf16> to vector<1x12x12xbf16>
    %144 = vector.shape_cast %143 : vector<1x12x12xbf16> to vector<12x12xbf16>
    %cst_34 = arith.constant dense<0.000000e+00> : vector<256x12xf32>
    %145 = tpu.matmul %142, %144, %cst_34 {dimension_numbers = #tpu.dot_dimension_numbers<[1], [0], [0], [1], [0, 0, 1, 1], [], []>} : vector<256x12xbf16>, vector<12x12xbf16>, vector<256x12xf32> -> vector<256x12xf32>
    %146 = arith.addf %139, %145 : vector<256x12xf32>
    %c0_35 = arith.constant 0 : index
    %c0_36 = arith.constant 0 : index
    %147 = vector.load %arg5[%c0_35, %c0_36] : memref<1x12xf32, #tpu.memory_space<vmem>>, vector<1x12xf32>
    %148 = vector.broadcast %147 : vector<1x12xf32> to vector<256x12xf32>
    %149 = arith.addf %146, %148 : vector<256x12xf32>
    %cst_37 = arith.constant 0.000000e+00 : f32
    %150 = vector.broadcast %cst_37 : f32 to vector<256x12xf32>
    %151 = arith.maximumf %149, %150 : vector<256x12xf32>
    %152 = vector.shape_cast %151 : vector<256x12xf32> to vector<16x16x12xf32>
    %cst_38 = arith.constant 0.000000e+00 : f32
    %153 = vector.broadcast %cst_38 : f32 to vector<16x1x12xf32>
    %154 = tpu.concatenate %153, %152, %153 in 1 : vector<16x1x12xf32>, vector<16x16x12xf32>, vector<16x1x12xf32> -> vector<16x18x12xf32>
    %cst_39 = arith.constant 0.000000e+00 : f32
    %155 = vector.broadcast %cst_39 : f32 to vector<1x18x12xf32>
    %156 = tpu.concatenate %155, %154, %155 in 0 : vector<1x18x12xf32>, vector<16x18x12xf32>, vector<1x18x12xf32> -> vector<18x18x12xf32>
    %c0_40 = arith.constant 0 : index
    %c0_41 = arith.constant 0 : index
    %c0_42 = arith.constant 0 : index
    %157 = vector.load %arg6[%c0_40, %c0_41, %c0_42] : memref<9x12x48xbf16, #tpu.memory_space<vmem>>, vector<9x12x48xbf16>
    %cst_43 = arith.constant 0.000000e+00 : f32
    %158 = vector.broadcast %cst_43 : f32 to vector<256x48xf32>
    %159 = vector.extract_strided_slice %156 {offsets = [0, 0, 0], sizes = [16, 16, 12], strides = [1, 1, 1]} : vector<18x18x12xf32> to vector<16x16x12xf32>
    %160 = vector.shape_cast %159 : vector<16x16x12xf32> to vector<256x12xf32>
    %161 = arith.truncf %160 : vector<256x12xf32> to vector<256x12xbf16>
    %162 = vector.extract_strided_slice %157 {offsets = [0, 0, 0], sizes = [1, 12, 48], strides = [1, 1, 1]} : vector<9x12x48xbf16> to vector<1x12x48xbf16>
    %163 = vector.shape_cast %162 : vector<1x12x48xbf16> to vector<12x48xbf16>
    %cst_44 = arith.constant dense<0.000000e+00> : vector<256x48xf32>
    %164 = tpu.matmul %161, %163, %cst_44 {dimension_numbers = #tpu.dot_dimension_numbers<[1], [0], [0], [1], [0, 0, 1, 1], [], []>} : vector<256x12xbf16>, vector<12x48xbf16>, vector<256x48xf32> -> vector<256x48xf32>
    %165 = arith.addf %158, %164 : vector<256x48xf32>
    %166 = vector.extract_strided_slice %156 {offsets = [0, 1, 0], sizes = [16, 16, 12], strides = [1, 1, 1]} : vector<18x18x12xf32> to vector<16x16x12xf32>
    %167 = vector.shape_cast %166 : vector<16x16x12xf32> to vector<256x12xf32>
    %168 = arith.truncf %167 : vector<256x12xf32> to vector<256x12xbf16>
    %169 = vector.extract_strided_slice %157 {offsets = [1, 0, 0], sizes = [1, 12, 48], strides = [1, 1, 1]} : vector<9x12x48xbf16> to vector<1x12x48xbf16>
    %170 = vector.shape_cast %169 : vector<1x12x48xbf16> to vector<12x48xbf16>
    %cst_45 = arith.constant dense<0.000000e+00> : vector<256x48xf32>
    %171 = tpu.matmul %168, %170, %cst_45 {dimension_numbers = #tpu.dot_dimension_numbers<[1], [0], [0], [1], [0, 0, 1, 1], [], []>} : vector<256x12xbf16>, vector<12x48xbf16>, vector<256x48xf32> -> vector<256x48xf32>
    %172 = arith.addf %165, %171 : vector<256x48xf32>
    %173 = vector.extract_strided_slice %156 {offsets = [0, 2, 0], sizes = [16, 16, 12], strides = [1, 1, 1]} : vector<18x18x12xf32> to vector<16x16x12xf32>
    %174 = vector.shape_cast %173 : vector<16x16x12xf32> to vector<256x12xf32>
    %175 = arith.truncf %174 : vector<256x12xf32> to vector<256x12xbf16>
    %176 = vector.extract_strided_slice %157 {offsets = [2, 0, 0], sizes = [1, 12, 48], strides = [1, 1, 1]} : vector<9x12x48xbf16> to vector<1x12x48xbf16>
    %177 = vector.shape_cast %176 : vector<1x12x48xbf16> to vector<12x48xbf16>
    %cst_46 = arith.constant dense<0.000000e+00> : vector<256x48xf32>
    %178 = tpu.matmul %175, %177, %cst_46 {dimension_numbers = #tpu.dot_dimension_numbers<[1], [0], [0], [1], [0, 0, 1, 1], [], []>} : vector<256x12xbf16>, vector<12x48xbf16>, vector<256x48xf32> -> vector<256x48xf32>
    %179 = arith.addf %172, %178 : vector<256x48xf32>
    %180 = vector.extract_strided_slice %156 {offsets = [1, 0, 0], sizes = [16, 16, 12], strides = [1, 1, 1]} : vector<18x18x12xf32> to vector<16x16x12xf32>
    %181 = vector.shape_cast %180 : vector<16x16x12xf32> to vector<256x12xf32>
    %182 = arith.truncf %181 : vector<256x12xf32> to vector<256x12xbf16>
    %183 = vector.extract_strided_slice %157 {offsets = [3, 0, 0], sizes = [1, 12, 48], strides = [1, 1, 1]} : vector<9x12x48xbf16> to vector<1x12x48xbf16>
    %184 = vector.shape_cast %183 : vector<1x12x48xbf16> to vector<12x48xbf16>
    %cst_47 = arith.constant dense<0.000000e+00> : vector<256x48xf32>
    %185 = tpu.matmul %182, %184, %cst_47 {dimension_numbers = #tpu.dot_dimension_numbers<[1], [0], [0], [1], [0, 0, 1, 1], [], []>} : vector<256x12xbf16>, vector<12x48xbf16>, vector<256x48xf32> -> vector<256x48xf32>
    %186 = arith.addf %179, %185 : vector<256x48xf32>
    %187 = vector.extract_strided_slice %156 {offsets = [1, 1, 0], sizes = [16, 16, 12], strides = [1, 1, 1]} : vector<18x18x12xf32> to vector<16x16x12xf32>
    %188 = vector.shape_cast %187 : vector<16x16x12xf32> to vector<256x12xf32>
    %189 = arith.truncf %188 : vector<256x12xf32> to vector<256x12xbf16>
    %190 = vector.extract_strided_slice %157 {offsets = [4, 0, 0], sizes = [1, 12, 48], strides = [1, 1, 1]} : vector<9x12x48xbf16> to vector<1x12x48xbf16>
    %191 = vector.shape_cast %190 : vector<1x12x48xbf16> to vector<12x48xbf16>
    %cst_48 = arith.constant dense<0.000000e+00> : vector<256x48xf32>
    %192 = tpu.matmul %189, %191, %cst_48 {dimension_numbers = #tpu.dot_dimension_numbers<[1], [0], [0], [1], [0, 0, 1, 1], [], []>} : vector<256x12xbf16>, vector<12x48xbf16>, vector<256x48xf32> -> vector<256x48xf32>
    %193 = arith.addf %186, %192 : vector<256x48xf32>
    %194 = vector.extract_strided_slice %156 {offsets = [1, 2, 0], sizes = [16, 16, 12], strides = [1, 1, 1]} : vector<18x18x12xf32> to vector<16x16x12xf32>
    %195 = vector.shape_cast %194 : vector<16x16x12xf32> to vector<256x12xf32>
    %196 = arith.truncf %195 : vector<256x12xf32> to vector<256x12xbf16>
    %197 = vector.extract_strided_slice %157 {offsets = [5, 0, 0], sizes = [1, 12, 48], strides = [1, 1, 1]} : vector<9x12x48xbf16> to vector<1x12x48xbf16>
    %198 = vector.shape_cast %197 : vector<1x12x48xbf16> to vector<12x48xbf16>
    %cst_49 = arith.constant dense<0.000000e+00> : vector<256x48xf32>
    %199 = tpu.matmul %196, %198, %cst_49 {dimension_numbers = #tpu.dot_dimension_numbers<[1], [0], [0], [1], [0, 0, 1, 1], [], []>} : vector<256x12xbf16>, vector<12x48xbf16>, vector<256x48xf32> -> vector<256x48xf32>
    %200 = arith.addf %193, %199 : vector<256x48xf32>
    %201 = vector.extract_strided_slice %156 {offsets = [2, 0, 0], sizes = [16, 16, 12], strides = [1, 1, 1]} : vector<18x18x12xf32> to vector<16x16x12xf32>
    %202 = vector.shape_cast %201 : vector<16x16x12xf32> to vector<256x12xf32>
    %203 = arith.truncf %202 : vector<256x12xf32> to vector<256x12xbf16>
    %204 = vector.extract_strided_slice %157 {offsets = [6, 0, 0], sizes = [1, 12, 48], strides = [1, 1, 1]} : vector<9x12x48xbf16> to vector<1x12x48xbf16>
    %205 = vector.shape_cast %204 : vector<1x12x48xbf16> to vector<12x48xbf16>
    %cst_50 = arith.constant dense<0.000000e+00> : vector<256x48xf32>
    %206 = tpu.matmul %203, %205, %cst_50 {dimension_numbers = #tpu.dot_dimension_numbers<[1], [0], [0], [1], [0, 0, 1, 1], [], []>} : vector<256x12xbf16>, vector<12x48xbf16>, vector<256x48xf32> -> vector<256x48xf32>
    %207 = arith.addf %200, %206 : vector<256x48xf32>
    %208 = vector.extract_strided_slice %156 {offsets = [2, 1, 0], sizes = [16, 16, 12], strides = [1, 1, 1]} : vector<18x18x12xf32> to vector<16x16x12xf32>
    %209 = vector.shape_cast %208 : vector<16x16x12xf32> to vector<256x12xf32>
    %210 = arith.truncf %209 : vector<256x12xf32> to vector<256x12xbf16>
    %211 = vector.extract_strided_slice %157 {offsets = [7, 0, 0], sizes = [1, 12, 48], strides = [1, 1, 1]} : vector<9x12x48xbf16> to vector<1x12x48xbf16>
    %212 = vector.shape_cast %211 : vector<1x12x48xbf16> to vector<12x48xbf16>
    %cst_51 = arith.constant dense<0.000000e+00> : vector<256x48xf32>
    %213 = tpu.matmul %210, %212, %cst_51 {dimension_numbers = #tpu.dot_dimension_numbers<[1], [0], [0], [1], [0, 0, 1, 1], [], []>} : vector<256x12xbf16>, vector<12x48xbf16>, vector<256x48xf32> -> vector<256x48xf32>
    %214 = arith.addf %207, %213 : vector<256x48xf32>
    %215 = vector.extract_strided_slice %156 {offsets = [2, 2, 0], sizes = [16, 16, 12], strides = [1, 1, 1]} : vector<18x18x12xf32> to vector<16x16x12xf32>
    %216 = vector.shape_cast %215 : vector<16x16x12xf32> to vector<256x12xf32>
    %217 = arith.truncf %216 : vector<256x12xf32> to vector<256x12xbf16>
    %218 = vector.extract_strided_slice %157 {offsets = [8, 0, 0], sizes = [1, 12, 48], strides = [1, 1, 1]} : vector<9x12x48xbf16> to vector<1x12x48xbf16>
    %219 = vector.shape_cast %218 : vector<1x12x48xbf16> to vector<12x48xbf16>
    %cst_52 = arith.constant dense<0.000000e+00> : vector<256x48xf32>
    %220 = tpu.matmul %217, %219, %cst_52 {dimension_numbers = #tpu.dot_dimension_numbers<[1], [0], [0], [1], [0, 0, 1, 1], [], []>} : vector<256x12xbf16>, vector<12x48xbf16>, vector<256x48xf32> -> vector<256x48xf32>
    %221 = arith.addf %214, %220 : vector<256x48xf32>
    %c0_53 = arith.constant 0 : index
    %c0_54 = arith.constant 0 : index
    %222 = vector.load %arg7[%c0_53, %c0_54] : memref<1x48xf32, #tpu.memory_space<vmem>>, vector<1x48xf32>
    %223 = vector.broadcast %222 : vector<1x48xf32> to vector<256x48xf32>
    %224 = arith.addf %221, %223 : vector<256x48xf32>
    %cst_55 = arith.constant 0.000000e+00 : f32
    %225 = vector.broadcast %cst_55 : f32 to vector<256x48xf32>
    %226 = arith.maximumf %224, %225 : vector<256x48xf32>
    %227 = vector.shape_cast %2 : vector<16x16x4xf32> to vector<256x4xf32>
    %228 = arith.truncf %227 : vector<256x4xf32> to vector<256x4xbf16>
    %c0_56 = arith.constant 0 : index
    %c0_57 = arith.constant 0 : index
    %229 = vector.load %arg8[%c0_56, %c0_57] : memref<4x48xbf16, #tpu.memory_space<vmem>>, vector<4x48xbf16>
    %cst_58 = arith.constant dense<0.000000e+00> : vector<256x48xf32>
    %230 = tpu.matmul %228, %229, %cst_58 {dimension_numbers = #tpu.dot_dimension_numbers<[1], [0], [0], [1], [0, 0, 1, 1], [], []>} : vector<256x4xbf16>, vector<4x48xbf16>, vector<256x48xf32> -> vector<256x48xf32>
    %c0_59 = arith.constant 0 : index
    %c0_60 = arith.constant 0 : index
    %231 = vector.load %arg9[%c0_59, %c0_60] : memref<1x48xf32, #tpu.memory_space<vmem>>, vector<1x48xf32>
    %232 = vector.broadcast %231 : vector<1x48xf32> to vector<256x48xf32>
    %233 = arith.addf %230, %232 : vector<256x48xf32>
    %cst_61 = arith.constant 0.000000e+00 : f32
    %234 = vector.broadcast %cst_61 : f32 to vector<256x48xf32>
    %235 = arith.maximumf %233, %234 : vector<256x48xf32>
    %236 = arith.addf %226, %235 : vector<256x48xf32>
    %237 = vector.shape_cast %236 : vector<256x48xf32> to vector<16x16x48xf32>
    %c0_62 = arith.constant 0 : index
    %c0_63 = arith.constant 0 : index
    %c0_64 = arith.constant 0 : index
    %c0_65 = arith.constant 0 : index
    %238 = vector.load %arg10[%c0_62, %c0_63, %c0_64, %c0_65] : memref<1x16x16x48xf32, #tpu.memory_space<vmem>>, vector<1x16x16x48xf32>
    %239 = vector.shape_cast %238 : vector<1x16x16x48xf32> to vector<16x16x48xf32>
    %240 = vector.shape_cast %237 : vector<16x16x48xf32> to vector<1x16x16x48xf32>
    tpu.vector_store %arg10[%c0_62, %c0_63, %c0_64, %c0_65], %240 {strides = array<i32>} : memref<1x16x16x48xf32, #tpu.memory_space<vmem>>, vector<1x16x16x48xf32>,
    return
  }
  func.func @transform_0(%arg0: i32) -> (i32, i32, i32, i32) {
    %c0_i32 = arith.constant 0 : i32
    %c0_i32_0 = arith.constant 0 : i32
    %c0_i32_1 = arith.constant 0 : i32
    %c0_i32_2 = arith.constant 0 : i32
    return %arg0, %c0_i32, %c0_i32_0, %c0_i32_1 : i32, i32, i32, i32
  }
  func.func @transform_1(%arg0: i32) -> (i32, i32, i32) {
    %c0_i32 = arith.constant 0 : i32
    %c0_i32_0 = arith.constant 0 : i32
    %c0_i32_1 = arith.constant 0 : i32
    %c0_i32_2 = arith.constant 0 : i32
    return %c0_i32, %c0_i32_0, %c0_i32_1 : i32, i32, i32
  }
  func.func @transform_2(%arg0: i32) -> (i32, i32) {
    %c0_i32 = arith.constant 0 : i32
    %c0_i32_0 = arith.constant 0 : i32
    %c0_i32_1 = arith.constant 0 : i32
    return %c0_i32, %c0_i32_0 : i32, i32
  }
  func.func @transform_3(%arg0: i32) -> (i32, i32, i32) {
    %c0_i32 = arith.constant 0 : i32
    %c0_i32_0 = arith.constant 0 : i32
    %c0_i32_1 = arith.constant 0 : i32
    %c0_i32_2 = arith.constant 0 : i32
    return %c0_i32, %c0_i32_0, %c0_i32_1 : i32, i32, i32
  }
  func.func @transform_4(%arg0: i32) -> (i32, i32) {
    %c0_i32 = arith.constant 0 : i32
    %c0_i32_0 = arith.constant 0 : i32
    %c0_i32_1 = arith.constant 0 : i32
    return %c0_i32, %c0_i32_0 : i32, i32
  }
  func.func @transform_5(%arg0: i32) -> (i32, i32, i32) {
    %c0_i32 = arith.constant 0 : i32
    %c0_i32_0 = arith.constant 0 : i32
    %c0_i32_1 = arith.constant 0 : i32
    %c0_i32_2 = arith.constant 0 : i32
    return %c0_i32, %c0_i32_0, %c0_i32_1 : i32, i32, i32
  }
  func.func @transform_6(%arg0: i32) -> (i32, i32) {
    %c0_i32 = arith.constant 0 : i32
    %c0_i32_0 = arith.constant 0 : i32
    %c0_i32_1 = arith.constant 0 : i32
    return %c0_i32, %c0_i32_0 : i32, i32
  }
  func.func @transform_7(%arg0: i32) -> (i32, i32) {
    %c0_i32 = arith.constant 0 : i32
    %c0_i32_0 = arith.constant 0 : i32
    %c0_i32_1 = arith.constant 0 : i32
    return %c0_i32, %c0_i32_0 : i32, i32
  }
  func.func @transform_8(%arg0: i32) -> (i32, i32) {
    %c0_i32 = arith.constant 0 : i32
    %c0_i32_0 = arith.constant 0 : i32
    %c0_i32_1 = arith.constant 0 : i32
    return %c0_i32, %c0_i32_0 : i32, i32
  }
  func.func @transform_9(%arg0: i32) -> (i32, i32, i32, i32) {
    %c0_i32 = arith.constant 0 : i32
    %c0_i32_0 = arith.constant 0 : i32
    %c0_i32_1 = arith.constant 0 : i32
    %c0_i32_2 = arith.constant 0 : i32
    return %arg0, %c0_i32, %c0_i32_0, %c0_i32_1 : i32, i32, i32, i32
  }
}

module attributes {stable_mosaic.version = 11 : i64} {
  func.func @_block_kernel(%arg0: i32, %arg1: memref<1x8x8x48xbf16, #tpu.memory_space<vmem>>, %arg2: memref<9x48x12xbf16, #tpu.memory_space<vmem>>, %arg3: memref<1x12xf32, #tpu.memory_space<vmem>>, %arg4: memref<9x12x12xbf16, #tpu.memory_space<vmem>>, %arg5: memref<1x12xf32, #tpu.memory_space<vmem>>, %arg6: memref<9x12x48xbf16, #tpu.memory_space<vmem>>, %arg7: memref<1x48xf32, #tpu.memory_space<vmem>>, %arg8: memref<1x8x8x48xf32, #tpu.memory_space<vmem>>) attributes {dimension_semantics = [#tpu.dimension_semantics<parallel>], iteration_bounds = array<i64: 2>, scalar_prefetch = 0 : i64, scratch_operands = 0 : i64, tpu.core_type = #tpu.core_type<tc>, window_params = [{transform_indices = @transform_0, window_bounds = array<i64: 1, 8, 8, 48>}, {pipeline_mode = #tpu.pipeline_mode<synchronous>, transform_indices = @transform_1, window_bounds = array<i64: 9, 48, 12>}, {pipeline_mode = #tpu.pipeline_mode<synchronous>, transform_indices = @transform_2, window_bounds = array<i64: 1, 12>}, {pipeline_mode = #tpu.pipeline_mode<synchronous>, transform_indices = @transform_3, window_bounds = array<i64: 9, 12, 12>}, {pipeline_mode = #tpu.pipeline_mode<synchronous>, transform_indices = @transform_4, window_bounds = array<i64: 1, 12>}, {pipeline_mode = #tpu.pipeline_mode<synchronous>, transform_indices = @transform_5, window_bounds = array<i64: 9, 12, 48>}, {pipeline_mode = #tpu.pipeline_mode<synchronous>, transform_indices = @transform_6, window_bounds = array<i64: 1, 48>}, {transform_indices = @transform_7, window_bounds = array<i64: 1, 8, 8, 48>}]} {
    %c0 = arith.constant 0 : index
    %c0_0 = arith.constant 0 : index
    %c0_1 = arith.constant 0 : index
    %c0_2 = arith.constant 0 : index
    %0 = vector.load %arg1[%c0, %c0_0, %c0_1, %c0_2] : memref<1x8x8x48xbf16, #tpu.memory_space<vmem>>, vector<1x8x8x48xbf16>
    %1 = vector.shape_cast %0 : vector<1x8x8x48xbf16> to vector<8x8x48xbf16>
    %2 = arith.extf %1 : vector<8x8x48xbf16> to vector<8x8x48xf32>
    %cst = arith.constant 0.000000e+00 : f32
    %3 = vector.broadcast %cst : f32 to vector<8x1x48xf32>
    %4 = tpu.concatenate %3, %2, %3 in 1 : vector<8x1x48xf32>, vector<8x8x48xf32>, vector<8x1x48xf32> -> vector<8x10x48xf32>
    %cst_3 = arith.constant 0.000000e+00 : f32
    %5 = vector.broadcast %cst_3 : f32 to vector<1x10x48xf32>
    %6 = tpu.concatenate %5, %4, %5 in 0 : vector<1x10x48xf32>, vector<8x10x48xf32>, vector<1x10x48xf32> -> vector<10x10x48xf32>
    %c0_4 = arith.constant 0 : index
    %c0_5 = arith.constant 0 : index
    %c0_6 = arith.constant 0 : index
    %7 = vector.load %arg2[%c0_4, %c0_5, %c0_6] : memref<9x48x12xbf16, #tpu.memory_space<vmem>>, vector<9x48x12xbf16>
    %cst_7 = arith.constant 0.000000e+00 : f32
    %8 = vector.broadcast %cst_7 : f32 to vector<64x12xf32>
    %9 = vector.extract_strided_slice %6 {offsets = [0, 0, 0], sizes = [8, 8, 48], strides = [1, 1, 1]} : vector<10x10x48xf32> to vector<8x8x48xf32>
    %10 = vector.shape_cast %9 : vector<8x8x48xf32> to vector<64x48xf32>
    %11 = arith.truncf %10 : vector<64x48xf32> to vector<64x48xbf16>
    %12 = vector.extract_strided_slice %7 {offsets = [0, 0, 0], sizes = [1, 48, 12], strides = [1, 1, 1]} : vector<9x48x12xbf16> to vector<1x48x12xbf16>
    %13 = vector.shape_cast %12 : vector<1x48x12xbf16> to vector<48x12xbf16>
    %cst_8 = arith.constant dense<0.000000e+00> : vector<64x12xf32>
    %14 = tpu.matmul %11, %13, %cst_8 {dimension_numbers = #tpu.dot_dimension_numbers<[1], [0], [0], [1], [0, 0, 1, 1], [], []>} : vector<64x48xbf16>, vector<48x12xbf16>, vector<64x12xf32> -> vector<64x12xf32>
    %15 = arith.addf %8, %14 : vector<64x12xf32>
    %16 = vector.extract_strided_slice %6 {offsets = [0, 1, 0], sizes = [8, 8, 48], strides = [1, 1, 1]} : vector<10x10x48xf32> to vector<8x8x48xf32>
    %17 = vector.shape_cast %16 : vector<8x8x48xf32> to vector<64x48xf32>
    %18 = arith.truncf %17 : vector<64x48xf32> to vector<64x48xbf16>
    %19 = vector.extract_strided_slice %7 {offsets = [1, 0, 0], sizes = [1, 48, 12], strides = [1, 1, 1]} : vector<9x48x12xbf16> to vector<1x48x12xbf16>
    %20 = vector.shape_cast %19 : vector<1x48x12xbf16> to vector<48x12xbf16>
    %cst_9 = arith.constant dense<0.000000e+00> : vector<64x12xf32>
    %21 = tpu.matmul %18, %20, %cst_9 {dimension_numbers = #tpu.dot_dimension_numbers<[1], [0], [0], [1], [0, 0, 1, 1], [], []>} : vector<64x48xbf16>, vector<48x12xbf16>, vector<64x12xf32> -> vector<64x12xf32>
    %22 = arith.addf %15, %21 : vector<64x12xf32>
    %23 = vector.extract_strided_slice %6 {offsets = [0, 2, 0], sizes = [8, 8, 48], strides = [1, 1, 1]} : vector<10x10x48xf32> to vector<8x8x48xf32>
    %24 = vector.shape_cast %23 : vector<8x8x48xf32> to vector<64x48xf32>
    %25 = arith.truncf %24 : vector<64x48xf32> to vector<64x48xbf16>
    %26 = vector.extract_strided_slice %7 {offsets = [2, 0, 0], sizes = [1, 48, 12], strides = [1, 1, 1]} : vector<9x48x12xbf16> to vector<1x48x12xbf16>
    %27 = vector.shape_cast %26 : vector<1x48x12xbf16> to vector<48x12xbf16>
    %cst_10 = arith.constant dense<0.000000e+00> : vector<64x12xf32>
    %28 = tpu.matmul %25, %27, %cst_10 {dimension_numbers = #tpu.dot_dimension_numbers<[1], [0], [0], [1], [0, 0, 1, 1], [], []>} : vector<64x48xbf16>, vector<48x12xbf16>, vector<64x12xf32> -> vector<64x12xf32>
    %29 = arith.addf %22, %28 : vector<64x12xf32>
    %30 = vector.extract_strided_slice %6 {offsets = [1, 0, 0], sizes = [8, 8, 48], strides = [1, 1, 1]} : vector<10x10x48xf32> to vector<8x8x48xf32>
    %31 = vector.shape_cast %30 : vector<8x8x48xf32> to vector<64x48xf32>
    %32 = arith.truncf %31 : vector<64x48xf32> to vector<64x48xbf16>
    %33 = vector.extract_strided_slice %7 {offsets = [3, 0, 0], sizes = [1, 48, 12], strides = [1, 1, 1]} : vector<9x48x12xbf16> to vector<1x48x12xbf16>
    %34 = vector.shape_cast %33 : vector<1x48x12xbf16> to vector<48x12xbf16>
    %cst_11 = arith.constant dense<0.000000e+00> : vector<64x12xf32>
    %35 = tpu.matmul %32, %34, %cst_11 {dimension_numbers = #tpu.dot_dimension_numbers<[1], [0], [0], [1], [0, 0, 1, 1], [], []>} : vector<64x48xbf16>, vector<48x12xbf16>, vector<64x12xf32> -> vector<64x12xf32>
    %36 = arith.addf %29, %35 : vector<64x12xf32>
    %37 = vector.extract_strided_slice %6 {offsets = [1, 1, 0], sizes = [8, 8, 48], strides = [1, 1, 1]} : vector<10x10x48xf32> to vector<8x8x48xf32>
    %38 = vector.shape_cast %37 : vector<8x8x48xf32> to vector<64x48xf32>
    %39 = arith.truncf %38 : vector<64x48xf32> to vector<64x48xbf16>
    %40 = vector.extract_strided_slice %7 {offsets = [4, 0, 0], sizes = [1, 48, 12], strides = [1, 1, 1]} : vector<9x48x12xbf16> to vector<1x48x12xbf16>
    %41 = vector.shape_cast %40 : vector<1x48x12xbf16> to vector<48x12xbf16>
    %cst_12 = arith.constant dense<0.000000e+00> : vector<64x12xf32>
    %42 = tpu.matmul %39, %41, %cst_12 {dimension_numbers = #tpu.dot_dimension_numbers<[1], [0], [0], [1], [0, 0, 1, 1], [], []>} : vector<64x48xbf16>, vector<48x12xbf16>, vector<64x12xf32> -> vector<64x12xf32>
    %43 = arith.addf %36, %42 : vector<64x12xf32>
    %44 = vector.extract_strided_slice %6 {offsets = [1, 2, 0], sizes = [8, 8, 48], strides = [1, 1, 1]} : vector<10x10x48xf32> to vector<8x8x48xf32>
    %45 = vector.shape_cast %44 : vector<8x8x48xf32> to vector<64x48xf32>
    %46 = arith.truncf %45 : vector<64x48xf32> to vector<64x48xbf16>
    %47 = vector.extract_strided_slice %7 {offsets = [5, 0, 0], sizes = [1, 48, 12], strides = [1, 1, 1]} : vector<9x48x12xbf16> to vector<1x48x12xbf16>
    %48 = vector.shape_cast %47 : vector<1x48x12xbf16> to vector<48x12xbf16>
    %cst_13 = arith.constant dense<0.000000e+00> : vector<64x12xf32>
    %49 = tpu.matmul %46, %48, %cst_13 {dimension_numbers = #tpu.dot_dimension_numbers<[1], [0], [0], [1], [0, 0, 1, 1], [], []>} : vector<64x48xbf16>, vector<48x12xbf16>, vector<64x12xf32> -> vector<64x12xf32>
    %50 = arith.addf %43, %49 : vector<64x12xf32>
    %51 = vector.extract_strided_slice %6 {offsets = [2, 0, 0], sizes = [8, 8, 48], strides = [1, 1, 1]} : vector<10x10x48xf32> to vector<8x8x48xf32>
    %52 = vector.shape_cast %51 : vector<8x8x48xf32> to vector<64x48xf32>
    %53 = arith.truncf %52 : vector<64x48xf32> to vector<64x48xbf16>
    %54 = vector.extract_strided_slice %7 {offsets = [6, 0, 0], sizes = [1, 48, 12], strides = [1, 1, 1]} : vector<9x48x12xbf16> to vector<1x48x12xbf16>
    %55 = vector.shape_cast %54 : vector<1x48x12xbf16> to vector<48x12xbf16>
    %cst_14 = arith.constant dense<0.000000e+00> : vector<64x12xf32>
    %56 = tpu.matmul %53, %55, %cst_14 {dimension_numbers = #tpu.dot_dimension_numbers<[1], [0], [0], [1], [0, 0, 1, 1], [], []>} : vector<64x48xbf16>, vector<48x12xbf16>, vector<64x12xf32> -> vector<64x12xf32>
    %57 = arith.addf %50, %56 : vector<64x12xf32>
    %58 = vector.extract_strided_slice %6 {offsets = [2, 1, 0], sizes = [8, 8, 48], strides = [1, 1, 1]} : vector<10x10x48xf32> to vector<8x8x48xf32>
    %59 = vector.shape_cast %58 : vector<8x8x48xf32> to vector<64x48xf32>
    %60 = arith.truncf %59 : vector<64x48xf32> to vector<64x48xbf16>
    %61 = vector.extract_strided_slice %7 {offsets = [7, 0, 0], sizes = [1, 48, 12], strides = [1, 1, 1]} : vector<9x48x12xbf16> to vector<1x48x12xbf16>
    %62 = vector.shape_cast %61 : vector<1x48x12xbf16> to vector<48x12xbf16>
    %cst_15 = arith.constant dense<0.000000e+00> : vector<64x12xf32>
    %63 = tpu.matmul %60, %62, %cst_15 {dimension_numbers = #tpu.dot_dimension_numbers<[1], [0], [0], [1], [0, 0, 1, 1], [], []>} : vector<64x48xbf16>, vector<48x12xbf16>, vector<64x12xf32> -> vector<64x12xf32>
    %64 = arith.addf %57, %63 : vector<64x12xf32>
    %65 = vector.extract_strided_slice %6 {offsets = [2, 2, 0], sizes = [8, 8, 48], strides = [1, 1, 1]} : vector<10x10x48xf32> to vector<8x8x48xf32>
    %66 = vector.shape_cast %65 : vector<8x8x48xf32> to vector<64x48xf32>
    %67 = arith.truncf %66 : vector<64x48xf32> to vector<64x48xbf16>
    %68 = vector.extract_strided_slice %7 {offsets = [8, 0, 0], sizes = [1, 48, 12], strides = [1, 1, 1]} : vector<9x48x12xbf16> to vector<1x48x12xbf16>
    %69 = vector.shape_cast %68 : vector<1x48x12xbf16> to vector<48x12xbf16>
    %cst_16 = arith.constant dense<0.000000e+00> : vector<64x12xf32>
    %70 = tpu.matmul %67, %69, %cst_16 {dimension_numbers = #tpu.dot_dimension_numbers<[1], [0], [0], [1], [0, 0, 1, 1], [], []>} : vector<64x48xbf16>, vector<48x12xbf16>, vector<64x12xf32> -> vector<64x12xf32>
    %71 = arith.addf %64, %70 : vector<64x12xf32>
    %c0_17 = arith.constant 0 : index
    %c0_18 = arith.constant 0 : index
    %72 = vector.load %arg3[%c0_17, %c0_18] : memref<1x12xf32, #tpu.memory_space<vmem>>, vector<1x12xf32>
    %73 = vector.broadcast %72 : vector<1x12xf32> to vector<64x12xf32>
    %74 = arith.addf %71, %73 : vector<64x12xf32>
    %cst_19 = arith.constant 0.000000e+00 : f32
    %75 = vector.broadcast %cst_19 : f32 to vector<64x12xf32>
    %76 = arith.maximumf %74, %75 : vector<64x12xf32>
    %77 = vector.shape_cast %76 : vector<64x12xf32> to vector<8x8x12xf32>
    %cst_20 = arith.constant 0.000000e+00 : f32
    %78 = vector.broadcast %cst_20 : f32 to vector<8x1x12xf32>
    %79 = tpu.concatenate %78, %77, %78 in 1 : vector<8x1x12xf32>, vector<8x8x12xf32>, vector<8x1x12xf32> -> vector<8x10x12xf32>
    %cst_21 = arith.constant 0.000000e+00 : f32
    %80 = vector.broadcast %cst_21 : f32 to vector<1x10x12xf32>
    %81 = tpu.concatenate %80, %79, %80 in 0 : vector<1x10x12xf32>, vector<8x10x12xf32>, vector<1x10x12xf32> -> vector<10x10x12xf32>
    %c0_22 = arith.constant 0 : index
    %c0_23 = arith.constant 0 : index
    %c0_24 = arith.constant 0 : index
    %82 = vector.load %arg4[%c0_22, %c0_23, %c0_24] : memref<9x12x12xbf16, #tpu.memory_space<vmem>>, vector<9x12x12xbf16>
    %cst_25 = arith.constant 0.000000e+00 : f32
    %83 = vector.broadcast %cst_25 : f32 to vector<64x12xf32>
    %84 = vector.extract_strided_slice %81 {offsets = [0, 0, 0], sizes = [8, 8, 12], strides = [1, 1, 1]} : vector<10x10x12xf32> to vector<8x8x12xf32>
    %85 = vector.shape_cast %84 : vector<8x8x12xf32> to vector<64x12xf32>
    %86 = arith.truncf %85 : vector<64x12xf32> to vector<64x12xbf16>
    %87 = vector.extract_strided_slice %82 {offsets = [0, 0, 0], sizes = [1, 12, 12], strides = [1, 1, 1]} : vector<9x12x12xbf16> to vector<1x12x12xbf16>
    %88 = vector.shape_cast %87 : vector<1x12x12xbf16> to vector<12x12xbf16>
    %cst_26 = arith.constant dense<0.000000e+00> : vector<64x12xf32>
    %89 = tpu.matmul %86, %88, %cst_26 {dimension_numbers = #tpu.dot_dimension_numbers<[1], [0], [0], [1], [0, 0, 1, 1], [], []>} : vector<64x12xbf16>, vector<12x12xbf16>, vector<64x12xf32> -> vector<64x12xf32>
    %90 = arith.addf %83, %89 : vector<64x12xf32>
    %91 = vector.extract_strided_slice %81 {offsets = [0, 1, 0], sizes = [8, 8, 12], strides = [1, 1, 1]} : vector<10x10x12xf32> to vector<8x8x12xf32>
    %92 = vector.shape_cast %91 : vector<8x8x12xf32> to vector<64x12xf32>
    %93 = arith.truncf %92 : vector<64x12xf32> to vector<64x12xbf16>
    %94 = vector.extract_strided_slice %82 {offsets = [1, 0, 0], sizes = [1, 12, 12], strides = [1, 1, 1]} : vector<9x12x12xbf16> to vector<1x12x12xbf16>
    %95 = vector.shape_cast %94 : vector<1x12x12xbf16> to vector<12x12xbf16>
    %cst_27 = arith.constant dense<0.000000e+00> : vector<64x12xf32>
    %96 = tpu.matmul %93, %95, %cst_27 {dimension_numbers = #tpu.dot_dimension_numbers<[1], [0], [0], [1], [0, 0, 1, 1], [], []>} : vector<64x12xbf16>, vector<12x12xbf16>, vector<64x12xf32> -> vector<64x12xf32>
    %97 = arith.addf %90, %96 : vector<64x12xf32>
    %98 = vector.extract_strided_slice %81 {offsets = [0, 2, 0], sizes = [8, 8, 12], strides = [1, 1, 1]} : vector<10x10x12xf32> to vector<8x8x12xf32>
    %99 = vector.shape_cast %98 : vector<8x8x12xf32> to vector<64x12xf32>
    %100 = arith.truncf %99 : vector<64x12xf32> to vector<64x12xbf16>
    %101 = vector.extract_strided_slice %82 {offsets = [2, 0, 0], sizes = [1, 12, 12], strides = [1, 1, 1]} : vector<9x12x12xbf16> to vector<1x12x12xbf16>
    %102 = vector.shape_cast %101 : vector<1x12x12xbf16> to vector<12x12xbf16>
    %cst_28 = arith.constant dense<0.000000e+00> : vector<64x12xf32>
    %103 = tpu.matmul %100, %102, %cst_28 {dimension_numbers = #tpu.dot_dimension_numbers<[1], [0], [0], [1], [0, 0, 1, 1], [], []>} : vector<64x12xbf16>, vector<12x12xbf16>, vector<64x12xf32> -> vector<64x12xf32>
    %104 = arith.addf %97, %103 : vector<64x12xf32>
    %105 = vector.extract_strided_slice %81 {offsets = [1, 0, 0], sizes = [8, 8, 12], strides = [1, 1, 1]} : vector<10x10x12xf32> to vector<8x8x12xf32>
    %106 = vector.shape_cast %105 : vector<8x8x12xf32> to vector<64x12xf32>
    %107 = arith.truncf %106 : vector<64x12xf32> to vector<64x12xbf16>
    %108 = vector.extract_strided_slice %82 {offsets = [3, 0, 0], sizes = [1, 12, 12], strides = [1, 1, 1]} : vector<9x12x12xbf16> to vector<1x12x12xbf16>
    %109 = vector.shape_cast %108 : vector<1x12x12xbf16> to vector<12x12xbf16>
    %cst_29 = arith.constant dense<0.000000e+00> : vector<64x12xf32>
    %110 = tpu.matmul %107, %109, %cst_29 {dimension_numbers = #tpu.dot_dimension_numbers<[1], [0], [0], [1], [0, 0, 1, 1], [], []>} : vector<64x12xbf16>, vector<12x12xbf16>, vector<64x12xf32> -> vector<64x12xf32>
    %111 = arith.addf %104, %110 : vector<64x12xf32>
    %112 = vector.extract_strided_slice %81 {offsets = [1, 1, 0], sizes = [8, 8, 12], strides = [1, 1, 1]} : vector<10x10x12xf32> to vector<8x8x12xf32>
    %113 = vector.shape_cast %112 : vector<8x8x12xf32> to vector<64x12xf32>
    %114 = arith.truncf %113 : vector<64x12xf32> to vector<64x12xbf16>
    %115 = vector.extract_strided_slice %82 {offsets = [4, 0, 0], sizes = [1, 12, 12], strides = [1, 1, 1]} : vector<9x12x12xbf16> to vector<1x12x12xbf16>
    %116 = vector.shape_cast %115 : vector<1x12x12xbf16> to vector<12x12xbf16>
    %cst_30 = arith.constant dense<0.000000e+00> : vector<64x12xf32>
    %117 = tpu.matmul %114, %116, %cst_30 {dimension_numbers = #tpu.dot_dimension_numbers<[1], [0], [0], [1], [0, 0, 1, 1], [], []>} : vector<64x12xbf16>, vector<12x12xbf16>, vector<64x12xf32> -> vector<64x12xf32>
    %118 = arith.addf %111, %117 : vector<64x12xf32>
    %119 = vector.extract_strided_slice %81 {offsets = [1, 2, 0], sizes = [8, 8, 12], strides = [1, 1, 1]} : vector<10x10x12xf32> to vector<8x8x12xf32>
    %120 = vector.shape_cast %119 : vector<8x8x12xf32> to vector<64x12xf32>
    %121 = arith.truncf %120 : vector<64x12xf32> to vector<64x12xbf16>
    %122 = vector.extract_strided_slice %82 {offsets = [5, 0, 0], sizes = [1, 12, 12], strides = [1, 1, 1]} : vector<9x12x12xbf16> to vector<1x12x12xbf16>
    %123 = vector.shape_cast %122 : vector<1x12x12xbf16> to vector<12x12xbf16>
    %cst_31 = arith.constant dense<0.000000e+00> : vector<64x12xf32>
    %124 = tpu.matmul %121, %123, %cst_31 {dimension_numbers = #tpu.dot_dimension_numbers<[1], [0], [0], [1], [0, 0, 1, 1], [], []>} : vector<64x12xbf16>, vector<12x12xbf16>, vector<64x12xf32> -> vector<64x12xf32>
    %125 = arith.addf %118, %124 : vector<64x12xf32>
    %126 = vector.extract_strided_slice %81 {offsets = [2, 0, 0], sizes = [8, 8, 12], strides = [1, 1, 1]} : vector<10x10x12xf32> to vector<8x8x12xf32>
    %127 = vector.shape_cast %126 : vector<8x8x12xf32> to vector<64x12xf32>
    %128 = arith.truncf %127 : vector<64x12xf32> to vector<64x12xbf16>
    %129 = vector.extract_strided_slice %82 {offsets = [6, 0, 0], sizes = [1, 12, 12], strides = [1, 1, 1]} : vector<9x12x12xbf16> to vector<1x12x12xbf16>
    %130 = vector.shape_cast %129 : vector<1x12x12xbf16> to vector<12x12xbf16>
    %cst_32 = arith.constant dense<0.000000e+00> : vector<64x12xf32>
    %131 = tpu.matmul %128, %130, %cst_32 {dimension_numbers = #tpu.dot_dimension_numbers<[1], [0], [0], [1], [0, 0, 1, 1], [], []>} : vector<64x12xbf16>, vector<12x12xbf16>, vector<64x12xf32> -> vector<64x12xf32>
    %132 = arith.addf %125, %131 : vector<64x12xf32>
    %133 = vector.extract_strided_slice %81 {offsets = [2, 1, 0], sizes = [8, 8, 12], strides = [1, 1, 1]} : vector<10x10x12xf32> to vector<8x8x12xf32>
    %134 = vector.shape_cast %133 : vector<8x8x12xf32> to vector<64x12xf32>
    %135 = arith.truncf %134 : vector<64x12xf32> to vector<64x12xbf16>
    %136 = vector.extract_strided_slice %82 {offsets = [7, 0, 0], sizes = [1, 12, 12], strides = [1, 1, 1]} : vector<9x12x12xbf16> to vector<1x12x12xbf16>
    %137 = vector.shape_cast %136 : vector<1x12x12xbf16> to vector<12x12xbf16>
    %cst_33 = arith.constant dense<0.000000e+00> : vector<64x12xf32>
    %138 = tpu.matmul %135, %137, %cst_33 {dimension_numbers = #tpu.dot_dimension_numbers<[1], [0], [0], [1], [0, 0, 1, 1], [], []>} : vector<64x12xbf16>, vector<12x12xbf16>, vector<64x12xf32> -> vector<64x12xf32>
    %139 = arith.addf %132, %138 : vector<64x12xf32>
    %140 = vector.extract_strided_slice %81 {offsets = [2, 2, 0], sizes = [8, 8, 12], strides = [1, 1, 1]} : vector<10x10x12xf32> to vector<8x8x12xf32>
    %141 = vector.shape_cast %140 : vector<8x8x12xf32> to vector<64x12xf32>
    %142 = arith.truncf %141 : vector<64x12xf32> to vector<64x12xbf16>
    %143 = vector.extract_strided_slice %82 {offsets = [8, 0, 0], sizes = [1, 12, 12], strides = [1, 1, 1]} : vector<9x12x12xbf16> to vector<1x12x12xbf16>
    %144 = vector.shape_cast %143 : vector<1x12x12xbf16> to vector<12x12xbf16>
    %cst_34 = arith.constant dense<0.000000e+00> : vector<64x12xf32>
    %145 = tpu.matmul %142, %144, %cst_34 {dimension_numbers = #tpu.dot_dimension_numbers<[1], [0], [0], [1], [0, 0, 1, 1], [], []>} : vector<64x12xbf16>, vector<12x12xbf16>, vector<64x12xf32> -> vector<64x12xf32>
    %146 = arith.addf %139, %145 : vector<64x12xf32>
    %c0_35 = arith.constant 0 : index
    %c0_36 = arith.constant 0 : index
    %147 = vector.load %arg5[%c0_35, %c0_36] : memref<1x12xf32, #tpu.memory_space<vmem>>, vector<1x12xf32>
    %148 = vector.broadcast %147 : vector<1x12xf32> to vector<64x12xf32>
    %149 = arith.addf %146, %148 : vector<64x12xf32>
    %cst_37 = arith.constant 0.000000e+00 : f32
    %150 = vector.broadcast %cst_37 : f32 to vector<64x12xf32>
    %151 = arith.maximumf %149, %150 : vector<64x12xf32>
    %152 = vector.shape_cast %151 : vector<64x12xf32> to vector<8x8x12xf32>
    %cst_38 = arith.constant 0.000000e+00 : f32
    %153 = vector.broadcast %cst_38 : f32 to vector<8x1x12xf32>
    %154 = tpu.concatenate %153, %152, %153 in 1 : vector<8x1x12xf32>, vector<8x8x12xf32>, vector<8x1x12xf32> -> vector<8x10x12xf32>
    %cst_39 = arith.constant 0.000000e+00 : f32
    %155 = vector.broadcast %cst_39 : f32 to vector<1x10x12xf32>
    %156 = tpu.concatenate %155, %154, %155 in 0 : vector<1x10x12xf32>, vector<8x10x12xf32>, vector<1x10x12xf32> -> vector<10x10x12xf32>
    %c0_40 = arith.constant 0 : index
    %c0_41 = arith.constant 0 : index
    %c0_42 = arith.constant 0 : index
    %157 = vector.load %arg6[%c0_40, %c0_41, %c0_42] : memref<9x12x48xbf16, #tpu.memory_space<vmem>>, vector<9x12x48xbf16>
    %cst_43 = arith.constant 0.000000e+00 : f32
    %158 = vector.broadcast %cst_43 : f32 to vector<64x48xf32>
    %159 = vector.extract_strided_slice %156 {offsets = [0, 0, 0], sizes = [8, 8, 12], strides = [1, 1, 1]} : vector<10x10x12xf32> to vector<8x8x12xf32>
    %160 = vector.shape_cast %159 : vector<8x8x12xf32> to vector<64x12xf32>
    %161 = arith.truncf %160 : vector<64x12xf32> to vector<64x12xbf16>
    %162 = vector.extract_strided_slice %157 {offsets = [0, 0, 0], sizes = [1, 12, 48], strides = [1, 1, 1]} : vector<9x12x48xbf16> to vector<1x12x48xbf16>
    %163 = vector.shape_cast %162 : vector<1x12x48xbf16> to vector<12x48xbf16>
    %cst_44 = arith.constant dense<0.000000e+00> : vector<64x48xf32>
    %164 = tpu.matmul %161, %163, %cst_44 {dimension_numbers = #tpu.dot_dimension_numbers<[1], [0], [0], [1], [0, 0, 1, 1], [], []>} : vector<64x12xbf16>, vector<12x48xbf16>, vector<64x48xf32> -> vector<64x48xf32>
    %165 = arith.addf %158, %164 : vector<64x48xf32>
    %166 = vector.extract_strided_slice %156 {offsets = [0, 1, 0], sizes = [8, 8, 12], strides = [1, 1, 1]} : vector<10x10x12xf32> to vector<8x8x12xf32>
    %167 = vector.shape_cast %166 : vector<8x8x12xf32> to vector<64x12xf32>
    %168 = arith.truncf %167 : vector<64x12xf32> to vector<64x12xbf16>
    %169 = vector.extract_strided_slice %157 {offsets = [1, 0, 0], sizes = [1, 12, 48], strides = [1, 1, 1]} : vector<9x12x48xbf16> to vector<1x12x48xbf16>
    %170 = vector.shape_cast %169 : vector<1x12x48xbf16> to vector<12x48xbf16>
    %cst_45 = arith.constant dense<0.000000e+00> : vector<64x48xf32>
    %171 = tpu.matmul %168, %170, %cst_45 {dimension_numbers = #tpu.dot_dimension_numbers<[1], [0], [0], [1], [0, 0, 1, 1], [], []>} : vector<64x12xbf16>, vector<12x48xbf16>, vector<64x48xf32> -> vector<64x48xf32>
    %172 = arith.addf %165, %171 : vector<64x48xf32>
    %173 = vector.extract_strided_slice %156 {offsets = [0, 2, 0], sizes = [8, 8, 12], strides = [1, 1, 1]} : vector<10x10x12xf32> to vector<8x8x12xf32>
    %174 = vector.shape_cast %173 : vector<8x8x12xf32> to vector<64x12xf32>
    %175 = arith.truncf %174 : vector<64x12xf32> to vector<64x12xbf16>
    %176 = vector.extract_strided_slice %157 {offsets = [2, 0, 0], sizes = [1, 12, 48], strides = [1, 1, 1]} : vector<9x12x48xbf16> to vector<1x12x48xbf16>
    %177 = vector.shape_cast %176 : vector<1x12x48xbf16> to vector<12x48xbf16>
    %cst_46 = arith.constant dense<0.000000e+00> : vector<64x48xf32>
    %178 = tpu.matmul %175, %177, %cst_46 {dimension_numbers = #tpu.dot_dimension_numbers<[1], [0], [0], [1], [0, 0, 1, 1], [], []>} : vector<64x12xbf16>, vector<12x48xbf16>, vector<64x48xf32> -> vector<64x48xf32>
    %179 = arith.addf %172, %178 : vector<64x48xf32>
    %180 = vector.extract_strided_slice %156 {offsets = [1, 0, 0], sizes = [8, 8, 12], strides = [1, 1, 1]} : vector<10x10x12xf32> to vector<8x8x12xf32>
    %181 = vector.shape_cast %180 : vector<8x8x12xf32> to vector<64x12xf32>
    %182 = arith.truncf %181 : vector<64x12xf32> to vector<64x12xbf16>
    %183 = vector.extract_strided_slice %157 {offsets = [3, 0, 0], sizes = [1, 12, 48], strides = [1, 1, 1]} : vector<9x12x48xbf16> to vector<1x12x48xbf16>
    %184 = vector.shape_cast %183 : vector<1x12x48xbf16> to vector<12x48xbf16>
    %cst_47 = arith.constant dense<0.000000e+00> : vector<64x48xf32>
    %185 = tpu.matmul %182, %184, %cst_47 {dimension_numbers = #tpu.dot_dimension_numbers<[1], [0], [0], [1], [0, 0, 1, 1], [], []>} : vector<64x12xbf16>, vector<12x48xbf16>, vector<64x48xf32> -> vector<64x48xf32>
    %186 = arith.addf %179, %185 : vector<64x48xf32>
    %187 = vector.extract_strided_slice %156 {offsets = [1, 1, 0], sizes = [8, 8, 12], strides = [1, 1, 1]} : vector<10x10x12xf32> to vector<8x8x12xf32>
    %188 = vector.shape_cast %187 : vector<8x8x12xf32> to vector<64x12xf32>
    %189 = arith.truncf %188 : vector<64x12xf32> to vector<64x12xbf16>
    %190 = vector.extract_strided_slice %157 {offsets = [4, 0, 0], sizes = [1, 12, 48], strides = [1, 1, 1]} : vector<9x12x48xbf16> to vector<1x12x48xbf16>
    %191 = vector.shape_cast %190 : vector<1x12x48xbf16> to vector<12x48xbf16>
    %cst_48 = arith.constant dense<0.000000e+00> : vector<64x48xf32>
    %192 = tpu.matmul %189, %191, %cst_48 {dimension_numbers = #tpu.dot_dimension_numbers<[1], [0], [0], [1], [0, 0, 1, 1], [], []>} : vector<64x12xbf16>, vector<12x48xbf16>, vector<64x48xf32> -> vector<64x48xf32>
    %193 = arith.addf %186, %192 : vector<64x48xf32>
    %194 = vector.extract_strided_slice %156 {offsets = [1, 2, 0], sizes = [8, 8, 12], strides = [1, 1, 1]} : vector<10x10x12xf32> to vector<8x8x12xf32>
    %195 = vector.shape_cast %194 : vector<8x8x12xf32> to vector<64x12xf32>
    %196 = arith.truncf %195 : vector<64x12xf32> to vector<64x12xbf16>
    %197 = vector.extract_strided_slice %157 {offsets = [5, 0, 0], sizes = [1, 12, 48], strides = [1, 1, 1]} : vector<9x12x48xbf16> to vector<1x12x48xbf16>
    %198 = vector.shape_cast %197 : vector<1x12x48xbf16> to vector<12x48xbf16>
    %cst_49 = arith.constant dense<0.000000e+00> : vector<64x48xf32>
    %199 = tpu.matmul %196, %198, %cst_49 {dimension_numbers = #tpu.dot_dimension_numbers<[1], [0], [0], [1], [0, 0, 1, 1], [], []>} : vector<64x12xbf16>, vector<12x48xbf16>, vector<64x48xf32> -> vector<64x48xf32>
    %200 = arith.addf %193, %199 : vector<64x48xf32>
    %201 = vector.extract_strided_slice %156 {offsets = [2, 0, 0], sizes = [8, 8, 12], strides = [1, 1, 1]} : vector<10x10x12xf32> to vector<8x8x12xf32>
    %202 = vector.shape_cast %201 : vector<8x8x12xf32> to vector<64x12xf32>
    %203 = arith.truncf %202 : vector<64x12xf32> to vector<64x12xbf16>
    %204 = vector.extract_strided_slice %157 {offsets = [6, 0, 0], sizes = [1, 12, 48], strides = [1, 1, 1]} : vector<9x12x48xbf16> to vector<1x12x48xbf16>
    %205 = vector.shape_cast %204 : vector<1x12x48xbf16> to vector<12x48xbf16>
    %cst_50 = arith.constant dense<0.000000e+00> : vector<64x48xf32>
    %206 = tpu.matmul %203, %205, %cst_50 {dimension_numbers = #tpu.dot_dimension_numbers<[1], [0], [0], [1], [0, 0, 1, 1], [], []>} : vector<64x12xbf16>, vector<12x48xbf16>, vector<64x48xf32> -> vector<64x48xf32>
    %207 = arith.addf %200, %206 : vector<64x48xf32>
    %208 = vector.extract_strided_slice %156 {offsets = [2, 1, 0], sizes = [8, 8, 12], strides = [1, 1, 1]} : vector<10x10x12xf32> to vector<8x8x12xf32>
    %209 = vector.shape_cast %208 : vector<8x8x12xf32> to vector<64x12xf32>
    %210 = arith.truncf %209 : vector<64x12xf32> to vector<64x12xbf16>
    %211 = vector.extract_strided_slice %157 {offsets = [7, 0, 0], sizes = [1, 12, 48], strides = [1, 1, 1]} : vector<9x12x48xbf16> to vector<1x12x48xbf16>
    %212 = vector.shape_cast %211 : vector<1x12x48xbf16> to vector<12x48xbf16>
    %cst_51 = arith.constant dense<0.000000e+00> : vector<64x48xf32>
    %213 = tpu.matmul %210, %212, %cst_51 {dimension_numbers = #tpu.dot_dimension_numbers<[1], [0], [0], [1], [0, 0, 1, 1], [], []>} : vector<64x12xbf16>, vector<12x48xbf16>, vector<64x48xf32> -> vector<64x48xf32>
    %214 = arith.addf %207, %213 : vector<64x48xf32>
    %215 = vector.extract_strided_slice %156 {offsets = [2, 2, 0], sizes = [8, 8, 12], strides = [1, 1, 1]} : vector<10x10x12xf32> to vector<8x8x12xf32>
    %216 = vector.shape_cast %215 : vector<8x8x12xf32> to vector<64x12xf32>
    %217 = arith.truncf %216 : vector<64x12xf32> to vector<64x12xbf16>
    %218 = vector.extract_strided_slice %157 {offsets = [8, 0, 0], sizes = [1, 12, 48], strides = [1, 1, 1]} : vector<9x12x48xbf16> to vector<1x12x48xbf16>
    %219 = vector.shape_cast %218 : vector<1x12x48xbf16> to vector<12x48xbf16>
    %cst_52 = arith.constant dense<0.000000e+00> : vector<64x48xf32>
    %220 = tpu.matmul %217, %219, %cst_52 {dimension_numbers = #tpu.dot_dimension_numbers<[1], [0], [0], [1], [0, 0, 1, 1], [], []>} : vector<64x12xbf16>, vector<12x48xbf16>, vector<64x48xf32> -> vector<64x48xf32>
    %221 = arith.addf %214, %220 : vector<64x48xf32>
    %c0_53 = arith.constant 0 : index
    %c0_54 = arith.constant 0 : index
    %222 = vector.load %arg7[%c0_53, %c0_54] : memref<1x48xf32, #tpu.memory_space<vmem>>, vector<1x48xf32>
    %223 = vector.broadcast %222 : vector<1x48xf32> to vector<64x48xf32>
    %224 = arith.addf %221, %223 : vector<64x48xf32>
    %cst_55 = arith.constant 0.000000e+00 : f32
    %225 = vector.broadcast %cst_55 : f32 to vector<64x48xf32>
    %226 = arith.maximumf %224, %225 : vector<64x48xf32>
    %227 = vector.shape_cast %2 : vector<8x8x48xf32> to vector<64x48xf32>
    %228 = arith.addf %226, %227 : vector<64x48xf32>
    %229 = vector.shape_cast %228 : vector<64x48xf32> to vector<8x8x48xf32>
    %c0_56 = arith.constant 0 : index
    %c0_57 = arith.constant 0 : index
    %c0_58 = arith.constant 0 : index
    %c0_59 = arith.constant 0 : index
    %230 = vector.load %arg8[%c0_56, %c0_57, %c0_58, %c0_59] : memref<1x8x8x48xf32, #tpu.memory_space<vmem>>, vector<1x8x8x48xf32>
    %231 = vector.shape_cast %230 : vector<1x8x8x48xf32> to vector<8x8x48xf32>
    %232 = vector.shape_cast %229 : vector<8x8x48xf32> to vector<1x8x8x48xf32>
    tpu.vector_store %arg8[%c0_56, %c0_57, %c0_58, %c0_59], %232 {strides = array<i32>} : memref<1x8x8x48xf32, #tpu.memory_space<vmem>>, vector<1x8x8x48xf32>,
    return
  }
  func.func @transform_0(%arg0: i32) -> (i32, i32, i32, i32) {
    %c0_i32 = arith.constant 0 : i32
    %c0_i32_0 = arith.constant 0 : i32
    %c0_i32_1 = arith.constant 0 : i32
    %c0_i32_2 = arith.constant 0 : i32
    return %arg0, %c0_i32, %c0_i32_0, %c0_i32_1 : i32, i32, i32, i32
  }
  func.func @transform_1(%arg0: i32) -> (i32, i32, i32) {
    %c0_i32 = arith.constant 0 : i32
    %c0_i32_0 = arith.constant 0 : i32
    %c0_i32_1 = arith.constant 0 : i32
    %c0_i32_2 = arith.constant 0 : i32
    return %c0_i32, %c0_i32_0, %c0_i32_1 : i32, i32, i32
  }
  func.func @transform_2(%arg0: i32) -> (i32, i32) {
    %c0_i32 = arith.constant 0 : i32
    %c0_i32_0 = arith.constant 0 : i32
    %c0_i32_1 = arith.constant 0 : i32
    return %c0_i32, %c0_i32_0 : i32, i32
  }
  func.func @transform_3(%arg0: i32) -> (i32, i32, i32) {
    %c0_i32 = arith.constant 0 : i32
    %c0_i32_0 = arith.constant 0 : i32
    %c0_i32_1 = arith.constant 0 : i32
    %c0_i32_2 = arith.constant 0 : i32
    return %c0_i32, %c0_i32_0, %c0_i32_1 : i32, i32, i32
  }
  func.func @transform_4(%arg0: i32) -> (i32, i32) {
    %c0_i32 = arith.constant 0 : i32
    %c0_i32_0 = arith.constant 0 : i32
    %c0_i32_1 = arith.constant 0 : i32
    return %c0_i32, %c0_i32_0 : i32, i32
  }
  func.func @transform_5(%arg0: i32) -> (i32, i32, i32) {
    %c0_i32 = arith.constant 0 : i32
    %c0_i32_0 = arith.constant 0 : i32
    %c0_i32_1 = arith.constant 0 : i32
    %c0_i32_2 = arith.constant 0 : i32
    return %c0_i32, %c0_i32_0, %c0_i32_1 : i32, i32, i32
  }
  func.func @transform_6(%arg0: i32) -> (i32, i32) {
    %c0_i32 = arith.constant 0 : i32
    %c0_i32_0 = arith.constant 0 : i32
    %c0_i32_1 = arith.constant 0 : i32
    return %c0_i32, %c0_i32_0 : i32, i32
  }
  func.func @transform_7(%arg0: i32) -> (i32, i32, i32, i32) {
    %c0_i32 = arith.constant 0 : i32
    %c0_i32_0 = arith.constant 0 : i32
    %c0_i32_1 = arith.constant 0 : i32
    %c0_i32_2 = arith.constant 0 : i32
    return %arg0, %c0_i32, %c0_i32_0, %c0_i32_1 : i32, i32, i32, i32
  }
}

</mosaic_0001>

<bundles_post_ra>
// kernel: forward.3
= control target key start
LH: loop header
LB: loop body
LE: loop exit
PB: predicated region body
PF: predicated region fallthrough
CT: control target
= control target key end

     0   :  { %12 = vsyncpa [#allocation3], 0  ;;  %s4144_s0 = inlined_call_operand.vmem [shape: bf16[2,8,8,48], index: 0, kind: input, shape index: {}]   ;;  %s4145_s1 = inlined_call_operand.vmem [shape: bf16[9,48,12], index: 1, kind: input, shape index: {}]   ;;  %s4146_s2 = inlined_call_operand.vmem [shape: f32[1,12], index: 2, kind: input, shape index: {}]   ;;  %s4147_s3 = inlined_call_operand.vmem [shape: bf16[9,12,12], index: 3, kind: input, shape index: {}]   ;;  %s4148_s4 = inlined_call_operand.vmem [shape: f32[1,12], index: 4, kind: input, shape index: {}]   ;;  %s4149_s5 = inlined_call_operand.vmem [shape: bf16[9,12,48], index: 5, kind: input, shape index: {}]   ;;  %s4150_s6 = inlined_call_operand.vmem [shape: f32[1,48], index: 6, kind: input, shape index: {}]   ;;  %s4151_s7 = inlined_call_operand.hbm [shape: f32[2,8,8,48], index: 7, kind: output, shape index: {}]  }
   0x1   :  { %14 = vsyncpa [#allocation3 + $0x1], 0  ;;  %s3018_s24 = smov 0   ;;  %s3020_s25 = smov 0  }
   0x2   :  { %s3022_s26 = smov 0   ;;  %s3024_s27 = smov 0  }
   0x3 LB: > { %s3039_s28 = sadd.s32 4294967295, %s2973_s27   ;;  %s2491_s29 = sadd.s32 4294967294, %s2973_s27   ;;  %s2973_s27 = sphi %s3024_s27, %s4167_s27   ;;  %s2969_s26 = sphi %s3022_s26, %s4166_s26   ;;  %s2965_s25 = sphi %s3020_s25, %s4165_s25   ;;  %s2961_s24 = sphi %s3018_s24, %s4164_s24  }
   0x4   : > { %s3043_s30 = sadd.s32 1, %s2973_s27   ;;  %s179_s8 = sadd.s32 1, %s2969_s26 }
   0x5   : > { %s176_s9 = ssub.s32 %s2973_s27, %s3043_s30  ;;  %p189_p0 = scmp.ne.s32.totalorder %s2969_s26, %s2965_s25 }
   0x6   : > { %p177_p1 = scmp.eq.s32.totalorder %s176_s9, 0  ;;  %p190_p2 = scmp.eq.s32.totalorder %s3039_s28, 1 }
   0x7   : > { %p195_p3 = scmp.ne.s32.totalorder %s2965_s25, %s2961_s24  ;;  %p196_p4 = scmp.eq.s32.totalorder %s2491_s29, 1 }
   0x8   : > { %s3054_s10 = scalar_select %p177_p1, %s2969_s26, %s179_s8  }
   0x9   : > { %p3056_p5 = por %p190_p2, %p189_p0  ;;  %p3060_p6 = por %p196_p4, %p195_p3 }
   0xa   : > { %p2494_p7 = scmp.ge.s32.totalorder %s2973_s27, 1  ;;  %p240_p8 = scmp.lt.s32.totalorder %s2973_s27, 3 }
   0xc   : > { %p241_p9 = pnand %p2494_p7, %p240_p8 }
   0xd   : > { %p272_p10 = scmp.lt.s32.totalorder (!%p241_p9), %s3039_s28, 1  ;;  %s269_s29 = sand.u32 (!%p241_p9), 1, %s2965_s25  }
   0xe   : > { %244 = sbr.rel (%p241_p9) target bundleno = 892 (0x37c), region = 48  ;;  %s2495_s8 = sshll.u32 (!%p241_p9), %s269_s29, 6 }
   0xf   : > { %s2837_s13 = sshll.u32 (!%p241_p9), %s3039_s28, 6  ;;  %s2931_s23 = scalar_lea.hbm (!%p241_p9), %s4151_s7, 128 }
  0x10   : > { %s2425_s17 = scalar_lea.hbm (!%p241_p9), %s4151_s7, %s2837_s13 }
  0x11   : > { %s2428_s19 = sshll.u32 (!%p241_p9), %s2425_s17, 4  ;;  %s2429_s19 = int_to_ptr.hbm [resolvable:$true] %s2428_s19 }
  0x12   : > { %s2925_s20 = sshra.s32 (!%p241_p9), %s2429_s19, 4  ;;  %s2926_s20 = int_to_ptr.hbm [resolvable:$true] %s2925_s20 }
  0x13   : > { %v2797_v0 = vld [vmem:[%s4145_s1 + $0x28] sm:$0xff]  ;;  %v3072_v1 = vld [vmem:[%s4145_s1 + $0x40] sm:$0xff]  ;;  %v2794_v2 = vld [vmem:[%s4145_s1 + $0x10] sm:$0xff]  ;;  %s273_s21 = scalar_select %p272_p10, %s3039_s28, 1  ;;  %vm318_vm0 = vcmask 1040384   ;;  %vm408_vm1 = vcmask 1046528  }
  0x14   : > { %480 = vmatpush.bf16.msra.mxu0 %v2797_v0  ;;  %2857 = vmatpush.bf16.msra.mxu3 %v2797_v0  ;;  %v2796_v3 = vld [vmem:[%s4145_s1 + $0x20] sm:$0xff]  ;;  %v3086_v4 = vld [vmem:[%s4145_s1 + $0x38] sm:$0xff]  ;;  %v2793_v5 = vld [vmem:[%s4145_s1 + $0x8] sm:$0xff]  ;;  %v2975_v19 = vmov 0.0   ;;  %vm462_vm2 = vcmask 392192   ;;  %vm563_vm3 = vcmask 1045504   ;;  %p2932_p0 = scmp.lt.s32.totalorder %s2926_s20, %s4151_s7 }
  0x15   : > { %2863 = vmatpush.bf16.msra.mxu2 %v3072_v1  ;;  %2860 = vmatpush.bf16.msra.mxu1 %v2794_v2  ;;  %s2791_s9 = sshll.u32 %s273_s21, 5  ;;  %v2795_v6 = vld [vmem:[%s4145_s1 + $0x18] sm:$0xff]  ;;  %v3109_v9 = vld [vmem:[%s4145_s1 + $0x30] sm:$0xff]  ;;  %v2792_v15 = vld [vmem:[%s4145_s1] sm:$0xff]  ;;  %v3130_v20 = vrot.slane %v2975_v19, 1  ;;  %vm1199_vm4 = vcmask 97280  }
  0x16   : > { %s3094_s15 = scalar_lea.vmem %s4144_s0, %s2791_s9  ;;  %v2803_v13 = vld [vmem:[%s4145_s1 + $0x58] sm:$0xff]  ;;  %v2802_v27 = vld [vmem:[%s4145_s1 + $0x50] sm:$0xff]  ;;  %v2801_v49 = vld [vmem:[%s4145_s1 + $0x48] sm:$0xff]  ;;  %s4053_s9 = scalar_lea.vmem [#allocation2], %s2495_s8 }
  0x17   : > { %v3100_v7 = vld [vmem:[%s3094_s15] sm:$0xff]   ;;  %v3103_v8 = vld [vmem:[%s3094_s15 + $0x8] sm:$0xff]   ;;  %v3118_v14 = vld [vmem:[%s3094_s15 + $0x10] sm:$0xff]   ;;  %s2426_s18 = sshll.u32 %s4053_s9, 4  ;;  %s2414_s28 = scalar_lea.sflag [#allocation3], %s269_s29  ;;  %s2427_s18 = int_to_ptr.vmem [resolvable:$true] %s2426_s18 }
  0x18   : > { %481 = vmatpush.bf16.msra.mxu0 %v2796_v3  ;;  %2858 = vmatpush.bf16.msra.mxu3 %v2796_v3  ;;  %v2840_v10 = vunpack.c.l.bf16 %v3100_v7  ;;  %v2841_v11 = vunpack.c.h.bf16 %v3100_v7  ;;  %v2844_v12 = vunpack.c.l.bf16 %v3103_v8  ;;  %v4156_v21 = vunpack.c.h.bf16 %v3103_v8  ;;  %v2812_v58 = vld [vmem:[%s4145_s1 + $0xa0] sm:$0xff]  ;;  %v2809_v61 = vld [vmem:[%s4145_s1 + $0x88] sm:$0xff]  ;;  %v2811_v62 = vld [vmem:[%s4145_s1 + $0x98] sm:$0xff] }
  0x19   : > { %2864 = vmatpush.bf16.msra.mxu2 %v3086_v4  ;;  %2861 = vmatpush.bf16.msra.mxu1 %v2793_v5  ;;  %v4155_v22 = vunpack.c.l.bf16 %v3118_v14  ;;  %v3223_v63 = vld [vmem:[%s3094_s15 + $0x18] sm:$0xff]   ;;  %s2927_s15 = scalar_lea.hbm %s2926_s20, 64 }
  0x1a   : > { %v302_v16 = vrot.slane %v2840_v10, 7  ;;  %v303_v17 = vrot.slane %v2841_v11, 7  ;;  %v304_v18 = vrot.slane %v2844_v12, 7  ;;  %v305_v38 = vrot.slane %v4156_v21, 7  ;;  %p2928_p11 = scmp.ne.s32.totalorder %s2926_s20, %s2927_s15  ;;  %p2933_p1 = scmp.lt.s32.totalorder %s2931_s23, %s2927_s15 }
  0x1b   : > { %v306_v45 = vrot.slane %v4155_v22, 7 }
  0x1c   : > { %482 = vmatpush.bf16.msra.mxu0 %v2795_v6  ;;  %2859 = vmatpush.bf16.msra.mxu3 %v2795_v6  ;;  %v3136_v23 = vsel %vm318_vm0, 0.0, %v302_v16  ;;  %v3139_v24 = vsel %vm318_vm0, %v302_v16, 0.0  ;;  %v3142_v25 = vsel %vm318_vm0, 0.0, %v303_v17  ;;  %v3145_v26 = vsel %vm318_vm0, 0.0, %v304_v18  ;;  %p2929_p12 = pnand %p2928_p11, %p3056_p5  ;;  %p2934_p2 = por %p2933_p1, %p2932_p0 }
  0x1d   : > { %2865 = vmatpush.bf16.msra.mxu2 %v3109_v9  ;;  %v411_v28 = vrot.slane %v3136_v23, 1  ;;  %v412_v29 = vrot.slane %v3139_v24, 1  ;;  %v328_v30 = vsel %vm318_vm0, %v303_v17, 0.0  ;;  %v329_v31 = vsel %vm318_vm0, %v304_v18, 0.0  ;;  %2862 = vmatpush.bf16.msra.mxu1 %v2792_v15  ;;  %v2806_v17 = vld [vmem:[%s4145_s1 + $0x70] sm:$0xff] }
  0x1e   : > { %v414_v32 = vrot.slane %v3142_v25, 1  ;;  %v415_v33 = vrot.slane %v328_v30, 1  ;;  %v417_v34 = vrot.slane %v3145_v26, 1  ;;  %v418_v35 = vrot.slane %v329_v31, 1  ;;  %p2930_p13 = pneg %p2929_p12 }
  0x1f   : > { %v3157_v36 = vsel %vm408_vm1, %v411_v28, %v412_v29  ;;  %v569_v37 = vrot.slane %v3142_v25, 2  ;;  %v570_v42 = vrot.slane %v328_v30, 2  ;;  %v572_v44 = vrot.slane %v3145_v26, 2  ;;  %v2805_v30 = vld [vmem:[%s4145_s1 + $0x68] sm:$0xff] }
  0x20   : > { %705 = vmatpush.bf16.msrb.mxu3 %v2803_v13  ;;  %539 = vmatpush.bf16.msrb.mxu0 %v2794_v2  ;;  %v440_v39 = vpack.c.bf16 %v3157_v36, %v3130_v20  ;;  %v3165_v40 = vsel %vm408_vm1, %v414_v32, %v415_v33  ;;  %v3168_v41 = vsel %vm408_vm1, %v417_v34, %v418_v35  ;;  %v573_v47 = vrot.slane %v329_v31, 2  ;;  %v2815_v32 = vld [vmem:[%s4145_s1 + $0xb8] sm:$0xff]  ;;  %v2808_v33 = vld [vmem:[%s4145_s1 + $0x80] sm:$0xff]  ;;  %v2810_v34 = vld [vmem:[%s4145_s1 + $0x90] sm:$0xff]  ;;  %p2935_p3 = pnand %p2934_p2, %p2930_p13 }
  0x21   : > { %v3172_v43 = vpack.c.bf16 %v3168_v41, %v3165_v40  ;;  %v3179_v46 = vsel %vm563_vm3, %v569_v37, %v570_v42  ;;  %v3183_v48 = vpack.c.bf16 %v3145_v26, %v3142_v25  ;;  %v3196_v51 = vsel %vm318_vm0, 0.0, %v305_v38  ;;  %916 = vmatpush.bf16.msrb.mxu2 %v2812_v58  ;;  %857 = vmatpush.bf16.msrb.mxu1 %v2809_v61 }
  0x22   : > { %2510 = vmatmul.msk.bf16.vlgmr.msra.gmra.mxu0 %vm462_vm2, %v440_v39  ;;  %v3191_v50 = vsel %vm563_vm3, %v572_v44, %v573_v47  ;;  %v330_v52 = vsel %vm318_vm0, %v305_v38, 0.0  ;;  %v3204_v54 = vsel %vm318_vm0, 0.0, %v306_v45  ;;  %v331_v55 = vsel %vm318_vm0, %v306_v45, 0.0 }
  0x23   : > { %2511 = vmatmul.msk.bf16.vlgmr.msra.gmra.mxu3 %vm462_vm2, %v3172_v43  ;;  %2527 = vmatmul.msk.bf16.vlgmr.msra.gmra.mxu1 %vm462_vm2, %v3183_v48  ;;  %v3201_v53 = vpack.c.bf16 %v3191_v50, %v3179_v46  ;;  %v420_v56 = vrot.slane %v3196_v51, 1  ;;  %v421_v57 = vrot.slane %v330_v52, 1  ;;  %v423_v59 = vrot.slane %v3204_v54, 1 }
  0x24   : > { %706 = vmatpush.bf16.msrb.mxu3 %v2802_v27  ;;  %540 = vmatpush.bf16.msrb.mxu0 %v2793_v5  ;;  %v424_v60 = vrot.slane %v331_v55, 1  ;;  %v4154_v2 = vunpack.c.h.bf16 %v3118_v14  ;;  %v576_v5 = vrot.slane %v330_v52, 2  ;;  %v578_v6 = vrot.slane %v3204_v54, 2  ;;  %v2807_v52 = vld [vmem:[%s4145_s1 + $0x78] sm:$0xff] }
  0x25   : > { %2543 = vmatmul.msk.bf16.vlgmr.msra.gmra.mxu2 %vm462_vm2, %v3201_v53  ;;  %v3226_v0 = vsel %vm408_vm1, %v420_v56, %v421_v57  ;;  %v579_v13 = vrot.slane %v331_v55, 2  ;;  %v3253_v28 = vpack.c.bf16 %v3204_v54, %v3196_v51  ;;  %858 = vmatpush.bf16.msrb.mxu1 %v2808_v33  ;;  %v566_v42 = vrot.slane %v3136_v23, 2 }
  0x26   : > { %v3231_v3 = vsel %vm408_vm1, %v423_v59, %v424_v60  ;;  %917 = vmatpush.bf16.msrb.mxu2 %v2811_v62  ;;  %v567_v44 = vrot.slane %v3139_v24, 2  ;;  %v3301_v24 = vrot.slane %v2975_v19, 2  ;;  %v743_v33 = vpack.c.bf16 %v3165_v40, %v3157_v36  ;;  %v2816_v40 = vld [vmem:[%s4145_s1 + $0xc0] sm:$0xff] }
  0x27   : > { %v3240_v16 = vpack.c.bf16 %v3231_v3, %v3226_v0  ;;  %v3249_v27 = vsel %vm563_vm3, %v578_v6, %v579_v13  ;;  %v2818_v13 = vld [vmem:[%s4145_s1 + $0xd0] sm:$0xff]  ;;  %v744_v36 = vpack.c.bf16 %v3226_v0, %v3168_v41  ;;  %v4152_v41 = vunpack.c.h.bf16 %v3223_v63 }
  0x28   : > { %541 = vmatpush.bf16.msrb.mxu0 %v2792_v15  ;;  %707 = vmatpush.bf16.msrb.mxu3 %v2801_v49  ;;  %v4153_v15 = vunpack.c.l.bf16 %v3223_v63  ;;  %v2804_v49 = vld [vmem:[%s4145_s1 + $0x60] sm:$0xff]  ;;  %v568_v57 = vsel %vm563_vm3, %v566_v42, %v567_v44 }
  0x29   : > { %859 = vmatpush.bf16.msrb.mxu1 %v2807_v52 }
  0x2a   : > { %v308_v29 = vrot.slane %v4153_v15, 7  ;;  %918 = vmatpush.bf16.msrb.mxu2 %v2810_v34  ;;  %v666_v34 = vpack.c.bf16 %v3142_v25, %v3136_v23 }
  0x2c   : > { %634 = vmatpush.bf16.msra.mxu0 %v3072_v1  ;;  %v575_v1 = vrot.slane %v3196_v51, 2  ;;  %v3285_v38 = vsel %vm318_vm0, 0.0, %v308_v29  ;;  %v333_v39 = vsel %vm318_vm0, %v308_v29, 0.0  ;;  %975 = vmatpush.bf16.msra.mxu3 %v2815_v32  ;;  %v2817_v32 = vld [vmem:[%s4145_s1 + $0xc8] sm:$0xff] }
  0x2d   : > { %v429_v55 = vrot.slane %v3285_v38, 1  ;;  %v430_v56 = vrot.slane %v333_v39, 1  ;;  %v584_v62 = vrot.slane %v3285_v38, 2 }
  0x2e   : > { %v3246_v18 = vsel %vm563_vm3, %v575_v1, %v576_v5  ;;  %v585_v1 = vrot.slane %v333_v39, 2  ;;  %v595_v5 = vpack.c.bf16 %v568_v57, %v3301_v24  ;;  %v2813_v39 = vld [vmem:[%s4145_s1 + $0xa8] sm:$0xff] }
  0x2f   : > { %v3267_v31 = vpack.c.bf16 %v3249_v27, %v3246_v18  ;;  %v431_v60 = vsel %vm408_vm1, %v429_v55, %v430_v56  ;;  %v819_v25 = vpack.c.bf16 %v3246_v18, %v3191_v50  ;;  %v309_v50 = vrot.slane %v4152_v41, 7 }
  0x30   : > { %635 = vmatpush.bf16.msra.mxu0 %v3086_v4  ;;  %v389_v4 = vpack.c.bf16 %v3136_v23, %v2975_v19  ;;  %v667_v23 = vpack.c.bf16 %v3196_v51, %v3145_v26 }
  0x31   : > { %v326_v51 = vsel %vm318_vm0, 0.0, %v309_v50  ;;  %v334_v0 = vsel %vm318_vm0, %v309_v50, 0.0 }
  0x32   : > { %2526 = vmatmul.msk.bf16.vlgmr.msrb.gmra.mxu0 %vm462_vm2, %v389_v4  ;;  %v740_v18 = vrot.slane %v334_v0, 1  ;;  %v669_v44 = vpack.c.bf16 %v326_v51, %v3285_v38 }
  0x33   : > { %2512 = vmatmul.msk.bf16.gmra.mxu3 %vm462_vm2, %v3240_v16  ;;  %2528 = vmatmul.msk.bf16.gmra.mxu1 %vm462_vm2, %v3253_v28 }
  0x34   : > { %636 = vmatpush.bf16.msra.mxu0 %v3109_v9  ;;  %v307_v9 = vrot.slane %v4154_v2, 7 }
  0x35   : > { %2544 = vmatmul.msk.bf16.gmra.mxu2 %vm462_vm2, %v3267_v31 }
  0x36   : > { %v3281_v35 = vsel %vm318_vm0, 0.0, %v307_v9  ;;  %v332_v37 = vsel %vm318_vm0, %v307_v9, 0.0 }
  0x37   : > { %v426_v45 = vrot.slane %v3281_v35, 1  ;;  %v427_v47 = vrot.slane %v332_v37, 1  ;;  %v581_v59 = vrot.slane %v3281_v35, 2  ;;  %v582_v61 = vrot.slane %v332_v37, 2 }
  0x38   : > { %782 = vmatpush.bf16.msrb.mxu0 %v2806_v17  ;;  %v586_v17 = vsel %vm563_vm3, %v584_v62, %v585_v1  ;;  %v392_v9 = vpack.c.bf16 %v3285_v38, %v3281_v35  ;;  %v818_v37 = vpack.c.bf16 %v3179_v46, %v568_v57  ;;  %v668_v46 = vpack.c.bf16 %v3281_v35, %v3204_v54 }
  0x39   : > { %v428_v58 = vsel %vm408_vm1, %v426_v45, %v427_v47  ;;  %v583_v4 = vsel %vm563_vm3, %v581_v59, %v582_v61  ;;  %v814_v54 = vrot.slane %v326_v51, 2  ;;  %v889_v47 = vpack.c.bf16 0.0, %v326_v51 }
  0x3a   : > { %v3309_v6 = vpack.c.bf16 %v431_v60, %v428_v58  ;;  %v598_v29 = vpack.c.bf16 %v586_v17, %v583_v4  ;;  %v745_v26 = vpack.c.bf16 %v428_v58, %v3231_v3  ;;  %v739_v3 = vrot.slane %v326_v51, 1 }
  0x3c   : > { %783 = vmatpush.bf16.msrb.mxu0 %v2805_v30  ;;  %v2814_v30 = vld [vmem:[%s4145_s1 + $0xb0] sm:$0xff] }
  0x3d   : > { %976 = vmatpush.bf16.msra.mxu3 %v2814_v30 }
  0x40   : > { %784 = vmatpush.bf16.msrb.mxu0 %v2804_v49 }
  0x41   : > { %977 = vmatpush.bf16.msra.mxu3 %v2813_v39 }
  0x42   : > { %2542 = vmatmul.msk.bf16.vlgmr.msra.gmra.mxu0 %vm462_vm2, %v595_v5  ;;  %v2644_v5 = vld [vmem:[%s4147_s3 + $0x8] sm:$0xf] }
  0x43   : > { %2513 = vmatmul.msk.bf16.gmra.mxu3 %vm462_vm2, %v3309_v6  ;;  %2529 = vmatmul.msk.bf16.gmra.mxu1 %vm462_vm2, %v392_v9 }
  0x44   : > { %1034 = vmatpush.bf16.msra.mxu0 %v2818_v13 }
  0x45   : > { %2545 = vmatmul.msk.bf16.gmra.mxu2 %vm462_vm2, %v598_v29 }
  0x48   : > { %1035 = vmatpush.bf16.msra.mxu0 %v2817_v32 }
  0x4c   : > { %1036 = vmatpush.bf16.msra.mxu0 %v2816_v40 }
  0x52   : > { %2574 = vmatmul.msk.bf16.vlgmr.msrb.gmra.mxu0 %vm462_vm2, %v743_v33 }
  0x53   : > { %2558 = vmatmul.msk.bf16.vlgmr.msrb.gmra.mxu3 %vm462_vm2, %v666_v34  ;;  %2590 = vmatmul.msk.bf16.vlgmr.msrb.gmra.mxu1 %vm462_vm2, %v818_v37 }
  0x55   : > { %2606 = vmatmul.msk.bf16.vlgmr.msrb.gmra.mxu2 %vm462_vm2, %v3183_v48  ;;  %v820_v48 = vpack.c.bf16 %v583_v4, %v3249_v27  ;;  %v741_v27 = vsel %vm408_vm1, %v739_v3, %v740_v18 }
  0x56   : > { %v746_v42 = vpack.c.bf16 %v741_v27, %v431_v60  ;;  %v948_v59 = vpack.c.bf16 %v3130_v20, %v741_v27 }
  0x62   : > { %2575 = vmatmul.msk.bf16.gmra.mxu0 %vm462_vm2, %v744_v36 }
  0x63   : > { %2559 = vmatmul.msk.bf16.gmra.mxu3 %vm462_vm2, %v667_v23  ;;  %2591 = vmatmul.msk.bf16.gmra.mxu1 %vm462_vm2, %v819_v25 }
  0x65   : > { %2607 = vmatmul.msk.bf16.gmra.mxu2 %vm462_vm2, %v3253_v28  ;;  %v815_v28 = vrot.slane %v334_v0, 2 }
  0x67   : > { %v816_v35 = vsel %vm563_vm3, %v814_v54, %v815_v28 }
  0x68   : > { %v821_v45 = vpack.c.bf16 %v816_v35, %v586_v17 }
  0x72   : > { %2576 = vmatmul.msk.bf16.gmra.mxu0 %vm462_vm2, %v745_v26 }
  0x73   : > { %2560 = vmatmul.msk.bf16.gmra.mxu3 %vm462_vm2, %v668_v46  ;;  %2592 = vmatmul.msk.bf16.gmra.mxu1 %vm462_vm2, %v820_v48 }
  0x75   : > { %2608 = vmatmul.msk.bf16.gmra.mxu2 %vm462_vm2, %v392_v9 }
  0x82   : > { %2577 = vmatmul.msk.bf16.gmra.mxu0 %vm462_vm2, %v746_v42 }
  0x83   : > { %2561 = vmatmul.msk.bf16.gmra.mxu3 %vm462_vm2, %v669_v44  ;;  %2593 = vmatmul.msk.bf16.gmra.mxu1 %vm462_vm2, %v821_v45  ;;  %v2652_v44 = vld [vmem:[%s4147_s3] sm:$0xf]  ;;  %v2819_v45 = vld [vmem:[%s4147_s3] sm:$0x30] }
  0x85   : > { %2609 = vmatmul.msk.bf16.gmra.mxu2 %vm462_vm2, %v889_v47  ;;  %v2653_v47 = vor.u32 %v2819_v45, %v2652_v44 }
  0x92   : > { %2638 = vmatmul.msk.bf16.vlgmr.msra.gmra.mxu0 %vm462_vm2, %v3201_v53 }
  0x93   : > { %2622 = vmatmul.msk.bf16.vlgmr.msra.gmra.mxu3 %vm462_vm2, %v3172_v43 }
  0x9f   : > { %v484_v49 = vpop.f32.mrf.mxu0 }
  0xa0   : > { %v548_v61 = vpop.f32.mrf.mxu1 }
  0xa2   : > { %2639 = vmatmul.msk.bf16.gmra.mxu0 %vm462_vm2, %v3267_v31 }
  0xa3   : > { %2623 = vmatmul.msk.bf16.gmra.mxu3 %vm462_vm2, %v3240_v16  ;;  %v1007_v16 = vpack.c.bf16 %v3301_v24, %v816_v35 }
  0xa6   : > { %v3384_v38 = vpop.f32.mrf.mxu3 }
  0xa7   : > { %v3386_v52 = vpop.f32.mrf.mxu0  ;;  %v549_v21 = vadd.f32 %v548_v61, %v3384_v38  ;;  %v3490_v38 = vld [vmem:[%s4146_s2] ss:$0 sm:$0xff] }
  0xa8   : > { %v3409_v4 = vpop.f32.mrf.mxu2 }
  0xae   : > { %v3388_v55 = vpop.f32.mrf.mxu3 }
  0xaf   : > { %v543_v56 = vpop.f32.mrf.mxu0 }
  0xb0   : > { %v544_v57 = vadd.f32 %v543_v56, %v484_v49  ;;  %v3416_v32 = vpop.f32.mrf.mxu2  ;;  %v1262_v49 = vsel %vm563_vm3, %v2653_v47, 0  ;;  %v2660_v56 = vld [vmem:[%s4147_s3 + $0x10] sm:$0xf] }
  0xb1   : > { %1271 = vmatpush.bf16.msra.mxu2 %v1262_v49 }
  0xb2   : > { %2640 = vmatmul.msk.bf16.gmra.mxu0 %vm462_vm2, %v598_v29  ;;  %v3414_v29 = vpop.f32.mrf.mxu1 }
  0xb3   : > { %2624 = vmatmul.msk.bf16.gmra.mxu3 %vm462_vm2, %v3309_v6  ;;  %v2820_v6 = vld [vmem:[%s4147_s3 + $0x8] sm:$0x30] }
  0xb4   : > { %v2645_v13 = vor.u32 %v2820_v6, %v2644_v5 }
  0xb6   : > { %v3393_v43 = vpop.f32.mrf.mxu3  ;;  %v1213_v17 = vsel %vm563_vm3, %v2645_v13, 0  ;;  %v2668_v13 = vld [vmem:[%s4147_s3 + $0x18] sm:$0xf] }
  0xb7   : > { %v545_v53 = vpop.f32.mrf.mxu0  ;;  %1222 = vmatpush.bf16.msra.mxu1 %v1213_v17  ;;  %v2822_v17 = vld [vmem:[%s4147_s3 + $0x18] sm:$0x30] }
  0xb8   : > { %v3420_v39 = vpop.f32.mrf.mxu2  ;;  %v2669_v44 = vor.u32 %v2822_v17, %v2668_v13 }
  0xba   : > { %v3418_v37 = vpop.f32.mrf.mxu1  ;;  %v1404_v49 = vsel %vm563_vm3, %v2669_v44, 0 }
  0xbb   : > { %1413 = vmatpush.bf16.msrb.mxu0 %v1404_v49 }
  0xbe   : > { %v3395_v31 = vpop.f32.mrf.mxu3 }
  0xbf   : > { %v638_v58 = vpop.f32.mrf.mxu0 }
  0xc0   : > { %v658_v60 = vadd.f32 %v638_v58, %v544_v57  ;;  %v3428_v46 = vpop.f32.mrf.mxu2  ;;  %v2821_v57 = vld [vmem:[%s4147_s3 + $0x10] sm:$0x30] }
  0xc2   : > { %2641 = vmatmul.msk.bf16.gmra.mxu0 %vm462_vm2, %v1007_v16  ;;  %v3424_v25 = vpop.f32.mrf.mxu1  ;;  %v2661_v16 = vor.u32 %v2821_v57, %v2660_v56  ;;  %v546_v56 = vadd.f32 %v545_v53, %v3386_v52 }
  0xc3   : > { %2625 = vmatmul.msk.bf16.gmra.mxu3 %vm462_vm2, %v948_v59 }
  0xc4   : > { %v1343_v59 = vsel %vm563_vm3, %v2661_v16, 0 }
  0xc5   : > { %1352 = vmatpush.bf16.msrb.mxu3 %v1343_v59 }
  0xc6   : > { %v3401_v62 = vpop.f32.mrf.mxu3 }
  0xc7   : > { %v640_v1 = vpop.f32.mrf.mxu0 }
  0xc8   : > { %v3436_v0 = vpop.f32.mrf.mxu2  ;;  %v659_v41 = vadd.f32 %v640_v1, %v546_v56  ;;  %v660_v1 = vadd.f32 %v3409_v4, %v549_v21 }
  0xca   : > { %v3430_v48 = vpop.f32.mrf.mxu1 }
  0xce   : > { %v3412_v9 = vpop.f32.mrf.mxu3 }
  0xcf   : > { %v786_v30 = vpop.f32.mrf.mxu0 }
  0xd0   : > { %v3444_v28 = vpop.f32.mrf.mxu2 }
  0xd2   : > { %v3440_v18 = vpop.f32.mrf.mxu1 }
  0xd6   : > { %v709_v33 = vpop.f32.mrf.mxu3 }
  0xd7   : > { %v788_v34 = vpop.f32.mrf.mxu0  ;;  %v729_v45 = vadd.f32 %v709_v33, %v658_v60  ;;  %v2676_v60 = vld [vmem:[%s4147_s3 + $0x20] sm:$0xf]  ;;  %v2823_v33 = vld [vmem:[%s4147_s3 + $0x20] sm:$0x30] }
  0xd8   : > { %v920_v58 = vpop.f32.mrf.mxu2  ;;  %v2677_v52 = vor.u32 %v2823_v33, %v2676_v60 }
  0xd9   : > { %v806_v57 = vadd.f32 %v786_v30, %v729_v45 }
  0xda   : > { %v861_v35 = vpop.f32.mrf.mxu1  ;;  %v1471_v17 = vsel %vm563_vm3, %v2677_v52, 0 }
  0xdb   : > { %v881_v2 = vadd.f32 %v861_v35, %v806_v57  ;;  %1480 = vmatpush.bf16.msrb.mxu1 %v1471_v17 }
  0xdd   : > { %v940_v53 = vadd.f32 %v920_v58, %v881_v2 }
  0xde   : > { %v711_v36 = vpop.f32.mrf.mxu3 }
  0xdf   : > { %v3422_v23 = vpop.f32.mrf.mxu0  ;;  %v730_v22 = vadd.f32 %v711_v36, %v659_v41 }
  0xe0   : > { %v922_v16 = vpop.f32.mrf.mxu2 }
  0xe1   : > { %v807_v30 = vadd.f32 %v788_v34, %v730_v22  ;;  %v551_v22 = vadd.f32 %v3414_v29, %v3388_v55 }
  0xe2   : > { %v863_v47 = vpop.f32.mrf.mxu1 }
  0xe3   : > { %v882_v45 = vadd.f32 %v863_v47, %v807_v30  ;;  %v661_v56 = vadd.f32 %v3416_v32, %v551_v22 }
  0xe5   : > { %v941_v4 = vadd.f32 %v922_v16, %v882_v45 }
  0xe6   : > { %v714_v40 = vpop.f32.mrf.mxu3 }
  0xe7   : > { %v3426_v26 = vpop.f32.mrf.mxu0  ;;  %v731_v36 = vadd.f32 %v714_v40, %v660_v1  ;;  %v554_v40 = vadd.f32 %v3418_v37, %v3393_v43 }
  0xe8   : > { %v925_v44 = vpop.f32.mrf.mxu2 }
  0xe9   : > { %v808_v21 = vadd.f32 %v3422_v23, %v731_v36  ;;  %v662_v43 = vadd.f32 %v3420_v39, %v554_v40 }
  0xea   : > { %v866_v13 = vpop.f32.mrf.mxu1 }
  0xee   : > { %v3432_v50 = vpop.f32.mrf.mxu3 }
  0xef   : > { %v3434_v51 = vpop.f32.mrf.mxu0  ;;  %v732_v47 = vadd.f32 %v3432_v50, %v661_v56  ;;  %v556_v56 = vadd.f32 %v3424_v25, %v3395_v31 }
  0xf0   : > { %v927_v16 = vpop.f32.mrf.mxu2 }
  0xf2   : > { %v868_v34 = vpop.f32.mrf.mxu1 }
  0xf6   : > { %v3438_v3 = vpop.f32.mrf.mxu3 }
  0xf7   : > { %v3442_v54 = vpop.f32.mrf.mxu0  ;;  %v733_v39 = vadd.f32 %v3438_v3, %v662_v43 }
  0xfe   : > { %v3446_v27 = vpop.f32.mrf.mxu3 }
  0xff   : > { %v3448_v42 = vpop.f32.mrf.mxu0 }
 0x106   : > { %v3464_v5 = vpop.f32.mrf.mxu3 }
 0x107   : > { %v3466_v6 = vpop.f32.mrf.mxu0 }
 0x10e   : > { %v3476_v59 = vpop.f32.mrf.mxu3 }
 0x10f   : > { %v1038_v15 = vpop.f32.mrf.mxu0 }
 0x116   : > { %v979_v35 = vpop.f32.mrf.mxu3 }
 0x117   : > { %v999_v41 = vadd.f32 %v979_v35, %v940_v53  ;;  %v1040_v61 = vpop.f32.mrf.mxu0 }
 0x119   : > { %v1058_v49 = vadd.f32 %v1038_v15, %v999_v41  ;;  %v883_v15 = vadd.f32 %v866_v13, %v808_v21  ;;  %v809_v13 = vadd.f32 %v3426_v26, %v732_v47 }
 0x11b   : > { %v1070_v2 = vadd.f32 %v3490_v38, %v1058_v49  ;;  %v942_v37 = vadd.f32 %v925_v44, %v883_v15  ;;  %v871_v44 = vpop.f32.mrf.mxu1  ;;  %v884_v21 = vadd.f32 %v868_v34, %v809_v13  ;;  %v663_v34 = vadd.f32 %v3428_v46, %v556_v56 }
 0x11d   : > { %v1078_v58 = vmax.f32 %v1070_v2, 0.0  ;;  %v943_v40 = vadd.f32 %v927_v16, %v884_v21 }
 0x11e   : > { %v981_v57 = vpop.f32.mrf.mxu3 }
 0x11f   : > { %v1094_v60 = vrot.slane %v1078_v58, 7  ;;  %v1000_v33 = vadd.f32 %v981_v57, %v941_v4  ;;  %v1043_v52 = vpop.f32.mrf.mxu0 }
 0x121   : > { %v1110_v55 = vsel %vm318_vm0, 0.0, %v1094_v60  ;;  %v1118_v29 = vsel %vm318_vm0, %v1094_v60, 0.0  ;;  %v1059_v23 = vadd.f32 %v1040_v61, %v1000_v33  ;;  %v810_v60 = vadd.f32 %v3434_v51, %v733_v39  ;;  %v930_v33 = vpop.f32.mrf.mxu2 }
 0x122   : > { %v1144_v53 = vpack.c.bf16 %v1110_v55, %v2975_v19  ;;  %v1162_v32 = vrot.slane %v1110_v55, 1  ;;  %v1163_v30 = vrot.slane %v1118_v29, 1  ;;  %v1293_v17 = vrot.slane %v1110_v55, 2 }
 0x123   : > { %v1294_v1 = vrot.slane %v1118_v29, 2  ;;  %v1071_v35 = vadd.f32 %v3490_v38, %v1059_v23  ;;  %v885_v23 = vadd.f32 %v871_v44, %v810_v60  ;;  %v734_v51 = vadd.f32 %v3446_v27, %v663_v34 }
 0x124   : > { %2654 = vmatmul.msk.bf16.vlgmr.msra.gmra.mxu2 %vm1199_vm4, %v1144_v53  ;;  %v3507_v50 = vsel %vm408_vm1, %v1162_v32, %v1163_v30  ;;  %v873_v30 = vpop.f32.mrf.mxu1 }
 0x125   : > { %v1079_v41 = vmax.f32 %v1071_v35, 0.0  ;;  %v1190_v61 = vpack.c.bf16 %v3507_v50, %v3130_v20  ;;  %v3513_v36 = vsel %vm563_vm3, %v1293_v17, %v1294_v1 }
 0x126   : > { %v984_v45 = vpop.f32.mrf.mxu3  ;;  %v1321_v49 = vpack.c.bf16 %v3513_v36, %v3301_v24 }
 0x127   : > { %v1095_v22 = vrot.slane %v1079_v41, 7  ;;  %v1001_v2 = vadd.f32 %v984_v45, %v942_v37  ;;  %2646 = vmatmul.msk.bf16.vlgmr.msra.gmra.mxu1 %vm1199_vm4, %v1190_v61  ;;  %v1045_v26 = vpop.f32.mrf.mxu0  ;;  %v944_v61 = vadd.f32 %v930_v33, %v885_v23  ;;  %v811_v45 = vadd.f32 %v3442_v54, %v734_v51  ;;  %v2684_v23 = vld [vmem:[%s4147_s3 + $0x28] sm:$0xf] }
 0x128   : > { %2662 = vmatmul.msk.bf16.vlgmr.msrb.gmra.mxu3 %vm1199_vm4, %v1321_v49 }
 0x129   : > { %v1111_v4 = vsel %vm318_vm0, 0.0, %v1095_v22  ;;  %v1060_v58 = vadd.f32 %v1043_v52, %v1001_v2  ;;  %v1119_v15 = vsel %vm318_vm0, %v1095_v22, 0.0  ;;  %v559_v52 = vadd.f32 %v3430_v48, %v3401_v62  ;;  %v932_v54 = vpop.f32.mrf.mxu2 }
 0x12a   : > { %v1382_v57 = vpack.c.bf16 %v1111_v4, %v1110_v55  ;;  %v1296_v55 = vrot.slane %v1111_v4, 2  ;;  %v1297_v53 = vrot.slane %v1119_v15, 2  ;;  %v1165_v32 = vrot.slane %v1111_v4, 1 }
 0x12b   : > { %v1072_v3 = vadd.f32 %v3490_v38, %v1060_v58  ;;  %v1166_v35 = vrot.slane %v1119_v15, 1  ;;  %v664_v48 = vadd.f32 %v3436_v0, %v559_v52  ;;  %v886_v60 = vadd.f32 %v873_v30, %v811_v45 }
 0x12c   : > { %2670 = vmatmul.msk.bf16.vlgmr.msrb.gmra.mxu0 %vm1199_vm4, %v1382_v57  ;;  %v3541_v49 = vsel %vm563_vm3, %v1296_v55, %v1297_v53  ;;  %v561_v57 = vadd.f32 %v3440_v18, %v3412_v9  ;;  %v876_v15 = vpop.f32.mrf.mxu1  ;;  %v2692_v55 = vld [vmem:[%s4147_s3 + $0x30] sm:$0xf]  ;;  %v2825_v53 = vld [vmem:[%s4147_s3 + $0x30] sm:$0x30] }
 0x12d   : > { %v1080_v47 = vmax.f32 %v1072_v3, 0.0  ;;  %v3547_v22 = vsel %vm408_vm1, %v1165_v32, %v1166_v35  ;;  %v945_v9 = vadd.f32 %v932_v54, %v886_v60 }
 0x12e   : > { %v986_v29 = vpop.f32.mrf.mxu3  ;;  %v665_v34 = vadd.f32 %v3444_v28, %v561_v57 }
 0x12f   : > { %v1096_v31 = vrot.slane %v1080_v47, 7  ;;  %v1002_v25 = vadd.f32 %v986_v29, %v943_v40  ;;  %v1048_v13 = vpop.f32.mrf.mxu0 }
 0x131   : > { %v1112_v16 = vsel %vm318_vm0, 0.0, %v1096_v31  ;;  %v1120_v17 = vsel %vm318_vm0, %v1096_v31, 0.0  ;;  %v1061_v1 = vadd.f32 %v1045_v26, %v1002_v25  ;;  %v735_v26 = vadd.f32 %v3464_v5, %v664_v48 }
 0x132   : > { %v1169_v46 = vrot.slane %v1120_v17, 1  ;;  %v1299_v43 = vrot.slane %v1112_v16, 2  ;;  %v1300_v37 = vrot.slane %v1120_v17, 2  ;;  %v3533_v62 = vpack.c.bf16 %v1112_v16, %v1111_v4 }
 0x133   : > { %v1073_v27 = vadd.f32 %v3490_v38, %v1061_v1  ;;  %v1168_v41 = vrot.slane %v1112_v16, 1  ;;  %v812_v33 = vadd.f32 %v3448_v42, %v735_v26  ;;  %v2824_v42 = vld [vmem:[%s4147_s3 + $0x28] sm:$0x30]  ;;  %v736_v25 = vadd.f32 %v3476_v59, %v665_v34  ;;  %v935_v1 = vpop.f32.mrf.mxu2 }
 0x134   : > { %2655 = vmatmul.msk.bf16.gmra.mxu2 %vm1199_vm4, %v3533_v62  ;;  %v3544_v39 = vsel %vm563_vm3, %v1299_v43, %v1300_v37  ;;  %v2685_v28 = vor.u32 %v2824_v42, %v2684_v23  ;;  %v2693_v17 = vor.u32 %v2825_v53, %v2692_v55  ;;  %v2708_v42 = vld [vmem:[%s4147_s3 + $0x40] sm:$0xf] }
 0x135   : > { %v1081_v44 = vmax.f32 %v1073_v27, 0.0  ;;  %v3550_v0 = vsel %vm408_vm1, %v1168_v41, %v1169_v46  ;;  %v3554_v2 = vpack.c.bf16 %v3544_v39, %v3541_v49  ;;  %v887_v31 = vadd.f32 %v876_v15, %v812_v33 }
 0x136   : > { %v989_v21 = vpop.f32.mrf.mxu3  ;;  %v3559_v4 = vpack.c.bf16 %v3550_v0, %v3547_v22  ;;  %v1536_v59 = vsel %vm563_vm3, %v2685_v28, 0  ;;  %v1585_v27 = vsel %vm563_vm3, %v2693_v17, 0 }
 0x137   : > { %v1097_v58 = vrot.slane %v1081_v44, 7  ;;  %v1003_v56 = vadd.f32 %v989_v21, %v944_v61  ;;  %v1050_v29 = vpop.f32.mrf.mxu0  ;;  %1545 = vmatpush.bf16.msrb.mxu2 %v1536_v59  ;;  %1594 = vmatpush.bf16.msra.mxu3 %v1585_v27  ;;  %v946_v54 = vadd.f32 %v935_v1, %v887_v31  ;;  %v2827_v31 = vld [vmem:[%s4147_s3 + $0x40] sm:$0x30] }
 0x138   : > { %2647 = vmatmul.msk.bf16.gmra.mxu1 %vm1199_vm4, %v3559_v4  ;;  %2663 = vmatmul.msk.bf16.gmra.mxu3 %vm1199_vm4, %v3554_v2  ;;  %v2709_v55 = vor.u32 %v2827_v31, %v2708_v42 }
 0x139   : > { %v1113_v3 = vsel %vm318_vm0, 0.0, %v1097_v58  ;;  %v1062_v5 = vadd.f32 %v1048_v13, %v1003_v56  ;;  %v1121_v18 = vsel %vm318_vm0, %v1097_v58, 0.0  ;;  %v813_v58 = vadd.f32 %v3466_v6, %v736_v25  ;;  %v2826_v6 = vld [vmem:[%s4147_s3 + $0x38] sm:$0x30] }
 0x13a   : > { %v1383_v40 = vpack.c.bf16 %v1113_v3, %v1112_v16  ;;  %v1302_v32 = vrot.slane %v1113_v3, 2  ;;  %v1303_v35 = vrot.slane %v1121_v18, 2  ;;  %v1171_v46 = vrot.slane %v1113_v3, 1 }
 0x13b   : > { %v1074_v47 = vadd.f32 %v3490_v38, %v1062_v5  ;;  %v1172_v43 = vrot.slane %v1121_v18, 1  ;;  %v878_v5 = vpop.f32.mrf.mxu1  ;;  %v937_v53 = vpop.f32.mrf.mxu2 }
 0x13c   : > { %2671 = vmatmul.msk.bf16.gmra.mxu0 %vm1199_vm4, %v1383_v40  ;;  %v3600_v57 = vsel %vm563_vm3, %v1302_v32, %v1303_v35  ;;  %v888_v25 = vadd.f32 %v878_v5, %v813_v58 }
 0x13d   : > { %v1082_v52 = vmax.f32 %v1074_v47, 0.0  ;;  %v3597_v56 = vsel %vm408_vm1, %v1171_v46, %v1172_v43 }
 0x13e   : > { %v991_v51 = vpop.f32.mrf.mxu3  ;;  %v947_v17 = vadd.f32 %v937_v53, %v888_v25  ;;  %v1514_v25 = vpack.c.bf16 %v3541_v49, %v3513_v36  ;;  %v1450_v36 = vpack.c.bf16 %v3597_v56, %v3550_v0 }
 0x13f   : > { %v1098_v30 = vrot.slane %v1082_v52, 7  ;;  %v1004_v16 = vadd.f32 %v991_v51, %v945_v9  ;;  %v1053_v34 = vpop.f32.mrf.mxu0 }
 0x141   : > { %v1114_v37 = vsel %vm318_vm0, 0.0, %v1098_v30  ;;  %v1122_v13 = vsel %vm318_vm0, %v1098_v30, 0.0  ;;  %v1063_v48 = vadd.f32 %v1050_v29, %v1004_v16  ;;  %v1683_v16 = vsel %vm563_vm3, %v2709_v55, 0 }
 0x142   : > { %v1175_v41 = vrot.slane %v1122_v13, 1  ;;  %v1305_v61 = vrot.slane %v1114_v37, 2  ;;  %v1306_v45 = vrot.slane %v1122_v13, 2  ;;  %v3590_v44 = vpack.c.bf16 %v1114_v37, %v1113_v3  ;;  %v2700_v3 = vld [vmem:[%s4147_s3 + $0x38] sm:$0xf]  ;;  %1692 = vmatpush.bf16.msra.mxu1 %v1683_v16 }
 0x143   : > { %v1075_v26 = vadd.f32 %v3490_v38, %v1063_v48  ;;  %v1174_v21 = vrot.slane %v1114_v37, 1  ;;  %v2701_v47 = vor.u32 %v2826_v6, %v2700_v3 }
 0x144   : > { %2656 = vmatmul.msk.bf16.gmra.mxu2 %vm1199_vm4, %v3590_v44  ;;  %v3603_v60 = vsel %vm563_vm3, %v1305_v61, %v1306_v45 }
 0x145   : > { %v1083_v33 = vmax.f32 %v1075_v26, 0.0  ;;  %v3612_v40 = vsel %vm408_vm1, %v1174_v21, %v1175_v41  ;;  %v3616_v15 = vpack.c.bf16 %v3603_v60, %v3600_v57  ;;  %v1634_v23 = vsel %vm563_vm3, %v2701_v47, 0 }
 0x146   : > { %v994_v29 = vpop.f32.mrf.mxu3  ;;  %v3620_v9 = vpack.c.bf16 %v3612_v40, %v3597_v56  ;;  %1643 = vmatpush.bf16.msra.mxu0 %v1634_v23 }
 0x147   : > { %v1099_v18 = vrot.slane %v1083_v33, 7  ;;  %v1005_v52 = vadd.f32 %v994_v29, %v946_v54  ;;  %v1055_v27 = vpop.f32.mrf.mxu0 }
 0x148   : > { %2648 = vmatmul.msk.bf16.gmra.mxu1 %vm1199_vm4, %v3620_v9  ;;  %2664 = vmatmul.msk.bf16.gmra.mxu3 %vm1199_vm4, %v3616_v15 }
 0x149   : > { %v1115_v51 = vsel %vm318_vm0, 0.0, %v1099_v18  ;;  %v1064_v28 = vadd.f32 %v1053_v34, %v1005_v52  ;;  %v1123_v1 = vsel %vm318_vm0, %v1099_v18, 0.0 }
 0x14a   : > { %v1384_v32 = vpack.c.bf16 %v1115_v51, %v1114_v37  ;;  %v1308_v13 = vrot.slane %v1115_v51, 2  ;;  %v1309_v48 = vrot.slane %v1123_v1, 2  ;;  %v1177_v41 = vrot.slane %v1115_v51, 1 }
 0x14b   : > { %v1076_v30 = vadd.f32 %v3490_v38, %v1064_v28  ;;  %v1178_v54 = vrot.slane %v1123_v1, 1  ;;  %v1515_v28 = vpack.c.bf16 %v3600_v57, %v3544_v39 }
 0x14c   : > { %2672 = vmatmul.msk.bf16.gmra.mxu0 %vm1199_vm4, %v1384_v32  ;;  %v1310_v33 = vsel %vm563_vm3, %v1308_v13, %v1309_v48 }
 0x14d   : > { %v1084_v35 = vmax.f32 %v1076_v30, 0.0  ;;  %v1179_v29 = vsel %vm408_vm1, %v1177_v41, %v1178_v54 }
 0x14e   : > { %v996_v46 = vpop.f32.mrf.mxu3 }
 0x14f   : > { %v1100_v43 = vrot.slane %v1084_v35, 7  ;;  %v1006_v59 = vadd.f32 %v996_v46, %v947_v17 }
 0x151   : > { %v1116_v37 = vsel %vm318_vm0, 0.0, %v1100_v43  ;;  %v1124_v61 = vsel %vm318_vm0, %v1100_v43, 0.0  ;;  %v1065_v45 = vadd.f32 %v1055_v27, %v1006_v59  ;;  %v2829_v27 = vld [vmem:[%s4149_s5 + $0x8] sm:$0x30] }
 0x152   : > { %v1181_v26 = vrot.slane %v1124_v61, 1  ;;  %v1311_v21 = vrot.slane %v1116_v37, 2  ;;  %v1312_v58 = vrot.slane %v1124_v61, 2  ;;  %v1147_v3 = vpack.c.bf16 %v1116_v37, %v1115_v51 }
 0x153   : > { %v1077_v6 = vadd.f32 %v3490_v38, %v1065_v45  ;;  %v1180_v5 = vrot.slane %v1116_v37, 1  ;;  %v1449_v51 = vpack.c.bf16 %v3547_v22, %v3507_v50  ;;  %v1516_v50 = vpack.c.bf16 %v1310_v33, %v3603_v60 }
 0x154   : > { %2657 = vmatmul.msk.bf16.gmra.mxu2 %vm1199_vm4, %v1147_v3  ;;  %v1313_v47 = vsel %vm563_vm3, %v1311_v21, %v1312_v58 }
 0x155   : > { %v1085_v34 = vmax.f32 %v1077_v6, 0.0  ;;  %v1182_v18 = vsel %vm408_vm1, %v1180_v5, %v1181_v26  ;;  %v1324_v52 = vpack.c.bf16 %v1313_v47, %v1310_v33 }
 0x156   : > { %v1193_v23 = vpack.c.bf16 %v1182_v18, %v1179_v29 }
 0x157   : > { %v1101_v42 = vrot.slane %v1085_v34, 7 }
 0x158   : > { %2649 = vmatmul.msk.bf16.gmra.mxu1 %vm1199_vm4, %v1193_v23  ;;  %2665 = vmatmul.msk.bf16.gmra.mxu3 %vm1199_vm4, %v1324_v52 }
 0x159   : > { %v1117_v38 = vsel %vm318_vm0, 0.0, %v1101_v42  ;;  %v1125_v49 = vsel %vm318_vm0, %v1101_v42, 0.0 }
 0x15a   : > { %v1385_v31 = vpack.c.bf16 %v1117_v38, %v1116_v37  ;;  %v1510_v39 = vrot.slane %v1117_v38, 2  ;;  %v1511_v22 = vrot.slane %v1125_v49, 2  ;;  %v1446_v0 = vrot.slane %v1125_v49, 1  ;;  %v2724_v49 = vld [vmem:[%s4149_s5] sm:$0xf] }
 0x15c   : > { %2673 = vmatmul.msk.bf16.gmra.mxu0 %vm1199_vm4, %v1385_v31 }
 0x164   : > { %2686 = vmatmul.msk.bf16.vlgmr.msrb.gmra.mxu2 %vm1199_vm4, %v1514_v25 }
 0x168   : > { %2678 = vmatmul.msk.bf16.vlgmr.msrb.gmra.mxu1 %vm1199_vm4, %v1449_v51  ;;  %2694 = vmatmul.msk.bf16.vlgmr.msra.gmra.mxu3 %vm1199_vm4, %v3533_v62  ;;  %v1451_v62 = vpack.c.bf16 %v1179_v29, %v3612_v40  ;;  %v1575_v40 = vpack.c.bf16 0.0, %v1117_v38 }
 0x16c   : > { %2702 = vmatmul.msk.bf16.vlgmr.msra.gmra.mxu0 %vm1199_vm4, %v3559_v4  ;;  %v1445_v4 = vrot.slane %v1117_v38, 1 }
 0x16e   : > { %v1447_v57 = vsel %vm408_vm1, %v1445_v4, %v1446_v0 }
 0x16f   : > { %v1452_v60 = vpack.c.bf16 %v1447_v57, %v1182_v18 }
 0x174   : > { %2687 = vmatmul.msk.bf16.gmra.mxu2 %vm1199_vm4, %v1515_v28 }
 0x178   : > { %2679 = vmatmul.msk.bf16.gmra.mxu1 %vm1199_vm4, %v1450_v36  ;;  %2695 = vmatmul.msk.bf16.gmra.mxu3 %vm1199_vm4, %v3590_v44  ;;  %v1512_v44 = vsel %vm563_vm3, %v1510_v39, %v1511_v22  ;;  %v2828_v39 = vld [vmem:[%s4149_s5] sm:$0x30] }
 0x179   : > { %v1517_v56 = vpack.c.bf16 %v1512_v44, %v1313_v47  ;;  %v1673_v61 = vpack.c.bf16 %v3301_v24, %v1512_v44  ;;  %v2725_v22 = vor.u32 %v2828_v39, %v2724_v49 }
 0x17c   : > { %2703 = vmatmul.msk.bf16.gmra.mxu0 %vm1199_vm4, %v3620_v9  ;;  %v1624_v9 = vpack.c.bf16 %v3130_v20, %v1447_v57  ;;  %v2732_v57 = vld [vmem:[%s4149_s5 + $0x10] sm:$0xf] }
 0x184   : > { %2688 = vmatmul.msk.bf16.gmra.mxu2 %vm1199_vm4, %v1516_v50 }
 0x188   : > { %2680 = vmatmul.msk.bf16.gmra.mxu1 %vm1199_vm4, %v1451_v62  ;;  %2696 = vmatmul.msk.bf16.gmra.mxu3 %vm1199_vm4, %v1147_v3 }
 0x18c   : > { %2704 = vmatmul.msk.bf16.gmra.mxu0 %vm1199_vm4, %v1193_v23 }
 0x194   : > { %2689 = vmatmul.msk.bf16.gmra.mxu2 %vm1199_vm4, %v1517_v56  ;;  %v1917_v56 = vsel %vm563_vm3, %v2725_v22, 0 }
 0x195   : > { %1926 = vmatpush.bf16.msrb.mxu3 %v1917_v56  ;;  %v2748_v56 = vld [vmem:[%s4149_s5 + $0x20] sm:$0xf] }
 0x198   : > { %2681 = vmatmul.msk.bf16.gmra.mxu1 %vm1199_vm4, %v1452_v60  ;;  %2697 = vmatmul.msk.bf16.gmra.mxu3 %vm1199_vm4, %v1575_v40  ;;  %v2830_v60 = vld [vmem:[%s4149_s5 + $0x10] sm:$0x30] }
 0x199   : > { %v2733_v40 = vor.u32 %v2830_v60, %v2732_v57  ;;  %v2832_v57 = vld [vmem:[%s4149_s5 + $0x20] sm:$0x30] }
 0x19a   : > { %v2749_v60 = vor.u32 %v2832_v57, %v2748_v56 }
 0x19c   : > { %2705 = vmatmul.msk.bf16.gmra.mxu0 %vm1199_vm4, %v1624_v9  ;;  %v1998_v9 = vsel %vm563_vm3, %v2733_v40, 0 }
 0x19d   : > { %2007 = vmatpush.bf16.msrb.mxu0 %v1998_v9  ;;  %v2126_v9 = vsel %vm563_vm3, %v2749_v60, 0 }
 0x1a4   : > { %v1224_v55 = vpop.f32.mrf.mxu1 }
 0x1a7   : > { %v1273_v30 = vpop.f32.mrf.mxu2 }
 0x1a8   : > { %2710 = vmatmul.msk.bf16.vlgmr.msra.gmra.mxu1 %vm1199_vm4, %v3554_v2  ;;  %v1274_v4 = vadd.f32 %v1273_v30, %v1224_v55  ;;  %v2740_v55 = vld [vmem:[%s4149_s5 + $0x18] sm:$0xf]  ;;  %v2831_v30 = vld [vmem:[%s4149_s5 + $0x18] sm:$0x30] }
 0x1a9   : > { %v1415_v35 = vpop.f32.mrf.mxu0 }
 0x1ab   : > { %v1354_v17 = vpop.f32.mrf.mxu3 }
 0x1ac   : > { %v3686_v53 = vpop.f32.mrf.mxu1 }
 0x1af   : > { %v1275_v1 = vpop.f32.mrf.mxu2 }
 0x1b0   : > { %v1276_v49 = vadd.f32 %v1275_v1, %v3686_v53 }
 0x1b1   : > { %v3703_v13 = vpop.f32.mrf.mxu0 }
 0x1b3   : > { %v3696_v43 = vpop.f32.mrf.mxu3 }
 0x1b4   : > { %v1375_v40 = vadd.f32 %v3696_v43, %v1276_v49 }
 0x1b5   : > { %v3688_v32 = vpop.f32.mrf.mxu1 }
 0x1b7   : > { %v3701_v59 = vpop.f32.mrf.mxu2 }
 0x1b8   : > { %2711 = vmatmul.msk.bf16.gmra.mxu1 %vm1199_vm4, %v3616_v15  ;;  %v2716_v15 = vld [vmem:[%s4149_s5 + $0x8] sm:$0xf] }
 0x1b9   : > { %v2717_v37 = vor.u32 %v2829_v27, %v2716_v15  ;;  %v3720_v26 = vpop.f32.mrf.mxu0  ;;  %v1374_v15 = vadd.f32 %v1354_v17, %v1274_v4 }
 0x1bb   : > { %v3705_v48 = vpop.f32.mrf.mxu3  ;;  %v1868_v45 = vsel %vm563_vm3, %v2717_v37, 0  ;;  %v2741_v37 = vor.u32 %v2831_v30, %v2740_v55  ;;  %v1435_v39 = vadd.f32 %v1415_v35, %v1374_v15  ;;  %v1279_v35 = vadd.f32 %v3701_v59, %v3688_v32 }
 0x1bc   : > { %1877 = vmatpush.bf16.msra.mxu2 %v1868_v45 }
 0x1bd   : > { %v3692_v16 = vpop.f32.mrf.mxu1  ;;  %v2059_v22 = vsel %vm563_vm3, %v2741_v37, 0 }
 0x1be   : > { %2068 = vmatpush.bf16.msrb.mxu1 %v2059_v22 }
 0x1bf   : > { %v3717_v54 = vpop.f32.mrf.mxu2 }
 0x1c0   : > { %2135 = vmatpush.bf16.msrb.mxu2 %v2126_v9  ;;  %v1281_v49 = vadd.f32 %v3717_v54, %v3692_v16 }
 0x1c1   : > { %v3728_v6 = vpop.f32.mrf.mxu0 }
 0x1c3   : > { %v3722_v21 = vpop.f32.mrf.mxu3 }
 0x1c5   : > { %v3694_v46 = vpop.f32.mrf.mxu1 }
 0x1c7   : > { %v3726_v3 = vpop.f32.mrf.mxu2 }
 0x1c8   : > { %2712 = vmatmul.msk.bf16.gmra.mxu1 %vm1199_vm4, %v1324_v52  ;;  %v1284_v54 = vadd.f32 %v3726_v3, %v3694_v46 }
 0x1c9   : > { %v3734_v34 = vpop.f32.mrf.mxu0 }
 0x1cb   : > { %v3730_v33 = vpop.f32.mrf.mxu3 }
 0x1cc   : > { %v1378_v46 = vadd.f32 %v3730_v33, %v1284_v54 }
 0x1cd   : > { %v3699_v2 = vpop.f32.mrf.mxu1 }
 0x1cf   : > { %v3732_v47 = vpop.f32.mrf.mxu2 }
 0x1d1   : > { %v3740_v42 = vpop.f32.mrf.mxu0 }
 0x1d3   : > { %v3736_v18 = vpop.f32.mrf.mxu3 }
 0x1d5   : > { %v3713_v41 = vpop.f32.mrf.mxu1 }
 0x1d7   : > { %v3738_v23 = vpop.f32.mrf.mxu2 }
 0x1d8   : > { %2713 = vmatmul.msk.bf16.gmra.mxu1 %vm1199_vm4, %v1673_v61 }
 0x1d9   : > { %v3748_v51 = vpop.f32.mrf.mxu0 }
 0x1db   : > { %v3742_v38 = vpop.f32.mrf.mxu3 }
 0x1dd   : > { %v3724_v58 = vpop.f32.mrf.mxu1 }
 0x1df   : > { %v3746_v25 = vpop.f32.mrf.mxu2 }
 0x1e1   : > { %v3754_v62 = vpop.f32.mrf.mxu0 }
 0x1e3   : > { %v3750_v28 = vpop.f32.mrf.mxu3 }
 0x1e5   : > { %v1482_v5 = vpop.f32.mrf.mxu1 }
 0x1e6   : > { %v1502_v17 = vadd.f32 %v1482_v5, %v1435_v39  ;;  %v1436_v5 = vadd.f32 %v3703_v13, %v1375_v40  ;;  %v1376_v39 = vadd.f32 %v3705_v48, %v1279_v35 }
 0x1e7   : > { %v1547_v50 = vpop.f32.mrf.mxu2 }
 0x1e8   : > { %v1567_v53 = vadd.f32 %v1547_v50, %v1502_v17  ;;  %v3799_v50 = vld [vmem:[%s4148_s4] ss:$0 sm:$0xff]  ;;  %v1437_v59 = vadd.f32 %v3720_v26, %v1376_v39 }
 0x1e9   : > { %v1645_v61 = vpop.f32.mrf.mxu0 }
 0x1eb   : > { %v1596_v44 = vpop.f32.mrf.mxu3 }
 0x1ec   : > { %v1616_v30 = vadd.f32 %v1596_v44, %v1567_v53 }
 0x1ed   : > { %v1484_v29 = vpop.f32.mrf.mxu1 }
 0x1ee   : > { %v1503_v37 = vadd.f32 %v1484_v29, %v1436_v5  ;;  %v1665_v43 = vadd.f32 %v1645_v61, %v1616_v30 }
 0x1ef   : > { %v1549_v27 = vpop.f32.mrf.mxu2 }
 0x1f0   : > { %v1568_v56 = vadd.f32 %v1549_v27, %v1503_v37  ;;  %v1377_v27 = vadd.f32 %v3722_v21, %v1281_v49 }
 0x1f1   : > { %v1647_v55 = vpop.f32.mrf.mxu0 }
 0x1f2   : > { %v1438_v35 = vadd.f32 %v3728_v6, %v1377_v27 }
 0x1f3   : > { %v1598_v4 = vpop.f32.mrf.mxu3 }
 0x1f4   : > { %v1617_v17 = vadd.f32 %v1598_v4, %v1568_v56 }
 0x1f5   : > { %v1487_v52 = vpop.f32.mrf.mxu1 }
 0x1f6   : > { %v1504_v44 = vadd.f32 %v1487_v52, %v1437_v59  ;;  %v1666_v53 = vadd.f32 %v1647_v55, %v1617_v17 }
 0x1f7   : > { %v1552_v15 = vpop.f32.mrf.mxu2 }
 0x1f8   : > { %v1569_v60 = vadd.f32 %v1552_v15, %v1504_v44  ;;  %v1439_v44 = vadd.f32 %v3734_v34, %v1378_v46 }
 0x1f9   : > { %v1650_v61 = vpop.f32.mrf.mxu0 }
 0x1fb   : > { %v1601_v22 = vpop.f32.mrf.mxu3 }
 0x1fc   : > { %v1618_v15 = vadd.f32 %v1601_v22, %v1569_v60 }
 0x1fd   : > { %v3744_v31 = vpop.f32.mrf.mxu1 }
 0x1fe   : > { %v1505_v39 = vadd.f32 %v3744_v31, %v1438_v35  ;;  %v1286_v31 = vadd.f32 %v3732_v47, %v3699_v2  ;;  %v1667_v33 = vadd.f32 %v1650_v61, %v1618_v15 }
 0x1ff   : > { %v1554_v29 = vpop.f32.mrf.mxu2 }
 0x200   : > { %v1570_v59 = vadd.f32 %v1554_v29, %v1505_v39  ;;  %v1379_v2 = vadd.f32 %v3736_v18, %v1286_v31 }
 0x201   : > { %v1652_v49 = vpop.f32.mrf.mxu0 }
 0x202   : > { %v1440_v34 = vadd.f32 %v3740_v42, %v1379_v2 }
 0x203   : > { %v1603_v40 = vpop.f32.mrf.mxu3 }
 0x204   : > { %v1619_v47 = vadd.f32 %v1603_v40, %v1570_v59 }
 0x205   : > { %v3752_v36 = vpop.f32.mrf.mxu1 }
 0x206   : > { %v1506_v60 = vadd.f32 %v3752_v36, %v1439_v44 }
 0x207   : > { %v1557_v3 = vpop.f32.mrf.mxu2 }
 0x208   : > { %v1571_v35 = vadd.f32 %v1557_v3, %v1506_v60 }
 0x20d   : > { %v3762_v0 = vpop.f32.mrf.mxu1 }
 0x20e   : > { %v1507_v3 = vadd.f32 %v3762_v0, %v1440_v34 }
 0x215   : > { %v3778_v45 = vpop.f32.mrf.mxu1 }
 0x21d   : > { %v3790_v1 = vpop.f32.mrf.mxu1 }
 0x225   : > { %v1694_v32 = vpop.f32.mrf.mxu1 }
 0x226   : > { %v1714_v13 = vadd.f32 %v1694_v32, %v1665_v43 }
 0x228   : > { %v1726_v48 = vadd.f32 %v3799_v50, %v1714_v13 }
 0x22a   : > { %v1734_v57 = vmax.f32 %v1726_v48, 0.0  ;;  %v1606_v48 = vpop.f32.mrf.mxu3 }
 0x22b   : > { %v1620_v46 = vadd.f32 %v1606_v48, %v1571_v35 }
 0x22c   : > { %v1750_v9 = vrot.slane %v1734_v57, 7 }
 0x22d   : > { %v1696_v16 = vpop.f32.mrf.mxu1 }
 0x22e   : > { %v1766_v26 = vsel %vm318_vm0, 0.0, %v1750_v9  ;;  %v1774_v52 = vsel %vm318_vm0, %v1750_v9, 0.0  ;;  %v1715_v4 = vadd.f32 %v1696_v16, %v1666_v53  ;;  %v1559_v16 = vpop.f32.mrf.mxu2 }
 0x22f   : > { %v1800_v5 = vpack.c.bf16 %v1766_v26, %v2975_v19  ;;  %v1818_v21 = vrot.slane %v1766_v26, 1  ;;  %v1819_v30 = vrot.slane %v1774_v52, 1  ;;  %v1948_v37 = vrot.slane %v1766_v26, 2 }
 0x230   : > { %v1949_v55 = vrot.slane %v1774_v52, 2  ;;  %v1727_v6 = vadd.f32 %v3799_v50, %v1715_v4  ;;  %v1668_v52 = vadd.f32 %v1652_v49, %v1619_v47  ;;  %v1655_v4 = vpop.f32.mrf.mxu0  ;;  %v1572_v44 = vadd.f32 %v1559_v16, %v1507_v3 }
 0x231   : > { %v3815_v56 = vsel %vm408_vm1, %v1818_v21, %v1819_v30  ;;  %2726 = vmatmul.msk.bf16.vlgmr.msrb.gmra.mxu3 %vm1199_vm4, %v1800_v5 }
 0x232   : > { %v1846_v19 = vpack.c.bf16 %v3815_v56, %v3130_v20  ;;  %v3822_v43 = vsel %vm563_vm3, %v1948_v37, %v1949_v55  ;;  %v1735_v22 = vmax.f32 %v1727_v6, 0.0 }
 0x233   : > { %v1976_v32 = vpack.c.bf16 %v3822_v43, %v3301_v24 }
 0x234   : > { %v1751_v13 = vrot.slane %v1735_v22, 7  ;;  %2718 = vmatmul.msk.bf16.vlgmr.msra.gmra.mxu2 %vm1199_vm4, %v1846_v19  ;;  %v1608_v19 = vpop.f32.mrf.mxu3 }
 0x235   : > { %2734 = vmatmul.msk.bf16.vlgmr.msrb.gmra.mxu0 %vm1199_vm4, %v1976_v32  ;;  %v1699_v17 = vpop.f32.mrf.mxu1 }
 0x236   : > { %v1767_v27 = vsel %vm318_vm0, 0.0, %v1751_v13  ;;  %v1716_v57 = vadd.f32 %v1699_v17, %v1667_v33  ;;  %v1775_v53 = vsel %vm318_vm0, %v1751_v13, 0.0  ;;  %v1291_v17 = vadd.f32 %v3746_v25, %v3724_v58  ;;  %v1562_v2 = vpop.f32.mrf.mxu2 }
 0x237   : > { %v2037_v9 = vpack.c.bf16 %v1767_v27, %v1766_v26  ;;  %v1821_v5 = vrot.slane %v1767_v27, 1  ;;  %v1822_v18 = vrot.slane %v1775_v53, 1  ;;  %v1951_v40 = vrot.slane %v1767_v27, 2 }
 0x238   : > { %v1728_v29 = vadd.f32 %v3799_v50, %v1716_v57  ;;  %v1952_v21 = vrot.slane %v1775_v53, 2  ;;  %v1289_v26 = vadd.f32 %v3738_v23, %v3713_v41  ;;  %v1621_v58 = vadd.f32 %v1608_v19, %v1572_v44 }
 0x239   : > { %2742 = vmatmul.msk.bf16.vlgmr.msrb.gmra.mxu1 %vm1199_vm4, %v2037_v9  ;;  %v3847_v49 = vsel %vm408_vm1, %v1821_v5, %v1822_v18  ;;  %v1381_v9 = vadd.f32 %v3750_v28, %v1291_v17  ;;  %v2833_v28 = vld [vmem:[%s4149_s5 + $0x28] sm:$0x30] }
 0x23a   : > { %v1736_v61 = vmax.f32 %v1728_v29, 0.0  ;;  %v3853_v23 = vsel %vm563_vm3, %v1951_v40, %v1952_v21  ;;  %v1380_v59 = vadd.f32 %v3742_v38, %v1289_v26  ;;  %v1669_v38 = vadd.f32 %v1655_v4, %v1620_v46  ;;  %v1657_v29 = vpop.f32.mrf.mxu0 }
 0x23b   : > { %v1670_v18 = vadd.f32 %v1657_v29, %v1621_v58  ;;  %v2772_v58 = vld [vmem:[%s4149_s5 + $0x38] sm:$0xf] }
 0x23c   : > { %v1752_v54 = vrot.slane %v1736_v61, 7  ;;  %v1441_v57 = vadd.f32 %v3748_v51, %v1380_v59  ;;  %v1611_v35 = vpop.f32.mrf.mxu3  ;;  %v2756_v51 = vld [vmem:[%s4149_s5 + $0x28] sm:$0xf] }
 0x23d   : > { %v1701_v36 = vpop.f32.mrf.mxu1 }
 0x23e   : > { %v1768_v30 = vsel %vm318_vm0, 0.0, %v1752_v54  ;;  %v1776_v37 = vsel %vm318_vm0, %v1752_v54, 0.0  ;;  %v1717_v15 = vadd.f32 %v1701_v36, %v1668_v52  ;;  %v1508_v25 = vadd.f32 %v3778_v45, %v1441_v57 }
 0x23f   : > { %v1824_v39 = vrot.slane %v1768_v30, 1  ;;  %v1825_v55 = vrot.slane %v1776_v37, 1  ;;  %v1954_v42 = vrot.slane %v1768_v30, 2  ;;  %v1955_v6 = vrot.slane %v1776_v37, 2 }
 0x240   : > { %v1729_v22 = vadd.f32 %v3799_v50, %v1717_v15  ;;  %v3844_v31 = vpack.c.bf16 %v1768_v30, %v1767_v27  ;;  %v1442_v54 = vadd.f32 %v3754_v62, %v1381_v9  ;;  %v2757_v45 = vor.u32 %v2833_v28, %v2756_v51  ;;  %v2764_v62 = vld [vmem:[%s4149_s5 + $0x30] sm:$0xf]  ;;  %v2780_v51 = vld [vmem:[%s4149_s5 + $0x40] sm:$0xf]  ;;  %v2836_v28 = vld [vmem:[%s4149_s5 + $0x40] sm:$0x30] }
 0x241   : > { %v3850_v41 = vsel %vm408_vm1, %v1824_v39, %v1825_v55  ;;  %v3856_v32 = vsel %vm563_vm3, %v1954_v42, %v1955_v6  ;;  %v1573_v52 = vadd.f32 %v1562_v2, %v1508_v25  ;;  %v2834_v42 = vld [vmem:[%s4149_s5 + $0x30] sm:$0x30]  ;;  %v2835_v25 = vld [vmem:[%s4149_s5 + $0x38] sm:$0x30] }
 0x242   : > { %v1737_v0 = vmax.f32 %v1729_v22, 0.0  ;;  %2727 = vmatmul.msk.bf16.gmra.mxu3 %vm1199_vm4, %v3844_v31  ;;  %v3863_v13 = vpack.c.bf16 %v3850_v41, %v3847_v49  ;;  %v3867_v33 = vpack.c.bf16 %v3856_v32, %v3853_v23  ;;  %v1509_v37 = vadd.f32 %v3790_v1, %v1442_v54  ;;  %v1564_v1 = vpop.f32.mrf.mxu2  ;;  %v1660_v44 = vpop.f32.mrf.mxu0 }
 0x243   : > { %v1622_v22 = vadd.f32 %v1611_v35, %v1573_v52  ;;  %v2765_v17 = vor.u32 %v2834_v42, %v2764_v62  ;;  %v2781_v52 = vor.u32 %v2836_v28, %v2780_v51  ;;  %v2169_v51 = vpack.c.bf16 %v3853_v23, %v3822_v43 }
 0x244   : > { %v1753_v48 = vrot.slane %v1737_v0, 7  ;;  %2719 = vmatmul.msk.bf16.gmra.mxu2 %vm1199_vm4, %v3863_v13  ;;  %v1574_v29 = vadd.f32 %v1564_v1, %v1509_v37  ;;  %v2104_v28 = vpack.c.bf16 %v3847_v49, %v3815_v56 }
 0x245   : > { %2735 = vmatmul.msk.bf16.gmra.mxu0 %vm1199_vm4, %v3867_v33  ;;  %v1704_v27 = vpop.f32.mrf.mxu1  ;;  %v2240_v9 = vsel %vm563_vm3, %v2765_v17, 0  ;;  %v1671_v35 = vadd.f32 %v1660_v44, %v1622_v22 }
 0x246   : > { %v1769_v47 = vsel %vm318_vm0, 0.0, %v1753_v48  ;;  %v1718_v60 = vadd.f32 %v1704_v27, %v1669_v38  ;;  %v1777_v34 = vsel %vm318_vm0, %v1753_v48, 0.0  ;;  %2249 = vmatpush.bf16.msra.mxu0 %v2240_v9 }
 0x247   : > { %v2038_v61 = vpack.c.bf16 %v1769_v47, %v1768_v30  ;;  %v1827_v4 = vrot.slane %v1769_v47, 1  ;;  %v1828_v40 = vrot.slane %v1777_v34, 1  ;;  %v1957_v21 = vrot.slane %v1769_v47, 2 }
 0x248   : > { %v1730_v53 = vadd.f32 %v3799_v50, %v1718_v60  ;;  %v1958_v36 = vrot.slane %v1777_v34, 2  ;;  %v2191_v30 = vsel %vm563_vm3, %v2757_v45, 0  ;;  %v2773_v34 = vor.u32 %v2835_v25, %v2772_v58 }
 0x249   : > { %2743 = vmatmul.msk.bf16.gmra.mxu1 %vm1199_vm4, %v2038_v61  ;;  %2200 = vmatpush.bf16.msra.mxu3 %v2191_v30  ;;  %v3903_v48 = vsel %vm408_vm1, %v1827_v4, %v1828_v40  ;;  %v2338_v40 = vsel %vm563_vm3, %v2781_v52, 0 }
 0x24a   : > { %v1738_v16 = vmax.f32 %v1730_v53, 0.0  ;;  %v3909_v27 = vsel %vm563_vm3, %v1957_v21, %v1958_v36  ;;  %v1613_v53 = vpop.f32.mrf.mxu3  ;;  %v2289_v21 = vsel %vm563_vm3, %v2773_v34, 0  ;;  %2347 = vmatpush.bf16.msra.mxu2 %v2338_v40  ;;  %v1662_v30 = vpop.f32.mrf.mxu0  ;;  %v2105_v43 = vpack.c.bf16 %v3903_v48, %v3850_v41 }
 0x24b   : > { %v1623_v4 = vadd.f32 %v1613_v53, %v1574_v29  ;;  %2298 = vmatpush.bf16.msra.mxu1 %v2289_v21 }
 0x24c   : > { %v1754_v5 = vrot.slane %v1738_v16, 7 }
 0x24d   : > { %v1706_v26 = vpop.f32.mrf.mxu1 }
 0x24e   : > { %v1770_v15 = vsel %vm318_vm0, 0.0, %v1754_v5  ;;  %v1778_v39 = vsel %vm318_vm0, %v1754_v5, 0.0  ;;  %v1719_v55 = vadd.f32 %v1706_v26, %v1670_v18 }
 0x24f   : > { %v1830_v6 = vrot.slane %v1770_v15, 1  ;;  %v1831_v46 = vrot.slane %v1778_v39, 1  ;;  %v1960_v3 = vrot.slane %v1770_v15, 2  ;;  %v1961_v19 = vrot.slane %v1778_v39, 2 }
 0x250   : > { %v1731_v59 = vadd.f32 %v3799_v50, %v1719_v55  ;;  %v3900_v0 = vpack.c.bf16 %v1770_v15, %v1769_v47  ;;  %v1672_v39 = vadd.f32 %v1662_v30, %v1623_v4 }
 0x251   : > { %v3906_v38 = vsel %vm408_vm1, %v1830_v6, %v1831_v46  ;;  %v3912_v57 = vsel %vm563_vm3, %v1960_v3, %v1961_v19 }
 0x252   : > { %v1739_v2 = vmax.f32 %v1731_v59, 0.0  ;;  %2728 = vmatmul.msk.bf16.gmra.mxu3 %vm1199_vm4, %v3900_v0  ;;  %v3918_v47 = vpack.c.bf16 %v3906_v38, %v3903_v48  ;;  %v3922_v60 = vpack.c.bf16 %v3912_v57, %v3909_v27 }
 0x254   : > { %v1755_v61 = vrot.slane %v1739_v2, 7  ;;  %2720 = vmatmul.msk.bf16.gmra.mxu2 %vm1199_vm4, %v3918_v47 }
 0x255   : > { %2736 = vmatmul.msk.bf16.gmra.mxu0 %vm1199_vm4, %v3922_v60  ;;  %v1709_v16 = vpop.f32.mrf.mxu1 }
 0x256   : > { %v1771_v54 = vsel %vm318_vm0, 0.0, %v1755_v61  ;;  %v1720_v45 = vadd.f32 %v1709_v16, %v1671_v35  ;;  %v1779_v36 = vsel %vm318_vm0, %v1755_v61, 0.0 }
 0x257   : > { %v2039_v18 = vpack.c.bf16 %v1771_v54, %v1770_v15  ;;  %v1833_v55 = vrot.slane %v1771_v54, 1  ;;  %v1834_v62 = vrot.slane %v1779_v36, 1  ;;  %v1963_v42 = vrot.slane %v1771_v54, 2 }
 0x258   : > { %v1732_v5 = vadd.f32 %v3799_v50, %v1720_v45  ;;  %v1964_v6 = vrot.slane %v1779_v36, 2 }
 0x259   : > { %2744 = vmatmul.msk.bf16.gmra.mxu1 %vm1199_vm4, %v2039_v18  ;;  %v1835_v9 = vsel %vm408_vm1, %v1833_v55, %v1834_v62 }
 0x25a   : > { %v1740_v26 = vmax.f32 %v1732_v5, 0.0  ;;  %v1965_v58 = vsel %vm563_vm3, %v1963_v42, %v1964_v6 }
 0x25b   : > { %v2171_v56 = vpack.c.bf16 %v1965_v58, %v3912_v57 }
 0x25c   : > { %v1756_v37 = vrot.slane %v1740_v26, 7 }
 0x25d   : > { %v1711_v46 = vpop.f32.mrf.mxu1 }
 0x25e   : > { %v1772_v15 = vsel %vm318_vm0, 0.0, %v1756_v37  ;;  %v1780_v3 = vsel %vm318_vm0, %v1756_v37, 0.0  ;;  %v1721_v19 = vadd.f32 %v1711_v46, %v1672_v39 }
 0x25f   : > { %v1836_v22 = vrot.slane %v1772_v15, 1  ;;  %v1837_v1 = vrot.slane %v1780_v3, 1  ;;  %v1966_v59 = vrot.slane %v1772_v15, 2  ;;  %v1967_v17 = vrot.slane %v1780_v3, 2 }
 0x260   : > { %v1733_v44 = vadd.f32 %v3799_v50, %v1721_v19  ;;  %v1803_v2 = vpack.c.bf16 %v1772_v15, %v1771_v54  ;;  %v2170_v54 = vpack.c.bf16 %v3909_v27, %v3856_v32 }
 0x261   : > { %v1838_v29 = vsel %vm408_vm1, %v1836_v22, %v1837_v1  ;;  %v1968_v25 = vsel %vm563_vm3, %v1966_v59, %v1967_v17 }
 0x262   : > { %v1741_v53 = vmax.f32 %v1733_v44, 0.0  ;;  %2729 = vmatmul.msk.bf16.gmra.mxu3 %vm1199_vm4, %v1803_v2  ;;  %v1849_v61 = vpack.c.bf16 %v1838_v29, %v1835_v9  ;;  %v1979_v35 = vpack.c.bf16 %v1968_v25, %v1965_v58 }
 0x264   : > { %v1757_v34 = vrot.slane %v1741_v53, 7  ;;  %2721 = vmatmul.msk.bf16.gmra.mxu2 %vm1199_vm4, %v1849_v61 }
 0x265   : > { %2737 = vmatmul.msk.bf16.gmra.mxu0 %vm1199_vm4, %v1979_v35 }
 0x266   : > { %v1773_v50 = vsel %vm318_vm0, 0.0, %v1757_v34  ;;  %v1781_v49 = vsel %vm318_vm0, %v1757_v34, 0.0 }
 0x267   : > { %v2040_v16 = vpack.c.bf16 %v1773_v50, %v1772_v15  ;;  %v2165_v41 = vrot.slane %v1773_v50, 2  ;;  %v2166_v23 = vrot.slane %v1781_v49, 2  ;;  %v2100_v32 = vrot.slane %v1773_v50, 1 }
 0x268   : > { %v2230_v57 = vpack.c.bf16 0.0, %v1773_v50 }
 0x269   : > { %2745 = vmatmul.msk.bf16.gmra.mxu1 %vm1199_vm4, %v2040_v16 }
 0x272   : > { %2758 = vmatmul.msk.bf16.vlgmr.msra.gmra.mxu3 %vm1199_vm4, %v2169_v51 }
 0x274   : > { %2750 = vmatmul.msk.bf16.vlgmr.msrb.gmra.mxu2 %vm1199_vm4, %v2104_v28 }
 0x275   : > { %2766 = vmatmul.msk.bf16.vlgmr.msra.gmra.mxu0 %vm1199_vm4, %v3844_v31  ;;  %v2106_v31 = vpack.c.bf16 %v1835_v9, %v3906_v38 }
 0x279   : > { %2774 = vmatmul.msk.bf16.vlgmr.msra.gmra.mxu1 %vm1199_vm4, %v3863_v13  ;;  %v2101_v13 = vrot.slane %v1781_v49, 1 }
 0x27b   : > { %v2102_v48 = vsel %vm408_vm1, %v2100_v32, %v2101_v13 }
 0x27c   : > { %v2107_v38 = vpack.c.bf16 %v2102_v48, %v1838_v29 }
 0x282   : > { %2759 = vmatmul.msk.bf16.gmra.mxu3 %vm1199_vm4, %v2170_v54 }
 0x284   : > { %2751 = vmatmul.msk.bf16.gmra.mxu2 %vm1199_vm4, %v2105_v43 }
 0x285   : > { %2767 = vmatmul.msk.bf16.gmra.mxu0 %vm1199_vm4, %v3900_v0  ;;  %v2167_v0 = vsel %vm563_vm3, %v2165_v41, %v2166_v23 }
 0x286   : > { %v2172_v27 = vpack.c.bf16 %v2167_v0, %v1968_v25  ;;  %v2328_v37 = vpack.c.bf16 %v3301_v24, %v2167_v0 }
 0x289   : > { %2775 = vmatmul.msk.bf16.gmra.mxu1 %vm1199_vm4, %v3918_v47  ;;  %v2279_v47 = vpack.c.bf16 %v3130_v20, %v2102_v48 }
 0x292   : > { %2760 = vmatmul.msk.bf16.gmra.mxu3 %vm1199_vm4, %v2171_v56 }
 0x294   : > { %2752 = vmatmul.msk.bf16.gmra.mxu2 %vm1199_vm4, %v2106_v31 }
 0x295   : > { %2768 = vmatmul.msk.bf16.gmra.mxu0 %vm1199_vm4, %v1803_v2 }
 0x299   : > { %2776 = vmatmul.msk.bf16.gmra.mxu1 %vm1199_vm4, %v1849_v61 }
 0x2a2   : > { %2761 = vmatmul.msk.bf16.gmra.mxu3 %vm1199_vm4, %v2172_v27 }
 0x2a4   : > { %2753 = vmatmul.msk.bf16.gmra.mxu2 %vm1199_vm4, %v2107_v38 }
 0x2a5   : > { %2769 = vmatmul.msk.bf16.gmra.mxu0 %vm1199_vm4, %v2230_v57 }
 0x2a9   : > { %2777 = vmatmul.msk.bf16.gmra.mxu1 %vm1199_vm4, %v2279_v47 }
 0x2b2   : > { %v2009_v40 = vpop.f32.mrf.mxu0 }
 0x2b4   : > { %2782 = vmatmul.msk.bf16.vlgmr.msra.gmra.mxu2 %vm1199_vm4, %v3867_v33  ;;  %v1928_v5 = vpop.f32.mrf.mxu3 }
 0x2b6   : > { %v2070_v21 = vpop.f32.mrf.mxu1 }
 0x2b7   : > { %v1879_v45 = vpop.f32.mrf.mxu2 }
 0x2b8   : > { %v1929_v51 = vadd.f32 %v1928_v5, %v1879_v45 }
 0x2ba   : > { %v2011_v26 = vpop.f32.mrf.mxu0  ;;  %v2029_v54 = vadd.f32 %v2009_v40, %v1929_v51 }
 0x2bc   : > { %v1930_v20 = vpop.f32.mrf.mxu3  ;;  %v2090_v49 = vadd.f32 %v2070_v21, %v2029_v54 }
 0x2be   : > { %v2072_v33 = vpop.f32.mrf.mxu1 }
 0x2bf   : > { %v1881_v52 = vpop.f32.mrf.mxu2 }
 0x2c0   : > { %v1931_v31 = vadd.f32 %v1930_v20, %v1881_v52  ;;  %v4043_v52 = vld [vmem:[%s4150_s6] ss:$0 sm:$0xff] }
 0x2c2   : > { %v2030_v32 = vadd.f32 %v2011_v26, %v1931_v31 }
 0x2c4   : > { %2783 = vmatmul.msk.bf16.gmra.mxu2 %vm1199_vm4, %v3922_v60  ;;  %v2014_v60 = vpop.f32.mrf.mxu0  ;;  %v2091_v38 = vadd.f32 %v2072_v33, %v2030_v32 }
 0x2c5   : > { %v1933_v39 = vpop.f32.mrf.mxu3 }
 0x2c6   : > { %v2075_v62 = vpop.f32.mrf.mxu1 }
 0x2c7   : > { %v1884_v4 = vpop.f32.mrf.mxu2 }
 0x2c8   : > { %v1934_v27 = vadd.f32 %v1933_v39, %v1884_v4 }
 0x2ca   : > { %v2031_v40 = vadd.f32 %v2014_v60, %v1934_v27 }
 0x2cc   : > { %v2016_v46 = vpop.f32.mrf.mxu0  ;;  %v2092_v4 = vadd.f32 %v2075_v62, %v2031_v40 }
 0x2cd   : > { %v1935_v42 = vpop.f32.mrf.mxu3 }
 0x2ce   : > { %v2077_v15 = vpop.f32.mrf.mxu1 }
 0x2cf   : > { %v3997_v18 = vpop.f32.mrf.mxu2 }
 0x2d0   : > { %v1936_v26 = vadd.f32 %v1935_v42, %v3997_v18 }
 0x2d4   : > { %2784 = vmatmul.msk.bf16.gmra.mxu2 %vm1199_vm4, %v1979_v35  ;;  %v4010_v22 = vpop.f32.mrf.mxu0 }
 0x2d5   : > { %v1938_v3 = vpop.f32.mrf.mxu3 }
 0x2d6   : > { %v4012_v1 = vpop.f32.mrf.mxu1 }
 0x2d7   : > { %v4000_v36 = vpop.f32.mrf.mxu2 }
 0x2d8   : > { %v1939_v18 = vadd.f32 %v1938_v3, %v4000_v36 }
 0x2dc   : > { %v4016_v17 = vpop.f32.mrf.mxu0 }
 0x2dd   : > { %v4014_v24 = vpop.f32.mrf.mxu3 }
 0x2de   : > { %v4018_v2 = vpop.f32.mrf.mxu1 }
 0x2df   : > { %v4002_v30 = vpop.f32.mrf.mxu2 }
 0x2e4   : > { %2785 = vmatmul.msk.bf16.gmra.mxu2 %vm1199_vm4, %v2328_v37  ;;  %v4022_v29 = vpop.f32.mrf.mxu0 }
 0x2e5   : > { %v4020_v9 = vpop.f32.mrf.mxu3 }
 0x2e6   : > { %v4024_v25 = vpop.f32.mrf.mxu1 }
 0x2e7   : > { %v4006_v55 = vpop.f32.mrf.mxu2 }
 0x2ec   : > { %v4030_v35 = vpop.f32.mrf.mxu0 }
 0x2ed   : > { %v4026_v53 = vpop.f32.mrf.mxu3 }
 0x2ee   : > { %v4032_v34 = vpop.f32.mrf.mxu1 }
 0x2ef   : > { %v4008_v6 = vpop.f32.mrf.mxu2 }
 0x2f4   : > { %v2251_v28 = vpop.f32.mrf.mxu0 }
 0x2f5   : > { %v2202_v50 = vpop.f32.mrf.mxu3 }
 0x2f6   : > { %v2300_v43 = vpop.f32.mrf.mxu1 }
 0x2f7   : > { %v2137_v19 = vpop.f32.mrf.mxu2 }
 0x2f8   : > { %v2157_v23 = vadd.f32 %v2137_v19, %v2090_v49 }
 0x2fa   : > { %v2222_v0 = vadd.f32 %v2202_v50, %v2157_v23  ;;  %v2032_v50 = vadd.f32 %v2016_v46, %v1936_v26 }
 0x2fc   : > { %v2253_v13 = vpop.f32.mrf.mxu0  ;;  %v2271_v45 = vadd.f32 %v2251_v28, %v2222_v0  ;;  %v2093_v62 = vadd.f32 %v2077_v15, %v2032_v50  ;;  %v1946_v50 = vadd.f32 %v4026_v53, %v4008_v6 }
 0x2fd   : > { %v2204_v41 = vpop.f32.mrf.mxu3 }
 0x2fe   : > { %v2302_v57 = vpop.f32.mrf.mxu1  ;;  %v2320_v51 = vadd.f32 %v2300_v43, %v2271_v45 }
 0x2ff   : > { %v2139_v59 = vpop.f32.mrf.mxu2 }
 0x300   : > { %v2158_v47 = vadd.f32 %v2139_v59, %v2091_v38 }
 0x302   : > { %v2223_v37 = vadd.f32 %v2204_v41, %v2158_v47 }
 0x304   : > { %v2256_v21 = vpop.f32.mrf.mxu0  ;;  %v2272_v60 = vadd.f32 %v2253_v13, %v2223_v37  ;;  %v2033_v13 = vadd.f32 %v4010_v22, %v1939_v18 }
 0x305   : > { %v2207_v5 = vpop.f32.mrf.mxu3 }
 0x306   : > { %v2305_v59 = vpop.f32.mrf.mxu1  ;;  %v2321_v49 = vadd.f32 %v2302_v57, %v2272_v60  ;;  %v1941_v57 = vadd.f32 %v4014_v24, %v4002_v30  ;;  %v2094_v47 = vadd.f32 %v4012_v1, %v2033_v13 }
 0x307   : > { %v2142_v44 = vpop.f32.mrf.mxu2 }
 0x308   : > { %v2159_v39 = vadd.f32 %v2142_v44, %v2092_v4  ;;  %v2034_v7 = vadd.f32 %v4016_v17, %v1941_v57 }
 0x30a   : > { %v2224_v43 = vadd.f32 %v2207_v5, %v2159_v39 }
 0x30c   : > { %v2258_v44 = vpop.f32.mrf.mxu0  ;;  %v2273_v32 = vadd.f32 %v2256_v21, %v2224_v43  ;;  %v1944_v21 = vadd.f32 %v4020_v9, %v4006_v55 }
 0x30d   : > { %v2209_v54 = vpop.f32.mrf.mxu3 }
 0x30e   : > { %v2307_v0 = vpop.f32.mrf.mxu1  ;;  %v2322_v15 = vadd.f32 %v2305_v59, %v2273_v32  ;;  %v4159_v59 = vunpack.c.h.bf16 %v3103_v8  ;;  %v2036_v8 = vadd.f32 %v4030_v35, %v1946_v50 }
 0x30f   : > { %v2144_v58 = vpop.f32.mrf.mxu2 }
 0x310   : > { %v2160_v46 = vadd.f32 %v2144_v58, %v2093_v62  ;;  %v4160_v62 = vunpack.c.l.bf16 %v3118_v14 }
 0x312   : > { %v2225_v27 = vadd.f32 %v2209_v54, %v2160_v46 }
 0x314   : > { %v2274_v5 = vadd.f32 %v2258_v44, %v2225_v27  ;;  %v2261_v40 = vpop.f32.mrf.mxu0  ;;  %v2097_v44 = vadd.f32 %v4032_v34, %v2036_v8  ;;  %v4161_v27 = vunpack.c.h.bf16 %v3118_v14 }
 0x315   : > { %v2212_v3 = vpop.f32.mrf.mxu3 }
 0x316   : > { %v2323_v30 = vadd.f32 %v2307_v0, %v2274_v5  ;;  %v2310_v24 = vpop.f32.mrf.mxu1 }
 0x317   : > { %v4028_v61 = vpop.f32.mrf.mxu2 }
 0x318   : > { %v2161_v22 = vadd.f32 %v4028_v61, %v2094_v47 }
 0x31a   : > { %v2226_v37 = vadd.f32 %v2212_v3, %v2161_v22  ;;  %v4162_v22 = vunpack.c.l.bf16 %v3223_v63 }
 0x31d   : > { %v2214_v26 = vpop.f32.mrf.mxu3 }
 0x31e   : > { %v2312_v54 = vpop.f32.mrf.mxu1 }
 0x31f   : > { %v4034_v16 = vpop.f32.mrf.mxu2 }
 0x326   : > { %v2315_v32 = vpop.f32.mrf.mxu1 }
 0x327   : > { %v4036_v56 = vpop.f32.mrf.mxu2 }
 0x32f   : > { %v4038_v48 = vpop.f32.mrf.mxu2 }
 0x330   : > { %v2164_v46 = vadd.f32 %v4038_v48, %v2097_v44 }
 0x337   : > { %v2349_v20 = vpop.f32.mrf.mxu2 }
 0x338   : > { %v2369_v33 = vadd.f32 %v2349_v20, %v2320_v51  ;;  %v2095_v20 = vadd.f32 %v4018_v2, %v2034_v7 }
 0x33a   : > { %v2381_v19 = vadd.f32 %v4043_v52, %v2369_v33  ;;  %v2162_v17 = vadd.f32 %v4034_v16, %v2095_v20  ;;  %v2275_v33 = vadd.f32 %v2261_v40, %v2226_v37  ;;  %v4163_v37 = vunpack.c.h.bf16 %v3223_v63 }
 0x33c   : > { %v2389_v28 = vmax.f32 %v2381_v19, 0.0  ;;  %v2263_v19 = vpop.f32.mrf.mxu0  ;;  %v2227_v60 = vadd.f32 %v2214_v26, %v2162_v17  ;;  %v2324_v9 = vadd.f32 %v2310_v24, %v2275_v33 }
 0x33e   : > { %v2397_v31 = vadd.f32 %v2840_v10, %v2389_v28 }
 0x33f   : > { %v2351_v41 = vpop.f32.mrf.mxu2 }
 0x340   : > { %2405 = vst.msk [vmem:[%s4053_s9] sm:$0xff] %vm462_vm2, %v2397_v31  ;;  %v2370_v42 = vadd.f32 %v2351_v41, %v2321_v49  ;;  %v2276_v31 = vadd.f32 %v2263_v19, %v2227_v60  ;;  %v2217_v49 = vpop.f32.mrf.mxu3 }
 0x342   : > { %v2382_v23 = vadd.f32 %v4043_v52, %v2370_v42  ;;  %v2325_v53 = vadd.f32 %v2312_v54, %v2276_v31 }
 0x344   : > { %v2390_v10 = vmax.f32 %v2382_v23, 0.0 }
 0x346   : > { %v2398_v36 = vadd.f32 %v2841_v11, %v2390_v10 }
 0x347   : > { %v2354_v38 = vpop.f32.mrf.mxu2 }
 0x348   : > { %2406 = vst.msk [vmem:[%s4053_s9 + $0x8] sm:$0xff] %vm462_vm2, %v2398_v36  ;;  %v2371_v58 = vadd.f32 %v2354_v38, %v2322_v15  ;;  %v2219_v10 = vpop.f32.mrf.mxu3 }
 0x349   : > { %v2229_v0 = vadd.f32 %v2219_v10, %v2164_v46 }
 0x34a   : > { %v2383_v45 = vadd.f32 %v4043_v52, %v2371_v58  ;;  %v2317_v58 = vpop.f32.mrf.mxu1 }
 0x34c   : > { %v2391_v11 = vmax.f32 %v2383_v45, 0.0 }
 0x34e   : > { %v2399_v51 = vadd.f32 %v2844_v12, %v2391_v11  ;;  %v2035_v12 = vadd.f32 %v4022_v29, %v1944_v21 }
 0x34f   : > { %v2356_v1 = vpop.f32.mrf.mxu2 }
 0x350   : > { %2407 = vst.msk [vmem:[%s4053_s9 + $0x10] sm:$0xff] %vm462_vm2, %v2399_v51  ;;  %v2372_v61 = vadd.f32 %v2356_v1, %v2323_v30  ;;  %v2096_v28 = vadd.f32 %v4024_v25, %v2035_v12  ;;  %v2266_v25 = vpop.f32.mrf.mxu0 }
 0x352   : > { %v2384_v4 = vadd.f32 %v4043_v52, %v2372_v61  ;;  %v2163_v29 = vadd.f32 %v4036_v56, %v2096_v28 }
 0x354   : > { %v2392_v39 = vmax.f32 %v2384_v4, 0.0  ;;  %v2228_v18 = vadd.f32 %v2217_v49, %v2163_v29 }
 0x356   : > { %v2400_v55 = vadd.f32 %v4159_v59, %v2392_v39  ;;  %v2277_v35 = vadd.f32 %v2266_v25, %v2228_v18 }
 0x357   : > { %v2359_v2 = vpop.f32.mrf.mxu2 }
 0x358   : > { %2408 = vst.msk [vmem:[%s4053_s9 + $0x18] sm:$0xff] %vm462_vm2, %v2400_v55  ;;  %v2373_v16 = vadd.f32 %v2359_v2, %v2324_v9  ;;  %v2326_v15 = vadd.f32 %v2315_v32, %v2277_v35  ;;  %v2268_v38 = vpop.f32.mrf.mxu0 }
 0x359   : > { %v2278_v57 = vadd.f32 %v2268_v38, %v2229_v0 }
 0x35a   : > { %v2385_v43 = vadd.f32 %v4043_v52, %v2373_v16 }
 0x35b   : > { %v2327_v45 = vadd.f32 %v2317_v58, %v2278_v57 }
 0x35c   : > { %v2393_v41 = vmax.f32 %v2385_v43, 0.0 }
 0x35e   : > { %v2401_v6 = vadd.f32 %v4160_v62, %v2393_v41 }
 0x35f   : > { %v2361_v42 = vpop.f32.mrf.mxu2 }
 0x360   : > { %2409 = vst.msk [vmem:[%s4053_s9 + $0x20] sm:$0xff] %vm462_vm2, %v2401_v6  ;;  %v2374_v56 = vadd.f32 %v2361_v42, %v2325_v53 }
 0x362   : > { %v2386_v23 = vadd.f32 %v4043_v52, %v2374_v56 }
 0x364   : > { %v2394_v13 = vmax.f32 %v2386_v23, 0.0 }
 0x366   : > { %v2402_v36 = vadd.f32 %v4161_v27, %v2394_v13 }
 0x367   : > { %v2364_v3 = vpop.f32.mrf.mxu2 }
 0x368   : > { %2410 = vst.msk [vmem:[%s4053_s9 + $0x28] sm:$0xff] %vm462_vm2, %v2402_v36  ;;  %v2375_v34 = vadd.f32 %v2364_v3, %v2326_v15 }
 0x36a   : > { %v2387_v48 = vadd.f32 %v4043_v52, %v2375_v34 }
 0x36c   : > { %v2395_v47 = vmax.f32 %v2387_v48, 0.0 }
 0x36e   : > { %v2403_v14 = vadd.f32 %v4162_v22, %v2395_v47 }
 0x36f   : > { %v2366_v5 = vpop.f32.mrf.mxu2 }
 0x370   : > { %2411 = vst.msk [vmem:[%s4053_s9 + $0x30] sm:$0xff] %vm462_vm2, %v2403_v14  ;;  %v2376_v40 = vadd.f32 %v2366_v5, %v2327_v45 }
 0x372   : > { %v2388_v7 = vadd.f32 %v4043_v52, %v2376_v40 }
 0x374   : > { %v2396_v11 = vmax.f32 %v2388_v7, 0.0 }
 0x376   : > { %v2404_v51 = vadd.f32 %v4163_v37, %v2396_v11 }
 0x378   : > { %2412 = vst.msk [vmem:[%s4053_s9 + $0x38] sm:$0xff] %vm462_vm2, %v2404_v51 }
 0x379   : > { %2938 = shalt.err (!%p2935_p3)
}
 0x37a   : > { %s2976_s29 = smov 128   ;;  %s2977_s9 = smov 8  }
 0x37b   : > { %2866 = dma.vmem_to_hbm [thread:$0]  (%p3056_p5), %s2427_s18, 1024, %s2429_s19, %s2414_s28, %s2976_s29, %s2976_s29, %s2977_s9  }
 0x37c PF: > { %p2872_p4 = scmp.ge.s32.totalorder %s2973_s27, 2  ;;  %s2443_s14 = sand.u32 1, %s2961_s24  }
 0x37d   : > { %s2444_s16 = scalar_lea.sflag [#allocation3], %s2443_s14 }
 0x37e   : > { %p2869_p7 = pnand %p2872_p4, %p3060_p6 }
 0x380   : > { %p2870_p8 = pneg %p2869_p7 }
 0x382   : > { %2956 = dma.done.wait (%p2870_p8), %s2444_s16, 1024  }
 0x383   : > { %2958 = vsyncadd (%p2870_p8), %s2444_s16, 4294966272  ;;  %p17_p9 = scmp.ge.s32.totalorder %s3043_s30, 4   ;;  %s4164_s24 = smov %s2965_s25 }
 0x384   : > { %s4165_s25 = smov %s2969_s26  ;;  %s4166_s26 = smov %s3054_s10 }
 0x385   : > { %s4167_s27 = smov %s3043_s30  ;;  %19 = sbr.rel (!%p17_p9) target bundleno = 3 (0x3), region = 83 }
 0x38a   :  { %2450 = vsyncpa [#allocation3], 1 }
 0x38b   :  { %2452 = vsyncpa [#allocation3 + $0x1], 1 }

// kernel: forward.2
= control target key start
LH: loop header
LB: loop body
LE: loop exit
PB: predicated region body
PF: predicated region fallthrough
CT: control target
= control target key end

     0   :  { %s6777_s30 = smov 0   ;;  %s9840_s0 = inlined_call_operand.vmem [shape: bf16[2,16,16,4], index: 0, kind: input, shape index: {}]   ;;  %s9841_s1 = inlined_call_operand.vmem [shape: bf16[9,4,12], index: 1, kind: input, shape index: {}]   ;;  %s9842_s2 = inlined_call_operand.vmem [shape: f32[1,12], index: 2, kind: input, shape index: {}]   ;;  %s9843_s3 = inlined_call_operand.vmem [shape: bf16[9,12,12], index: 3, kind: input, shape index: {}]   ;;  %s9844_s4 = inlined_call_operand.vmem [shape: f32[1,12], index: 4, kind: input, shape index: {}]   ;;  %s9845_s5 = inlined_call_operand.vmem [shape: bf16[9,12,48], index: 5, kind: input, shape index: {}]   ;;  %s9846_s6 = inlined_call_operand.vmem [shape: f32[1,48], index: 6, kind: input, shape index: {}]   ;;  %s9847_s7 = inlined_call_operand.vmem [shape: bf16[4,48], index: 7, kind: input, shape index: {}]   ;;  %s9848_s8 = inlined_call_operand.vmem [shape: f32[1,48], index: 8, kind: input, shape index: {}]   ;;  %s9849_s9 = inlined_call_operand.vmem [shape: f32[2,16,16,48], index: 9, kind: output, shape index: {}]  }
   0x1 LB: > { %s6061_s10 = sadd.s32 4294967295, %s6723_s30   ;;  %p6065_p0 = scmp.ge.s32.totalorder %s6723_s30, 1  ;;  %s6723_s30 = sphi %s6777_s30, %s19_s30  }
   0x2   : > { %p287_p1 = scmp.lt.s32.totalorder %s6723_s30, 3 }
   0x4   : > { %p288_p2 = pnand %p6065_p0, %p287_p1 }
   0x6   : > { %291 = sbr.rel (%p288_p2) target bundleno = 2205 (0x89d), region = 56 }
   0xb   : > { %v560_v0 = vld [vmem:[%s9841_s1 + $0x2] sm:$0x3]  ;;  %vm789_vm0 = vcmask 1041408   ;;  %v559_v1 = vld [vmem:[%s9841_s1] sm:$0x3]  ;;  %v6725_v5 = vmov 0.0  }
   0xc   : > { %v791_v2 = vsel %vm789_vm0, %v560_v0, 0  ;;  %v931_v3 = vsel %vm789_vm0, %v559_v1, 0  ;;  %v561_v4 = vld [vmem:[%s9841_s1 + $0x4] sm:$0x3]  ;;  %v616_v6 = vrot.slane %v6725_v5, 1  ;;  %vm740_vm1 = vcmask 31744  }
   0xd   : > { %800 = vmatpush.bf16.msra.mxu0 %v791_v2  ;;  %940 = vmatpush.bf16.msra.mxu1 %v931_v3  ;;  %v1196_v7 = vsel %vm789_vm0, %v561_v4, 0  ;;  %v1023_v8 = vrot.slane %v6725_v5, 2  ;;  %v563_v9 = vld [vmem:[%s9841_s1 + $0x8] sm:$0x3]  ;;  %p323_p3 = scmp.lt.s32.totalorder %s6061_s10, 1  ;;  %v9850_v15 = vmov 0.0|0.0  }
   0xe   : > { %1205 = vmatpush.bf16.msra.mxu2 %v1196_v7  ;;  %v6800_v10 = vpack.c.bf16 %v616_v6, %v616_v6  ;;  %v1461_v11 = vsel %vm789_vm0, %v563_v9, 0  ;;  %v562_v12 = vld [vmem:[%s9841_s1 + $0x6] sm:$0x3]  ;;  %vm430_vm2 = vcmask 1040384   ;;  %vm615_vm3 = vcmask 1046528  }
   0xf   : > { %v6806_v13 = vpack.c.bf16 %v1023_v8, %v1023_v8  ;;  %v1324_v14 = vsel %vm789_vm0, %v562_v12, 0  ;;  %s10180_s10 = smov (!%p323_p3, %s6061_s10), 1  ;;  %vm1022_vm4 = vcmask 1045504   ;;  %vm2507_vm5 = vcmask 97280  }
  0x10   : > { %9949 = vst [vmem:[#allocation2_spill] sm:$0xff] %v6800_v10  ;;  %6070 = vmatmul.msk.bf16.vlgmr.msra.gmra.mxu0 %vm740_vm1, %v6800_v10  ;;  %941 = vmatmul.bf16.vlgmr.msra.gmra.mxu1 %v9850_v15  ;;  %s6586_s21 = sshll.u32 %s10180_s10, 7  ;;  %s6587_s29 = sshll.u32 %s10180_s10, 8  ;;  %vm5973_vm6 = vcmask 392192  }
  0x11   : > { %9950 = vst [vmem:[#allocation3_spill] sm:$0xff] %v6806_v13  ;;  %1470 = vmatpush.bf16.msrb.mxu0 %v1461_v11  ;;  %6101 = vmatmul.msk.bf16.vlgmr.msra.gmra.mxu2 %vm740_vm1, %v6806_v13  ;;  %s6820_s24 = scalar_lea.vmem %s9840_s0, %s6586_s21  ;;  %s9608_s13 = scalar_lea.vmem %s9849_s9, %s6587_s29 }
  0x12   : > { %1333 = vmatpush.bf16.msra.mxu3 %v1324_v14  ;;  %v6607_v16 = vld [vmem:[%s6820_s24] sm:$0xff]   ;;  %v6670_v24 = vld [vmem:[%s6820_s24 + $0x8] sm:$0xff]   ;;  %v6671_v54 = vld [vmem:[%s6820_s24 + $0x10] sm:$0xff]  }
  0x13   : > { %v6608_v17 = vunpack.c.l.bf16 %v6607_v16  ;;  %v6609_v18 = vunpack.c.h.bf16 %v6607_v16  ;;  %v6612_v33 = vunpack.c.l.bf16 %v6670_v24  ;;  %v6613_v37 = vunpack.c.h.bf16 %v6670_v24  ;;  %v6672_v12 = vld [vmem:[%s6820_s24 + $0x18] sm:$0xff]   ;;  %v6682_v10 = vld [vmem:[%s6820_s24 + $0x68] sm:$0xff]  }
  0x14   : > { %v6616_v58 = vunpack.c.l.bf16 %v6671_v54  ;;  %v6617_v59 = vunpack.c.h.bf16 %v6671_v54 }
  0x15   : > { %v431_v19 = vrot.slane %v6608_v17, 7  ;;  %v432_v20 = vrot.slane %v6609_v18, 7  ;;  %v434_v40 = vrot.slane %v6612_v33, 7  ;;  %v435_v41 = vrot.slane %v6613_v37, 7 }
  0x16   : > { %v437_v61 = vrot.slane %v6616_v58, 7  ;;  %v438_v62 = vrot.slane %v6617_v59, 7  ;;  %v6620_v18 = vunpack.c.l.bf16 %v6672_v12 }
  0x17   : > { %v433_v21 = vsel %vm430_vm2, %v431_v19, %v432_v20  ;;  %v527_v22 = vsel %vm430_vm2, 0.0, %v431_v19  ;;  %v543_v23 = vsel %vm430_vm2, %v432_v20, 0.0  ;;  %v544_v42 = vsel %vm430_vm2, %v435_v41, 0.0 }
  0x18   : > { %v569_v25 = vpack.c.bf16 %v433_v21, %v527_v22  ;;  %v618_v26 = vrot.slane %v527_v22, 1  ;;  %v619_v27 = vrot.slane %v433_v21, 1  ;;  %v1025_v28 = vrot.slane %v527_v22, 2 }
  0x19   : > { %v1026_v29 = vrot.slane %v433_v21, 2  ;;  %v621_v30 = vrot.slane %v543_v23, 1  ;;  %v1028_v31 = vrot.slane %v543_v23, 2  ;;  %v436_v43 = vsel %vm430_vm2, %v434_v40, %v435_v41 }
  0x1a   : > { %6117 = vmatmul.msk.bf16.vlgmr.msra.gmra.mxu3 %vm740_vm1, %v569_v25  ;;  %v620_v32 = vsel %vm615_vm3, %v618_v26, %v619_v27  ;;  %v528_v44 = vsel %vm430_vm2, 0.0, %v434_v40  ;;  %v624_v46 = vrot.slane %v436_v43, 1  ;;  %v626_v47 = vrot.slane %v544_v42, 1 }
  0x1b   : > { %v622_v34 = vsel %vm615_vm3, %v619_v27, %v621_v30  ;;  %v1027_v35 = vsel %vm1022_vm4, %v1025_v28, %v1026_v29  ;;  %v1029_v36 = vsel %vm1022_vm4, %v1026_v29, %v1028_v31  ;;  %v623_v45 = vrot.slane %v528_v44, 1 }
  0x1c   : > { %v6832_v38 = vpack.c.bf16 %v622_v34, %v620_v32  ;;  %v6834_v39 = vpack.c.bf16 %v1029_v36, %v1027_v35  ;;  %v1030_v48 = vrot.slane %v528_v44, 2  ;;  %v1031_v49 = vrot.slane %v436_v43, 2  ;;  %v6673_v35 = vld [vmem:[%s6820_s24 + $0x20] sm:$0xff]  }
  0x1d   : > { %v1033_v50 = vrot.slane %v544_v42, 2  ;;  %v6844_v51 = vpack.c.bf16 %v436_v43, %v528_v44  ;;  %v625_v52 = vsel %vm615_vm3, %v623_v45, %v624_v46  ;;  %v627_v53 = vsel %vm615_vm3, %v624_v46, %v626_v47 }
  0x1e   : > { %v1032_v55 = vsel %vm1022_vm4, %v1030_v48, %v1031_v49  ;;  %v6853_v57 = vpack.c.bf16 %v627_v53, %v625_v52  ;;  %v545_v63 = vsel %vm430_vm2, %v438_v62, 0.0  ;;  %v439_v0 = vsel %vm430_vm2, %v437_v61, %v438_v62 }
  0x1f   : > { %v1034_v56 = vsel %vm1022_vm4, %v1031_v49, %v1033_v50  ;;  %v529_v1 = vsel %vm430_vm2, 0.0, %v437_v61  ;;  %v629_v3 = vrot.slane %v439_v0, 1  ;;  %v631_v4 = vrot.slane %v545_v63, 1  ;;  %v6674_v61 = vld [vmem:[%s6820_s24 + $0x28] sm:$0xff]  }
  0x20   : > { %6071 = vmatmul.msk.bf16.gmra.mxu0 %vm740_vm1, %v6832_v38  ;;  %6086 = vmatmul.msk.bf16.gmra.mxu1 %vm740_vm1, %v569_v25  ;;  %v6855_v60 = vpack.c.bf16 %v1034_v56, %v1032_v55  ;;  %v628_v2 = vrot.slane %v529_v1, 1  ;;  %v1035_v5 = vrot.slane %v529_v1, 2  ;;  %v1036_v6 = vrot.slane %v439_v0, 2 }
  0x21   : > { %6102 = vmatmul.msk.bf16.gmra.mxu2 %vm740_vm1, %v6834_v39  ;;  %v1038_v7 = vrot.slane %v545_v63, 2  ;;  %v6866_v8 = vpack.c.bf16 %v439_v0, %v529_v1  ;;  %v632_v11 = vsel %vm615_vm3, %v629_v3, %v631_v4  ;;  %v6621_v19 = vunpack.c.h.bf16 %v6672_v12 }
  0x22   : > { %v630_v9 = vsel %vm615_vm3, %v628_v2, %v629_v3  ;;  %v1037_v14 = vsel %vm1022_vm4, %v1035_v5, %v1036_v6  ;;  %v440_v21 = vrot.slane %v6620_v18, 7  ;;  %v6624_v41 = vunpack.c.l.bf16 %v6673_v35 }
  0x23   : > { %v1039_v16 = vsel %vm1022_vm4, %v1036_v6, %v1038_v7  ;;  %v6875_v17 = vpack.c.bf16 %v632_v11, %v630_v9  ;;  %v441_v22 = vrot.slane %v6621_v19, 7  ;;  %v6625_v42 = vunpack.c.h.bf16 %v6673_v35 }
  0x24   : > { %v6877_v20 = vpack.c.bf16 %v1039_v16, %v1037_v14  ;;  %v530_v25 = vsel %vm430_vm2, 0.0, %v440_v21  ;;  %v443_v44 = vrot.slane %v6624_v41, 7  ;;  %v6628_v1 = vunpack.c.l.bf16 %v6674_v61 }
  0x25   : > { %v546_v23 = vsel %vm430_vm2, %v441_v22, 0.0  ;;  %v442_v24 = vsel %vm430_vm2, %v440_v21, %v441_v22  ;;  %v633_v26 = vrot.slane %v530_v25, 1  ;;  %v1040_v29 = vrot.slane %v530_v25, 2 }
  0x26   : > { %v634_v27 = vrot.slane %v442_v24, 1  ;;  %v636_v28 = vrot.slane %v546_v23, 1  ;;  %v1041_v30 = vrot.slane %v442_v24, 2  ;;  %v1043_v31 = vrot.slane %v546_v23, 2 }
  0x27   : > { %v6888_v32 = vpack.c.bf16 %v442_v24, %v530_v25  ;;  %v444_v45 = vrot.slane %v6625_v42, 7  ;;  %v531_v48 = vsel %vm430_vm2, 0.0, %v443_v44  ;;  %v6629_v2 = vunpack.c.h.bf16 %v6674_v61  ;;  %v6675_v24 = vld [vmem:[%s6820_s24 + $0x30] sm:$0xff]  }
  0x28   : > { %v635_v33 = vsel %vm615_vm3, %v633_v26, %v634_v27  ;;  %v637_v34 = vsel %vm615_vm3, %v634_v27, %v636_v28  ;;  %v1042_v36 = vsel %vm1022_vm4, %v1040_v29, %v1041_v30  ;;  %v1044_v37 = vsel %vm1022_vm4, %v1041_v30, %v1043_v31 }
  0x29   : > { %v6897_v40 = vpack.c.bf16 %v637_v34, %v635_v33  ;;  %v6899_v43 = vpack.c.bf16 %v1044_v37, %v1042_v36  ;;  %v547_v46 = vsel %vm430_vm2, %v444_v45, 0.0  ;;  %v445_v47 = vsel %vm430_vm2, %v443_v44, %v444_v45  ;;  %v564_v44 = vld [vmem:[%s9841_s1 + $0xa] sm:$0x3] }
  0x2a   : > { %6118 = vmatmul.msk.bf16.gmra.mxu3 %vm740_vm1, %v6844_v51  ;;  %v638_v49 = vrot.slane %v531_v48, 1  ;;  %v639_v50 = vrot.slane %v445_v47, 1  ;;  %v641_v52 = vrot.slane %v547_v46, 1  ;;  %v1045_v53 = vrot.slane %v531_v48, 2 }
  0x2b   : > { %v1046_v54 = vrot.slane %v445_v47, 2  ;;  %v1048_v55 = vrot.slane %v547_v46, 2  ;;  %v6910_v56 = vpack.c.bf16 %v445_v47, %v531_v48  ;;  %v446_v4 = vrot.slane %v6628_v1, 7 }
  0x2c   : > { %v640_v58 = vsel %vm615_vm3, %v638_v49, %v639_v50  ;;  %v642_v59 = vsel %vm615_vm3, %v639_v50, %v641_v52  ;;  %v447_v5 = vrot.slane %v6629_v2, 7  ;;  %v6632_v28 = vunpack.c.l.bf16 %v6675_v24 }
  0x2d   : > { %v1047_v62 = vsel %vm1022_vm4, %v1045_v53, %v1046_v54  ;;  %v1049_v63 = vsel %vm1022_vm4, %v1046_v54, %v1048_v55  ;;  %v6919_v0 = vpack.c.bf16 %v642_v59, %v640_v58  ;;  %v532_v9 = vsel %vm430_vm2, 0.0, %v446_v4  ;;  %v6676_v53 = vld [vmem:[%s6820_s24 + $0x38] sm:$0xff]  }
  0x2e   : > { %v6921_v3 = vpack.c.bf16 %v1049_v63, %v1047_v62  ;;  %v548_v6 = vsel %vm430_vm2, %v447_v5, 0.0  ;;  %v448_v7 = vsel %vm430_vm2, %v446_v4, %v447_v5  ;;  %v643_v11 = vrot.slane %v532_v9, 1 }
  0x2f   : > { %v644_v12 = vrot.slane %v448_v7, 1  ;;  %v646_v14 = vrot.slane %v548_v6, 1  ;;  %v1050_v16 = vrot.slane %v532_v9, 2  ;;  %v1051_v18 = vrot.slane %v448_v7, 2 }
  0x30   : > { %6072 = vmatmul.msk.bf16.gmra.mxu0 %vm740_vm1, %v6853_v57  ;;  %6087 = vmatmul.msk.bf16.gmra.mxu1 %vm740_vm1, %v6844_v51  ;;  %v1053_v19 = vrot.slane %v548_v6, 2  ;;  %v6932_v21 = vpack.c.bf16 %v448_v7, %v532_v9  ;;  %v6633_v29 = vunpack.c.h.bf16 %v6675_v24  ;;  %v449_v31 = vrot.slane %v6632_v28, 7 }
  0x31   : > { %6103 = vmatmul.msk.bf16.gmra.mxu2 %vm740_vm1, %v6855_v60  ;;  %v645_v22 = vsel %vm615_vm3, %v643_v11, %v644_v12  ;;  %v647_v23 = vsel %vm615_vm3, %v644_v12, %v646_v14  ;;  %v1052_v25 = vsel %vm1022_vm4, %v1050_v16, %v1051_v18  ;;  %v1596_v48 = vsel %vm789_vm0, %v564_v44, 0 }
  0x32   : > { %v1054_v26 = vsel %vm1022_vm4, %v1051_v18, %v1053_v19  ;;  %v6941_v27 = vpack.c.bf16 %v647_v23, %v645_v22  ;;  %v450_v33 = vrot.slane %v6633_v29, 7  ;;  %v533_v36 = vsel %vm430_vm2, 0.0, %v449_v31  ;;  %1605 = vmatpush.bf16.msrb.mxu1 %v1596_v48  ;;  %v6677_v22 = vld [vmem:[%s6820_s24 + $0x40] sm:$0xff]  }
  0x33   : > { %v6943_v30 = vpack.c.bf16 %v1054_v26, %v1052_v25  ;;  %v648_v37 = vrot.slane %v533_v36, 1  ;;  %v1055_v45 = vrot.slane %v533_v36, 2  ;;  %v6636_v59 = vunpack.c.l.bf16 %v6676_v53 }
  0x34   : > { %v549_v34 = vsel %vm430_vm2, %v450_v33, 0.0  ;;  %v451_v35 = vsel %vm430_vm2, %v449_v31, %v450_v33  ;;  %v6637_v61 = vunpack.c.h.bf16 %v6676_v53  ;;  %v6640_v26 = vunpack.c.l.bf16 %v6677_v22 }
  0x35   : > { %v649_v41 = vrot.slane %v451_v35, 1  ;;  %v651_v42 = vrot.slane %v549_v34, 1  ;;  %v1056_v46 = vrot.slane %v451_v35, 2  ;;  %v1058_v47 = vrot.slane %v549_v34, 2 }
  0x36   : > { %v6958_v49 = vpack.c.bf16 %v451_v35, %v533_v36  ;;  %v452_v63 = vrot.slane %v6636_v59, 7  ;;  %v453_v1 = vrot.slane %v6637_v61, 7  ;;  %v6641_v28 = vunpack.c.h.bf16 %v6677_v22 }
  0x37   : > { %v650_v50 = vsel %vm615_vm3, %v648_v37, %v649_v41  ;;  %v652_v52 = vsel %vm615_vm3, %v649_v41, %v651_v42  ;;  %v1057_v54 = vsel %vm1022_vm4, %v1055_v45, %v1056_v46  ;;  %v1059_v55 = vsel %vm1022_vm4, %v1056_v46, %v1058_v47 }
  0x38   : > { %v6967_v58 = vpack.c.bf16 %v652_v52, %v650_v50  ;;  %v6969_v62 = vpack.c.bf16 %v1059_v55, %v1057_v54  ;;  %v550_v2 = vsel %vm430_vm2, %v453_v1, 0.0  ;;  %v454_v4 = vsel %vm430_vm2, %v452_v63, %v453_v1 }
  0x39   : > { %v534_v5 = vsel %vm430_vm2, 0.0, %v452_v63  ;;  %v654_v7 = vrot.slane %v454_v4, 1  ;;  %v656_v9 = vrot.slane %v550_v2, 1  ;;  %v1061_v12 = vrot.slane %v454_v4, 2 }
  0x3a   : > { %6119 = vmatmul.msk.bf16.gmra.mxu3 %vm740_vm1, %v6866_v8  ;;  %v653_v6 = vrot.slane %v534_v5, 1  ;;  %v1060_v11 = vrot.slane %v534_v5, 2  ;;  %v1063_v14 = vrot.slane %v550_v2, 2  ;;  %v6980_v16 = vpack.c.bf16 %v454_v4, %v534_v5  ;;  %v6678_v2 = vld [vmem:[%s6820_s24 + $0x48] sm:$0xff]  }
  0x3b   : > { %v657_v19 = vsel %vm615_vm3, %v654_v7, %v656_v9  ;;  %v455_v35 = vrot.slane %v6640_v26, 7  ;;  %v456_v36 = vrot.slane %v6641_v28, 7  ;;  %v6644_v9 = vunpack.c.l.bf16 %v6678_v2 }
  0x3c   : > { %v655_v18 = vsel %vm615_vm3, %v653_v6, %v654_v7  ;;  %v1062_v23 = vsel %vm1022_vm4, %v1060_v11, %v1061_v12  ;;  %v1064_v24 = vsel %vm1022_vm4, %v1061_v12, %v1063_v14  ;;  %v6645_v11 = vunpack.c.h.bf16 %v6678_v2 }
  0x3d   : > { %v6989_v25 = vpack.c.bf16 %v657_v19, %v655_v18  ;;  %v6991_v33 = vpack.c.bf16 %v1064_v24, %v1062_v23  ;;  %v551_v37 = vsel %vm430_vm2, %v456_v36, 0.0  ;;  %v457_v42 = vsel %vm430_vm2, %v455_v35, %v456_v36 }
  0x3e   : > { %v535_v44 = vsel %vm430_vm2, 0.0, %v455_v35  ;;  %v659_v50 = vrot.slane %v457_v42, 1  ;;  %v661_v52 = vrot.slane %v551_v37, 1  ;;  %v1066_v55 = vrot.slane %v457_v42, 2 }
  0x3f   : > { %v658_v48 = vrot.slane %v535_v44, 1  ;;  %v1065_v54 = vrot.slane %v535_v44, 2  ;;  %v1068_v59 = vrot.slane %v551_v37, 2  ;;  %v7002_v61 = vpack.c.bf16 %v457_v42, %v535_v44 }
  0x40   : > { %6073 = vmatmul.msk.bf16.gmra.mxu0 %vm740_vm1, %v6875_v17  ;;  %6088 = vmatmul.msk.bf16.gmra.mxu1 %vm740_vm1, %v6866_v8  ;;  %v662_v1 = vsel %vm615_vm3, %v659_v50, %v661_v52  ;;  %v458_v26 = vrot.slane %v6644_v9, 7  ;;  %v459_v28 = vrot.slane %v6645_v11, 7 }
  0x41   : > { %6104 = vmatmul.msk.bf16.gmra.mxu2 %vm740_vm1, %v6877_v20  ;;  %v660_v63 = vsel %vm615_vm3, %v658_v48, %v659_v50  ;;  %v1067_v4 = vsel %vm1022_vm4, %v1065_v54, %v1066_v55  ;;  %v1069_v5 = vsel %vm1022_vm4, %v1066_v55, %v1068_v59 }
  0x42   : > { %v7011_v7 = vpack.c.bf16 %v662_v1, %v660_v63  ;;  %v7013_v19 = vpack.c.bf16 %v1069_v5, %v1067_v4  ;;  %v536_v35 = vsel %vm430_vm2, 0.0, %v458_v26  ;;  %v6679_v63 = vld [vmem:[%s6820_s24 + $0x50] sm:$0xff]  }
  0x43   : > { %v663_v42 = vrot.slane %v536_v35, 1  ;;  %v1070_v48 = vrot.slane %v536_v35, 2  ;;  %v6649_v9 = vunpack.c.h.bf16 %v6679_v63 }
  0x4a   : > { %6120 = vmatmul.msk.bf16.gmra.mxu3 %vm740_vm1, %v6888_v32 }
  0x50   : > { %6074 = vmatmul.msk.bf16.gmra.mxu0 %vm740_vm1, %v6897_v40  ;;  %6089 = vmatmul.msk.bf16.gmra.mxu1 %vm740_vm1, %v6888_v32 }
  0x51   : > { %6105 = vmatmul.msk.bf16.gmra.mxu2 %vm740_vm1, %v6899_v43 }
  0x5a   : > { %6121 = vmatmul.msk.bf16.gmra.mxu3 %vm740_vm1, %v6910_v56 }
  0x60   : > { %6075 = vmatmul.msk.bf16.gmra.mxu0 %vm740_vm1, %v6919_v0  ;;  %6090 = vmatmul.msk.bf16.gmra.mxu1 %vm740_vm1, %v6910_v56 }
  0x61   : > { %6106 = vmatmul.msk.bf16.gmra.mxu2 %vm740_vm1, %v6921_v3 }
  0x6a   : > { %6122 = vmatmul.msk.bf16.gmra.mxu3 %vm740_vm1, %v6932_v21 }
  0x70   : > { %6076 = vmatmul.msk.bf16.gmra.mxu0 %vm740_vm1, %v6941_v27  ;;  %6091 = vmatmul.msk.bf16.gmra.mxu1 %vm740_vm1, %v6932_v21 }
  0x71   : > { %6107 = vmatmul.msk.bf16.gmra.mxu2 %vm740_vm1, %v6943_v30 }
  0x7a   : > { %6123 = vmatmul.msk.bf16.gmra.mxu3 %vm740_vm1, %v6958_v49 }
  0x80   : > { %6077 = vmatmul.msk.bf16.gmra.mxu0 %vm740_vm1, %v6967_v58  ;;  %6092 = vmatmul.msk.bf16.gmra.mxu1 %vm740_vm1, %v6958_v49 }
  0x81   : > { %6108 = vmatmul.msk.bf16.gmra.mxu2 %vm740_vm1, %v6969_v62 }
  0x8a   : > { %6124 = vmatmul.msk.bf16.gmra.mxu3 %vm740_vm1, %v6980_v16 }
  0x8d   : > { %v802_v29 = vpop.f32.mrf.mxu0  ;;  %v942_v31 = vpop.f32.mrf.mxu1 }
  0x8e   : > { %v943_v34 = vadd.f32 %v942_v31, %v802_v29  ;;  %v552_v29 = vsel %vm430_vm2, %v459_v28, 0.0 }
  0x8f   : > { %v1073_v52 = vrot.slane %v552_v29, 2 }
  0x90   : > { %6078 = vmatmul.msk.bf16.gmra.mxu0 %vm740_vm1, %v6989_v25  ;;  %6093 = vmatmul.msk.bf16.gmra.mxu1 %vm740_vm1, %v6980_v16 }
  0x91   : > { %6109 = vmatmul.msk.bf16.gmra.mxu2 %vm740_vm1, %v6991_v33 }
  0x94   : > { %v1207_v41 = vpop.f32.mrf.mxu2 }
  0x95   : > { %v1287_v45 = vadd.f32 %v1207_v41, %v943_v34  ;;  %v804_v46 = vpop.f32.mrf.mxu0  ;;  %v944_v47 = vpop.f32.mrf.mxu1  ;;  %v460_v34 = vsel %vm430_vm2, %v458_v26, %v459_v28 }
  0x96   : > { %v945_v53 = vadd.f32 %v944_v47, %v804_v46  ;;  %v664_v44 = vrot.slane %v460_v34, 1  ;;  %v1071_v50 = vrot.slane %v460_v34, 2  ;;  %v7028_v54 = vpack.c.bf16 %v460_v34, %v536_v35 }
  0x98   : > { %v665_v55 = vsel %vm615_vm3, %v663_v42, %v664_v44  ;;  %v1072_v1 = vsel %vm1022_vm4, %v1070_v48, %v1071_v50  ;;  %v1074_v2 = vsel %vm1022_vm4, %v1071_v50, %v1073_v52 }
  0x9a   : > { %6125 = vmatmul.msk.bf16.gmra.mxu3 %vm740_vm1, %v7002_v61 }
  0x9c   : > { %v1209_v6 = vpop.f32.mrf.mxu2 }
  0x9d   : > { %v1288_v12 = vadd.f32 %v1209_v6, %v945_v53  ;;  %v807_v14 = vpop.f32.mrf.mxu0  ;;  %v947_v18 = vpop.f32.mrf.mxu1  ;;  %v6648_v6 = vunpack.c.l.bf16 %v6679_v63 }
  0x9e   : > { %v1335_v22 = vpop.f32.mrf.mxu3  ;;  %v948_v23 = vadd.f32 %v947_v18, %v807_v14  ;;  %v7039_v18 = vpack.c.bf16 %v1074_v2, %v1072_v1 }
  0x9f   : > { %v7015_v24 = vadd.f32 %v1335_v22, %v1287_v45  ;;  %v666_v45 = vrot.slane %v552_v29, 1  ;;  %v461_v28 = vrot.slane %v6648_v6, 7  ;;  %v462_v29 = vrot.slane %v6649_v9, 7 }
  0xa0   : > { %6079 = vmatmul.msk.bf16.gmra.mxu0 %vm740_vm1, %v7011_v7  ;;  %6094 = vmatmul.msk.bf16.gmra.mxu1 %vm740_vm1, %v7002_v61 }
  0xa1   : > { %6110 = vmatmul.msk.bf16.gmra.mxu2 %vm740_vm1, %v7013_v19  ;;  %v667_v59 = vsel %vm615_vm3, %v664_v44, %v666_v45  ;;  %v463_v35 = vsel %vm430_vm2, %v461_v28, %v462_v29 }
  0xa2   : > { %v7037_v5 = vpack.c.bf16 %v667_v59, %v665_v55  ;;  %v669_v45 = vrot.slane %v463_v35, 1  ;;  %v1076_v52 = vrot.slane %v463_v35, 2 }
  0xa4   : > { %v1212_v31 = vpop.f32.mrf.mxu2 }
  0xa5   : > { %v1289_v36 = vadd.f32 %v1212_v31, %v948_v23  ;;  %v809_v37 = vpop.f32.mrf.mxu0  ;;  %v949_v41 = vpop.f32.mrf.mxu1  ;;  %v553_v31 = vsel %vm430_vm2, %v462_v29, 0.0 }
  0xa6   : > { %v1337_v46 = vpop.f32.mrf.mxu3  ;;  %v950_v47 = vadd.f32 %v949_v41, %v809_v37  ;;  %v537_v37 = vsel %vm430_vm2, 0.0, %v461_v28  ;;  %v1078_v55 = vrot.slane %v553_v31, 2 }
  0xa7   : > { %v7026_v53 = vadd.f32 %v1337_v46, %v1288_v12  ;;  %v668_v44 = vrot.slane %v537_v37, 1  ;;  %v671_v46 = vrot.slane %v553_v31, 1  ;;  %v1075_v50 = vrot.slane %v537_v37, 2 }
  0xa8   : > { %v7054_v63 = vpack.c.bf16 %v463_v35, %v537_v37  ;;  %v1079_v9 = vsel %vm1022_vm4, %v1076_v52, %v1078_v55 }
  0xa9   : > { %v670_v1 = vsel %vm615_vm3, %v668_v44, %v669_v45  ;;  %v672_v2 = vsel %vm615_vm3, %v669_v45, %v671_v46  ;;  %v1077_v6 = vsel %vm1022_vm4, %v1075_v50, %v1076_v52 }
  0xaa   : > { %6126 = vmatmul.msk.bf16.gmra.mxu3 %vm740_vm1, %v7028_v54  ;;  %v7065_v31 = vpack.c.bf16 %v1079_v9, %v1077_v6 }
  0xac   : > { %v1214_v4 = vpop.f32.mrf.mxu2 }
  0xad   : > { %v1290_v11 = vadd.f32 %v1214_v4, %v950_v47  ;;  %v812_v12 = vpop.f32.mrf.mxu0  ;;  %v952_v14 = vpop.f32.mrf.mxu1  ;;  %v6680_v4 = vld [vmem:[%s6820_s24 + $0x58] sm:$0xff]  }
  0xae   : > { %v1340_v22 = vpop.f32.mrf.mxu3  ;;  %v953_v23 = vadd.f32 %v952_v14, %v812_v12  ;;  %v7063_v14 = vpack.c.bf16 %v672_v2, %v670_v1 }
  0xaf   : > { %v7041_v26 = vadd.f32 %v1340_v22, %v1289_v36  ;;  %v6652_v22 = vunpack.c.l.bf16 %v6680_v4 }
  0xb0   : > { %6080 = vmatmul.msk.bf16.gmra.mxu0 %vm740_vm1, %v7037_v5  ;;  %6095 = vmatmul.msk.bf16.gmra.mxu1 %vm740_vm1, %v7028_v54 }
  0xb1   : > { %6111 = vmatmul.msk.bf16.gmra.mxu2 %vm740_vm1, %v7039_v18 }
  0xb4   : > { %v1217_v34 = vpop.f32.mrf.mxu2 }
  0xb5   : > { %v1291_v36 = vadd.f32 %v1217_v34, %v953_v23  ;;  %v814_v41 = vpop.f32.mrf.mxu0  ;;  %v954_v42 = vpop.f32.mrf.mxu1 }
  0xb6   : > { %v1342_v47 = vpop.f32.mrf.mxu3  ;;  %v955_v48 = vadd.f32 %v954_v42, %v814_v41  ;;  %v464_v41 = vrot.slane %v6652_v22, 7 }
  0xb7   : > { %v7052_v59 = vadd.f32 %v1342_v47, %v1290_v11  ;;  %v6653_v11 = vunpack.c.h.bf16 %v6680_v4 }
  0xb8   : > { %v538_v47 = vsel %vm430_vm2, 0.0, %v464_v41 }
  0xb9   : > { %v465_v42 = vrot.slane %v6653_v11, 7  ;;  %v673_v52 = vrot.slane %v538_v47, 1  ;;  %v1080_v6 = vrot.slane %v538_v47, 2 }
  0xba   : > { %6127 = vmatmul.msk.bf16.gmra.mxu3 %vm740_vm1, %v7054_v63 }
  0xbb   : > { %v554_v44 = vsel %vm430_vm2, %v465_v42, 0.0  ;;  %v466_v46 = vsel %vm430_vm2, %v464_v41, %v465_v42 }
  0xbc   : > { %v1219_v12 = vpop.f32.mrf.mxu2  ;;  %v674_v55 = vrot.slane %v466_v46, 1  ;;  %v676_v1 = vrot.slane %v554_v44, 1  ;;  %v1081_v9 = vrot.slane %v466_v46, 2  ;;  %v7080_v11 = vpack.c.bf16 %v466_v46, %v538_v47 }
  0xbd   : > { %v1292_v23 = vadd.f32 %v1219_v12, %v955_v48  ;;  %v817_v28 = vpop.f32.mrf.mxu0  ;;  %v957_v29 = vpop.f32.mrf.mxu1  ;;  %v1083_v12 = vrot.slane %v554_v44, 2 }
  0xbe   : > { %v1345_v34 = vpop.f32.mrf.mxu3  ;;  %v958_v35 = vadd.f32 %v957_v29, %v817_v28  ;;  %v675_v28 = vsel %vm615_vm3, %v673_v52, %v674_v55  ;;  %v677_v29 = vsel %vm615_vm3, %v674_v55, %v676_v1 }
  0xbf   : > { %v7067_v37 = vadd.f32 %v1345_v34, %v1291_v36  ;;  %v6681_v34 = vld [vmem:[%s6820_s24 + $0x60] sm:$0xff]   ;;  %v1084_v41 = vsel %vm1022_vm4, %v1081_v9, %v1083_v12 }
  0xc0   : > { %6081 = vmatmul.msk.bf16.gmra.mxu0 %vm740_vm1, %v7063_v14  ;;  %6096 = vmatmul.msk.bf16.gmra.mxu1 %vm740_vm1, %v7054_v63  ;;  %v6656_v44 = vunpack.c.l.bf16 %v6681_v34 }
  0xc1   : > { %6112 = vmatmul.msk.bf16.gmra.mxu2 %vm740_vm1, %v7065_v31 }
  0xc4   : > { %v1222_v45 = vpop.f32.mrf.mxu2 }
  0xc5   : > { %v1293_v36 = vadd.f32 %v1222_v45, %v958_v35  ;;  %v819_v48 = vpop.f32.mrf.mxu0  ;;  %v959_v50 = vpop.f32.mrf.mxu1  ;;  %v1082_v35 = vsel %vm1022_vm4, %v1080_v6, %v1081_v9  ;;  %v7089_v45 = vpack.c.bf16 %v677_v29, %v675_v28 }
  0xc6   : > { %v1347_v2 = vpop.f32.mrf.mxu3  ;;  %v960_v4 = vadd.f32 %v959_v50, %v819_v48  ;;  %v7091_v50 = vpack.c.bf16 %v1084_v41, %v1082_v35 }
  0xc7   : > { %v7078_v22 = vadd.f32 %v1347_v2, %v1292_v23  ;;  %v6657_v23 = vunpack.c.h.bf16 %v6681_v34  ;;  %v467_v2 = vrot.slane %v6656_v44, 7 }
  0xc8   : > { %9951 = vst [vmem:[#allocation4_spill] sm:$0xff] %v7091_v50 }
  0xc9   : > { %v468_v6 = vrot.slane %v6657_v23, 7  ;;  %v539_v28 = vsel %vm430_vm2, 0.0, %v467_v2 }
  0xca   : > { %6128 = vmatmul.msk.bf16.gmra.mxu3 %vm740_vm1, %v7080_v11  ;;  %v678_v35 = vrot.slane %v539_v28, 1  ;;  %v1085_v23 = vrot.slane %v539_v28, 2 }
  0xcb   : > { %v469_v12 = vsel %vm430_vm2, %v467_v2, %v468_v6 }
  0xcc   : > { %v1224_v42 = vpop.f32.mrf.mxu2  ;;  %v679_v41 = vrot.slane %v469_v12, 1  ;;  %v7106_v13 = vpack.c.bf16 %v469_v12, %v539_v28 }
  0xcd   : > { %v1294_v48 = vadd.f32 %v1224_v42, %v960_v4  ;;  %v822_v46 = vpop.f32.mrf.mxu0  ;;  %v962_v47 = vpop.f32.mrf.mxu1  ;;  %v555_v4 = vsel %vm430_vm2, %v468_v6, 0.0 }
  0xce   : > { %v1350_v52 = vpop.f32.mrf.mxu3  ;;  %v963_v55 = vadd.f32 %v962_v47, %v822_v46  ;;  %v681_v42 = vrot.slane %v555_v4, 1  ;;  %v1086_v47 = vrot.slane %v469_v12, 2  ;;  %9953 = vst [vmem:[#allocation6_spill] sm:$0xff] %v7106_v13  ;;  %v680_v6 = vsel %vm615_vm3, %v678_v35, %v679_v41 }
  0xcf   : > { %v7093_v1 = vadd.f32 %v1350_v52, %v1293_v36  ;;  %v1088_v52 = vrot.slane %v555_v4, 2  ;;  %v6660_v4 = vunpack.c.l.bf16 %v6682_v10 }
  0xd0   : > { %6082 = vmatmul.msk.bf16.gmra.mxu0 %vm740_vm1, %v7089_v45  ;;  %6097 = vmatmul.msk.bf16.gmra.mxu1 %vm740_vm1, %v7080_v11  ;;  %v682_v2 = vsel %vm615_vm3, %v679_v41, %v681_v42 }
  0xd1   : > { %6113 = vmatmul.msk.bf16.gmra.mxu2 %vm740_vm1, %v7091_v50 }
  0xd4   : > { %v1227_v9 = vpop.f32.mrf.mxu2 }
  0xd5   : > { %v1295_v36 = vadd.f32 %v1227_v9, %v963_v55  ;;  %v824_v29 = vpop.f32.mrf.mxu0  ;;  %v964_v34 = vpop.f32.mrf.mxu1  ;;  %v1087_v55 = vsel %vm1022_vm4, %v1085_v23, %v1086_v47  ;;  %v1089_v9 = vsel %vm1022_vm4, %v1086_v47, %v1088_v52  ;;  %v470_v23 = vrot.slane %v6660_v4, 7 }
  0xd6   : > { %v1352_v46 = vpop.f32.mrf.mxu3  ;;  %v965_v44 = vadd.f32 %v964_v34, %v824_v29  ;;  %v7115_v34 = vpack.c.bf16 %v682_v2, %v680_v6 }
  0xd7   : > { %v7104_v15 = vadd.f32 %v1352_v46, %v1294_v48  ;;  %v6661_v48 = vunpack.c.h.bf16 %v6682_v10  ;;  %v540_v6 = vsel %vm430_vm2, 0.0, %v470_v23 }
  0xd8   : > { %9954 = vst [vmem:[#allocation7_spill] sm:$0xff] %v7115_v34 }
  0xd9   : > { %9952 = vst [vmem:[#allocation5_spill] sm:$0xff] %v7104_v15  ;;  %v7117_v15 = vpack.c.bf16 %v1089_v9, %v1087_v55  ;;  %v471_v47 = vrot.slane %v6661_v48, 7  ;;  %v683_v9 = vrot.slane %v540_v6, 1  ;;  %v1090_v48 = vrot.slane %v540_v6, 2 }
  0xda   : > { %6129 = vmatmul.msk.bf16.gmra.mxu3 %vm740_vm1, %v7106_v13 }
  0xdb   : > { %9955 = vst [vmem:[#allocation8_spill] sm:$0xff] %v7117_v15  ;;  %v556_v10 = vsel %vm430_vm2, %v471_v47, 0.0  ;;  %v472_v52 = vsel %vm430_vm2, %v470_v23, %v471_v47  ;;  %v565_v23 = vld [vmem:[%s9841_s1 + $0xc] sm:$0x3] }
  0xdc   : > { %v1229_v29 = vpop.f32.mrf.mxu2  ;;  %v1720_v47 = vsel %vm789_vm0, %v565_v23, 0 }
  0xdd   : > { %v1296_v46 = vadd.f32 %v1229_v29, %v965_v44  ;;  %v827_v12 = vpop.f32.mrf.mxu0  ;;  %v967_v28 = vpop.f32.mrf.mxu1  ;;  %v684_v29 = vrot.slane %v472_v52, 1  ;;  %1729 = vmatpush.bf16.msrb.mxu2 %v1720_v47 }
  0xde   : > { %v1355_v35 = vpop.f32.mrf.mxu3  ;;  %v968_v41 = vadd.f32 %v967_v28, %v827_v12  ;;  %v686_v12 = vrot.slane %v556_v10, 1 }
  0xdf   : > { %v7119_v42 = vadd.f32 %v1355_v35, %v1295_v36  ;;  %v1091_v35 = vrot.slane %v472_v52, 2 }
  0xe0   : > { %6083 = vmatmul.msk.bf16.gmra.mxu0 %vm740_vm1, %v7115_v34  ;;  %6098 = vmatmul.msk.bf16.gmra.mxu1 %vm740_vm1, %v7106_v13  ;;  %v7132_v34 = vpack.c.bf16 %v472_v52, %v540_v6 }
  0xe1   : > { %9956 = vst [vmem:[#allocation9_spill] sm:$0xff] %v7119_v42  ;;  %6114 = vmatmul.msk.bf16.gmra.mxu2 %vm740_vm1, %v7117_v15  ;;  %v1093_v42 = vrot.slane %v556_v10, 2  ;;  %v687_v10 = vsel %vm615_vm3, %v684_v29, %v686_v12  ;;  %v1092_v52 = vsel %vm1022_vm4, %v1090_v48, %v1091_v35 }
  0xe3   : > { %v1094_v6 = vsel %vm1022_vm4, %v1091_v35, %v1093_v42 }
  0xe4   : > { %v1232_v44 = vpop.f32.mrf.mxu2  ;;  %v7151_v50 = vpack.c.bf16 %v1094_v6, %v1092_v52 }
  0xe5   : > { %v1297_v36 = vadd.f32 %v1232_v44, %v968_v41  ;;  %v829_v2 = vpop.f32.mrf.mxu0  ;;  %v969_v55 = vpop.f32.mrf.mxu1  ;;  %v566_v41 = vld [vmem:[%s9841_s1 + $0xe] sm:$0x3] }
  0xe6   : > { %v1357_v28 = vpop.f32.mrf.mxu3  ;;  %v970_v4 = vadd.f32 %v969_v55, %v829_v2  ;;  %v1844_v44 = vsel %vm789_vm0, %v566_v41, 0  ;;  %v685_v2 = vsel %vm615_vm3, %v683_v9, %v684_v29  ;;  %9959 = vst [vmem:[#allocation12_spill] sm:$0xff] %v7151_v50 }
  0xe7   : > { %v7130_v15 = vadd.f32 %v1357_v28, %v1296_v46  ;;  %v6683_v46 = vld [vmem:[%s6820_s24 + $0x70] sm:$0xff]   ;;  %1853 = vmatpush.bf16.msrb.mxu3 %v1844_v44  ;;  %v7149_v28 = vpack.c.bf16 %v687_v10, %v685_v2 }
  0xe8   : > { %v6664_v23 = vunpack.c.l.bf16 %v6683_v46 }
  0xe9   : > { %9957 = vst [vmem:[#allocation10_spill] sm:$0xff] %v7130_v15  ;;  %v6665_v15 = vunpack.c.h.bf16 %v6683_v46 }
  0xea   : > { %6130 = vmatmul.msk.bf16.gmra.mxu3 %vm740_vm1, %v7132_v34  ;;  %9958 = vst [vmem:[#allocation11_spill] sm:$0xff] %v7149_v28  ;;  %v473_v42 = vrot.slane %v6664_v23, 7 }
  0xeb   : > { %v474_v48 = vrot.slane %v6665_v15, 7 }
  0xec   : > { %v1234_v55 = vpop.f32.mrf.mxu2  ;;  %v541_v2 = vsel %vm430_vm2, 0.0, %v473_v42 }
  0xed   : > { %v1298_v41 = vadd.f32 %v1234_v55, %v970_v4  ;;  %v832_v13 = vpop.f32.mrf.mxu0  ;;  %v972_v9 = vpop.f32.mrf.mxu1  ;;  %v567_v4 = vld [vmem:[%s9841_s1 + $0x10] sm:$0x3]  ;;  %v557_v35 = vsel %vm430_vm2, %v474_v48, 0.0  ;;  %v475_v44 = vsel %vm430_vm2, %v473_v42, %v474_v48  ;;  %v688_v52 = vrot.slane %v541_v2, 1 }
  0xee   : > { %v1360_v29 = vpop.f32.mrf.mxu3  ;;  %v973_v12 = vadd.f32 %v972_v9, %v832_v13  ;;  %v1968_v13 = vsel %vm789_vm0, %v567_v4, 0  ;;  %v689_v6 = vrot.slane %v475_v44, 1  ;;  %v691_v55 = vrot.slane %v557_v35, 1 }
  0xef   : > { %v7153_v47 = vadd.f32 %v1360_v29, %v1297_v36  ;;  %1977 = vmatpush.bf16.msra.mxu0 %v1968_v13  ;;  %v1095_v29 = vrot.slane %v541_v2, 2  ;;  %v7170_v4 = vpack.c.bf16 %v475_v44, %v541_v2  ;;  %v6684_v13 = vld [vmem:[%s6820_s24 + $0x78] sm:$0xff]  }
  0xf0   : > { %6084 = vmatmul.msk.bf16.gmra.mxu0 %vm740_vm1, %v7149_v28  ;;  %6099 = vmatmul.msk.bf16.gmra.mxu1 %vm740_vm1, %v7132_v34  ;;  %v690_v48 = vsel %vm615_vm3, %v688_v52, %v689_v6  ;;  %v692_v42 = vsel %vm615_vm3, %v689_v6, %v691_v55 }
  0xf1   : > { %9960 = vst [vmem:[#allocation13_spill] sm:$0xff] %v7153_v47  ;;  %6115 = vmatmul.msk.bf16.gmra.mxu2 %vm740_vm1, %v7151_v50  ;;  %v1096_v50 = vrot.slane %v475_v44, 2  ;;  %v1098_v47 = vrot.slane %v557_v35, 2  ;;  %v6668_v35 = vunpack.c.l.bf16 %v6684_v13 }
  0xf4   : > { %v1237_v36 = vpop.f32.mrf.mxu2 }
  0xf5   : > { %v1299_v10 = vadd.f32 %v1237_v36, %v973_v12  ;;  %v834_v15 = vpop.f32.mrf.mxu0  ;;  %v974_v46 = vpop.f32.mrf.mxu1  ;;  %v1097_v12 = vsel %vm1022_vm4, %v1095_v29, %v1096_v50  ;;  %v1099_v36 = vsel %vm1022_vm4, %v1096_v50, %v1098_v47  ;;  %v476_v50 = vrot.slane %v6668_v35, 7 }
  0xf6   : > { %v1362_v23 = vpop.f32.mrf.mxu3  ;;  %v975_v9 = vadd.f32 %v974_v46, %v834_v15  ;;  %v7179_v46 = vpack.c.bf16 %v692_v42, %v690_v48 }
  0xf7   : > { %v7168_v28 = vadd.f32 %v1362_v23, %v1298_v41  ;;  %v6669_v41 = vunpack.c.h.bf16 %v6684_v13 }
  0xf9   : > { %9961 = vst [vmem:[#allocation14_spill] sm:$0xff] %v7168_v28  ;;  %v7181_v28 = vpack.c.bf16 %v1099_v36, %v1097_v12  ;;  %v7189_v47 = vrot.slane %v6669_v41, 7 }
  0xfa   : > { %6131 = vmatmul.msk.bf16.gmra.mxu3 %vm740_vm1, %v7170_v4 }
  0xfb   : > { %9962 = vst [vmem:[#allocation15_spill] sm:$0xff] %v7181_v28  ;;  %v7195_v29 = vsel %vm430_vm2, %v476_v50, %v7189_v47 }
  0xfc   : > { %v1239_v15 = vpop.f32.mrf.mxu2 }
  0xfd   : > { %v1300_v23 = vadd.f32 %v1239_v15, %v975_v9  ;;  %v837_v44 = vpop.f32.mrf.mxu0  ;;  %v977_v2 = vpop.f32.mrf.mxu1 }
  0xfe   : > { %v1365_v52 = vpop.f32.mrf.mxu3  ;;  %v978_v6 = vadd.f32 %v977_v2, %v837_v44 }
  0xff   : > { %v7183_v55 = vadd.f32 %v1365_v52, %v1299_v10  ;;  %v7198_v10 = vsel %vm430_vm2, 0.0, %v476_v50 }
 0x100   : > { %6085 = vmatmul.msk.bf16.gmra.mxu0 %vm740_vm1, %v7179_v46  ;;  %6100 = vmatmul.msk.bf16.gmra.mxu1 %vm740_vm1, %v7170_v4  ;;  %v7204_v35 = vpack.c.bf16 %v7195_v29, %v7198_v10 }
 0x101   : > { %6116 = vmatmul.msk.bf16.gmra.mxu2 %vm740_vm1, %v7181_v28 }
 0x104   : > { %v1242_v9 = vpop.f32.mrf.mxu2 }
 0x105   : > { %v1301_v48 = vadd.f32 %v1242_v9, %v978_v6  ;;  %v839_v42 = vpop.f32.mrf.mxu0  ;;  %v979_v13 = vpop.f32.mrf.mxu1 }
 0x106   : > { %v1367_v12 = vpop.f32.mrf.mxu3  ;;  %v980_v36 = vadd.f32 %v979_v13, %v839_v42 }
 0x107   : > { %v7200_v15 = vadd.f32 %v1367_v12, %v1300_v23 }
 0x10a   : > { %6132 = vmatmul.msk.bf16.gmra.mxu3 %vm740_vm1, %v7204_v35 }
 0x10c   : > { %v1244_v41 = vpop.f32.mrf.mxu2 }
 0x10d   : > { %v1302_v44 = vadd.f32 %v1244_v41, %v980_v36  ;;  %v842_v2 = vpop.f32.mrf.mxu0  ;;  %v982_v52 = vpop.f32.mrf.mxu1 }
 0x10e   : > { %v1370_v50 = vpop.f32.mrf.mxu3  ;;  %v983_v28 = vadd.f32 %v982_v52, %v842_v2 }
 0x10f   : > { %v7208_v6 = vadd.f32 %v1370_v50, %v1301_v48 }
 0x110   : > { %6133 = vmatmul.msk.bf16.vlgmr.msrb.gmra.mxu0 %vm740_vm1, %v6832_v38  ;;  %6149 = vmatmul.msk.bf16.vlgmr.msrb.gmra.mxu1 %vm740_vm1, %v6834_v39 }
 0x111   : > { %9963 = vst [vmem:[#allocation16_spill] sm:$0xff] %v7208_v6  ;;  %6165 = vmatmul.msk.bf16.vlgmr.msrb.gmra.mxu2 %vm740_vm1, %v6844_v51 }
 0x114   : > { %v1247_v23 = vpop.f32.mrf.mxu2 }
 0x115   : > { %v1303_v9 = vadd.f32 %v1247_v23, %v983_v28  ;;  %v844_v42 = vpop.f32.mrf.mxu0  ;;  %v984_v13 = vpop.f32.mrf.mxu1 }
 0x116   : > { %v1372_v12 = vpop.f32.mrf.mxu3  ;;  %v985_v36 = vadd.f32 %v984_v13, %v844_v42 }
 0x117   : > { %v7216_v41 = vadd.f32 %v1372_v12, %v1302_v44 }
 0x11a   : > { %6180 = vmatmul.msk.bf16.vlgmr.msrb.gmra.mxu3 %vm740_vm1, %v6853_v57 }
 0x11c   : > { %v1249_v48 = vpop.f32.mrf.mxu2 }
 0x11d   : > { %v1304_v2 = vadd.f32 %v1249_v48, %v985_v36  ;;  %v847_v38 = vpop.f32.mrf.mxu0  ;;  %v987_v52 = vpop.f32.mrf.mxu1 }
 0x11e   : > { %v1375_v50 = vpop.f32.mrf.mxu3  ;;  %v988_v39 = vadd.f32 %v987_v52, %v847_v38 }
 0x11f   : > { %v7220_v6 = vadd.f32 %v1375_v50, %v1303_v9 }
 0x120   : > { %6134 = vmatmul.msk.bf16.gmra.mxu0 %vm740_vm1, %v6853_v57  ;;  %6150 = vmatmul.msk.bf16.gmra.mxu1 %vm740_vm1, %v6855_v60 }
 0x121   : > { %6166 = vmatmul.msk.bf16.gmra.mxu2 %vm740_vm1, %v6866_v8 }
 0x124   : > { %v1252_v51 = vpop.f32.mrf.mxu2 }
 0x125   : > { %v1305_v28 = vadd.f32 %v1252_v51, %v988_v39  ;;  %v849_v44 = vpop.f32.mrf.mxu0  ;;  %v989_v23 = vpop.f32.mrf.mxu1 }
 0x126   : > { %v1377_v42 = vpop.f32.mrf.mxu3  ;;  %v990_v13 = vadd.f32 %v989_v23, %v849_v44 }
 0x127   : > { %v7228_v12 = vadd.f32 %v1377_v42, %v1304_v2 }
 0x12a   : > { %6181 = vmatmul.msk.bf16.gmra.mxu3 %vm740_vm1, %v6875_v17 }
 0x12c   : > { %v1254_v9 = vpop.f32.mrf.mxu2 }
 0x12d   : > { %v1306_v36 = vadd.f32 %v1254_v9, %v990_v13  ;;  %v852_v57 = vpop.f32.mrf.mxu0  ;;  %v992_v48 = vpop.f32.mrf.mxu1 }
 0x12e   : > { %v1380_v38 = vpop.f32.mrf.mxu3  ;;  %v993_v52 = vadd.f32 %v992_v48, %v852_v57 }
 0x12f   : > { %v7232_v50 = vadd.f32 %v1380_v38, %v1305_v28 }
 0x130   : > { %6135 = vmatmul.msk.bf16.gmra.mxu0 %vm740_vm1, %v6875_v17  ;;  %6151 = vmatmul.msk.bf16.gmra.mxu1 %vm740_vm1, %v6877_v20 }
 0x131   : > { %6167 = vmatmul.msk.bf16.gmra.mxu2 %vm740_vm1, %v6888_v32 }
 0x134   : > { %v1257_v8 = vpop.f32.mrf.mxu2 }
 0x135   : > { %v1307_v2 = vadd.f32 %v1257_v8, %v993_v52  ;;  %v854_v39 = vpop.f32.mrf.mxu0  ;;  %v994_v51 = vpop.f32.mrf.mxu1 }
 0x136   : > { %v1382_v44 = vpop.f32.mrf.mxu3  ;;  %v995_v23 = vadd.f32 %v994_v51, %v854_v39 }
 0x137   : > { %v7240_v42 = vadd.f32 %v1382_v44, %v1306_v36 }
 0x13a   : > { %6182 = vmatmul.msk.bf16.gmra.mxu3 %vm740_vm1, %v6897_v40 }
 0x13c   : > { %v1259_v28 = vpop.f32.mrf.mxu2 }
 0x13d   : > { %v1308_v13 = vadd.f32 %v1259_v28, %v995_v23  ;;  %v857_v17 = vpop.f32.mrf.mxu0  ;;  %v997_v9 = vpop.f32.mrf.mxu1 }
 0x13e   : > { %v1385_v57 = vpop.f32.mrf.mxu3  ;;  %v998_v48 = vadd.f32 %v997_v9, %v857_v17 }
 0x13f   : > { %v7244_v38 = vadd.f32 %v1385_v57, %v1307_v2 }
 0x140   : > { %6136 = vmatmul.msk.bf16.gmra.mxu0 %vm740_vm1, %v6897_v40  ;;  %6152 = vmatmul.msk.bf16.gmra.mxu1 %vm740_vm1, %v6899_v43 }
 0x141   : > { %6168 = vmatmul.msk.bf16.gmra.mxu2 %vm740_vm1, %v6910_v56 }
 0x144   : > { %v1262_v32 = vpop.f32.mrf.mxu2 }
 0x145   : > { %v1309_v36 = vadd.f32 %v1262_v32, %v998_v48  ;;  %v859_v52 = vpop.f32.mrf.mxu0  ;;  %v999_v8 = vpop.f32.mrf.mxu1 }
 0x146   : > { %v1387_v39 = vpop.f32.mrf.mxu3  ;;  %v1000_v51 = vadd.f32 %v999_v8, %v859_v52 }
 0x147   : > { %v7252_v44 = vadd.f32 %v1387_v39, %v1308_v13 }
 0x14a   : > { %6183 = vmatmul.msk.bf16.gmra.mxu3 %vm740_vm1, %v6919_v0 }
 0x14c   : > { %v1264_v2 = vpop.f32.mrf.mxu2 }
 0x14d   : > { %v1310_v23 = vadd.f32 %v1264_v2, %v1000_v51  ;;  %v862_v40 = vpop.f32.mrf.mxu0  ;;  %v1002_v28 = vpop.f32.mrf.mxu1 }
 0x14e   : > { %v1390_v17 = vpop.f32.mrf.mxu3  ;;  %v1003_v9 = vadd.f32 %v1002_v28, %v862_v40 }
 0x14f   : > { %v7256_v57 = vadd.f32 %v1390_v17, %v1309_v36 }
 0x150   : > { %6137 = vmatmul.msk.bf16.gmra.mxu0 %vm740_vm1, %v6919_v0  ;;  %6153 = vmatmul.msk.bf16.gmra.mxu1 %vm740_vm1, %v6921_v3 }
 0x151   : > { %6169 = vmatmul.msk.bf16.gmra.mxu2 %vm740_vm1, %v6932_v21 }
 0x154   : > { %v1267_v56 = vpop.f32.mrf.mxu2 }
 0x155   : > { %v1311_v13 = vadd.f32 %v1267_v56, %v1003_v9  ;;  %v864_v48 = vpop.f32.mrf.mxu0  ;;  %v1004_v32 = vpop.f32.mrf.mxu1 }
 0x156   : > { %v1392_v52 = vpop.f32.mrf.mxu3  ;;  %v1005_v8 = vadd.f32 %v1004_v32, %v864_v48 }
 0x157   : > { %v7264_v39 = vadd.f32 %v1392_v52, %v1310_v23 }
 0x15a   : > { %6184 = vmatmul.msk.bf16.gmra.mxu3 %vm740_vm1, %v6941_v27 }
 0x15c   : > { %v1269_v36 = vpop.f32.mrf.mxu2 }
 0x15d   : > { %v1312_v51 = vadd.f32 %v1269_v36, %v1005_v8  ;;  %v867_v0 = vpop.f32.mrf.mxu0  ;;  %v1007_v2 = vpop.f32.mrf.mxu1 }
 0x15e   : > { %v1395_v40 = vpop.f32.mrf.mxu3  ;;  %v1008_v28 = vadd.f32 %v1007_v2, %v867_v0 }
 0x15f   : > { %v7268_v17 = vadd.f32 %v1395_v40, %v1311_v13 }
 0x160   : > { %6138 = vmatmul.msk.bf16.gmra.mxu0 %vm740_vm1, %v6941_v27  ;;  %6154 = vmatmul.msk.bf16.gmra.mxu1 %vm740_vm1, %v6943_v30 }
 0x161   : > { %6170 = vmatmul.msk.bf16.gmra.mxu2 %vm740_vm1, %v6958_v49 }
 0x164   : > { %v1272_v21 = vpop.f32.mrf.mxu2 }
 0x165   : > { %v1313_v23 = vadd.f32 %v1272_v21, %v1008_v28  ;;  %v869_v9 = vpop.f32.mrf.mxu0  ;;  %v1009_v56 = vpop.f32.mrf.mxu1 }
 0x166   : > { %v1397_v48 = vpop.f32.mrf.mxu3  ;;  %v1010_v32 = vadd.f32 %v1009_v56, %v869_v9 }
 0x167   : > { %v7276_v52 = vadd.f32 %v1397_v48, %v1312_v51 }
 0x16a   : > { %6185 = vmatmul.msk.bf16.gmra.mxu3 %vm740_vm1, %v6967_v58 }
 0x16c   : > { %v1274_v13 = vpop.f32.mrf.mxu2 }
 0x16d   : > { %v1314_v8 = vadd.f32 %v1274_v13, %v1010_v32  ;;  %v872_v27 = vpop.f32.mrf.mxu0  ;;  %v1012_v36 = vpop.f32.mrf.mxu1 }
 0x16e   : > { %v1400_v0 = vpop.f32.mrf.mxu3  ;;  %v1013_v2 = vadd.f32 %v1012_v36, %v872_v27 }
 0x16f   : > { %v7280_v40 = vadd.f32 %v1400_v0, %v1313_v23  ;;  %v6214_v23 = vld [vmem:[%s9843_s3 + $0x8] sm:$0xf] }
 0x170   : > { %6139 = vmatmul.msk.bf16.gmra.mxu0 %vm740_vm1, %v6967_v58  ;;  %6155 = vmatmul.msk.bf16.gmra.mxu1 %vm740_vm1, %v6969_v62  ;;  %v6589_v58 = vld [vmem:[%s9843_s3 + $0x8] sm:$0x30] }
 0x171   : > { %6171 = vmatmul.msk.bf16.gmra.mxu2 %vm740_vm1, %v6980_v16  ;;  %v6215_v32 = vor.u32 %v6589_v58, %v6214_v23 }
 0x173   : > { %v2556_v13 = vsel %vm1022_vm4, %v6215_v32, 0 }
 0x174   : > { %v1277_v49 = vpop.f32.mrf.mxu2  ;;  %2565 = vmatpush.bf16.msra.mxu1 %v2556_v13 }
 0x175   : > { %v1315_v51 = vadd.f32 %v1277_v49, %v1013_v2  ;;  %v874_v28 = vpop.f32.mrf.mxu0  ;;  %v1014_v21 = vpop.f32.mrf.mxu1 }
 0x176   : > { %v1402_v9 = vpop.f32.mrf.mxu3  ;;  %v1015_v56 = vadd.f32 %v1014_v21, %v874_v28 }
 0x177   : > { %v7288_v48 = vadd.f32 %v1402_v9, %v1314_v8 }
 0x17a   : > { %6186 = vmatmul.msk.bf16.gmra.mxu3 %vm740_vm1, %v6989_v25 }
 0x17c   : > { %v1279_v16 = vpop.f32.mrf.mxu2 }
 0x17d   : > { %v1316_v27 = vadd.f32 %v1279_v16, %v1015_v56  ;;  %v877_v36 = vpop.f32.mrf.mxu0  ;;  %v1017_v8 = vpop.f32.mrf.mxu1 }
 0x17e   : > { %v1405_v0 = vpop.f32.mrf.mxu3  ;;  %v1018_v2 = vadd.f32 %v1017_v8, %v877_v36 }
 0x17f   : > { %v7299_v49 = vadd.f32 %v1405_v0, %v1315_v51 }
 0x180   : > { %6140 = vmatmul.msk.bf16.gmra.mxu0 %vm740_vm1, %v6989_v25  ;;  %6156 = vmatmul.msk.bf16.gmra.mxu1 %vm740_vm1, %v6991_v33 }
 0x181   : > { %6172 = vmatmul.msk.bf16.gmra.mxu2 %vm740_vm1, %v7002_v61 }
 0x184   : > { %v1282_v28 = vpop.f32.mrf.mxu2 }
 0x185   : > { %v1317_v21 = vadd.f32 %v1282_v28, %v1018_v2  ;;  %v879_v9 = vpop.f32.mrf.mxu0  ;;  %v1019_v23 = vpop.f32.mrf.mxu1 }
 0x186   : > { %v1407_v56 = vpop.f32.mrf.mxu3  ;;  %v1020_v58 = vadd.f32 %v1019_v23, %v879_v9 }
 0x187   : > { %v7307_v32 = vadd.f32 %v1407_v56, %v1316_v27 }
 0x18a   : > { %6187 = vmatmul.msk.bf16.gmra.mxu3 %vm740_vm1, %v7011_v7 }
 0x18c   : > { %v1284_v51 = vpop.f32.mrf.mxu2 }
 0x18d   : > { %v1318_v13 = vadd.f32 %v1284_v51, %v1020_v58  ;;  %v1472_v25 = vpop.f32.mrf.mxu0  ;;  %v1607_v16 = vpop.f32.mrf.mxu1 }
 0x18e   : > { %v1410_v36 = vpop.f32.mrf.mxu3  ;;  %v1552_v8 = vadd.f32 %v1472_v25, %v7015_v24 }
 0x18f   : > { %v7312_v0 = vadd.f32 %v1410_v36, %v1317_v21 }
 0x190   : > { %v1687_v61 = vadd.f32 %v1607_v16, %v1552_v8  ;;  %6141 = vmatmul.msk.bf16.gmra.mxu0 %vm740_vm1, %v7011_v7  ;;  %6157 = vmatmul.msk.bf16.gmra.mxu1 %vm740_vm1, %v7013_v19 }
 0x191   : > { %6173 = vmatmul.msk.bf16.gmra.mxu2 %vm740_vm1, %v7028_v54 }
 0x194   : > { %v1731_v27 = vpop.f32.mrf.mxu2 }
 0x195   : > { %v1811_v2 = vadd.f32 %v1731_v27, %v1687_v61  ;;  %v1474_v28 = vpop.f32.mrf.mxu0  ;;  %v1609_v9 = vpop.f32.mrf.mxu1 }
 0x196   : > { %v1412_v23 = vpop.f32.mrf.mxu3  ;;  %v1553_v56 = vadd.f32 %v1474_v28, %v7026_v53 }
 0x197   : > { %v7321_v24 = vadd.f32 %v1412_v23, %v1318_v13 }
 0x198   : > { %v1688_v21 = vadd.f32 %v1609_v9, %v1553_v56 }
 0x19a   : > { %6188 = vmatmul.msk.bf16.gmra.mxu3 %vm740_vm1, %v7037_v5 }
 0x19c   : > { %v1733_v7 = vpop.f32.mrf.mxu2 }
 0x19d   : > { %v1812_v58 = vadd.f32 %v1733_v7, %v1688_v21  ;;  %v1477_v51 = vpop.f32.mrf.mxu0  ;;  %v1612_v25 = vpop.f32.mrf.mxu1 }
 0x19e   : > { %v1855_v16 = vpop.f32.mrf.mxu3  ;;  %v1554_v54 = vadd.f32 %v1477_v51, %v7041_v26 }
 0x19f   : > { %v7326_v36 = vadd.f32 %v1855_v16, %v1811_v2 }
 0x1a0   : > { %v1689_v8 = vadd.f32 %v1612_v25, %v1554_v54  ;;  %6142 = vmatmul.msk.bf16.gmra.mxu0 %vm740_vm1, %v7037_v5  ;;  %6158 = vmatmul.msk.bf16.gmra.mxu1 %vm740_vm1, %v7039_v18 }
 0x1a1   : > { %6174 = vmatmul.msk.bf16.gmra.mxu2 %vm740_vm1, %v7054_v63 }
 0x1a4   : > { %v1736_v53 = vpop.f32.mrf.mxu2 }
 0x1a5   : > { %v1813_v13 = vadd.f32 %v1736_v53, %v1689_v8  ;;  %v1479_v61 = vpop.f32.mrf.mxu0  ;;  %v1614_v27 = vpop.f32.mrf.mxu1 }
 0x1a6   : > { %v1857_v28 = vpop.f32.mrf.mxu3  ;;  %v1555_v9 = vadd.f32 %v1479_v61, %v7052_v59 }
 0x1a7   : > { %v7335_v26 = vadd.f32 %v1857_v28, %v1812_v58 }
 0x1a8   : > { %v1690_v2 = vadd.f32 %v1614_v27, %v1555_v9 }
 0x1aa   : > { %6189 = vmatmul.msk.bf16.gmra.mxu3 %vm740_vm1, %v7063_v14 }
 0x1ac   : > { %v1738_v5 = vpop.f32.mrf.mxu2 }
 0x1ad   : > { %v1814_v23 = vadd.f32 %v1738_v5, %v1690_v2  ;;  %v1482_v56 = vpop.f32.mrf.mxu0  ;;  %v1617_v21 = vpop.f32.mrf.mxu1 }
 0x1ae   : > { %v1860_v7 = vpop.f32.mrf.mxu3  ;;  %v1556_v63 = vadd.f32 %v1482_v56, %v7067_v37 }
 0x1af   : > { %v7340_v51 = vadd.f32 %v1860_v7, %v1813_v13 }
 0x1b0   : > { %v1691_v25 = vadd.f32 %v1617_v21, %v1556_v63  ;;  %6143 = vmatmul.msk.bf16.gmra.mxu0 %vm740_vm1, %v7063_v14  ;;  %6159 = vmatmul.msk.bf16.gmra.mxu1 %vm740_vm1, %v7065_v31 }
 0x1b1   : > { %6175 = vmatmul.msk.bf16.gmra.mxu2 %vm740_vm1, %v7080_v11 }
 0x1b4   : > { %v1741_v59 = vpop.f32.mrf.mxu2 }
 0x1b5   : > { %v1815_v58 = vadd.f32 %v1741_v59, %v1691_v25  ;;  %v1484_v16 = vpop.f32.mrf.mxu0  ;;  %v1619_v54 = vpop.f32.mrf.mxu1  ;;  %v9966_v59 = vld [vmem:[#allocation5_spill] sm:$0xff] }
 0x1b6   : > { %v1862_v8 = vpop.f32.mrf.mxu3  ;;  %v1557_v53 = vadd.f32 %v1484_v16, %v7078_v22  ;;  %v9964_v22 = vld [vmem:[#allocation4_spill] sm:$0xff] }
 0x1b7   : > { %v7349_v37 = vadd.f32 %v1862_v8, %v1814_v23  ;;  %v9965_v23 = vld [vmem:[#allocation6_spill] sm:$0xff] }
 0x1b8   : > { %v1692_v13 = vadd.f32 %v1619_v54, %v1557_v53  ;;  %v9967_v54 = vld [vmem:[#allocation7_spill] sm:$0xff] }
 0x1ba   : > { %6190 = vmatmul.msk.bf16.gmra.mxu3 %vm740_vm1, %v7089_v45 }
 0x1bc   : > { %v1743_v14 = vpop.f32.mrf.mxu2 }
 0x1bd   : > { %v1816_v61 = vadd.f32 %v1743_v14, %v1692_v13  ;;  %v1487_v27 = vpop.f32.mrf.mxu0  ;;  %v1622_v28 = vpop.f32.mrf.mxu1 }
 0x1be   : > { %v1865_v9 = vpop.f32.mrf.mxu3  ;;  %v1558_v11 = vadd.f32 %v1487_v27, %v7093_v1  ;;  %v9968_v27 = vld [vmem:[#allocation9_spill] sm:$0xff] }
 0x1bf   : > { %v7354_v2 = vadd.f32 %v1865_v9, %v1815_v58 }
 0x1c0   : > { %v1693_v5 = vadd.f32 %v1622_v28, %v1558_v11  ;;  %6144 = vmatmul.msk.bf16.gmra.mxu0 %vm740_vm1, %v7089_v45  ;;  %6160 = vmatmul.msk.bf16.gmra.mxu1 %vm740_vm1, %v9964_v22 }
 0x1c1   : > { %6176 = vmatmul.msk.bf16.gmra.mxu2 %vm740_vm1, %v9965_v23  ;;  %v1450_v23 = vrot.slane %v7195_v29, 1 }
 0x1c4   : > { %v1746_v56 = vpop.f32.mrf.mxu2 }
 0x1c5   : > { %v1817_v21 = vadd.f32 %v1746_v56, %v1693_v5  ;;  %v1489_v7 = vpop.f32.mrf.mxu0  ;;  %v1624_v63 = vpop.f32.mrf.mxu1  ;;  %v9969_v5 = vld [vmem:[#allocation8_spill] sm:$0xff] }
 0x1c6   : > { %v1867_v25 = vpop.f32.mrf.mxu3  ;;  %v1559_v16 = vadd.f32 %v1489_v7, %v9966_v59 }
 0x1c7   : > { %v7363_v1 = vadd.f32 %v1867_v25, %v1816_v61  ;;  %v1449_v61 = vrot.slane %v7198_v10, 1 }
 0x1c8   : > { %v1694_v58 = vadd.f32 %v1624_v63, %v1559_v16  ;;  %v9970_v16 = vld [vmem:[#allocation10_spill] sm:$0xff] }
 0x1ca   : > { %6191 = vmatmul.msk.bf16.gmra.mxu3 %vm740_vm1, %v9967_v54 }
 0x1cc   : > { %v1748_v45 = vpop.f32.mrf.mxu2 }
 0x1cd   : > { %v1818_v8 = vadd.f32 %v1748_v45, %v1694_v58  ;;  %v1492_v53 = vpop.f32.mrf.mxu0  ;;  %v1627_v13 = vpop.f32.mrf.mxu1 }
 0x1ce   : > { %v1870_v14 = vpop.f32.mrf.mxu3  ;;  %v1560_v28 = vadd.f32 %v1492_v53, %v9968_v27  ;;  %v1451_v53 = vsel %vm615_vm3, %v1449_v61, %v1450_v23  ;;  %v9972_v27 = vld [vmem:[#allocation11_spill] sm:$0xff] }
 0x1cf   : > { %v7368_v9 = vadd.f32 %v1870_v14, %v1817_v21  ;;  %v558_v21 = vsel %vm430_vm2, %v7189_v47, 0.0  ;;  %v1585_v47 = vrot.slane %v7195_v29, 2 }
 0x1d0   : > { %v1695_v11 = vadd.f32 %v1627_v13, %v1560_v28  ;;  %6145 = vmatmul.msk.bf16.gmra.mxu0 %vm740_vm1, %v9967_v54  ;;  %6161 = vmatmul.msk.bf16.gmra.mxu1 %vm740_vm1, %v9969_v5  ;;  %v1452_v54 = vrot.slane %v558_v21, 1 }
 0x1d1   : > { %6177 = vmatmul.msk.bf16.gmra.mxu2 %vm740_vm1, %v7132_v34 }
 0x1d2   : > { %v1453_v34 = vsel %vm615_vm3, %v1450_v23, %v1452_v54  ;;  %v1587_v23 = vrot.slane %v558_v21, 2 }
 0x1d3   : > { %v1456_v13 = vpack.c.bf16 %v1453_v34, %v1451_v53 }
 0x1d4   : > { %v1751_v56 = vpop.f32.mrf.mxu2 }
 0x1d5   : > { %v1819_v7 = vadd.f32 %v1751_v56, %v1695_v11  ;;  %v1494_v63 = vpop.f32.mrf.mxu0  ;;  %v1629_v25 = vpop.f32.mrf.mxu1  ;;  %v1584_v11 = vrot.slane %v7198_v10, 2  ;;  %v1588_v10 = vsel %vm1022_vm4, %v1585_v47, %v1587_v23 }
 0x1d6   : > { %v1872_v59 = vpop.f32.mrf.mxu3  ;;  %v1561_v58 = vadd.f32 %v1494_v63, %v9970_v16 }
 0x1d7   : > { %v7381_v45 = vadd.f32 %v1872_v59, %v1818_v8  ;;  %v9973_v59 = vld [vmem:[#allocation13_spill] sm:$0xff]  ;;  %v1586_v29 = vsel %vm1022_vm4, %v1584_v11, %v1585_v47 }
 0x1d8   : > { %v1696_v14 = vadd.f32 %v1629_v25, %v1561_v58  ;;  %v9974_v25 = vld [vmem:[#allocation12_spill] sm:$0xff]  ;;  %v7402_v58 = vpack.c.bf16 %v1588_v10, %v1586_v29 }
 0x1d9   : > { %9971 = vst [vmem:[#allocation4_spill] sm:$0xff] %v7381_v45 }
 0x1da   : > { %6192 = vmatmul.msk.bf16.gmra.mxu3 %vm740_vm1, %v9972_v27 }
 0x1dc   : > { %v1753_v28 = vpop.f32.mrf.mxu2 }
 0x1dd   : > { %v7389_v56 = vadd.f32 %v1753_v28, %v1696_v14  ;;  %v1497_v63 = vpop.f32.mrf.mxu0  ;;  %v1632_v16 = vpop.f32.mrf.mxu1  ;;  %v9975_v14 = vld [vmem:[#allocation14_spill] sm:$0xff] }
 0x1de   : > { %v1875_v8 = vpop.f32.mrf.mxu3  ;;  %v1562_v45 = vadd.f32 %v1497_v63, %v9973_v59  ;;  %v9976_v59 = vld [vmem:[#allocation15_spill] sm:$0xff] }
 0x1df   : > { %v7392_v61 = vadd.f32 %v1875_v8, %v1819_v7 }
 0x1e0   : > { %v1697_v54 = vadd.f32 %v1632_v16, %v1562_v45  ;;  %6146 = vmatmul.msk.bf16.gmra.mxu0 %vm740_vm1, %v9972_v27  ;;  %6162 = vmatmul.msk.bf16.gmra.mxu1 %vm740_vm1, %v9974_v25 }
 0x1e1   : > { %6178 = vmatmul.msk.bf16.gmra.mxu2 %vm740_vm1, %v7170_v4 }
 0x1e4   : > { %v1756_v53 = vpop.f32.mrf.mxu2 }
 0x1e5   : > { %v1821_v7 = vadd.f32 %v1756_v53, %v1697_v54  ;;  %v1499_v34 = vpop.f32.mrf.mxu0  ;;  %v7404_v21 = vpop.f32.mrf.mxu1 }
 0x1e6   : > { %v7406_v45 = vpop.f32.mrf.mxu3  ;;  %v7409_v27 = vadd.f32 %v1499_v34, %v9975_v14  ;;  %v6590_v14 = vld [vmem:[%s9843_s3 + $0x10] sm:$0x30] }
 0x1ea   : > { %6193 = vmatmul.msk.bf16.gmra.mxu3 %vm740_vm1, %v7179_v46 }
 0x1ec   : > { %v7413_v4 = vpop.f32.mrf.mxu2 }
 0x1ed   : > { %v1502_v28 = vpop.f32.mrf.mxu0  ;;  %v1637_v11 = vpop.f32.mrf.mxu1 }
 0x1ee   : > { %v1880_v47 = vpop.f32.mrf.mxu3  ;;  %v1564_v63 = vadd.f32 %v1502_v28, %v7183_v55 }
 0x1ef   : > { %v7416_v16 = vadd.f32 %v1880_v47, %v1821_v7  ;;  %v6588_v7 = vld [vmem:[%s9843_s3] sm:$0x30] }
 0x1f0   : > { %v1699_v8 = vadd.f32 %v1637_v11, %v1564_v63  ;;  %6147 = vmatmul.msk.bf16.gmra.mxu0 %vm740_vm1, %v7179_v46  ;;  %6163 = vmatmul.msk.bf16.gmra.mxu1 %vm740_vm1, %v9976_v59  ;;  %v6234_v46 = vld [vmem:[%s9843_s3] sm:$0xf] }
 0x1f1   : > { %6179 = vmatmul.msk.bf16.gmra.mxu2 %vm740_vm1, %v7204_v35  ;;  %v6253_v35 = vld [vmem:[%s9843_s3 + $0x10] sm:$0xf]  ;;  %v6235_v34 = vor.u32 %v6588_v7, %v6234_v46 }
 0x1f2   : > { %v6254_v28 = vor.u32 %v6590_v14, %v6253_v35  ;;  %v9980_v35 = vmov 0.0|0.0  }
 0x1f4   : > { %v1761_v23 = vpop.f32.mrf.mxu2  ;;  %v2964_v47 = vsel %vm1022_vm4, %v6254_v28, 0 }
 0x1f5   : > { %v1823_v54 = vadd.f32 %v1761_v23, %v1699_v8  ;;  %v1504_v29 = vpop.f32.mrf.mxu0  ;;  %v7424_v10 = vpop.f32.mrf.mxu1  ;;  %2973 = vmatpush.bf16.msra.mxu3 %v2964_v47 }
 0x1f6   : > { %9977 = vst [vmem:[#allocation6_spill] sm:$0xff] %v7424_v10  ;;  %v7426_v53 = vpop.f32.mrf.mxu3  ;;  %v7429_v55 = vadd.f32 %v1504_v29, %v7200_v15  ;;  %v2700_v15 = vsel %vm1022_vm4, %v6235_v34, 0  ;;  %v9979_v29 = vld [vmem:[#allocation16_spill] sm:$0xff] }
 0x1f7   : > { %2709 = vmatpush.bf16.msra.mxu2 %v2700_v15 }
 0x1fa   : > { %6194 = vmatmul.msk.bf16.gmra.mxu3 %vm740_vm1, %v1456_v13 }
 0x1fc   : > { %v7445_v11 = vpop.f32.mrf.mxu2 }
 0x1fd   : > { %9978 = vst [vmem:[#allocation5_spill] sm:$0xff] %v7445_v11  ;;  %v1507_v63 = vpop.f32.mrf.mxu0  ;;  %v1642_v8 = vpop.f32.mrf.mxu1 }
 0x1fe   : > { %v1885_v23 = vpop.f32.mrf.mxu3  ;;  %v1566_v46 = vadd.f32 %v1507_v63, %v9979_v29 }
 0x1ff   : > { %v7449_v7 = vadd.f32 %v1885_v23, %v1823_v54  ;;  %v9984_v54 = vld [vmem:[#allocation2_spill] sm:$0xff] }
 0x200   : > { %v1701_v10 = vadd.f32 %v1642_v8, %v1566_v46  ;;  %6148 = vmatmul.msk.bf16.gmra.mxu0 %vm740_vm1, %v1456_v13  ;;  %6164 = vmatmul.msk.bf16.gmra.mxu1 %vm740_vm1, %v7402_v58 }
 0x201   : > { %1805 = vmatmul.bf16.gmra.mxu2 %v9980_v35 }
 0x204   : > { %v1766_v34 = vpop.f32.mrf.mxu2 }
 0x205   : > { %v1825_v14 = vadd.f32 %v1766_v34, %v1701_v10  ;;  %v1509_v15 = vpop.f32.mrf.mxu0  ;;  %v7455_v28 = vpop.f32.mrf.mxu1 }
 0x206   : > { %9981 = vst [vmem:[#allocation7_spill] sm:$0xff] %v7455_v28  ;;  %v7457_v11 = vpop.f32.mrf.mxu3  ;;  %v7460_v47 = vadd.f32 %v1509_v15, %v7216_v41 }
 0x207   : > { %9982 = vst [vmem:[#allocation9_spill] sm:$0xff] %v7457_v11 }
 0x208   : > { %9983 = vst [vmem:[#allocation8_spill] sm:$0xff] %v7460_v47 }
 0x20a   : > { %6195 = vmatmul.msk.bf16.gmra.mxu3 %vm740_vm1, %v9984_v54 }
 0x20c   : > { %v7464_v63 = vpop.f32.mrf.mxu2 }
 0x20d   : > { %9985 = vst [vmem:[#allocation10_spill] sm:$0xff] %v7464_v63  ;;  %v1512_v13 = vpop.f32.mrf.mxu0  ;;  %v1647_v8 = vpop.f32.mrf.mxu1 }
 0x20e   : > { %v1890_v23 = vpop.f32.mrf.mxu3  ;;  %v1568_v29 = vadd.f32 %v1512_v13, %v7220_v6 }
 0x20f   : > { %v7467_v46 = vadd.f32 %v1890_v23, %v1825_v14 }
 0x210   : > { %v1703_v10 = vadd.f32 %v1647_v8, %v1568_v29  ;;  %6196 = vmatmul.msk.bf16.vlgmr.msra.gmra.mxu0 %vm740_vm1, %v6855_v60  ;;  %6216 = vmatmul.msk.bf16.vlgmr.msra.gmra.mxu1 %vm2507_vm5, %v9984_v54 }
 0x211   : > { %2710 = vmatmul.bf16.vlgmr.msra.gmra.mxu2 %v9980_v35 }
 0x214   : > { %v1771_v41 = vpop.f32.mrf.mxu2 }
 0x215   : > { %v1827_v34 = vadd.f32 %v1771_v41, %v1703_v10  ;;  %v1514_v15 = vpop.f32.mrf.mxu0  ;;  %v7472_v28 = vpop.f32.mrf.mxu1 }
 0x216   : > { %9986 = vst [vmem:[#allocation11_spill] sm:$0xff] %v7472_v28  ;;  %v7474_v47 = vpop.f32.mrf.mxu3  ;;  %v7477_v63 = vadd.f32 %v1514_v15, %v7228_v12 }
 0x21c   : > { %v7479_v11 = vpop.f32.mrf.mxu2 }
 0x21d   : > { %9987 = vst [vmem:[#allocation13_spill] sm:$0xff] %v7479_v11  ;;  %v1517_v6 = vpop.f32.mrf.mxu0  ;;  %v1652_v14 = vpop.f32.mrf.mxu1 }
 0x21e   : > { %v1895_v13 = vpop.f32.mrf.mxu3  ;;  %v1570_v8 = vadd.f32 %v1517_v6, %v7232_v50 }
 0x21f   : > { %v7482_v60 = vadd.f32 %v1895_v13, %v1827_v34 }
 0x220   : > { %v1705_v23 = vadd.f32 %v1652_v14, %v1570_v8  ;;  %6197 = vmatmul.msk.bf16.gmra.mxu0 %vm740_vm1, %v6877_v20 }
 0x224   : > { %v1776_v29 = vpop.f32.mrf.mxu2 }
 0x225   : > { %v1829_v10 = vadd.f32 %v1776_v29, %v1705_v23  ;;  %v1519_v41 = vpop.f32.mrf.mxu0  ;;  %v7486_v35 = vpop.f32.mrf.mxu1 }
 0x226   : > { %9988 = vst [vmem:[#allocation12_spill] sm:$0xff] %v7486_v35  ;;  %v7488_v12 = vpop.f32.mrf.mxu3  ;;  %v7491_v15 = vadd.f32 %v1519_v41, %v7240_v42 }
 0x22c   : > { %v7493_v11 = vpop.f32.mrf.mxu2 }
 0x22d   : > { %9989 = vst [vmem:[#allocation14_spill] sm:$0xff] %v7493_v11  ;;  %v1522_v28 = vpop.f32.mrf.mxu0  ;;  %v1657_v50 = vpop.f32.mrf.mxu1 }
 0x22e   : > { %v1900_v34 = vpop.f32.mrf.mxu3  ;;  %v1572_v6 = vadd.f32 %v1522_v28, %v7244_v38 }
 0x22f   : > { %v7496_v14 = vadd.f32 %v1900_v34, %v1829_v10 }
 0x230   : > { %v1707_v20 = vadd.f32 %v1657_v50, %v1572_v6  ;;  %6198 = vmatmul.msk.bf16.gmra.mxu0 %vm740_vm1, %v6899_v43 }
 0x234   : > { %v1781_v13 = vpop.f32.mrf.mxu2 }
 0x235   : > { %v1831_v8 = vadd.f32 %v1781_v13, %v1707_v20  ;;  %v1524_v23 = vpop.f32.mrf.mxu0  ;;  %v7500_v29 = vpop.f32.mrf.mxu1 }
 0x236   : > { %9990 = vst [vmem:[#allocation15_spill] sm:$0xff] %v7500_v29  ;;  %v7502_v42 = vpop.f32.mrf.mxu3  ;;  %v7505_v41 = vadd.f32 %v1524_v23, %v7252_v44 }
 0x23c   : > { %v7507_v11 = vpop.f32.mrf.mxu2 }
 0x23d   : > { %9991 = vst [vmem:[#allocation16_spill] sm:$0xff] %v7507_v11  ;;  %v1527_v35 = vpop.f32.mrf.mxu0  ;;  %v1662_v38 = vpop.f32.mrf.mxu1 }
 0x23e   : > { %v1905_v28 = vpop.f32.mrf.mxu3  ;;  %v1574_v10 = vadd.f32 %v1527_v35, %v7256_v57 }
 0x23f   : > { %v7510_v50 = vadd.f32 %v1905_v28, %v1831_v8 }
 0x240   : > { %v1709_v43 = vadd.f32 %v1662_v38, %v1574_v10  ;;  %6199 = vmatmul.msk.bf16.gmra.mxu0 %vm740_vm1, %v6921_v3 }
 0x244   : > { %v1786_v34 = vpop.f32.mrf.mxu2 }
 0x245   : > { %v1833_v6 = vadd.f32 %v1786_v34, %v1709_v43  ;;  %v1529_v20 = vpop.f32.mrf.mxu0  ;;  %v7514_v13 = vpop.f32.mrf.mxu1 }
 0x246   : > { %9992 = vst [vmem:[#allocation17_spill] sm:$0xff] %v7514_v13  ;;  %v7516_v44 = vpop.f32.mrf.mxu3  ;;  %v7519_v23 = vadd.f32 %v1529_v20, %v7264_v39 }
 0x24c   : > { %v7521_v11 = vpop.f32.mrf.mxu2 }
 0x24d   : > { %9993 = vst [vmem:[#allocation18_spill] sm:$0xff] %v7521_v11  ;;  %v1532_v29 = vpop.f32.mrf.mxu0  ;;  %v1667_v57 = vpop.f32.mrf.mxu1 }
 0x24e   : > { %v1910_v35 = vpop.f32.mrf.mxu3  ;;  %v1576_v8 = vadd.f32 %v1532_v29, %v7268_v17 }
 0x24f   : > { %v7524_v38 = vadd.f32 %v1910_v35, %v1833_v6 }
 0x250   : > { %v1711_v3 = vadd.f32 %v1667_v57, %v1576_v8  ;;  %6200 = vmatmul.msk.bf16.gmra.mxu0 %vm740_vm1, %v6943_v30 }
 0x254   : > { %v1791_v28 = vpop.f32.mrf.mxu2 }
 0x255   : > { %v1835_v10 = vadd.f32 %v1791_v28, %v1711_v3  ;;  %v1534_v43 = vpop.f32.mrf.mxu0  ;;  %v7528_v34 = vpop.f32.mrf.mxu1 }
 0x256   : > { %v7530_v39 = vpop.f32.mrf.mxu3  ;;  %v7533_v20 = vadd.f32 %v1534_v43, %v7276_v52 }
 0x25c   : > { %v7535_v11 = vpop.f32.mrf.mxu2 }
 0x25d   : > { %9994 = vst [vmem:[#allocation19_spill] sm:$0xff] %v7535_v11  ;;  %v1537_v13 = vpop.f32.mrf.mxu0  ;;  %v1672_v17 = vpop.f32.mrf.mxu1  ;;  %v9996_v11 = vld [vmem:[#allocation3_spill] sm:$0xff] }
 0x25e   : > { %v1915_v29 = vpop.f32.mrf.mxu3  ;;  %v1578_v6 = vadd.f32 %v1537_v13, %v7280_v40  ;;  %6255 = vmatmul.msk.bf16.vlgmr.msra.gmra.mxu3 %vm2507_vm5, %v9996_v11 }
 0x25f   : > { %v7538_v57 = vadd.f32 %v1915_v29, %v1835_v10 }
 0x260   : > { %v1713_v30 = vadd.f32 %v1672_v17, %v1578_v6  ;;  %6201 = vmatmul.msk.bf16.gmra.mxu0 %vm740_vm1, %v6969_v62 }
 0x264   : > { %v1796_v35 = vpop.f32.mrf.mxu2 }
 0x265   : > { %v1837_v8 = vadd.f32 %v1796_v35, %v1713_v30  ;;  %v1539_v3 = vpop.f32.mrf.mxu0  ;;  %v7542_v28 = vpop.f32.mrf.mxu1 }
 0x266   : > { %9995 = vst [vmem:[#allocation20_spill] sm:$0xff] %v7542_v28  ;;  %v7544_v52 = vpop.f32.mrf.mxu3  ;;  %v7547_v43 = vadd.f32 %v1539_v3, %v7288_v48 }
 0x26c   : > { %v7553_v40 = vpop.f32.mrf.mxu2 }
 0x26d   : > { %v1542_v62 = vpop.f32.mrf.mxu0  ;;  %v1677_v13 = vpop.f32.mrf.mxu1 }
 0x26e   : > { %v1920_v10 = vpop.f32.mrf.mxu3  ;;  %v1580_v17 = vadd.f32 %v1542_v62, %v7299_v49  ;;  %v6273_v49 = vld [vmem:[%s9843_s3 + $0x18] sm:$0xf] }
 0x26f   : > { %v7556_v29 = vadd.f32 %v1920_v10, %v1837_v8  ;;  %v6591_v8 = vld [vmem:[%s9843_s3 + $0x18] sm:$0x30] }
 0x270   : > { %v1715_v6 = vadd.f32 %v1677_v13, %v1580_v17  ;;  %6202 = vmatmul.msk.bf16.gmra.mxu0 %vm740_vm1, %v6991_v33  ;;  %v6293_v33 = vld [vmem:[%s9843_s3 + $0x20] sm:$0xf]  ;;  %v6274_v62 = vor.u32 %v6591_v8, %v6273_v49  ;;  %v6592_v13 = vld [vmem:[%s9843_s3 + $0x20] sm:$0x30] }
 0x271   : > { %v6294_v10 = vor.u32 %v6592_v13, %v6293_v33 }
 0x273   : > { %v3239_v17 = vsel %vm1022_vm4, %v6294_v10, 0 }
 0x274   : > { %v1801_v48 = vpop.f32.mrf.mxu2  ;;  %3248 = vmatpush.bf16.msrb.mxu1 %v3239_v17 }
 0x275   : > { %v1839_v30 = vadd.f32 %v1801_v48, %v1715_v6  ;;  %v1544_v35 = vpop.f32.mrf.mxu0  ;;  %v7560_v3 = vpop.f32.mrf.mxu1 }
 0x276   : > { %9997 = vst [vmem:[#allocation21_spill] sm:$0xff] %v7560_v3  ;;  %v7562_v28 = vpop.f32.mrf.mxu3  ;;  %v7565_v54 = vadd.f32 %v1544_v35, %v7307_v32  ;;  %v3097_v32 = vsel %vm1022_vm4, %v6274_v62, 0 }
 0x277   : > { %9998 = vst [vmem:[#allocation22_spill] sm:$0xff] %v7562_v28  ;;  %3106 = vmatpush.bf16.msrb.mxu0 %v3097_v32  ;;  %v7596_v32 = vld [vmem:[%s9842_s2] ss:$0 sm:$0xff] }
 0x278   : > { %9999 = vst [vmem:[#allocation23_spill] sm:$0xff] %v7565_v54 }
 0x27c   : > { %v7581_v6 = vpop.f32.mrf.mxu2 }
 0x27d   : > { %v1547_v48 = vpop.f32.mrf.mxu0  ;;  %v1682_v35 = vpop.f32.mrf.mxu1 }
 0x27e   : > { %v1925_v3 = vpop.f32.mrf.mxu3  ;;  %v1582_v54 = vadd.f32 %v1547_v48, %v7312_v0 }
 0x27f   : > { %v7584_v28 = vadd.f32 %v1925_v3, %v1839_v30 }
 0x280   : > { %v1717_v49 = vadd.f32 %v1682_v35, %v1582_v54  ;;  %6203 = vmatmul.msk.bf16.gmra.mxu0 %vm740_vm1, %v7013_v19 }
 0x284   : > { %v1806_v8 = vpop.f32.mrf.mxu2 }
 0x285   : > { %v1841_v33 = vadd.f32 %v1806_v8, %v1717_v49  ;;  %v1549_v62 = vpop.f32.mrf.mxu0 }
 0x286   : > { %v7588_v13 = vpop.f32.mrf.mxu3  ;;  %v7591_v10 = vadd.f32 %v1549_v62, %v7321_v24 }
 0x287   : > { %10000 = vst [vmem:[#allocation24_spill] sm:$0xff] %v7588_v13 }
 0x288   : > { %10001 = vst [vmem:[#allocation25_spill] sm:$0xff] %v7591_v10 }
 0x28d   : > { %v1979_v0 = vpop.f32.mrf.mxu0 }
 0x28e   : > { %v1930_v30 = vpop.f32.mrf.mxu3  ;;  %v2059_v54 = vadd.f32 %v1979_v0, %v7326_v36 }
 0x28f   : > { %v7599_v3 = vadd.f32 %v1930_v30, %v1841_v33 }
 0x290   : > { %v2095_v19 = vadd.f32 %v7596_v32, %v2059_v54  ;;  %6204 = vmatmul.msk.bf16.gmra.mxu0 %vm740_vm1, %v7039_v18 }
 0x291   : > { %10002 = vst [vmem:[#allocation26_spill] sm:$0xff] %v7599_v3 }
 0x292   : > { %v2127_v17 = vmax.f32 %v2095_v19, 0.0 }
 0x294   : > { %v2191_v24 = vrot.slane %v2127_v17, 7 }
 0x295   : > { %v1981_v48 = vpop.f32.mrf.mxu0 }
 0x296   : > { %v2060_v35 = vadd.f32 %v1981_v48, %v7335_v26  ;;  %v2287_v8 = vsel %vm430_vm2, 0.0, %v2191_v24 }
 0x297   : > { %v2382_v13 = vrot.slane %v2287_v8, 1  ;;  %v2791_v33 = vrot.slane %v2287_v8, 2 }
 0x298   : > { %v2096_v49 = vadd.f32 %v7596_v32, %v2060_v35 }
 0x29a   : > { %v2128_v62 = vmax.f32 %v2096_v49, 0.0 }
 0x29c   : > { %v2192_v10 = vrot.slane %v2128_v62, 7 }
 0x29d   : > { %v1984_v36 = vpop.f32.mrf.mxu0 }
 0x29e   : > { %v2193_v0 = vsel %vm430_vm2, %v2191_v24, %v2192_v10  ;;  %v2303_v30 = vsel %vm430_vm2, %v2192_v10, 0.0  ;;  %v2061_v18 = vadd.f32 %v1984_v36, %v7340_v51 }
 0x29f   : > { %v2383_v54 = vrot.slane %v2193_v0, 1  ;;  %v2385_v19 = vrot.slane %v2303_v30, 1  ;;  %v2792_v17 = vrot.slane %v2193_v0, 2  ;;  %v2794_v3 = vrot.slane %v2303_v30, 2 }
 0x2a0   : > { %v2097_v26 = vadd.f32 %v7596_v32, %v2061_v18  ;;  %6205 = vmatmul.msk.bf16.gmra.mxu0 %vm740_vm1, %v7065_v31  ;;  %v7613_v48 = vpack.c.bf16 %v2193_v0, %v2287_v8 }
 0x2a1   : > { %v2384_v35 = vsel %vm615_vm3, %v2382_v13, %v2383_v54  ;;  %v2386_v49 = vsel %vm615_vm3, %v2383_v54, %v2385_v19  ;;  %v2793_v24 = vsel %vm1022_vm4, %v2791_v33, %v2792_v17  ;;  %v2795_v10 = vsel %vm1022_vm4, %v2792_v17, %v2794_v3 }
 0x2a2   : > { %v2129_v51 = vmax.f32 %v2097_v26, 0.0  ;;  %6236 = vmatmul.msk.bf16.gmra.mxu2 %vm2507_vm5, %v7613_v48  ;;  %v7621_v62 = vpack.c.bf16 %v2386_v49, %v2384_v35  ;;  %v7623_v36 = vpack.c.bf16 %v2795_v10, %v2793_v24 }
 0x2a4   : > { %6217 = vmatmul.msk.bf16.gmra.mxu1 %vm2507_vm5, %v7621_v62  ;;  %6256 = vmatmul.msk.bf16.gmra.mxu3 %vm2507_vm5, %v7623_v36  ;;  %v2194_v13 = vrot.slane %v2129_v51, 7 }
 0x2a5   : > { %v1986_v31 = vpop.f32.mrf.mxu0 }
 0x2a6   : > { %v2062_v8 = vadd.f32 %v1986_v31, %v7349_v37  ;;  %v2288_v33 = vsel %vm430_vm2, 0.0, %v2194_v13 }
 0x2a7   : > { %v2387_v18 = vrot.slane %v2288_v33, 1  ;;  %v2796_v19 = vrot.slane %v2288_v33, 2 }
 0x2a8   : > { %v2098_v3 = vadd.f32 %v7596_v32, %v2062_v8 }
 0x2aa   : > { %v2130_v0 = vmax.f32 %v2098_v3, 0.0 }
 0x2ac   : > { %v2195_v30 = vrot.slane %v2130_v0, 7 }
 0x2ad   : > { %v1989_v54 = vpop.f32.mrf.mxu0 }
 0x2ae   : > { %v2196_v17 = vsel %vm430_vm2, %v2194_v13, %v2195_v30  ;;  %v2304_v26 = vsel %vm430_vm2, %v2195_v30, 0.0  ;;  %v2063_v35 = vadd.f32 %v1989_v54, %v7354_v2 }
 0x2af   : > { %v2388_v49 = vrot.slane %v2196_v17, 1  ;;  %v2390_v24 = vrot.slane %v2304_v26, 1  ;;  %v2797_v10 = vrot.slane %v2196_v17, 2  ;;  %v2799_v51 = vrot.slane %v2304_v26, 2 }
 0x2b0   : > { %v2099_v37 = vadd.f32 %v7596_v32, %v2063_v35  ;;  %6206 = vmatmul.msk.bf16.gmra.mxu0 %vm740_vm1, %v9964_v22  ;;  %v7638_v31 = vpack.c.bf16 %v2196_v17, %v2288_v33 }
 0x2b1   : > { %v2389_v8 = vsel %vm615_vm3, %v2387_v18, %v2388_v49  ;;  %v2391_v3 = vsel %vm615_vm3, %v2388_v49, %v2390_v24  ;;  %v2798_v13 = vsel %vm1022_vm4, %v2796_v19, %v2797_v10  ;;  %v2800_v0 = vsel %vm1022_vm4, %v2797_v10, %v2799_v51 }
 0x2b2   : > { %v2131_v2 = vmax.f32 %v2099_v37, 0.0  ;;  %6237 = vmatmul.msk.bf16.gmra.mxu2 %vm2507_vm5, %v7638_v31  ;;  %v7646_v30 = vpack.c.bf16 %v2391_v3, %v2389_v8  ;;  %v7648_v54 = vpack.c.bf16 %v2800_v0, %v2798_v13 }
 0x2b4   : > { %10003 = vst [vmem:[#allocation27_spill] sm:$0xff] %v7648_v54  ;;  %6218 = vmatmul.msk.bf16.gmra.mxu1 %vm2507_vm5, %v7646_v30  ;;  %6257 = vmatmul.msk.bf16.gmra.mxu3 %vm2507_vm5, %v7648_v54  ;;  %v2197_v33 = vrot.slane %v2131_v2, 7 }
 0x2b5   : > { %v1991_v22 = vpop.f32.mrf.mxu0 }
 0x2b6   : > { %v2064_v18 = vadd.f32 %v1991_v22, %v7363_v1  ;;  %v2289_v17 = vsel %vm430_vm2, 0.0, %v2197_v33 }
 0x2b7   : > { %v2392_v49 = vrot.slane %v2289_v17, 1  ;;  %v2801_v10 = vrot.slane %v2289_v17, 2 }
 0x2b8   : > { %v2100_v19 = vadd.f32 %v7596_v32, %v2064_v18 }
 0x2ba   : > { %v2132_v26 = vmax.f32 %v2100_v19, 0.0 }
 0x2bc   : > { %v2198_v35 = vrot.slane %v2132_v26, 7 }
 0x2bd   : > { %v1994_v24 = vpop.f32.mrf.mxu0 }
 0x2be   : > { %v2199_v51 = vsel %vm430_vm2, %v2197_v33, %v2198_v35  ;;  %v2305_v37 = vsel %vm430_vm2, %v2198_v35, 0.0  ;;  %v2065_v8 = vadd.f32 %v1994_v24, %v7368_v9 }
 0x2bf   : > { %v2393_v3 = vrot.slane %v2199_v51, 1  ;;  %v2395_v13 = vrot.slane %v2305_v37, 1  ;;  %v2802_v0 = vrot.slane %v2199_v51, 2  ;;  %v2804_v2 = vrot.slane %v2305_v37, 2 }
 0x2c0   : > { %v2101_v1 = vadd.f32 %v7596_v32, %v2065_v8  ;;  %6207 = vmatmul.msk.bf16.gmra.mxu0 %vm740_vm1, %v9969_v5  ;;  %v7663_v22 = vpack.c.bf16 %v2199_v51, %v2289_v17 }
 0x2c1   : > { %v2394_v18 = vsel %vm615_vm3, %v2392_v49, %v2393_v3  ;;  %v2396_v19 = vsel %vm615_vm3, %v2393_v3, %v2395_v13  ;;  %v2803_v33 = vsel %vm1022_vm4, %v2801_v10, %v2802_v0  ;;  %v2805_v26 = vsel %vm1022_vm4, %v2802_v0, %v2804_v2  ;;  %v10006_v49 = vld [vmem:[#allocation4_spill] sm:$0xff] }
 0x2c2   : > { %v2133_v9 = vmax.f32 %v2101_v1, 0.0  ;;  %6238 = vmatmul.msk.bf16.gmra.mxu2 %vm2507_vm5, %v7663_v22  ;;  %v7671_v35 = vpack.c.bf16 %v2396_v19, %v2394_v18  ;;  %v7673_v24 = vpack.c.bf16 %v2805_v26, %v2803_v33 }
 0x2c4   : > { %10004 = vst [vmem:[#allocation28_spill] sm:$0xff] %v7671_v35  ;;  %6219 = vmatmul.msk.bf16.gmra.mxu1 %vm2507_vm5, %v7671_v35  ;;  %6258 = vmatmul.msk.bf16.gmra.mxu3 %vm2507_vm5, %v7673_v24  ;;  %v2200_v17 = vrot.slane %v2133_v9, 7 }
 0x2c5   : > { %10005 = vst [vmem:[#allocation29_spill] sm:$0xff] %v7673_v24  ;;  %v1996_v5 = vpop.f32.mrf.mxu0 }
 0x2c6   : > { %v2066_v10 = vadd.f32 %v1996_v5, %v10006_v49  ;;  %v2290_v37 = vsel %vm430_vm2, 0.0, %v2200_v17 }
 0x2c7   : > { %v2397_v13 = vrot.slane %v2290_v37, 1  ;;  %v2806_v2 = vrot.slane %v2290_v37, 2 }
 0x2c8   : > { %v2102_v51 = vadd.f32 %v7596_v32, %v2066_v10 }
 0x2ca   : > { %v2134_v8 = vmax.f32 %v2102_v51, 0.0 }
 0x2cc   : > { %v2201_v3 = vrot.slane %v2134_v8, 7 }
 0x2cd   : > { %v1999_v0 = vpop.f32.mrf.mxu0 }
 0x2ce   : > { %v2202_v1 = vsel %vm430_vm2, %v2200_v17, %v2201_v3  ;;  %v2306_v18 = vsel %vm430_vm2, %v2201_v3, 0.0  ;;  %v2067_v19 = vadd.f32 %v1999_v0, %v7392_v61 }
 0x2cf   : > { %v2398_v33 = vrot.slane %v2202_v1, 1  ;;  %v2400_v26 = vrot.slane %v2306_v18, 1  ;;  %v2807_v9 = vrot.slane %v2202_v1, 2  ;;  %v2809_v35 = vrot.slane %v2306_v18, 2 }
 0x2d0   : > { %v2103_v5 = vadd.f32 %v7596_v32, %v2067_v19  ;;  %6208 = vmatmul.msk.bf16.gmra.mxu0 %vm740_vm1, %v9974_v25  ;;  %v7688_v49 = vpack.c.bf16 %v2202_v1, %v2290_v37  ;;  %v1944_v25 = vadd.f32 %v7406_v45, %v7389_v56 }
 0x2d1   : > { %v2399_v10 = vsel %vm615_vm3, %v2397_v13, %v2398_v33  ;;  %v2401_v51 = vsel %vm615_vm3, %v2398_v33, %v2400_v26  ;;  %v2808_v17 = vsel %vm1022_vm4, %v2806_v2, %v2807_v9  ;;  %v2810_v8 = vsel %vm1022_vm4, %v2807_v9, %v2809_v35 }
 0x2d2   : > { %v2135_v61 = vmax.f32 %v2103_v5, 0.0  ;;  %6239 = vmatmul.msk.bf16.gmra.mxu2 %vm2507_vm5, %v7688_v49  ;;  %v7696_v3 = vpack.c.bf16 %v2401_v51, %v2399_v10  ;;  %v7698_v0 = vpack.c.bf16 %v2810_v8, %v2808_v17 }
 0x2d4   : > { %10007 = vst [vmem:[#allocation4_spill] sm:$0xff] %v7698_v0  ;;  %6220 = vmatmul.msk.bf16.gmra.mxu1 %vm2507_vm5, %v7696_v3  ;;  %6259 = vmatmul.msk.bf16.gmra.mxu3 %vm2507_vm5, %v7698_v0  ;;  %v2203_v13 = vrot.slane %v2135_v61, 7  ;;  %v1698_v61 = vadd.f32 %v7404_v21, %v7409_v27 }
 0x2d5   : > { %v2001_v37 = vpop.f32.mrf.mxu0 }
 0x2d6   : > { %v2068_v35 = vadd.f32 %v2001_v37, %v1944_v25  ;;  %v2291_v1 = vsel %vm430_vm2, 0.0, %v2203_v13 }
 0x2d7   : > { %v2402_v33 = vrot.slane %v2291_v1, 1  ;;  %v2811_v9 = vrot.slane %v2291_v1, 2 }
 0x2d8   : > { %v2104_v2 = vadd.f32 %v7596_v32, %v2068_v35 }
 0x2da   : > { %v2136_v18 = vmax.f32 %v2104_v2, 0.0 }
 0x2dc   : > { %v2204_v19 = vrot.slane %v2136_v18, 7  ;;  %v1822_v18 = vadd.f32 %v7413_v4, %v1698_v61  ;;  %v7734_v4 = vpop.f32.mrf.mxu1 }
 0x2dd   : > { %v2004_v26 = vpop.f32.mrf.mxu0 }
 0x2de   : > { %v2205_v56 = vsel %vm430_vm2, %v2203_v13, %v2204_v19  ;;  %v2307_v45 = vsel %vm430_vm2, %v2204_v19, 0.0  ;;  %v2069_v5 = vadd.f32 %v2004_v26, %v7416_v16 }
 0x2df   : > { %v2403_v10 = vrot.slane %v2205_v56, 1  ;;  %v2405_v51 = vrot.slane %v2307_v45, 1  ;;  %v2812_v17 = vrot.slane %v2205_v56, 2  ;;  %v2814_v8 = vrot.slane %v2307_v45, 2  ;;  %v7739_v45 = vpop.f32.mrf.mxu3 }
 0x2e0   : > { %v2105_v25 = vadd.f32 %v7596_v32, %v2069_v5  ;;  %6209 = vmatmul.msk.bf16.gmra.mxu0 %vm740_vm1, %v9976_v59  ;;  %v7716_v37 = vpack.c.bf16 %v2205_v56, %v2291_v1  ;;  %v1946_v59 = vadd.f32 %v7426_v53, %v1822_v18 }
 0x2e1   : > { %v2404_v13 = vsel %vm615_vm3, %v2402_v33, %v2403_v10  ;;  %v2406_v35 = vsel %vm615_vm3, %v2403_v10, %v2405_v51  ;;  %v2813_v16 = vsel %vm1022_vm4, %v2811_v9, %v2812_v17  ;;  %v2815_v2 = vsel %vm1022_vm4, %v2812_v17, %v2814_v8  ;;  %v7736_v9 = vpop.f32.mrf.mxu2  ;;  %v10010_v51 = vld [vmem:[#allocation6_spill] sm:$0xff] }
 0x2e2   : > { %v2137_v19 = vmax.f32 %v2105_v25, 0.0  ;;  %6240 = vmatmul.msk.bf16.gmra.mxu2 %vm2507_vm5, %v7716_v37  ;;  %v7725_v21 = vpack.c.bf16 %v2406_v35, %v2404_v13  ;;  %v7727_v27 = vpack.c.bf16 %v2815_v2, %v2813_v16  ;;  %v1700_v17 = vadd.f32 %v10010_v51, %v7429_v55 }
 0x2e4   : > { %10008 = vst [vmem:[#allocation30_spill] sm:$0xff] %v7725_v21  ;;  %6221 = vmatmul.msk.bf16.gmra.mxu1 %vm2507_vm5, %v7725_v21  ;;  %6260 = vmatmul.msk.bf16.gmra.mxu3 %vm2507_vm5, %v7727_v27  ;;  %v2206_v33 = vrot.slane %v2137_v19, 7 }
 0x2e5   : > { %10009 = vst [vmem:[#allocation31_spill] sm:$0xff] %v7727_v27  ;;  %v2006_v1 = vpop.f32.mrf.mxu0 }
 0x2e6   : > { %v2070_v26 = vadd.f32 %v2006_v1, %v1946_v59  ;;  %v2292_v5 = vsel %vm430_vm2, 0.0, %v2206_v33  ;;  %v2567_v1 = vpop.f32.mrf.mxu1 }
 0x2e7   : > { %v2407_v8 = vrot.slane %v2292_v5, 1  ;;  %v2816_v25 = vrot.slane %v2292_v5, 2 }
 0x2e8   : > { %v2106_v56 = vadd.f32 %v7596_v32, %v2070_v26 }
 0x2e9   : > { %v2711_v26 = vpop.f32.mrf.mxu2 }
 0x2ea   : > { %v2138_v53 = vmax.f32 %v2106_v56, 0.0  ;;  %v10011_v56 = vld [vmem:[#allocation5_spill] sm:$0xff] }
 0x2ec   : > { %v2207_v10 = vrot.slane %v2138_v53, 7  ;;  %v1824_v53 = vadd.f32 %v10011_v56, %v1700_v17 }
 0x2ed   : > { %v2009_v61 = vpop.f32.mrf.mxu0 }
 0x2ee   : > { %v2208_v13 = vsel %vm430_vm2, %v2206_v33, %v2207_v10  ;;  %v2308_v35 = vsel %vm430_vm2, %v2207_v10, 0.0  ;;  %v2071_v16 = vadd.f32 %v2009_v61, %v7449_v7  ;;  %v2712_v33 = vadd.f32 %v2711_v26, %v2567_v1  ;;  %v10015_v1 = vld [vmem:[#allocation8_spill] sm:$0xff]  ;;  %v10016_v26 = vld [vmem:[#allocation7_spill] sm:$0xff] }
 0x2ef   : > { %v2408_v2 = vrot.slane %v2208_v13, 1  ;;  %v2410_v18 = vrot.slane %v2308_v35, 1  ;;  %v2817_v19 = vrot.slane %v2208_v13, 2  ;;  %v2819_v59 = vrot.slane %v2308_v35, 2  ;;  %v2975_v35 = vpop.f32.mrf.mxu3 }
 0x2f0   : > { %v2107_v21 = vadd.f32 %v7596_v32, %v2071_v16  ;;  %6210 = vmatmul.msk.bf16.gmra.mxu0 %vm740_vm1, %v7402_v58  ;;  %v7751_v55 = vpack.c.bf16 %v2208_v13, %v2292_v5  ;;  %v7763_v58 = vadd.f32 %v2975_v35, %v2712_v33  ;;  %v10014_v5 = vld [vmem:[#allocation9_spill] sm:$0xff]  ;;  %v1702_v56 = vadd.f32 %v10016_v26, %v10015_v1  ;;  %v6594_v1 = vld [vmem:[%s9843_s3 + $0x30] sm:$0x30] }
 0x2f1   : > { %v2409_v10 = vsel %vm615_vm3, %v2407_v8, %v2408_v2  ;;  %v2411_v7 = vsel %vm615_vm3, %v2408_v2, %v2410_v18  ;;  %v2818_v51 = vsel %vm1022_vm4, %v2816_v25, %v2817_v19  ;;  %v2820_v61 = vsel %vm1022_vm4, %v2817_v19, %v2819_v59 }
 0x2f2   : > { %v2139_v27 = vmax.f32 %v2107_v21, 0.0  ;;  %6241 = vmatmul.msk.bf16.gmra.mxu2 %vm2507_vm5, %v7751_v55  ;;  %v7759_v17 = vpack.c.bf16 %v2411_v7, %v2409_v10  ;;  %v7761_v16 = vpack.c.bf16 %v2820_v61, %v2818_v51  ;;  %v1948_v13 = vadd.f32 %v10014_v5, %v1824_v53 }
 0x2f4   : > { %10012 = vst [vmem:[#allocation6_spill] sm:$0xff] %v7759_v17  ;;  %6222 = vmatmul.msk.bf16.gmra.mxu1 %vm2507_vm5, %v7759_v17  ;;  %6261 = vmatmul.msk.bf16.gmra.mxu3 %vm2507_vm5, %v7761_v16  ;;  %v2209_v25 = vrot.slane %v2139_v27, 7 }
 0x2f5   : > { %10013 = vst [vmem:[#allocation5_spill] sm:$0xff] %v7761_v16  ;;  %v2011_v8 = vpop.f32.mrf.mxu0 }
 0x2f6   : > { %v2072_v21 = vadd.f32 %v2011_v8, %v1948_v13  ;;  %v2293_v18 = vsel %vm430_vm2, 0.0, %v2209_v25  ;;  %v6313_v8 = vld [vmem:[%s9843_s3 + $0x28] sm:$0xf] }
 0x2f7   : > { %v2412_v33 = vrot.slane %v2293_v18, 1  ;;  %v2821_v10 = vrot.slane %v2293_v18, 2 }
 0x2f8   : > { %v2108_v2 = vadd.f32 %v7596_v32, %v2072_v21  ;;  %v10017_v21 = vld [vmem:[#allocation10_spill] sm:$0xff] }
 0x2fa   : > { %v2140_v19 = vmax.f32 %v2108_v2, 0.0  ;;  %v1826_v2 = vadd.f32 %v10017_v21, %v1702_v56 }
 0x2fc   : > { %v2210_v59 = vrot.slane %v2140_v19, 7  ;;  %v1950_v17 = vadd.f32 %v7474_v47, %v1826_v2 }
 0x2fd   : > { %v2014_v53 = vpop.f32.mrf.mxu0 }
 0x2fe   : > { %v2211_v7 = vsel %vm430_vm2, %v2209_v25, %v2210_v59  ;;  %v2309_v51 = vsel %vm430_vm2, %v2210_v59, 0.0  ;;  %v2073_v61 = vadd.f32 %v2014_v53, %v7467_v46  ;;  %v6593_v46 = vld [vmem:[%s9843_s3 + $0x28] sm:$0x30]  ;;  %v6333_v59 = vld [vmem:[%s9843_s3 + $0x30] sm:$0xf] }
 0x2ff   : > { %v2413_v27 = vrot.slane %v2211_v7, 1  ;;  %v2415_v35 = vrot.slane %v2309_v51, 1  ;;  %v2822_v5 = vrot.slane %v2211_v7, 2  ;;  %v2824_v13 = vrot.slane %v2309_v51, 2 }
 0x300   : > { %v2109_v19 = vadd.f32 %v7596_v32, %v2073_v61  ;;  %6211 = vmatmul.msk.bf16.gmra.mxu0 %vm740_vm1, %v9996_v11  ;;  %v7784_v25 = vpack.c.bf16 %v2211_v7, %v2293_v18  ;;  %v6314_v21 = vor.u32 %v6593_v46, %v6313_v8  ;;  %v6334_v11 = vor.u32 %v6594_v1, %v6333_v59 }
 0x301   : > { %v2414_v26 = vsel %vm615_vm3, %v2412_v33, %v2413_v27  ;;  %v2416_v56 = vsel %vm615_vm3, %v2413_v27, %v2415_v35  ;;  %v2823_v53 = vsel %vm1022_vm4, %v2821_v10, %v2822_v5  ;;  %v2825_v18 = vsel %vm1022_vm4, %v2822_v5, %v2824_v13 }
 0x302   : > { %v2141_v7 = vmax.f32 %v2109_v19, 0.0  ;;  %6242 = vmatmul.msk.bf16.gmra.mxu2 %vm2507_vm5, %v7784_v25  ;;  %v7801_v51 = vpack.c.bf16 %v2416_v56, %v2414_v26  ;;  %v7803_v61 = vpack.c.bf16 %v2825_v18, %v2823_v53  ;;  %v3379_v33 = vsel %vm1022_vm4, %v6314_v21, 0 }
 0x303   : > { %3388 = vmatpush.bf16.msrb.mxu2 %v3379_v33  ;;  %v3508_v27 = vsel %vm1022_vm4, %v6334_v11, 0 }
 0x304   : > { %10018 = vst [vmem:[#allocation9_spill] sm:$0xff] %v7803_v61  ;;  %6223 = vmatmul.msk.bf16.gmra.mxu1 %vm2507_vm5, %v7801_v51  ;;  %6262 = vmatmul.msk.bf16.gmra.mxu3 %vm2507_vm5, %v7803_v61  ;;  %v2212_v35 = vrot.slane %v2141_v7, 7  ;;  %v10019_v7 = vld [vmem:[#allocation11_spill] sm:$0xff] }
 0x305   : > { %v2016_v10 = vpop.f32.mrf.mxu0  ;;  %3517 = vmatpush.bf16.msrb.mxu3 %v3508_v27  ;;  %v1704_v21 = vadd.f32 %v10019_v7, %v7477_v63 }
 0x306   : > { %v2074_v5 = vadd.f32 %v2016_v10, %v1950_v17  ;;  %v2294_v8 = vsel %vm430_vm2, 0.0, %v2212_v35 }
 0x307   : > { %v2417_v19 = vrot.slane %v2294_v8, 1  ;;  %v2826_v59 = vrot.slane %v2294_v8, 2 }
 0x308   : > { %v2110_v13 = vadd.f32 %v7596_v32, %v2074_v5 }
 0x30a   : > { %v2142_v47 = vmax.f32 %v2110_v13, 0.0  ;;  %v10020_v13 = vld [vmem:[#allocation13_spill] sm:$0xff] }
 0x30c   : > { %v2213_v2 = vrot.slane %v2142_v47, 7  ;;  %v1828_v47 = vadd.f32 %v10020_v13, %v1704_v21 }
 0x30d   : > { %v2019_v46 = vpop.f32.mrf.mxu0 }
 0x30e   : > { %v2214_v1 = vsel %vm430_vm2, %v2212_v35, %v2213_v2  ;;  %v2310_v26 = vsel %vm430_vm2, %v2213_v2, 0.0  ;;  %v2075_v56 = vadd.f32 %v2019_v46, %v7482_v60 }
 0x30f   : > { %v2418_v53 = vrot.slane %v2214_v1, 1  ;;  %v2420_v11 = vrot.slane %v2310_v26, 1  ;;  %v2827_v18 = vrot.slane %v2214_v1, 2  ;;  %v2829_v17 = vrot.slane %v2310_v26, 2  ;;  %v7841_v26 = vpop.f32.mrf.mxu1 }
 0x310   : > { %v2111_v33 = vadd.f32 %v7596_v32, %v2075_v56  ;;  %6275 = vmatmul.msk.bf16.vlgmr.msrb.gmra.mxu0 %vm2507_vm5, %v7613_v48  ;;  %v7822_v10 = vpack.c.bf16 %v2214_v1, %v2294_v8  ;;  %v1952_v48 = vadd.f32 %v7488_v12, %v1828_v47 }
 0x311   : > { %v2419_v27 = vsel %vm615_vm3, %v2417_v19, %v2418_v53  ;;  %v2421_v35 = vsel %vm615_vm3, %v2418_v53, %v2420_v11  ;;  %v2828_v60 = vsel %vm1022_vm4, %v2826_v59, %v2827_v18  ;;  %v2830_v5 = vsel %vm1022_vm4, %v2827_v18, %v2829_v17  ;;  %v7844_v17 = vpop.f32.mrf.mxu2 }
 0x312   : > { %v2143_v2 = vmax.f32 %v2111_v33, 0.0  ;;  %6243 = vmatmul.msk.bf16.gmra.mxu2 %vm2507_vm5, %v7822_v10  ;;  %v7831_v63 = vpack.c.bf16 %v2421_v35, %v2419_v27  ;;  %v7833_v46 = vpack.c.bf16 %v2830_v5, %v2828_v60  ;;  %10022 = vst [vmem:[#allocation7_spill] sm:$0xff] %v7844_v17  ;;  %v7849_v35 = vpop.f32.mrf.mxu3  ;;  %v10049_v17 = vld [vmem:[#allocation25_spill] sm:$0xff] }
 0x313   : > { %10023 = vst [vmem:[#allocation10_spill] sm:$0xff] %v7849_v35 }
 0x314   : > { %10021 = vst [vmem:[#allocation8_spill] sm:$0xff] %v7833_v46  ;;  %6224 = vmatmul.msk.bf16.gmra.mxu1 %vm2507_vm5, %v7831_v63  ;;  %6263 = vmatmul.msk.bf16.gmra.mxu3 %vm2507_vm5, %v7833_v46  ;;  %v2215_v19 = vrot.slane %v2143_v2, 7  ;;  %v10024_v2 = vld [vmem:[#allocation12_spill] sm:$0xff] }
 0x315   : > { %v2021_v8 = vpop.f32.mrf.mxu0 }
 0x316   : > { %v2076_v59 = vadd.f32 %v2021_v8, %v1952_v48  ;;  %v2295_v56 = vsel %vm430_vm2, 0.0, %v2215_v19  ;;  %v1706_v48 = vadd.f32 %v10024_v2, %v7491_v15 }
 0x317   : > { %v2422_v18 = vrot.slane %v2295_v56, 1  ;;  %v2831_v7 = vrot.slane %v2295_v56, 2 }
 0x318   : > { %v2112_v1 = vadd.f32 %v7596_v32, %v2076_v59 }
 0x31a   : > { %v2144_v53 = vmax.f32 %v2112_v1, 0.0 }
 0x31c   : > { %v2216_v11 = vrot.slane %v2144_v53, 7 }
 0x31d   : > { %v2024_v12 = vpop.f32.mrf.mxu0 }
 0x31e   : > { %v2217_v21 = vsel %vm430_vm2, %v2215_v19, %v2216_v11  ;;  %v2311_v33 = vsel %vm430_vm2, %v2216_v11, 0.0  ;;  %v2077_v27 = vadd.f32 %v2024_v12, %v7496_v14  ;;  %v10025_v12 = vld [vmem:[#allocation14_spill] sm:$0xff] }
 0x31f   : > { %v2423_v60 = vrot.slane %v2217_v21, 1  ;;  %v2425_v5 = vrot.slane %v2311_v33, 1  ;;  %v2832_v13 = vrot.slane %v2217_v21, 2  ;;  %v2834_v47 = vrot.slane %v2311_v33, 2 }
 0x320   : > { %v2113_v8 = vadd.f32 %v7596_v32, %v2077_v27  ;;  %6276 = vmatmul.msk.bf16.gmra.mxu0 %vm2507_vm5, %v7638_v31  ;;  %v7856_v59 = vpack.c.bf16 %v2217_v21, %v2295_v56  ;;  %v1830_v33 = vadd.f32 %v10025_v12, %v1706_v48 }
 0x321   : > { %v2572_v19 = vpop.f32.mrf.mxu1  ;;  %v2424_v1 = vsel %vm615_vm3, %v2422_v18, %v2423_v60  ;;  %v2426_v14 = vsel %vm615_vm3, %v2423_v60, %v2425_v5  ;;  %v2833_v53 = vsel %vm1022_vm4, %v2831_v7, %v2832_v13  ;;  %v2835_v11 = vsel %vm1022_vm4, %v2832_v13, %v2834_v47 }
 0x322   : > { %v2145_v35 = vmax.f32 %v2113_v8, 0.0  ;;  %6244 = vmatmul.msk.bf16.gmra.mxu2 %vm2507_vm5, %v7856_v59  ;;  %v7865_v15 = vpack.c.bf16 %v2426_v14, %v2424_v1  ;;  %v7867_v27 = vpack.c.bf16 %v2835_v11, %v2833_v53  ;;  %v1954_v56 = vadd.f32 %v7502_v42, %v1830_v33 }
 0x324   : > { %10026 = vst [vmem:[#allocation11_spill] sm:$0xff] %v7865_v15  ;;  %6225 = vmatmul.msk.bf16.gmra.mxu1 %vm2507_vm5, %v7865_v15  ;;  %6264 = vmatmul.msk.bf16.gmra.mxu3 %vm2507_vm5, %v7867_v27  ;;  %v2218_v21 = vrot.slane %v2145_v35, 7  ;;  %v10028_v15 = vld [vmem:[#allocation15_spill] sm:$0xff] }
 0x325   : > { %10027 = vst [vmem:[#allocation13_spill] sm:$0xff] %v7867_v27  ;;  %v2716_v18 = vpop.f32.mrf.mxu2  ;;  %v2026_v7 = vpop.f32.mrf.mxu0 }
 0x326   : > { %v2717_v60 = vadd.f32 %v2716_v18, %v2572_v19  ;;  %v2078_v5 = vadd.f32 %v2026_v7, %v1954_v56  ;;  %v2296_v8 = vsel %vm430_vm2, 0.0, %v2218_v21 }
 0x327   : > { %v2980_v13 = vpop.f32.mrf.mxu3  ;;  %v2427_v14 = vrot.slane %v2296_v8, 1  ;;  %v2836_v53 = vrot.slane %v2296_v8, 2 }
 0x328   : > { %v2114_v47 = vadd.f32 %v7596_v32, %v2078_v5  ;;  %v7875_v2 = vadd.f32 %v2980_v13, %v2717_v60 }
 0x329   : > { %v2574_v48 = vpop.f32.mrf.mxu1 }
 0x32a   : > { %v2146_v42 = vmax.f32 %v2114_v47, 0.0  ;;  %v1708_v47 = vadd.f32 %v10028_v15, %v7505_v41 }
 0x32c   : > { %v2219_v1 = vrot.slane %v2146_v42, 7 }
 0x32d   : > { %v2718_v11 = vpop.f32.mrf.mxu2  ;;  %v2029_v12 = vpop.f32.mrf.mxu0 }
 0x32e   : > { %v2220_v33 = vsel %vm430_vm2, %v2218_v21, %v2219_v1  ;;  %v2312_v35 = vsel %vm430_vm2, %v2219_v1, 0.0  ;;  %v2719_v19 = vadd.f32 %v2718_v11, %v2574_v48  ;;  %v2079_v56 = vadd.f32 %v2029_v12, %v7510_v50 }
 0x32f   : > { %v2428_v18 = vrot.slane %v2220_v33, 1  ;;  %v2430_v7 = vrot.slane %v2312_v35, 1  ;;  %v2837_v60 = vrot.slane %v2220_v33, 2  ;;  %v2839_v5 = vrot.slane %v2312_v35, 2  ;;  %v2982_v13 = vpop.f32.mrf.mxu3  ;;  %v10029_v35 = vld [vmem:[#allocation16_spill] sm:$0xff] }
 0x330   : > { %v2115_v42 = vadd.f32 %v7596_v32, %v2079_v56  ;;  %v7884_v27 = vadd.f32 %v2982_v13, %v2719_v19  ;;  %6277 = vmatmul.msk.bf16.gmra.mxu0 %vm2507_vm5, %v7663_v22  ;;  %v7888_v21 = vpack.c.bf16 %v2220_v33, %v2296_v8  ;;  %v1832_v41 = vadd.f32 %v10029_v35, %v1708_v47 }
 0x331   : > { %v2577_v48 = vpop.f32.mrf.mxu1  ;;  %v2429_v50 = vsel %vm615_vm3, %v2427_v14, %v2428_v18  ;;  %v2431_v1 = vsel %vm615_vm3, %v2428_v18, %v2430_v7  ;;  %v2838_v11 = vsel %vm1022_vm4, %v2836_v53, %v2837_v60  ;;  %v2840_v12 = vsel %vm1022_vm4, %v2837_v60, %v2839_v5 }
 0x332   : > { %v2147_v15 = vmax.f32 %v2115_v42, 0.0  ;;  %6245 = vmatmul.msk.bf16.gmra.mxu2 %vm2507_vm5, %v7888_v21  ;;  %v7897_v19 = vpack.c.bf16 %v2431_v1, %v2429_v50  ;;  %v7899_v56 = vpack.c.bf16 %v2840_v12, %v2838_v11  ;;  %v1956_v8 = vadd.f32 %v7516_v44, %v1832_v41 }
 0x334   : > { %10030 = vst [vmem:[#allocation12_spill] sm:$0xff] %v7897_v19  ;;  %6226 = vmatmul.msk.bf16.gmra.mxu1 %vm2507_vm5, %v7897_v19  ;;  %6265 = vmatmul.msk.bf16.gmra.mxu3 %vm2507_vm5, %v7899_v56  ;;  %v2221_v33 = vrot.slane %v2147_v15, 7  ;;  %v10032_v19 = vld [vmem:[#allocation17_spill] sm:$0xff] }
 0x335   : > { %10031 = vst [vmem:[#allocation14_spill] sm:$0xff] %v7899_v56  ;;  %v2721_v14 = vpop.f32.mrf.mxu2  ;;  %v2031_v53 = vpop.f32.mrf.mxu0 }
 0x336   : > { %v2722_v18 = vadd.f32 %v2721_v14, %v2577_v48  ;;  %v2080_v7 = vadd.f32 %v2031_v53, %v1956_v8  ;;  %v2297_v42 = vsel %vm430_vm2, 0.0, %v2221_v33 }
 0x337   : > { %v2985_v60 = vpop.f32.mrf.mxu3  ;;  %v2432_v1 = vrot.slane %v2297_v42, 1  ;;  %v2841_v11 = vrot.slane %v2297_v42, 2 }
 0x338   : > { %v2116_v5 = vadd.f32 %v7596_v32, %v2080_v7  ;;  %v7907_v13 = vadd.f32 %v2985_v60, %v2722_v18 }
 0x339   : > { %v2579_v47 = vpop.f32.mrf.mxu1 }
 0x33a   : > { %v2148_v44 = vmax.f32 %v2116_v5, 0.0  ;;  %v1710_v5 = vadd.f32 %v10032_v19, %v7519_v23 }
 0x33c   : > { %v2222_v50 = vrot.slane %v2148_v44, 7 }
 0x33d   : > { %v2723_v12 = vpop.f32.mrf.mxu2  ;;  %v2034_v35 = vpop.f32.mrf.mxu0 }
 0x33e   : > { %v2223_v41 = vsel %vm430_vm2, %v2221_v33, %v2222_v50  ;;  %v2313_v15 = vsel %vm430_vm2, %v2222_v50, 0.0  ;;  %v2724_v48 = vadd.f32 %v2723_v12, %v2579_v47  ;;  %v2081_v8 = vadd.f32 %v2034_v35, %v7524_v38 }
 0x33f   : > { %v2433_v14 = vrot.slane %v2223_v41, 1  ;;  %v2435_v53 = vrot.slane %v2313_v15, 1  ;;  %v2842_v18 = vrot.slane %v2223_v41, 2  ;;  %v2844_v7 = vrot.slane %v2313_v15, 2  ;;  %v2987_v60 = vpop.f32.mrf.mxu3  ;;  %v10033_v15 = vld [vmem:[#allocation18_spill] sm:$0xff] }
 0x340   : > { %v2117_v44 = vadd.f32 %v7596_v32, %v2081_v8  ;;  %v7916_v56 = vadd.f32 %v2987_v60, %v2724_v48  ;;  %6278 = vmatmul.msk.bf16.gmra.mxu0 %vm2507_vm5, %v7688_v49  ;;  %v7920_v33 = vpack.c.bf16 %v2223_v41, %v2297_v42  ;;  %v1834_v23 = vadd.f32 %v10033_v15, %v1710_v5 }
 0x341   : > { %v2582_v47 = vpop.f32.mrf.mxu1  ;;  %v2434_v38 = vsel %vm615_vm3, %v2432_v1, %v2433_v14  ;;  %v2436_v50 = vsel %vm615_vm3, %v2433_v14, %v2435_v53  ;;  %v2843_v12 = vsel %vm1022_vm4, %v2841_v11, %v2842_v18  ;;  %v2845_v35 = vsel %vm1022_vm4, %v2842_v18, %v2844_v7 }
 0x342   : > { %v2149_v19 = vmax.f32 %v2117_v44, 0.0  ;;  %6246 = vmatmul.msk.bf16.gmra.mxu2 %vm2507_vm5, %v7920_v33  ;;  %v7929_v48 = vpack.c.bf16 %v2436_v50, %v2434_v38  ;;  %v7931_v8 = vpack.c.bf16 %v2845_v35, %v2843_v12  ;;  %v1958_v42 = vadd.f32 %v7530_v39, %v1834_v23 }
 0x344   : > { %10034 = vst [vmem:[#allocation15_spill] sm:$0xff] %v7929_v48  ;;  %6227 = vmatmul.msk.bf16.gmra.mxu1 %vm2507_vm5, %v7929_v48  ;;  %6266 = vmatmul.msk.bf16.gmra.mxu3 %vm2507_vm5, %v7931_v8  ;;  %v2224_v41 = vrot.slane %v2149_v19, 7 }
 0x345   : > { %10035 = vst [vmem:[#allocation16_spill] sm:$0xff] %v7931_v8  ;;  %v2726_v1 = vpop.f32.mrf.mxu2  ;;  %v2036_v11 = vpop.f32.mrf.mxu0 }
 0x346   : > { %v2727_v14 = vadd.f32 %v2726_v1, %v2582_v47  ;;  %v2082_v53 = vadd.f32 %v2036_v11, %v1958_v42  ;;  %v2298_v44 = vsel %vm430_vm2, 0.0, %v2224_v41 }
 0x347   : > { %v2990_v18 = vpop.f32.mrf.mxu3  ;;  %v2437_v50 = vrot.slane %v2298_v44, 1  ;;  %v2846_v12 = vrot.slane %v2298_v44, 2 }
 0x348   : > { %v2118_v7 = vadd.f32 %v7596_v32, %v2082_v53  ;;  %v7939_v60 = vadd.f32 %v2990_v18, %v2727_v14 }
 0x349   : > { %v2584_v5 = vpop.f32.mrf.mxu1 }
 0x34a   : > { %v2150_v39 = vmax.f32 %v2118_v7, 0.0  ;;  %v1712_v7 = vadd.f32 %v7528_v34, %v7533_v20 }
 0x34c   : > { %v2225_v38 = vrot.slane %v2150_v39, 7 }
 0x34d   : > { %v2728_v35 = vpop.f32.mrf.mxu2  ;;  %v2039_v15 = vpop.f32.mrf.mxu0 }
 0x34e   : > { %v2226_v23 = vsel %vm430_vm2, %v2224_v41, %v2225_v38  ;;  %v2314_v19 = vsel %vm430_vm2, %v2225_v38, 0.0  ;;  %v2729_v47 = vadd.f32 %v2728_v35, %v2584_v5  ;;  %v2083_v42 = vadd.f32 %v2039_v15, %v7538_v57 }
 0x34f   : > { %v2438_v1 = vrot.slane %v2226_v23, 1  ;;  %v2440_v11 = vrot.slane %v2314_v19, 1  ;;  %v2847_v14 = vrot.slane %v2226_v23, 2  ;;  %v2849_v53 = vrot.slane %v2314_v19, 2  ;;  %v2992_v18 = vpop.f32.mrf.mxu3  ;;  %v10036_v19 = vld [vmem:[#allocation19_spill] sm:$0xff] }
 0x350   : > { %v2119_v39 = vadd.f32 %v7596_v32, %v2083_v42  ;;  %v7948_v48 = vadd.f32 %v2992_v18, %v2729_v47  ;;  %6279 = vmatmul.msk.bf16.gmra.mxu0 %vm2507_vm5, %v7716_v37  ;;  %v7952_v41 = vpack.c.bf16 %v2226_v23, %v2298_v44  ;;  %v1836_v34 = vadd.f32 %v10036_v19, %v1712_v7 }
 0x351   : > { %v2587_v5 = vpop.f32.mrf.mxu1  ;;  %v2439_v57 = vsel %vm615_vm3, %v2437_v50, %v2438_v1  ;;  %v2441_v38 = vsel %vm615_vm3, %v2438_v1, %v2440_v11  ;;  %v2848_v35 = vsel %vm1022_vm4, %v2846_v12, %v2847_v14  ;;  %v2850_v15 = vsel %vm1022_vm4, %v2847_v14, %v2849_v53 }
 0x352   : > { %v2151_v20 = vmax.f32 %v2119_v39, 0.0  ;;  %6247 = vmatmul.msk.bf16.gmra.mxu2 %vm2507_vm5, %v7952_v41  ;;  %v7961_v47 = vpack.c.bf16 %v2441_v38, %v2439_v57  ;;  %v7963_v42 = vpack.c.bf16 %v2850_v15, %v2848_v35  ;;  %v1960_v44 = vadd.f32 %v7544_v52, %v1836_v34 }
 0x354   : > { %10037 = vst [vmem:[#allocation17_spill] sm:$0xff] %v7961_v47  ;;  %6228 = vmatmul.msk.bf16.gmra.mxu1 %vm2507_vm5, %v7961_v47  ;;  %6267 = vmatmul.msk.bf16.gmra.mxu3 %vm2507_vm5, %v7963_v42  ;;  %v2227_v23 = vrot.slane %v2151_v20, 7  ;;  %v10039_v47 = vld [vmem:[#allocation20_spill] sm:$0xff] }
 0x355   : > { %10038 = vst [vmem:[#allocation18_spill] sm:$0xff] %v7963_v42  ;;  %v2731_v50 = vpop.f32.mrf.mxu2  ;;  %v2041_v12 = vpop.f32.mrf.mxu0 }
 0x356   : > { %v2732_v1 = vadd.f32 %v2731_v50, %v2587_v5  ;;  %v2084_v11 = vadd.f32 %v2041_v12, %v1960_v44  ;;  %v2299_v39 = vsel %vm430_vm2, 0.0, %v2227_v23 }
 0x357   : > { %v2995_v14 = vpop.f32.mrf.mxu3  ;;  %v2442_v38 = vrot.slane %v2299_v39, 1  ;;  %v2851_v35 = vrot.slane %v2299_v39, 2 }
 0x358   : > { %v2120_v53 = vadd.f32 %v7596_v32, %v2084_v11  ;;  %v7971_v18 = vadd.f32 %v2995_v14, %v2732_v1 }
 0x359   : > { %v2589_v7 = vpop.f32.mrf.mxu1 }
 0x35a   : > { %v2152_v52 = vmax.f32 %v2120_v53, 0.0  ;;  %v1714_v53 = vadd.f32 %v10039_v47, %v7547_v43 }
 0x35c   : > { %v2228_v57 = vrot.slane %v2152_v52, 7  ;;  %v1838_v43 = vadd.f32 %v7553_v40, %v1714_v53 }
 0x35d   : > { %v2733_v15 = vpop.f32.mrf.mxu2  ;;  %v2044_v19 = vpop.f32.mrf.mxu0 }
 0x35e   : > { %v2229_v34 = vsel %vm430_vm2, %v2227_v23, %v2228_v57  ;;  %v2315_v20 = vsel %vm430_vm2, %v2228_v57, 0.0  ;;  %v2734_v5 = vadd.f32 %v2733_v15, %v2589_v7  ;;  %v2085_v44 = vadd.f32 %v2044_v19, %v7556_v29 }
 0x35f   : > { %v2443_v50 = vrot.slane %v2229_v34, 1  ;;  %v2445_v12 = vrot.slane %v2315_v20, 1  ;;  %v2852_v1 = vrot.slane %v2229_v34, 2  ;;  %v2854_v11 = vrot.slane %v2315_v20, 2  ;;  %v2997_v14 = vpop.f32.mrf.mxu3 }
 0x360   : > { %v2121_v52 = vadd.f32 %v7596_v32, %v2085_v44  ;;  %v7980_v42 = vadd.f32 %v2997_v14, %v2734_v5  ;;  %6280 = vmatmul.msk.bf16.gmra.mxu0 %vm2507_vm5, %v7751_v55  ;;  %v7984_v23 = vpack.c.bf16 %v2229_v34, %v2299_v39  ;;  %v10042_v39 = vld [vmem:[#allocation22_spill] sm:$0xff] }
 0x361   : > { %v2592_v7 = vpop.f32.mrf.mxu1  ;;  %v2444_v29 = vsel %vm615_vm3, %v2442_v38, %v2443_v50  ;;  %v2446_v57 = vsel %vm615_vm3, %v2443_v50, %v2445_v12  ;;  %v2853_v15 = vsel %vm1022_vm4, %v2851_v35, %v2852_v1  ;;  %v2855_v19 = vsel %vm1022_vm4, %v2852_v1, %v2854_v11 }
 0x362   : > { %v2153_v47 = vmax.f32 %v2121_v52, 0.0  ;;  %6248 = vmatmul.msk.bf16.gmra.mxu2 %vm2507_vm5, %v7984_v23  ;;  %v7993_v20 = vpack.c.bf16 %v2446_v57, %v2444_v29  ;;  %v7995_v5 = vpack.c.bf16 %v2855_v19, %v2853_v15  ;;  %v1962_v34 = vadd.f32 %v10042_v39, %v1838_v43 }
 0x364   : > { %10040 = vst [vmem:[#allocation19_spill] sm:$0xff] %v7993_v20  ;;  %6229 = vmatmul.msk.bf16.gmra.mxu1 %vm2507_vm5, %v7993_v20  ;;  %6268 = vmatmul.msk.bf16.gmra.mxu3 %vm2507_vm5, %v7995_v5  ;;  %v2230_v44 = vrot.slane %v2153_v47, 7  ;;  %v10044_v20 = vld [vmem:[#allocation21_spill] sm:$0xff] }
 0x365   : > { %10041 = vst [vmem:[#allocation20_spill] sm:$0xff] %v7995_v5  ;;  %v2736_v38 = vpop.f32.mrf.mxu2  ;;  %v2046_v35 = vpop.f32.mrf.mxu0 }
 0x366   : > { %v2737_v40 = vadd.f32 %v2736_v38, %v2592_v7  ;;  %v2086_v50 = vadd.f32 %v2046_v35, %v1962_v34  ;;  %v2300_v53 = vsel %vm430_vm2, 0.0, %v2230_v44 }
 0x367   : > { %v3000_v12 = vpop.f32.mrf.mxu3  ;;  %v2447_v57 = vrot.slane %v2300_v53, 1  ;;  %v2856_v15 = vrot.slane %v2300_v53, 2 }
 0x368   : > { %v2122_v1 = vadd.f32 %v7596_v32, %v2086_v50  ;;  %v8003_v11 = vadd.f32 %v3000_v12, %v2737_v40  ;;  %v10043_v12 = vld [vmem:[#allocation23_spill] sm:$0xff] }
 0x369   : > { %v2594_v14 = vpop.f32.mrf.mxu1 }
 0x36a   : > { %v2154_v52 = vmax.f32 %v2122_v1, 0.0  ;;  %v1716_v1 = vadd.f32 %v10044_v20, %v10043_v12 }
 0x36c   : > { %v2231_v29 = vrot.slane %v2154_v52, 7  ;;  %v8014_v52 = vld [vmem:[%s9842_s2] ss:$0 sm:$0xff] }
 0x36d   : > { %v2738_v19 = vpop.f32.mrf.mxu2  ;;  %v2049_v43 = vpop.f32.mrf.mxu0 }
 0x36e   : > { %v2232_v39 = vsel %vm430_vm2, %v2230_v44, %v2231_v29  ;;  %v2316_v47 = vsel %vm430_vm2, %v2231_v29, 0.0  ;;  %v2739_v7 = vadd.f32 %v2738_v19, %v2594_v14  ;;  %v2087_v34 = vadd.f32 %v2049_v43, %v7584_v28 }
 0x36f   : > { %v2448_v38 = vrot.slane %v2232_v39, 1  ;;  %v2450_v32 = vrot.slane %v2316_v47, 1  ;;  %v2857_v35 = vrot.slane %v2232_v39, 2  ;;  %v2859_v40 = vrot.slane %v2316_v47, 2  ;;  %v3002_v50 = vpop.f32.mrf.mxu3 }
 0x370   : > { %v2123_v44 = vadd.f32 %v8014_v52, %v2087_v34  ;;  %v8017_v5 = vadd.f32 %v3002_v50, %v2739_v7  ;;  %6281 = vmatmul.msk.bf16.gmra.mxu0 %vm2507_vm5, %v7784_v25  ;;  %v8021_v28 = vpack.c.bf16 %v2232_v39, %v2300_v53  ;;  %v1840_v47 = vadd.f32 %v7581_v6, %v1716_v1  ;;  %v6352_v53 = vld [vmem:[%s9843_s3 + $0x38] sm:$0xf]  ;;  %v10047_v39 = vld [vmem:[#allocation24_spill] sm:$0xff] }
 0x371   : > { %v2597_v14 = vpop.f32.mrf.mxu1  ;;  %v2449_v29 = vsel %vm615_vm3, %v2447_v57, %v2448_v38  ;;  %v2451_v19 = vsel %vm615_vm3, %v2448_v38, %v2450_v32  ;;  %v2858_v20 = vsel %vm1022_vm4, %v2856_v15, %v2857_v35  ;;  %v2860_v43 = vsel %vm1022_vm4, %v2857_v35, %v2859_v40  ;;  %v6595_v57 = vld [vmem:[%s9843_s3 + $0x38] sm:$0x30] }
 0x372   : > { %v2155_v12 = vmax.f32 %v2123_v44, 0.0  ;;  %6249 = vmatmul.msk.bf16.gmra.mxu2 %vm2507_vm5, %v8021_v28  ;;  %v8030_v7 = vpack.c.bf16 %v2451_v19, %v2449_v29  ;;  %v8032_v34 = vpack.c.bf16 %v2860_v43, %v2858_v20  ;;  %v6353_v15 = vor.u32 %v6595_v57, %v6352_v53  ;;  %v6372_v44 = vld [vmem:[%s9843_s3 + $0x40] sm:$0xf]  ;;  %v6596_v29 = vld [vmem:[%s9843_s3 + $0x40] sm:$0x30] }
 0x373   : > { %v1964_v38 = vadd.f32 %v10047_v39, %v1840_v47  ;;  %v6373_v20 = vor.u32 %v6596_v29, %v6372_v44 }
 0x374   : > { %10045 = vst [vmem:[#allocation22_spill] sm:$0xff] %v8030_v7  ;;  %6230 = vmatmul.msk.bf16.gmra.mxu1 %vm2507_vm5, %v8030_v7  ;;  %6269 = vmatmul.msk.bf16.gmra.mxu3 %vm2507_vm5, %v8032_v34  ;;  %v3637_v35 = vsel %vm1022_vm4, %v6353_v15, 0  ;;  %v2233_v40 = vrot.slane %v2155_v12, 7 }
 0x375   : > { %10046 = vst [vmem:[#allocation23_spill] sm:$0xff] %v8032_v34  ;;  %v2741_v6 = vpop.f32.mrf.mxu2  ;;  %v2051_v32 = vpop.f32.mrf.mxu0  ;;  %3646 = vmatpush.bf16.msra.mxu0 %v3637_v35  ;;  %v3766_v12 = vsel %vm1022_vm4, %v6373_v20, 0 }
 0x376   : > { %v2742_v50 = vadd.f32 %v2741_v6, %v2597_v14  ;;  %v2088_v1 = vadd.f32 %v2051_v32, %v1964_v38  ;;  %v2301_v14 = vsel %vm430_vm2, 0.0, %v2233_v40  ;;  %3775 = vmatpush.bf16.msra.mxu1 %v3766_v12 }
 0x377   : > { %v3005_v19 = vpop.f32.mrf.mxu3  ;;  %v2452_v39 = vrot.slane %v2301_v14, 1  ;;  %v2861_v38 = vrot.slane %v2301_v14, 2 }
 0x378   : > { %v2124_v43 = vadd.f32 %v8014_v52, %v2088_v1  ;;  %v8053_v47 = vadd.f32 %v3005_v19, %v2742_v50  ;;  %v10048_v1 = vld [vmem:[#allocation26_spill] sm:$0xff] }
 0x379   : > { %v2599_v53 = vpop.f32.mrf.mxu1 }
 0x37a   : > { %v2156_v57 = vmax.f32 %v2124_v43, 0.0  ;;  %v1718_v43 = vadd.f32 %v7734_v4, %v10049_v17 }
 0x37c   : > { %v2234_v15 = vrot.slane %v2156_v57, 7  ;;  %v1842_v4 = vadd.f32 %v7736_v9, %v1718_v43 }
 0x37d   : > { %v2743_v6 = vpop.f32.mrf.mxu2  ;;  %v2054_v32 = vpop.f32.mrf.mxu0 }
 0x37e   : > { %v2235_v35 = vsel %vm430_vm2, %v2233_v40, %v2234_v15  ;;  %v2317_v44 = vsel %vm430_vm2, %v2234_v15, 0.0  ;;  %v2744_v29 = vadd.f32 %v2743_v6, %v2599_v53  ;;  %v2089_v50 = vadd.f32 %v2054_v32, %v10048_v1 }
 0x37f   : > { %v2453_v19 = vrot.slane %v2235_v35, 1  ;;  %v2455_v7 = vrot.slane %v2317_v44, 1  ;;  %v2862_v34 = vrot.slane %v2235_v35, 2  ;;  %v2864_v20 = vrot.slane %v2317_v44, 2  ;;  %v3007_v8 = vpop.f32.mrf.mxu3 }
 0x380   : > { %v2125_v12 = vadd.f32 %v8014_v52, %v2089_v50  ;;  %v8063_v57 = vadd.f32 %v3007_v8, %v2744_v29  ;;  %6282 = vmatmul.msk.bf16.gmra.mxu0 %vm2507_vm5, %v7822_v10  ;;  %v8067_v40 = vpack.c.bf16 %v2235_v35, %v2301_v14  ;;  %v1966_v14 = vadd.f32 %v7739_v45, %v1842_v4 }
 0x381   : > { %v2602_v53 = vpop.f32.mrf.mxu1  ;;  %v2454_v15 = vsel %vm615_vm3, %v2452_v39, %v2453_v19  ;;  %v2456_v6 = vsel %vm615_vm3, %v2453_v19, %v2455_v7  ;;  %v2863_v32 = vsel %vm1022_vm4, %v2861_v38, %v2862_v34  ;;  %v2865_v44 = vsel %vm1022_vm4, %v2862_v34, %v2864_v20 }
 0x382   : > { %v2157_v17 = vmax.f32 %v2125_v12, 0.0  ;;  %6250 = vmatmul.msk.bf16.gmra.mxu2 %vm2507_vm5, %v8067_v40  ;;  %v8076_v8 = vpack.c.bf16 %v2456_v6, %v2454_v15  ;;  %v8078_v29 = vpack.c.bf16 %v2865_v44, %v2863_v32 }
 0x384   : > { %6231 = vmatmul.msk.bf16.gmra.mxu1 %vm2507_vm5, %v8076_v8  ;;  %6270 = vmatmul.msk.bf16.gmra.mxu3 %vm2507_vm5, %v8078_v29  ;;  %v2236_v39 = vrot.slane %v2157_v17, 7 }
 0x385   : > { %v2746_v7 = vpop.f32.mrf.mxu2  ;;  %v2056_v34 = vpop.f32.mrf.mxu0 }
 0x386   : > { %v2747_v9 = vadd.f32 %v2746_v7, %v2602_v53  ;;  %v2090_v38 = vadd.f32 %v2056_v34, %v1966_v14  ;;  %v2302_v20 = vsel %vm430_vm2, 0.0, %v2236_v39 }
 0x387   : > { %v3010_v35 = vpop.f32.mrf.mxu3  ;;  %v3222_v12 = vrot.slane %v2302_v20, 1  ;;  %v3362_v15 = vrot.slane %v2302_v20, 2 }
 0x388   : > { %v2126_v1 = vadd.f32 %v8014_v52, %v2090_v38  ;;  %v8086_v50 = vadd.f32 %v3010_v35, %v2747_v9 }
 0x389   : > { %v2604_v19 = vpop.f32.mrf.mxu1 }
 0x38a   : > { %v2158_v45 = vmax.f32 %v2126_v1, 0.0 }
 0x38c   : > { %v2237_v43 = vrot.slane %v2158_v45, 7 }
 0x38d   : > { %v2748_v6 = vpop.f32.mrf.mxu2  ;;  %v3108_v32 = vpop.f32.mrf.mxu0 }
 0x38e   : > { %v2238_v44 = vsel %vm430_vm2, %v2236_v39, %v2237_v43  ;;  %v2318_v4 = vsel %vm430_vm2, %v2237_v43, 0.0  ;;  %v2749_v53 = vadd.f32 %v2748_v6, %v2604_v19  ;;  %v8092_v17 = vadd.f32 %v3108_v32, %v7763_v58 }
 0x38f   : > { %v3223_v52 = vrot.slane %v2238_v44, 1  ;;  %v3225_v14 = vrot.slane %v2318_v4, 1  ;;  %v3363_v7 = vrot.slane %v2238_v44, 2  ;;  %v3365_v34 = vrot.slane %v2318_v4, 2  ;;  %v3012_v9 = vpop.f32.mrf.mxu3 }
 0x390   : > { %v8094_v38 = vadd.f32 %v3012_v9, %v2749_v53  ;;  %6283 = vmatmul.msk.bf16.gmra.mxu0 %vm2507_vm5, %v7856_v59  ;;  %v8098_v35 = vpack.c.bf16 %v2238_v44, %v2302_v20 }
 0x391   : > { %v2607_v1 = vpop.f32.mrf.mxu1  ;;  %v3364_v39 = vsel %vm1022_vm4, %v3362_v15, %v3363_v7  ;;  %v3366_v19 = vsel %vm1022_vm4, %v3363_v7, %v3365_v34  ;;  %v3224_v58 = vsel %vm615_vm3, %v3222_v12, %v3223_v52  ;;  %v3226_v45 = vsel %vm615_vm3, %v3223_v52, %v3225_v14 }
 0x392   : > { %6315 = vmatmul.msk.bf16.vlgmr.msrb.gmra.mxu2 %vm2507_vm5, %v7623_v36  ;;  %v8106_v43 = vpack.c.bf16 %v3366_v19, %v3364_v39  ;;  %v8108_v6 = vpack.c.bf16 %v3226_v45, %v3224_v58 }
 0x394   : > { %6295 = vmatmul.msk.bf16.vlgmr.msrb.gmra.mxu1 %vm2507_vm5, %v7621_v62  ;;  %6335 = vmatmul.msk.bf16.vlgmr.msrb.gmra.mxu3 %vm2507_vm5, %v7638_v31 }
 0x395   : > { %v2751_v20 = vpop.f32.mrf.mxu2  ;;  %v8114_v15 = vpop.f32.mrf.mxu0 }
 0x396   : > { %v2752_v32 = vadd.f32 %v2751_v20, %v2607_v1 }
 0x397   : > { %v3015_v12 = vpop.f32.mrf.mxu3 }
 0x398   : > { %v8116_v44 = vadd.f32 %v3015_v12, %v2752_v32 }
 0x399   : > { %v2609_v4 = vpop.f32.mrf.mxu1 }
 0x39d   : > { %v2753_v53 = vpop.f32.mrf.mxu2  ;;  %v3113_v36 = vpop.f32.mrf.mxu0 }
 0x39e   : > { %v2754_v52 = vadd.f32 %v2753_v53, %v2609_v4  ;;  %v8119_v14 = vadd.f32 %v3113_v36, %v7875_v2 }
 0x39f   : > { %v3017_v7 = vpop.f32.mrf.mxu3 }
 0x3a0   : > { %v8121_v34 = vadd.f32 %v3017_v7, %v2754_v52  ;;  %6284 = vmatmul.msk.bf16.gmra.mxu0 %vm2507_vm5, %v7888_v21 }
 0x3a1   : > { %v2612_v62 = vpop.f32.mrf.mxu1 }
 0x3a2   : > { %6316 = vmatmul.msk.bf16.gmra.mxu2 %vm2507_vm5, %v7648_v54 }
 0x3a4   : > { %6296 = vmatmul.msk.bf16.gmra.mxu1 %vm2507_vm5, %v7646_v30  ;;  %6336 = vmatmul.msk.bf16.gmra.mxu3 %vm2507_vm5, %v7663_v22 }
 0x3a5   : > { %v2756_v31 = vpop.f32.mrf.mxu2  ;;  %v3115_v9 = vpop.f32.mrf.mxu0 }
 0x3a6   : > { %v2757_v2 = vadd.f32 %v2756_v31, %v2612_v62  ;;  %v8132_v1 = vadd.f32 %v3115_v9, %v7884_v27  ;;  %v10050_v27 = vld [vmem:[#allocation28_spill] sm:$0xff] }
 0x3a7   : > { %v3020_v39 = vpop.f32.mrf.mxu3 }
 0x3a8   : > { %v8134_v19 = vadd.f32 %v3020_v39, %v2757_v2 }
 0x3a9   : > { %v2614_v58 = vpop.f32.mrf.mxu1 }
 0x3ad   : > { %v2758_v45 = vpop.f32.mrf.mxu2  ;;  %v3118_v20 = vpop.f32.mrf.mxu0 }
 0x3ae   : > { %v2759_v32 = vadd.f32 %v2758_v45, %v2614_v58  ;;  %v8137_v12 = vadd.f32 %v3118_v20, %v7907_v13 }
 0x3af   : > { %v3022_v4 = vpop.f32.mrf.mxu3 }
 0x3b0   : > { %v8139_v53 = vadd.f32 %v3022_v4, %v2759_v32  ;;  %6285 = vmatmul.msk.bf16.gmra.mxu0 %vm2507_vm5, %v7920_v33 }
 0x3b1   : > { %v2617_v22 = vpop.f32.mrf.mxu1 }
 0x3b2   : > { %6317 = vmatmul.msk.bf16.gmra.mxu2 %vm2507_vm5, %v7673_v24 }
 0x3b4   : > { %6297 = vmatmul.msk.bf16.gmra.mxu1 %vm2507_vm5, %v10050_v27  ;;  %6337 = vmatmul.msk.bf16.gmra.mxu3 %vm2507_vm5, %v7688_v49 }
 0x3b5   : > { %v2761_v36 = vpop.f32.mrf.mxu2  ;;  %v3120_v52 = vpop.f32.mrf.mxu0 }
 0x3b6   : > { %v2762_v13 = vadd.f32 %v2761_v36, %v2617_v22  ;;  %v8150_v7 = vadd.f32 %v3120_v52, %v7916_v56 }
 0x3b7   : > { %v3025_v62 = vpop.f32.mrf.mxu3 }
 0x3b8   : > { %v8152_v31 = vadd.f32 %v3025_v62, %v2762_v13 }
 0x3b9   : > { %v2619_v9 = vpop.f32.mrf.mxu1 }
 0x3bd   : > { %v2763_v2 = vpop.f32.mrf.mxu2  ;;  %v3123_v39 = vpop.f32.mrf.mxu0 }
 0x3be   : > { %v2764_v58 = vadd.f32 %v2763_v2, %v2619_v9  ;;  %v8155_v45 = vadd.f32 %v3123_v39, %v7939_v60 }
 0x3bf   : > { %v3027_v20 = vpop.f32.mrf.mxu3 }
 0x3c0   : > { %v8157_v32 = vadd.f32 %v3027_v20, %v2764_v58  ;;  %6286 = vmatmul.msk.bf16.gmra.mxu0 %vm2507_vm5, %v7952_v41 }
 0x3c1   : > { %v2622_v49 = vpop.f32.mrf.mxu1 }
 0x3c2   : > { %6318 = vmatmul.msk.bf16.gmra.mxu2 %vm2507_vm5, %v7698_v0 }
 0x3c4   : > { %6298 = vmatmul.msk.bf16.gmra.mxu1 %vm2507_vm5, %v7696_v3  ;;  %6338 = vmatmul.msk.bf16.gmra.mxu3 %vm2507_vm5, %v7716_v37 }
 0x3c5   : > { %v2766_v56 = vpop.f32.mrf.mxu2  ;;  %v3125_v4 = vpop.f32.mrf.mxu0 }
 0x3c6   : > { %v2767_v60 = vadd.f32 %v2766_v56, %v2622_v49  ;;  %v8168_v22 = vadd.f32 %v3125_v4, %v7948_v48  ;;  %v10051_v49 = vld [vmem:[#allocation31_spill] sm:$0xff]  ;;  %v10052_v48 = vld [vmem:[#allocation30_spill] sm:$0xff] }
 0x3c7   : > { %v3030_v36 = vpop.f32.mrf.mxu3 }
 0x3c8   : > { %v8170_v52 = vadd.f32 %v3030_v36, %v2767_v60 }
 0x3c9   : > { %v2624_v13 = vpop.f32.mrf.mxu1 }
 0x3cd   : > { %v2768_v62 = vpop.f32.mrf.mxu2  ;;  %v3128_v9 = vpop.f32.mrf.mxu0 }
 0x3ce   : > { %v2769_v2 = vadd.f32 %v2768_v62, %v2624_v13  ;;  %v8173_v39 = vadd.f32 %v3128_v9, %v7971_v18 }
 0x3cf   : > { %v3032_v58 = vpop.f32.mrf.mxu3 }
 0x3d0   : > { %v8175_v20 = vadd.f32 %v3032_v58, %v2769_v2  ;;  %6287 = vmatmul.msk.bf16.gmra.mxu0 %vm2507_vm5, %v7984_v23 }
 0x3d1   : > { %v2627_v37 = vpop.f32.mrf.mxu1 }
 0x3d2   : > { %6319 = vmatmul.msk.bf16.gmra.mxu2 %vm2507_vm5, %v10051_v49 }
 0x3d4   : > { %6299 = vmatmul.msk.bf16.gmra.mxu1 %vm2507_vm5, %v10052_v48  ;;  %6339 = vmatmul.msk.bf16.gmra.mxu3 %vm2507_vm5, %v7751_v55 }
 0x3d5   : > { %v2771_v56 = vpop.f32.mrf.mxu2  ;;  %v3130_v4 = vpop.f32.mrf.mxu0 }
 0x3d6   : > { %v2772_v18 = vadd.f32 %v2771_v56, %v2627_v37  ;;  %v8186_v60 = vadd.f32 %v3130_v4, %v7980_v42  ;;  %v10053_v42 = vld [vmem:[#allocation6_spill] sm:$0xff] }
 0x3d7   : > { %v3035_v36 = vpop.f32.mrf.mxu3 }
 0x3d8   : > { %v8188_v13 = vadd.f32 %v3035_v36, %v2772_v18 }
 0x3d9   : > { %v2629_v62 = vpop.f32.mrf.mxu1 }
 0x3dd   : > { %v2773_v9 = vpop.f32.mrf.mxu2  ;;  %v3133_v2 = vpop.f32.mrf.mxu0 }
 0x3de   : > { %v2774_v58 = vadd.f32 %v2773_v9, %v2629_v62  ;;  %v8191_v49 = vadd.f32 %v3133_v2, %v8003_v11 }
 0x3df   : > { %v3037_v0 = vpop.f32.mrf.mxu3 }
 0x3e0   : > { %v8193_v24 = vadd.f32 %v3037_v0, %v2774_v58  ;;  %6288 = vmatmul.msk.bf16.gmra.mxu0 %vm2507_vm5, %v8021_v28 }
 0x3e1   : > { %v2632_v55 = vpop.f32.mrf.mxu1 }
 0x3e2   : > { %6320 = vmatmul.msk.bf16.gmra.mxu2 %vm2507_vm5, %v7761_v16 }
 0x3e4   : > { %6300 = vmatmul.msk.bf16.gmra.mxu1 %vm2507_vm5, %v10053_v42  ;;  %6340 = vmatmul.msk.bf16.gmra.mxu3 %vm2507_vm5, %v7784_v25 }
 0x3e5   : > { %v2776_v37 = vpop.f32.mrf.mxu2  ;;  %v3135_v56 = vpop.f32.mrf.mxu0 }
 0x3e6   : > { %v2777_v11 = vadd.f32 %v2776_v37, %v2632_v55  ;;  %v8204_v4 = vadd.f32 %v3135_v56, %v8017_v5 }
 0x3e7   : > { %v3040_v0 = vpop.f32.mrf.mxu3 }
 0x3e8   : > { %v8206_v18 = vadd.f32 %v3040_v0, %v2777_v11  ;;  %v6392_v11 = vld [vmem:[%s9845_s5 + $0x8] sm:$0xf]  ;;  %v6598_v0 = vld [vmem:[%s9845_s5 + $0x8] sm:$0x30] }
 0x3e9   : > { %v2634_v36 = vpop.f32.mrf.mxu1 }
 0x3ed   : > { %v2778_v62 = vpop.f32.mrf.mxu2  ;;  %v3138_v9 = vpop.f32.mrf.mxu0 }
 0x3ee   : > { %v2779_v2 = vadd.f32 %v2778_v62, %v2634_v36  ;;  %v8209_v58 = vadd.f32 %v3138_v9, %v8053_v47  ;;  %v6393_v62 = vor.u32 %v6598_v0, %v6392_v11 }
 0x3ef   : > { %v3042_v16 = vpop.f32.mrf.mxu3 }
 0x3f0   : > { %v8211_v54 = vadd.f32 %v3042_v16, %v2779_v2  ;;  %6289 = vmatmul.msk.bf16.gmra.mxu0 %vm2507_vm5, %v8067_v40  ;;  %v4351_v9 = vsel %vm1022_vm4, %v6393_v62, 0 }
 0x3f1   : > { %v2637_v25 = vpop.f32.mrf.mxu1  ;;  %4360 = vmatpush.bf16.msra.mxu2 %v4351_v9 }
 0x3f2   : > { %6321 = vmatmul.msk.bf16.gmra.mxu2 %vm2507_vm5, %v7803_v61 }
 0x3f4   : > { %6301 = vmatmul.msk.bf16.gmra.mxu1 %vm2507_vm5, %v7801_v51  ;;  %6341 = vmatmul.msk.bf16.gmra.mxu3 %vm2507_vm5, %v7822_v10  ;;  %v6412_v10 = vld [vmem:[%s9845_s5] sm:$0xf] }
 0x3f5   : > { %v2781_v5 = vpop.f32.mrf.mxu2  ;;  %v3140_v55 = vpop.f32.mrf.mxu0 }
 0x3f6   : > { %v2782_v47 = vadd.f32 %v2781_v5, %v2637_v25  ;;  %v8222_v37 = vadd.f32 %v3140_v55, %v8063_v57  ;;  %v6597_v57 = vld [vmem:[%s9845_s5] sm:$0x30] }
 0x3f7   : > { %v3045_v16 = vpop.f32.mrf.mxu3  ;;  %v6413_v2 = vor.u32 %v6597_v57, %v6412_v10 }
 0x3f8   : > { %v8224_v56 = vadd.f32 %v3045_v16, %v2782_v47 }
 0x3f9   : > { %v2639_v36 = vpop.f32.mrf.mxu1  ;;  %v4493_v55 = vsel %vm1022_vm4, %v6413_v2, 0 }
 0x3fa   : > { %4502 = vmatpush.bf16.msra.mxu3 %v4493_v55 }
 0x3fd   : > { %v2783_v25 = vpop.f32.mrf.mxu2  ;;  %v3143_v5 = vpop.f32.mrf.mxu0 }
 0x3fe   : > { %v2784_v47 = vadd.f32 %v2783_v25, %v2639_v36  ;;  %v8241_v16 = vadd.f32 %v3143_v5, %v8086_v50 }
 0x3ff   : > { %v3047_v11 = vpop.f32.mrf.mxu3 }
 0x400   : > { %v8243_v0 = vadd.f32 %v3047_v11, %v2784_v47  ;;  %6290 = vmatmul.msk.bf16.gmra.mxu0 %vm2507_vm5, %v8098_v35 }
 0x401   : > { %v2642_v61 = vpop.f32.mrf.mxu1 }
 0x402   : > { %6322 = vmatmul.msk.bf16.gmra.mxu2 %vm2507_vm5, %v7833_v46 }
 0x404   : > { %6302 = vmatmul.msk.bf16.gmra.mxu1 %vm2507_vm5, %v7831_v63  ;;  %6342 = vmatmul.msk.bf16.gmra.mxu3 %vm2507_vm5, %v7856_v59  ;;  %v10057_v59 = vld [vmem:[#allocation7_spill] sm:$0xff] }
 0x405   : > { %v2786_v36 = vpop.f32.mrf.mxu2  ;;  %v3145_v50 = vpop.f32.mrf.mxu0 }
 0x406   : > { %v2787_v62 = vadd.f32 %v2786_v36, %v2642_v61  ;;  %v8254_v10 = vadd.f32 %v3145_v50, %v8094_v38  ;;  %v2714_v38 = vadd.f32 %v10057_v59, %v7841_v26  ;;  %v10058_v50 = vld [vmem:[#allocation13_spill] sm:$0xff] }
 0x407   : > { %v3050_v57 = vpop.f32.mrf.mxu3 }
 0x408   : > { %10054 = vst [vmem:[#allocation21_spill] sm:$0xff] %v8254_v10  ;;  %v8256_v9 = vadd.f32 %v3050_v57, %v2787_v62  ;;  %v10059_v62 = vld [vmem:[#allocation11_spill] sm:$0xff] }
 0x409   : > { %v2644_v2 = vpop.f32.mrf.mxu1 }
 0x40d   : > { %v2788_v25 = vpop.f32.mrf.mxu2  ;;  %v3148_v5 = vpop.f32.mrf.mxu0 }
 0x40e   : > { %v2789_v55 = vadd.f32 %v2788_v25, %v2644_v2  ;;  %v8259_v47 = vadd.f32 %v3148_v5, %v8116_v44  ;;  %v10060_v2 = vld [vmem:[#allocation10_spill] sm:$0xff] }
 0x40f   : > { %v3052_v11 = vpop.f32.mrf.mxu3  ;;  %v3056_v25 = vadd.f32 %v10060_v2, %v2714_v38 }
 0x410   : > { %10055 = vst [vmem:[#allocation24_spill] sm:$0xff] %v8259_v47  ;;  %v8261_v46 = vadd.f32 %v3052_v11, %v2789_v55  ;;  %6354 = vmatmul.msk.bf16.vlgmr.msra.gmra.mxu0 %vm2507_vm5, %v7646_v30 }
 0x411   : > { %v3250_v61 = vpop.f32.mrf.mxu1 }
 0x412   : > { %10056 = vst [vmem:[#allocation26_spill] sm:$0xff] %v8261_v46  ;;  %v3330_v36 = vadd.f32 %v3250_v61, %v8092_v17  ;;  %6323 = vmatmul.msk.bf16.gmra.mxu2 %vm2507_vm5, %v10058_v50  ;;  %v3189_v17 = vadd.f32 %v8114_v15, %v3056_v25  ;;  %v10061_v15 = vld [vmem:[#allocation14_spill] sm:$0xff] }
 0x414   : > { %6303 = vmatmul.msk.bf16.gmra.mxu1 %vm2507_vm5, %v10059_v62  ;;  %6343 = vmatmul.msk.bf16.gmra.mxu3 %vm2507_vm5, %v7888_v21 }
 0x415   : > { %v3390_v44 = vpop.f32.mrf.mxu2  ;;  %v3150_v57 = vpop.f32.mrf.mxu0 }
 0x416   : > { %v3470_v30 = vadd.f32 %v3390_v44, %v3330_v36  ;;  %v8276_v5 = vadd.f32 %v3150_v57, %v8121_v34  ;;  %v10062_v36 = vld [vmem:[#allocation12_spill] sm:$0xff] }
 0x417   : > { %v3519_v26 = vpop.f32.mrf.mxu3 }
 0x418   : > { %v8279_v55 = vadd.f32 %v3519_v26, %v3470_v30 }
 0x419   : > { %v3252_v11 = vpop.f32.mrf.mxu1 }
 0x41a   : > { %v3331_v61 = vadd.f32 %v3252_v11, %v3189_v17 }
 0x41d   : > { %v3392_v59 = vpop.f32.mrf.mxu2  ;;  %v3153_v50 = vpop.f32.mrf.mxu0 }
 0x41e   : > { %v3471_v47 = vadd.f32 %v3392_v59, %v3331_v61  ;;  %v8282_v21 = vadd.f32 %v3153_v50, %v8134_v19  ;;  %v10063_v61 = vld [vmem:[#allocation16_spill] sm:$0xff]  ;;  %v10064_v59 = vld [vmem:[#allocation15_spill] sm:$0xff] }
 0x41f   : > { %v3521_v10 = vpop.f32.mrf.mxu3 }
 0x420   : > { %v8284_v46 = vadd.f32 %v3521_v10, %v3471_v47  ;;  %6355 = vmatmul.msk.bf16.gmra.mxu0 %vm2507_vm5, %v10050_v27 }
 0x421   : > { %v3255_v34 = vpop.f32.mrf.mxu1 }
 0x422   : > { %v3332_v38 = vadd.f32 %v3255_v34, %v8119_v14  ;;  %6324 = vmatmul.msk.bf16.gmra.mxu2 %vm2507_vm5, %v10061_v15 }
 0x424   : > { %6304 = vmatmul.msk.bf16.gmra.mxu1 %vm2507_vm5, %v10062_v36  ;;  %6344 = vmatmul.msk.bf16.gmra.mxu3 %vm2507_vm5, %v7920_v33 }
 0x425   : > { %v3395_v19 = vpop.f32.mrf.mxu2  ;;  %v3155_v50 = vpop.f32.mrf.mxu0 }
 0x426   : > { %v3472_v44 = vadd.f32 %v3395_v19, %v3332_v38  ;;  %v8296_v10 = vadd.f32 %v3155_v50, %v8139_v53 }
 0x427   : > { %v3524_v47 = vpop.f32.mrf.mxu3 }
 0x428   : > { %v8298_v27 = vadd.f32 %v3524_v47, %v3472_v44 }
 0x429   : > { %v3257_v57 = vpop.f32.mrf.mxu1 }
 0x42a   : > { %v3333_v14 = vadd.f32 %v3257_v57, %v8132_v1 }
 0x42d   : > { %v3397_v2 = vpop.f32.mrf.mxu2  ;;  %v3158_v25 = vpop.f32.mrf.mxu0 }
 0x42e   : > { %v3473_v30 = vadd.f32 %v3397_v2, %v3333_v14  ;;  %v8302_v26 = vadd.f32 %v3158_v25, %v8152_v31 }
 0x42f   : > { %v3526_v17 = vpop.f32.mrf.mxu3 }
 0x430   : > { %v8304_v33 = vadd.f32 %v3526_v17, %v3473_v30  ;;  %6356 = vmatmul.msk.bf16.gmra.mxu0 %vm2507_vm5, %v7696_v3  ;;  %v10065_v30 = vld [vmem:[#allocation18_spill] sm:$0xff]  ;;  %v10066_v17 = vld [vmem:[#allocation17_spill] sm:$0xff] }
 0x431   : > { %v3260_v53 = vpop.f32.mrf.mxu1 }
 0x432   : > { %v3334_v11 = vadd.f32 %v3260_v53, %v8137_v12  ;;  %6325 = vmatmul.msk.bf16.gmra.mxu2 %vm2507_vm5, %v10063_v61 }
 0x434   : > { %6305 = vmatmul.msk.bf16.gmra.mxu1 %vm2507_vm5, %v10064_v59  ;;  %6345 = vmatmul.msk.bf16.gmra.mxu3 %vm2507_vm5, %v7952_v41 }
 0x435   : > { %v3400_v1 = vpop.f32.mrf.mxu2  ;;  %v3160_v31 = vpop.f32.mrf.mxu0 }
 0x436   : > { %v3474_v34 = vadd.f32 %v3400_v1, %v3334_v11  ;;  %v8316_v38 = vadd.f32 %v3160_v31, %v8157_v32 }
 0x437   : > { %v3529_v19 = vpop.f32.mrf.mxu3 }
 0x438   : > { %v8318_v3 = vadd.f32 %v3529_v19, %v3474_v34 }
 0x439   : > { %v3262_v50 = vpop.f32.mrf.mxu1 }
 0x43a   : > { %v3335_v12 = vadd.f32 %v3262_v50, %v8150_v7 }
 0x43d   : > { %v3402_v44 = vpop.f32.mrf.mxu2  ;;  %v3163_v47 = vpop.f32.mrf.mxu0 }
 0x43e   : > { %v3475_v57 = vadd.f32 %v3402_v44, %v3335_v12  ;;  %v8322_v14 = vadd.f32 %v3163_v47, %v8170_v52 }
 0x43f   : > { %v3531_v2 = vpop.f32.mrf.mxu3 }
 0x440   : > { %v8324_v41 = vadd.f32 %v3531_v2, %v3475_v57  ;;  %6357 = vmatmul.msk.bf16.gmra.mxu0 %vm2507_vm5, %v10052_v48  ;;  %v10067_v57 = vld [vmem:[#allocation20_spill] sm:$0xff]  ;;  %v10068_v2 = vld [vmem:[#allocation19_spill] sm:$0xff] }
 0x441   : > { %v3265_v32 = vpop.f32.mrf.mxu1 }
 0x442   : > { %v3336_v25 = vadd.f32 %v3265_v32, %v8155_v45  ;;  %6326 = vmatmul.msk.bf16.gmra.mxu2 %vm2507_vm5, %v10065_v30 }
 0x444   : > { %6306 = vmatmul.msk.bf16.gmra.mxu1 %vm2507_vm5, %v10066_v17  ;;  %6346 = vmatmul.msk.bf16.gmra.mxu3 %vm2507_vm5, %v7984_v23 }
 0x445   : > { %v3405_v7 = vpop.f32.mrf.mxu2  ;;  %v3165_v52 = vpop.f32.mrf.mxu0 }
 0x446   : > { %v3476_v53 = vadd.f32 %v3405_v7, %v3336_v25  ;;  %v8336_v11 = vadd.f32 %v3165_v52, %v8175_v20 }
 0x447   : > { %v3534_v1 = vpop.f32.mrf.mxu3 }
 0x448   : > { %v8338_v48 = vadd.f32 %v3534_v1, %v3476_v53 }
 0x449   : > { %v3267_v31 = vpop.f32.mrf.mxu1 }
 0x44a   : > { %v3337_v45 = vadd.f32 %v3267_v31, %v8168_v22 }
 0x44d   : > { %v3407_v34 = vpop.f32.mrf.mxu2  ;;  %v3168_v19 = vpop.f32.mrf.mxu0 }
 0x44e   : > { %v3477_v50 = vadd.f32 %v3407_v34, %v3337_v45  ;;  %v8342_v12 = vadd.f32 %v3168_v19, %v8188_v13 }
 0x44f   : > { %v3536_v44 = vpop.f32.mrf.mxu3 }
 0x450   : > { %v8344_v23 = vadd.f32 %v3536_v44, %v3477_v50  ;;  %6358 = vmatmul.msk.bf16.gmra.mxu0 %vm2507_vm5, %v10053_v42  ;;  %v10069_v50 = vld [vmem:[#allocation23_spill] sm:$0xff]  ;;  %v10070_v44 = vld [vmem:[#allocation22_spill] sm:$0xff] }
 0x451   : > { %v3270_v20 = vpop.f32.mrf.mxu1 }
 0x452   : > { %v3338_v47 = vadd.f32 %v3270_v20, %v8173_v39  ;;  %6327 = vmatmul.msk.bf16.gmra.mxu2 %vm2507_vm5, %v10067_v57 }
 0x454   : > { %6307 = vmatmul.msk.bf16.gmra.mxu1 %vm2507_vm5, %v10068_v2  ;;  %6347 = vmatmul.msk.bf16.gmra.mxu3 %vm2507_vm5, %v8021_v28 }
 0x455   : > { %v3410_v22 = vpop.f32.mrf.mxu2  ;;  %v3170_v13 = vpop.f32.mrf.mxu0 }
 0x456   : > { %v3478_v32 = vadd.f32 %v3410_v22, %v3338_v47  ;;  %v8356_v25 = vadd.f32 %v3170_v13, %v8193_v24 }
 0x457   : > { %v3539_v7 = vpop.f32.mrf.mxu3 }
 0x458   : > { %v8358_v42 = vadd.f32 %v3539_v7, %v3478_v32 }
 0x459   : > { %v3272_v52 = vpop.f32.mrf.mxu1 }
 0x45a   : > { %v3339_v39 = vadd.f32 %v3272_v52, %v8186_v60 }
 0x45d   : > { %v3412_v53 = vpop.f32.mrf.mxu2  ;;  %v3173_v1 = vpop.f32.mrf.mxu0 }
 0x45e   : > { %v3479_v31 = vadd.f32 %v3412_v53, %v3339_v39  ;;  %v8362_v45 = vadd.f32 %v3173_v1, %v8206_v18 }
 0x45f   : > { %v3541_v34 = vpop.f32.mrf.mxu3 }
 0x460   : > { %v8364_v28 = vadd.f32 %v3541_v34, %v3479_v31  ;;  %6359 = vmatmul.msk.bf16.gmra.mxu0 %vm2507_vm5, %v7801_v51 }
 0x461   : > { %v3275_v24 = vpop.f32.mrf.mxu1 }
 0x462   : > { %v3340_v19 = vadd.f32 %v3275_v24, %v8191_v49  ;;  %6328 = vmatmul.msk.bf16.gmra.mxu2 %vm2507_vm5, %v10069_v50 }
 0x464   : > { %6308 = vmatmul.msk.bf16.gmra.mxu1 %vm2507_vm5, %v10070_v44  ;;  %6348 = vmatmul.msk.bf16.gmra.mxu3 %vm2507_vm5, %v8067_v40 }
 0x465   : > { %v3415_v60 = vpop.f32.mrf.mxu2  ;;  %v3175_v18 = vpop.f32.mrf.mxu0 }
 0x466   : > { %v3480_v20 = vadd.f32 %v3415_v60, %v3340_v19  ;;  %v8376_v47 = vadd.f32 %v3175_v18, %v8211_v54 }
 0x467   : > { %v3544_v22 = vpop.f32.mrf.mxu3 }
 0x468   : > { %v8378_v51 = vadd.f32 %v3544_v22, %v3480_v20 }
 0x469   : > { %v3277_v13 = vpop.f32.mrf.mxu1 }
 0x46a   : > { %v8381_v49 = vadd.f32 %v3277_v13, %v8204_v4  ;;  %v10072_v13 = vld [vmem:[#allocation26_spill] sm:$0xff] }
 0x46d   : > { %v8383_v32 = vpop.f32.mrf.mxu2  ;;  %v3178_v7 = vpop.f32.mrf.mxu0 }
 0x46e   : > { %v8386_v52 = vadd.f32 %v3178_v7, %v8224_v56 }
 0x46f   : > { %v8388_v40 = vpop.f32.mrf.mxu3 }
 0x470   : > { %6360 = vmatmul.msk.bf16.gmra.mxu0 %vm2507_vm5, %v7831_v63 }
 0x471   : > { %v3280_v54 = vpop.f32.mrf.mxu1 }
 0x472   : > { %v3342_v39 = vadd.f32 %v3280_v54, %v8209_v58  ;;  %6329 = vmatmul.msk.bf16.gmra.mxu2 %vm2507_vm5, %v8078_v29 }
 0x474   : > { %6309 = vmatmul.msk.bf16.gmra.mxu1 %vm2507_vm5, %v8076_v8  ;;  %6349 = vmatmul.msk.bf16.gmra.mxu3 %vm2507_vm5, %v8098_v35 }
 0x475   : > { %v3420_v4 = vpop.f32.mrf.mxu2  ;;  %v3180_v56 = vpop.f32.mrf.mxu0 }
 0x476   : > { %v3482_v53 = vadd.f32 %v3420_v4, %v3342_v39  ;;  %v8400_v1 = vadd.f32 %v3180_v56, %v8243_v0  ;;  %v10073_v4 = vld [vmem:[#allocation21_spill] sm:$0xff] }
 0x477   : > { %v3549_v31 = vpop.f32.mrf.mxu3 }
 0x478   : > { %v8402_v63 = vadd.f32 %v3549_v31, %v3482_v53 }
 0x479   : > { %v3282_v34 = vpop.f32.mrf.mxu1 }
 0x47a   : > { %v8405_v58 = vadd.f32 %v3282_v34, %v8222_v37  ;;  %v10071_v37 = vmov 0.0|0.0  }
 0x47d   : > { %v8407_v24 = vpop.f32.mrf.mxu2  ;;  %v3183_v19 = vpop.f32.mrf.mxu0 }
 0x47e   : > { %v8410_v60 = vadd.f32 %v3183_v19, %v8256_v9 }
 0x47f   : > { %v8412_v35 = vpop.f32.mrf.mxu3 }
 0x480   : > { %6361 = vmatmul.msk.bf16.gmra.mxu0 %vm2507_vm5, %v10059_v62 }
 0x481   : > { %v3285_v0 = vpop.f32.mrf.mxu1 }
 0x482   : > { %v3344_v18 = vadd.f32 %v3285_v0, %v8241_v16  ;;  %6330 = vmatmul.msk.bf16.gmra.mxu2 %vm2507_vm5, %v8106_v43  ;;  %v10074_v0 = vld [vmem:[#allocation24_spill] sm:$0xff] }
 0x484   : > { %6310 = vmatmul.msk.bf16.gmra.mxu1 %vm2507_vm5, %v8108_v6  ;;  %3593 = vmatmul.bf16.gmra.mxu3 %v10071_v37 }
 0x485   : > { %v3425_v20 = vpop.f32.mrf.mxu2  ;;  %v3185_v22 = vpop.f32.mrf.mxu0 }
 0x486   : > { %v3484_v9 = vadd.f32 %v3425_v20, %v3344_v18  ;;  %v8423_v7 = vadd.f32 %v3185_v22, %v10072_v13  ;;  %v10075_v20 = vld [vmem:[#allocation2_spill] sm:$0xff]  ;;  %v10076_v22 = vld [vmem:[#allocation27_spill] sm:$0xff] }
 0x487   : > { %v3554_v54 = vpop.f32.mrf.mxu3 }
 0x488   : > { %v8425_v39 = vadd.f32 %v3554_v54, %v3484_v9 }
 0x489   : > { %v3287_v62 = vpop.f32.mrf.mxu1 }
 0x48a   : > { %v8428_v16 = vadd.f32 %v3287_v62, %v10073_v4 }
 0x48d   : > { %v8430_v56 = vpop.f32.mrf.mxu2  ;;  %v3648_v53 = vpop.f32.mrf.mxu0 }
 0x48e   : > { %v8433_v31 = vadd.f32 %v3648_v53, %v8279_v55 }
 0x48f   : > { %v8435_v34 = vpop.f32.mrf.mxu3 }
 0x490   : > { %6362 = vmatmul.msk.bf16.gmra.mxu0 %vm2507_vm5, %v10062_v36 }
 0x491   : > { %v3290_v19 = vpop.f32.mrf.mxu1 }
 0x492   : > { %v3346_v18 = vadd.f32 %v3290_v19, %v10074_v0  ;;  %6394 = vmatmul.msk.bf16.vlgmr.msra.gmra.mxu2 %vm2507_vm5, %v10075_v20 }
 0x494   : > { %6374 = vmatmul.msk.bf16.vlgmr.msra.gmra.mxu1 %vm2507_vm5, %v10076_v22  ;;  %4503 = vmatmul.bf16.vlgmr.msra.gmra.mxu3 %v10071_v37 }
 0x495   : > { %v3430_v9 = vpop.f32.mrf.mxu2  ;;  %v3650_v13 = vpop.f32.mrf.mxu0 }
 0x496   : > { %v3486_v55 = vadd.f32 %v3430_v9, %v3346_v18  ;;  %v8446_v54 = vadd.f32 %v3650_v13, %v8284_v46  ;;  %v10079_v9 = vld [vmem:[#allocation29_spill] sm:$0xff] }
 0x497   : > { %v3559_v62 = vpop.f32.mrf.mxu3 }
 0x498   : > { %v8448_v4 = vadd.f32 %v3559_v62, %v3486_v55 }
 0x499   : > { %v3292_v36 = vpop.f32.mrf.mxu1 }
 0x49a   : > { %v8451_v53 = vadd.f32 %v3292_v36, %v8276_v5 }
 0x49d   : > { %v8453_v19 = vpop.f32.mrf.mxu2  ;;  %v3653_v0 = vpop.f32.mrf.mxu0 }
 0x49e   : > { %10077 = vst [vmem:[#allocation25_spill] sm:$0xff] %v8453_v19  ;;  %v8456_v22 = vadd.f32 %v3653_v0, %v8298_v27 }
 0x49f   : > { %v8458_v37 = vpop.f32.mrf.mxu3 }
 0x4a0   : > { %10078 = vst [vmem:[#allocation28_spill] sm:$0xff] %v8458_v37  ;;  %6363 = vmatmul.msk.bf16.gmra.mxu0 %vm2507_vm5, %v10064_v59 }
 0x4a1   : > { %v3295_v46 = vpop.f32.mrf.mxu1 }
 0x4a2   : > { %v3348_v18 = vadd.f32 %v3295_v46, %v8282_v21 }
 0x4a4   : > { %6375 = vmatmul.msk.bf16.gmra.mxu1 %vm2507_vm5, %v10079_v9  ;;  %v10081_v9 = vld [vmem:[#allocation4_spill] sm:$0xff] }
 0x4a5   : > { %v3435_v13 = vpop.f32.mrf.mxu2  ;;  %v3655_v5 = vpop.f32.mrf.mxu0 }
 0x4a6   : > { %v3488_v55 = vadd.f32 %v3435_v13, %v3348_v18  ;;  %v8466_v62 = vadd.f32 %v3655_v5, %v8304_v33 }
 0x4a7   : > { %v3564_v36 = vpop.f32.mrf.mxu3 }
 0x4a8   : > { %v8468_v27 = vadd.f32 %v3564_v36, %v3488_v55 }
 0x4a9   : > { %v3297_v0 = vpop.f32.mrf.mxu1 }
 0x4aa   : > { %v8471_v37 = vadd.f32 %v3297_v0, %v8296_v10 }
 0x4ad   : > { %v8473_v59 = vpop.f32.mrf.mxu2  ;;  %v3658_v19 = vpop.f32.mrf.mxu0 }
 0x4ae   : > { %v8476_v21 = vadd.f32 %v3658_v19, %v8318_v3 }
 0x4af   : > { %v8478_v46 = vpop.f32.mrf.mxu3 }
 0x4b0   : > { %10080 = vst [vmem:[#allocation30_spill] sm:$0xff] %v8478_v46  ;;  %6364 = vmatmul.msk.bf16.gmra.mxu0 %vm2507_vm5, %v10066_v17 }
 0x4b1   : > { %v3300_v33 = vpop.f32.mrf.mxu1 }
 0x4b2   : > { %v3350_v18 = vadd.f32 %v3300_v33, %v8302_v26 }
 0x4b4   : > { %6376 = vmatmul.msk.bf16.gmra.mxu1 %vm2507_vm5, %v10081_v9  ;;  %v10083_v9 = vld [vmem:[#allocation31_spill] sm:$0xff] }
 0x4b5   : > { %v3440_v13 = vpop.f32.mrf.mxu2  ;;  %v3660_v10 = vpop.f32.mrf.mxu0 }
 0x4b6   : > { %v3490_v5 = vadd.f32 %v3440_v13, %v3350_v18  ;;  %v8486_v55 = vadd.f32 %v3660_v10, %v8324_v41 }
 0x4b7   : > { %v3569_v36 = vpop.f32.mrf.mxu3 }
 0x4b8   : > { %v8488_v3 = vadd.f32 %v3569_v36, %v3490_v5 }
 0x4b9   : > { %v3302_v19 = vpop.f32.mrf.mxu1 }
 0x4ba   : > { %v8491_v0 = vadd.f32 %v3302_v19, %v8316_v38 }
 0x4bd   : > { %v8493_v17 = vpop.f32.mrf.mxu2  ;;  %v3663_v46 = vpop.f32.mrf.mxu0 }
 0x4be   : > { %v8496_v26 = vadd.f32 %v3663_v46, %v8338_v48 }
 0x4bf   : > { %v8498_v33 = vpop.f32.mrf.mxu3 }
 0x4c0   : > { %10082 = vst [vmem:[#allocation6_spill] sm:$0xff] %v8498_v33  ;;  %6365 = vmatmul.msk.bf16.gmra.mxu0 %vm2507_vm5, %v10068_v2 }
 0x4c1   : > { %v3305_v41 = vpop.f32.mrf.mxu1 }
 0x4c2   : > { %v3352_v18 = vadd.f32 %v3305_v41, %v8322_v14 }
 0x4c4   : > { %6377 = vmatmul.msk.bf16.gmra.mxu1 %vm2507_vm5, %v10083_v9  ;;  %v10086_v9 = vld [vmem:[#allocation5_spill] sm:$0xff] }
 0x4c5   : > { %v3445_v13 = vpop.f32.mrf.mxu2  ;;  %v3665_v38 = vpop.f32.mrf.mxu0 }
 0x4c6   : > { %v3492_v10 = vadd.f32 %v3445_v13, %v3352_v18  ;;  %v8506_v5 = vadd.f32 %v3665_v38, %v8344_v23 }
 0x4c7   : > { %v3574_v36 = vpop.f32.mrf.mxu3 }
 0x4c8   : > { %v8508_v48 = vadd.f32 %v3574_v36, %v3492_v10 }
 0x4c9   : > { %v3307_v46 = vpop.f32.mrf.mxu1 }
 0x4ca   : > { %v8511_v19 = vadd.f32 %v3307_v46, %v8336_v11 }
 0x4cd   : > { %v8513_v2 = vpop.f32.mrf.mxu2  ;;  %v3668_v33 = vpop.f32.mrf.mxu0 }
 0x4ce   : > { %10084 = vst [vmem:[#allocation7_spill] sm:$0xff] %v8513_v2  ;;  %v8516_v14 = vadd.f32 %v3668_v33, %v8358_v42 }
 0x4cf   : > { %v8518_v41 = vpop.f32.mrf.mxu3 }
 0x4d0   : > { %10085 = vst [vmem:[#allocation11_spill] sm:$0xff] %v8518_v41  ;;  %6366 = vmatmul.msk.bf16.gmra.mxu0 %vm2507_vm5, %v10070_v44 }
 0x4d1   : > { %v3310_v23 = vpop.f32.mrf.mxu1 }
 0x4d2   : > { %v3354_v18 = vadd.f32 %v3310_v23, %v8342_v12 }
 0x4d4   : > { %6378 = vmatmul.msk.bf16.gmra.mxu1 %vm2507_vm5, %v10086_v9  ;;  %v10090_v9 = vld [vmem:[#allocation9_spill] sm:$0xff] }
 0x4d5   : > { %v3450_v13 = vpop.f32.mrf.mxu2  ;;  %v3670_v11 = vpop.f32.mrf.mxu0 }
 0x4d6   : > { %v3494_v38 = vadd.f32 %v3450_v13, %v3354_v18  ;;  %v8526_v10 = vadd.f32 %v3670_v11, %v8364_v28 }
 0x4d7   : > { %v3579_v36 = vpop.f32.mrf.mxu3 }
 0x4d8   : > { %v8528_v42 = vadd.f32 %v3579_v36, %v3494_v38 }
 0x4d9   : > { %v3312_v33 = vpop.f32.mrf.mxu1 }
 0x4da   : > { %v8531_v46 = vadd.f32 %v3312_v33, %v8356_v25 }
 0x4dc   : > { %10087 = vst [vmem:[#allocation10_spill] sm:$0xff] %v8531_v46 }
 0x4dd   : > { %v8533_v44 = vpop.f32.mrf.mxu2  ;;  %v3673_v41 = vpop.f32.mrf.mxu0 }
 0x4de   : > { %10088 = vst [vmem:[#allocation14_spill] sm:$0xff] %v8533_v44  ;;  %v8536_v12 = vadd.f32 %v3673_v41, %v8378_v51 }
 0x4df   : > { %v8538_v23 = vpop.f32.mrf.mxu3 }
 0x4e0   : > { %10089 = vst [vmem:[#allocation12_spill] sm:$0xff] %v8538_v23  ;;  %6367 = vmatmul.msk.bf16.gmra.mxu0 %vm2507_vm5, %v8076_v8 }
 0x4e1   : > { %v3315_v28 = vpop.f32.mrf.mxu1 }
 0x4e2   : > { %v3356_v18 = vadd.f32 %v3315_v28, %v8362_v45 }
 0x4e4   : > { %6379 = vmatmul.msk.bf16.gmra.mxu1 %vm2507_vm5, %v10090_v9  ;;  %v6431_v9 = vld [vmem:[%s9845_s5 + $0x10] sm:$0xf] }
 0x4e5   : > { %v3455_v13 = vpop.f32.mrf.mxu2  ;;  %v8545_v25 = vpop.f32.mrf.mxu0 }
 0x4e6   : > { %v3496_v11 = vadd.f32 %v3455_v13, %v3356_v18  ;;  %v10094_v13 = vld [vmem:[#allocation8_spill] sm:$0xff] }
 0x4e7   : > { %v3584_v38 = vpop.f32.mrf.mxu3 }
 0x4e8   : > { %v8547_v36 = vadd.f32 %v3584_v38, %v3496_v11 }
 0x4e9   : > { %v3317_v51 = vpop.f32.mrf.mxu1 }
 0x4ea   : > { %v8550_v41 = vadd.f32 %v3317_v51, %v8376_v47  ;;  %v6599_v47 = vld [vmem:[%s9845_s5 + $0x10] sm:$0x30] }
 0x4ec   : > { %10091 = vst [vmem:[#allocation16_spill] sm:$0xff] %v8550_v41 }
 0x4ed   : > { %v8552_v33 = vpop.f32.mrf.mxu2  ;;  %v3678_v8 = vpop.f32.mrf.mxu0 }
 0x4ee   : > { %10092 = vst [vmem:[#allocation15_spill] sm:$0xff] %v8552_v33  ;;  %v8555_v23 = vadd.f32 %v3678_v8, %v8402_v63  ;;  %v6432_v63 = vor.u32 %v6599_v47, %v6431_v9  ;;  %v6471_v33 = vld [vmem:[%s9845_s5 + $0x20] sm:$0xf]  ;;  %v6601_v9 = vld [vmem:[%s9845_s5 + $0x20] sm:$0x30] }
 0x4ef   : > { %v8557_v45 = vpop.f32.mrf.mxu3  ;;  %v6472_v47 = vor.u32 %v6601_v9, %v6471_v33  ;;  %v6491_v33 = vld [vmem:[%s9845_s5 + $0x28] sm:$0xf] }
 0x4f0   : > { %10093 = vst [vmem:[#allocation18_spill] sm:$0xff] %v8557_v45  ;;  %6368 = vmatmul.msk.bf16.gmra.mxu0 %vm2507_vm5, %v8108_v6  ;;  %v4755_v6 = vsel %vm1022_vm4, %v6432_v63, 0 }
 0x4f1   : > { %v3320_v28 = vpop.f32.mrf.mxu1  ;;  %4764 = vmatpush.bf16.msrb.mxu0 %v4755_v6 }
 0x4f2   : > { %v3358_v18 = vadd.f32 %v3320_v28, %v8386_v52 }
 0x4f4   : > { %6380 = vmatmul.msk.bf16.gmra.mxu1 %vm2507_vm5, %v10094_v13 }
 0x4f5   : > { %v3460_v11 = vpop.f32.mrf.mxu2  ;;  %v8570_v38 = vpop.f32.mrf.mxu0 }
 0x4f6   : > { %v3498_v51 = vadd.f32 %v3460_v11, %v3358_v18  ;;  %v5030_v11 = vsel %vm1022_vm4, %v6472_v47, 0 }
 0x4f7   : > { %v3589_v8 = vpop.f32.mrf.mxu3  ;;  %5039 = vmatpush.bf16.msrb.mxu2 %v5030_v11 }
 0x4f8   : > { %v8573_v52 = vadd.f32 %v3589_v8, %v3498_v51  ;;  %v6451_v8 = vld [vmem:[%s9845_s5 + $0x18] sm:$0xf] }
 0x4f9   : > { %v3322_v28 = vpop.f32.mrf.mxu1 }
 0x4fa   : > { %v8576_v45 = vadd.f32 %v3322_v28, %v8400_v1  ;;  %v10098_v28 = vld [vmem:[#allocation13_spill] sm:$0xff] }
 0x4fc   : > { %10095 = vst [vmem:[#allocation17_spill] sm:$0xff] %v8576_v45 }
 0x4fd   : > { %v8584_v18 = vpop.f32.mrf.mxu2  ;;  %v3683_v13 = vpop.f32.mrf.mxu0 }
 0x4fe   : > { %10096 = vst [vmem:[#allocation20_spill] sm:$0xff] %v8584_v18  ;;  %v8587_v63 = vadd.f32 %v3683_v13, %v8425_v39  ;;  %v6602_v39 = vld [vmem:[%s9845_s5 + $0x28] sm:$0x30] }
 0x4ff   : > { %v8590_v51 = vpop.f32.mrf.mxu3  ;;  %v6492_v9 = vor.u32 %v6602_v39, %v6491_v33 }
 0x500   : > { %10097 = vst [vmem:[#allocation19_spill] sm:$0xff] %v8590_v51  ;;  %6369 = vmatmul.msk.bf16.gmra.mxu0 %vm2507_vm5, %v10075_v20 }
 0x501   : > { %v3325_v1 = vpop.f32.mrf.mxu1  ;;  %v5170_v20 = vsel %vm1022_vm4, %v6492_v9, 0 }
 0x502   : > { %v3360_v6 = vadd.f32 %v3325_v1, %v8410_v60  ;;  %v6600_v60 = vld [vmem:[%s9845_s5 + $0x18] sm:$0x30]  ;;  %5179 = vmatpush.bf16.msrb.mxu3 %v5170_v20 }
 0x503   : > { %v6452_v11 = vor.u32 %v6600_v60, %v6451_v8  ;;  %v10100_v8 = vld [vmem:[#allocation3_spill] sm:$0xff] }
 0x504   : > { %6381 = vmatmul.msk.bf16.gmra.mxu1 %vm2507_vm5, %v10098_v28 }
 0x505   : > { %v3465_v47 = vpop.f32.mrf.mxu2  ;;  %v8609_v13 = vpop.f32.mrf.mxu0  ;;  %v4888_v18 = vsel %vm1022_vm4, %v6452_v11, 0 }
 0x506   : > { %v3500_v1 = vadd.f32 %v3465_v47, %v3360_v6  ;;  %4897 = vmatpush.bf16.msrb.mxu1 %v4888_v18  ;;  %v8624_v6 = vld [vmem:[%s9844_s4] ss:$0 sm:$0xff] }
 0x507   : > { %v3594_v51 = vpop.f32.mrf.mxu3 }
 0x508   : > { %v8613_v45 = vadd.f32 %v3594_v51, %v3500_v1 }
 0x509   : > { %v3327_v28 = vpop.f32.mrf.mxu1 }
 0x50a   : > { %v8616_v33 = vadd.f32 %v3327_v28, %v8423_v7 }
 0x50c   : > { %10099 = vst [vmem:[#allocation23_spill] sm:$0xff] %v8616_v33 }
 0x50d   : > { %v3688_v39 = vpop.f32.mrf.mxu0 }
 0x50e   : > { %v8619_v41 = vadd.f32 %v3688_v39, %v8448_v4 }
 0x510   : > { %6433 = vmatmul.msk.bf16.vlgmr.msrb.gmra.mxu0 %vm2507_vm5, %v10100_v8 }
 0x511   : > { %v3777_v20 = vpop.f32.mrf.mxu1 }
 0x512   : > { %v3857_v51 = vadd.f32 %v3777_v20, %v8433_v31 }
 0x514   : > { %v3893_v18 = vadd.f32 %v8624_v6, %v3857_v51  ;;  %6382 = vmatmul.msk.bf16.gmra.mxu1 %vm2507_vm5, %v10061_v15 }
 0x515   : > { %v8632_v7 = vpop.f32.mrf.mxu0 }
 0x516   : > { %v3925_v4 = vmax.f32 %v3893_v18, 0.0 }
 0x518   : > { %v3989_v60 = vrot.slane %v3925_v4, 7 }
 0x519   : > { %v3779_v9 = vpop.f32.mrf.mxu1 }
 0x51a   : > { %v3858_v47 = vadd.f32 %v3779_v9, %v8446_v54  ;;  %v4085_v28 = vsel %vm430_vm2, 0.0, %v3989_v60 }
 0x51b   : > { %v4180_v51 = vrot.slane %v4085_v28, 1  ;;  %v4584_v15 = vrot.slane %v4085_v28, 2 }
 0x51c   : > { %v3894_v11 = vadd.f32 %v8624_v6, %v3858_v47 }
 0x51d   : > { %v3693_v1 = vpop.f32.mrf.mxu0 }
 0x51e   : > { %v3926_v39 = vmax.f32 %v3894_v11, 0.0  ;;  %v8638_v31 = vadd.f32 %v3693_v1, %v8468_v27 }
 0x520   : > { %v3990_v20 = vrot.slane %v3926_v39, 7 }
 0x521   : > { %v3782_v33 = vpop.f32.mrf.mxu1 }
 0x522   : > { %v3991_v44 = vsel %vm430_vm2, %v3989_v60, %v3990_v20  ;;  %v4101_v18 = vsel %vm430_vm2, %v3990_v20, 0.0  ;;  %v3859_v4 = vadd.f32 %v3782_v33, %v8456_v22 }
 0x523   : > { %v4181_v54 = vrot.slane %v3991_v44, 1  ;;  %v4183_v9 = vrot.slane %v4101_v18, 1  ;;  %v4585_v47 = vrot.slane %v3991_v44, 2  ;;  %v4587_v46 = vrot.slane %v4101_v18, 2 }
 0x524   : > { %v3895_v2 = vadd.f32 %v8624_v6, %v3859_v4  ;;  %6383 = vmatmul.msk.bf16.gmra.mxu1 %vm2507_vm5, %v10063_v61  ;;  %v8646_v27 = vpack.c.bf16 %v3991_v44, %v4085_v28 }
 0x525   : > { %v8648_v11 = vpop.f32.mrf.mxu0  ;;  %v4182_v1 = vsel %vm615_vm3, %v4180_v51, %v4181_v54  ;;  %v4184_v60 = vsel %vm615_vm3, %v4181_v54, %v4183_v9  ;;  %v4586_v39 = vsel %vm1022_vm4, %v4584_v15, %v4585_v47  ;;  %v4588_v22 = vsel %vm1022_vm4, %v4585_v47, %v4587_v46 }
 0x526   : > { %v3927_v33 = vmax.f32 %v3895_v2, 0.0  ;;  %6414 = vmatmul.msk.bf16.gmra.mxu3 %vm2507_vm5, %v8646_v27  ;;  %v8656_v20 = vpack.c.bf16 %v4184_v60, %v4182_v1  ;;  %v8658_v18 = vpack.c.bf16 %v4588_v22, %v4586_v39 }
 0x528   : > { %10101 = vst [vmem:[#allocation22_spill] sm:$0xff] %v8656_v20  ;;  %6395 = vmatmul.msk.bf16.gmra.mxu2 %vm2507_vm5, %v8656_v20  ;;  %6434 = vmatmul.msk.bf16.gmra.mxu0 %vm2507_vm5, %v8658_v18  ;;  %v3992_v44 = vrot.slane %v3927_v33, 7 }
 0x529   : > { %v3784_v61 = vpop.f32.mrf.mxu1 }
 0x52a   : > { %v3860_v28 = vadd.f32 %v3784_v61, %v8466_v62  ;;  %v4086_v51 = vsel %vm430_vm2, 0.0, %v3992_v44 }
 0x52b   : > { %v4185_v9 = vrot.slane %v4086_v51, 1  ;;  %v4589_v1 = vrot.slane %v4086_v51, 2 }
 0x52c   : > { %v3896_v46 = vadd.f32 %v8624_v6, %v3860_v28 }
 0x52d   : > { %v3698_v2 = vpop.f32.mrf.mxu0 }
 0x52e   : > { %v3928_v15 = vmax.f32 %v3896_v46, 0.0  ;;  %v8668_v4 = vadd.f32 %v3698_v2, %v8488_v3 }
 0x530   : > { %v3993_v54 = vrot.slane %v3928_v15, 7 }
 0x531   : > { %v3787_v47 = vpop.f32.mrf.mxu1 }
 0x532   : > { %v3994_v60 = vsel %vm430_vm2, %v3992_v44, %v3993_v54  ;;  %v4102_v39 = vsel %vm430_vm2, %v3993_v54, 0.0  ;;  %v3861_v22 = vadd.f32 %v3787_v47, %v8476_v21 }
 0x533   : > { %v4186_v62 = vrot.slane %v3994_v60, 1  ;;  %v4188_v33 = vrot.slane %v4102_v39, 1  ;;  %v4590_v61 = vrot.slane %v3994_v60, 2  ;;  %v4592_v28 = vrot.slane %v4102_v39, 2 }
 0x534   : > { %v3897_v20 = vadd.f32 %v8624_v6, %v3861_v22  ;;  %6384 = vmatmul.msk.bf16.gmra.mxu1 %vm2507_vm5, %v10065_v30  ;;  %v8676_v3 = vpack.c.bf16 %v3994_v60, %v4086_v51 }
 0x535   : > { %v8678_v46 = vpop.f32.mrf.mxu0  ;;  %v4187_v2 = vsel %vm615_vm3, %v4185_v9, %v4186_v62  ;;  %v4189_v44 = vsel %vm615_vm3, %v4186_v62, %v4188_v33  ;;  %v4591_v15 = vsel %vm1022_vm4, %v4589_v1, %v4590_v61  ;;  %v4593_v21 = vsel %vm1022_vm4, %v4590_v61, %v4592_v28 }
 0x536   : > { %v3929_v54 = vmax.f32 %v3897_v20, 0.0  ;;  %6415 = vmatmul.msk.bf16.gmra.mxu3 %vm2507_vm5, %v8676_v3  ;;  %v8686_v47 = vpack.c.bf16 %v4189_v44, %v4187_v2  ;;  %v8688_v39 = vpack.c.bf16 %v4593_v21, %v4591_v15 }
 0x538   : > { %10102 = vst [vmem:[#allocation26_spill] sm:$0xff] %v8686_v47  ;;  %6396 = vmatmul.msk.bf16.gmra.mxu2 %vm2507_vm5, %v8686_v47  ;;  %6435 = vmatmul.msk.bf16.gmra.mxu0 %vm2507_vm5, %v8688_v39  ;;  %v3995_v51 = vrot.slane %v3929_v54, 7 }
 0x539   : > { %10103 = vst [vmem:[#allocation21_spill] sm:$0xff] %v8688_v39  ;;  %v3789_v30 = vpop.f32.mrf.mxu1 }
 0x53a   : > { %v3862_v9 = vadd.f32 %v3789_v30, %v8486_v55  ;;  %v4087_v60 = vsel %vm430_vm2, 0.0, %v3995_v51 }
 0x53b   : > { %v4190_v61 = vrot.slane %v4087_v60, 1  ;;  %v4594_v2 = vrot.slane %v4087_v60, 2 }
 0x53c   : > { %v3898_v1 = vadd.f32 %v8624_v6, %v3862_v9 }
 0x53d   : > { %v3703_v20 = vpop.f32.mrf.mxu0 }
 0x53e   : > { %v3930_v22 = vmax.f32 %v3898_v1, 0.0  ;;  %v8698_v62 = vadd.f32 %v3703_v20, %v8508_v48 }
 0x540   : > { %v3996_v33 = vrot.slane %v3930_v22, 7 }
 0x541   : > { %v3792_v28 = vpop.f32.mrf.mxu1 }
 0x542   : > { %v3997_v44 = vsel %vm430_vm2, %v3995_v51, %v3996_v33  ;;  %v4103_v15 = vsel %vm430_vm2, %v3996_v33, 0.0  ;;  %v3863_v21 = vadd.f32 %v3792_v28, %v8496_v26 }
 0x543   : > { %v4191_v55 = vrot.slane %v3997_v44, 1  ;;  %v4193_v54 = vrot.slane %v4103_v15, 1  ;;  %v4595_v30 = vrot.slane %v3997_v44, 2  ;;  %v4597_v9 = vrot.slane %v4103_v15, 2 }
 0x544   : > { %v3899_v47 = vadd.f32 %v8624_v6, %v3863_v21  ;;  %6385 = vmatmul.msk.bf16.gmra.mxu1 %vm2507_vm5, %v10067_v57  ;;  %v8706_v48 = vpack.c.bf16 %v3997_v44, %v4087_v60 }
 0x545   : > { %v8708_v1 = vpop.f32.mrf.mxu0  ;;  %v4192_v20 = vsel %vm615_vm3, %v4190_v61, %v4191_v55  ;;  %v4194_v51 = vsel %vm615_vm3, %v4191_v55, %v4193_v54  ;;  %v4596_v22 = vsel %vm1022_vm4, %v4594_v2, %v4595_v30  ;;  %v4598_v26 = vsel %vm1022_vm4, %v4595_v30, %v4597_v9 }
 0x546   : > { %v3931_v33 = vmax.f32 %v3899_v47, 0.0  ;;  %6416 = vmatmul.msk.bf16.gmra.mxu3 %vm2507_vm5, %v8706_v48  ;;  %v8716_v28 = vpack.c.bf16 %v4194_v51, %v4192_v20  ;;  %v8718_v15 = vpack.c.bf16 %v4598_v26, %v4596_v22 }
 0x548   : > { %10104 = vst [vmem:[#allocation24_spill] sm:$0xff] %v8716_v28  ;;  %6397 = vmatmul.msk.bf16.gmra.mxu2 %vm2507_vm5, %v8716_v28  ;;  %6436 = vmatmul.msk.bf16.gmra.mxu0 %vm2507_vm5, %v8718_v15  ;;  %v3998_v60 = vrot.slane %v3931_v33, 7 }
 0x549   : > { %10105 = vst [vmem:[#allocation27_spill] sm:$0xff] %v8718_v15  ;;  %v3794_v57 = vpop.f32.mrf.mxu1 }
 0x54a   : > { %v3864_v61 = vadd.f32 %v3794_v57, %v8506_v5  ;;  %v4088_v44 = vsel %vm430_vm2, 0.0, %v3998_v60 }
 0x54b   : > { %v4195_v30 = vrot.slane %v4088_v44, 1  ;;  %v4599_v20 = vrot.slane %v4088_v44, 2 }
 0x54c   : > { %v3900_v2 = vadd.f32 %v8624_v6, %v3864_v61 }
 0x54d   : > { %v3708_v47 = vpop.f32.mrf.mxu0 }
 0x54e   : > { %v3932_v21 = vmax.f32 %v3900_v2, 0.0  ;;  %v8728_v55 = vadd.f32 %v3708_v47, %v8528_v42 }
 0x550   : > { %v3999_v54 = vrot.slane %v3932_v21, 7 }
 0x551   : > { %v3797_v9 = vpop.f32.mrf.mxu1 }
 0x552   : > { %v4000_v51 = vsel %vm430_vm2, %v3998_v60, %v3999_v54  ;;  %v4104_v22 = vsel %vm430_vm2, %v3999_v54, 0.0  ;;  %v3865_v26 = vadd.f32 %v3797_v9, %v8516_v14 }
 0x553   : > { %v4196_v5 = vrot.slane %v4000_v51, 1  ;;  %v4198_v33 = vrot.slane %v4104_v22, 1  ;;  %v4600_v57 = vrot.slane %v4000_v51, 2  ;;  %v4602_v61 = vrot.slane %v4104_v22, 2 }
 0x554   : > { %v3901_v28 = vadd.f32 %v8624_v6, %v3865_v26  ;;  %6386 = vmatmul.msk.bf16.gmra.mxu1 %vm2507_vm5, %v10069_v50  ;;  %v8736_v42 = vpack.c.bf16 %v4000_v51, %v4088_v44 }
 0x555   : > { %v8738_v2 = vpop.f32.mrf.mxu0  ;;  %v4197_v47 = vsel %vm615_vm3, %v4195_v30, %v4196_v5  ;;  %v4199_v60 = vsel %vm615_vm3, %v4196_v5, %v4198_v33  ;;  %v4601_v21 = vsel %vm1022_vm4, %v4599_v20, %v4600_v57  ;;  %v4603_v14 = vsel %vm1022_vm4, %v4600_v57, %v4602_v61 }
 0x556   : > { %v3933_v54 = vmax.f32 %v3901_v28, 0.0  ;;  %6417 = vmatmul.msk.bf16.gmra.mxu3 %vm2507_vm5, %v8736_v42  ;;  %v8746_v9 = vpack.c.bf16 %v4199_v60, %v4197_v47  ;;  %v8748_v22 = vpack.c.bf16 %v4603_v14, %v4601_v21  ;;  %v3481_v57 = vadd.f32 %v8383_v32, %v8381_v49 }
 0x558   : > { %10106 = vst [vmem:[#allocation29_spill] sm:$0xff] %v8748_v22  ;;  %6398 = vmatmul.msk.bf16.gmra.mxu2 %vm2507_vm5, %v8746_v9  ;;  %6437 = vmatmul.msk.bf16.gmra.mxu0 %vm2507_vm5, %v8748_v22  ;;  %v4001_v44 = vrot.slane %v3933_v54, 7 }
 0x559   : > { %v3799_v50 = vpop.f32.mrf.mxu1 }
 0x55a   : > { %v3866_v30 = vadd.f32 %v3799_v50, %v8526_v10  ;;  %v4089_v51 = vsel %vm430_vm2, 0.0, %v4001_v44 }
 0x55b   : > { %v4200_v61 = vrot.slane %v4089_v51, 1  ;;  %v4604_v60 = vrot.slane %v4089_v51, 2 }
 0x55c   : > { %v3902_v20 = vadd.f32 %v8624_v6, %v3866_v30 }
 0x55d   : > { %v3713_v28 = vpop.f32.mrf.mxu0 }
 0x55e   : > { %v3934_v26 = vmax.f32 %v3902_v20, 0.0  ;;  %v8758_v5 = vadd.f32 %v3713_v28, %v8547_v36 }
 0x560   : > { %v4002_v33 = vrot.slane %v3934_v26, 7 }
 0x561   : > { %v3802_v47 = vpop.f32.mrf.mxu1 }
 0x562   : > { %v4003_v21 = vsel %vm430_vm2, %v4001_v44, %v4002_v33  ;;  %v4105_v10 = vsel %vm430_vm2, %v4002_v33, 0.0  ;;  %v3867_v14 = vadd.f32 %v3802_v47, %v8536_v12  ;;  %v3610_v33 = vadd.f32 %v8388_v40, %v3481_v57 }
 0x563   : > { %v4201_v54 = vrot.slane %v4003_v21, 1  ;;  %v4203_v50 = vrot.slane %v4105_v10, 1  ;;  %v4605_v30 = vrot.slane %v4003_v21, 2  ;;  %v4607_v20 = vrot.slane %v4105_v10, 2 }
 0x564   : > { %v3903_v36 = vadd.f32 %v8624_v6, %v3867_v14  ;;  %6387 = vmatmul.msk.bf16.gmra.mxu1 %vm2507_vm5, %v8078_v29  ;;  %v8768_v28 = vpack.c.bf16 %v4003_v21, %v4089_v51  ;;  %v3739_v51 = vadd.f32 %v8545_v25, %v3610_v33  ;;  %v3483_v25 = vadd.f32 %v8407_v24, %v8405_v58 }
 0x565   : > { %v8770_v49 = vpop.f32.mrf.mxu0  ;;  %v4202_v32 = vsel %vm615_vm3, %v4200_v61, %v4201_v54  ;;  %v4204_v44 = vsel %vm615_vm3, %v4201_v54, %v4203_v50  ;;  %v4606_v26 = vsel %vm1022_vm4, %v4604_v60, %v4605_v30  ;;  %v4608_v12 = vsel %vm1022_vm4, %v4605_v30, %v4607_v20 }
 0x566   : > { %v3935_v47 = vmax.f32 %v3903_v36, 0.0  ;;  %6418 = vmatmul.msk.bf16.gmra.mxu3 %vm2507_vm5, %v8768_v28  ;;  %v8779_v10 = vpack.c.bf16 %v4204_v44, %v4202_v32  ;;  %v8781_v29 = vpack.c.bf16 %v4608_v12, %v4606_v26  ;;  %v8795_v32 = vpop.f32.mrf.mxu2  ;;  %v8797_v44 = vpop.f32.mrf.mxu3 }
 0x568   : > { %10107 = vst [vmem:[#allocation4_spill] sm:$0xff] %v8781_v29  ;;  %6399 = vmatmul.msk.bf16.gmra.mxu2 %vm2507_vm5, %v8779_v10  ;;  %6438 = vmatmul.msk.bf16.gmra.mxu0 %vm2507_vm5, %v8781_v29  ;;  %v4004_v60 = vrot.slane %v3935_v47, 7 }
 0x569   : > { %v3804_v61 = vpop.f32.mrf.mxu1 }
 0x56a   : > { %v3868_v21 = vadd.f32 %v3804_v61, %v3739_v51  ;;  %v4090_v14 = vsel %vm430_vm2, 0.0, %v4004_v60 }
 0x56b   : > { %v4205_v20 = vrot.slane %v4090_v14, 1  ;;  %v4609_v26 = vrot.slane %v4090_v14, 2 }
 0x56c   : > { %v3904_v40 = vadd.f32 %v8624_v6, %v3868_v21 }
 0x56d   : > { %v3718_v57 = vpop.f32.mrf.mxu0 }
 0x56e   : > { %v3936_v54 = vmax.f32 %v3904_v40, 0.0  ;;  %v8791_v50 = vadd.f32 %v3718_v57, %v8573_v52 }
 0x570   : > { %v4005_v30 = vrot.slane %v3936_v54, 7 }
 0x571   : > { %v3807_v36 = vpop.f32.mrf.mxu1 }
 0x572   : > { %v4006_v12 = vsel %vm430_vm2, %v4004_v60, %v4005_v30  ;;  %v4106_v33 = vsel %vm430_vm2, %v4005_v30, 0.0  ;;  %v3869_v47 = vadd.f32 %v3807_v36, %v8555_v23  ;;  %v3612_v30 = vadd.f32 %v8412_v35, %v3483_v25  ;;  %v4362_v35 = vpop.f32.mrf.mxu2  ;;  %v4504_v25 = vpop.f32.mrf.mxu3 }
 0x573   : > { %v4206_v51 = vrot.slane %v4006_v12, 1  ;;  %v4208_v52 = vrot.slane %v4106_v33, 1  ;;  %v4610_v61 = vrot.slane %v4006_v12, 2  ;;  %v4612_v21 = vrot.slane %v4106_v33, 2 }
 0x574   : > { %v3905_v40 = vadd.f32 %v8624_v6, %v3869_v47  ;;  %6388 = vmatmul.msk.bf16.gmra.mxu1 %vm2507_vm5, %v8106_v43  ;;  %v8805_v58 = vpack.c.bf16 %v4006_v12, %v4090_v14  ;;  %v3741_v14 = vadd.f32 %v8570_v38, %v3612_v30  ;;  %v4505_v47 = vadd.f32 %v4504_v25, %v4362_v35 }
 0x575   : > { %v8807_v24 = vpop.f32.mrf.mxu0  ;;  %v4207_v57 = vsel %vm615_vm3, %v4205_v20, %v4206_v51  ;;  %v4209_v60 = vsel %vm615_vm3, %v4206_v51, %v4208_v52  ;;  %v4611_v54 = vsel %vm1022_vm4, %v4609_v26, %v4610_v61  ;;  %v4613_v23 = vsel %vm1022_vm4, %v4610_v61, %v4612_v21 }
 0x576   : > { %v3937_v36 = vmax.f32 %v3905_v40, 0.0  ;;  %6419 = vmatmul.msk.bf16.gmra.mxu3 %vm2507_vm5, %v8805_v58  ;;  %v8816_v33 = vpack.c.bf16 %v4209_v60, %v4207_v57  ;;  %v8818_v43 = vpack.c.bf16 %v4613_v23, %v4611_v54  ;;  %v3485_v57 = vadd.f32 %v8430_v56, %v8428_v16 }
 0x578   : > { %10108 = vst [vmem:[#allocation31_spill] sm:$0xff] %v8818_v43  ;;  %6400 = vmatmul.msk.bf16.gmra.mxu2 %vm2507_vm5, %v8816_v33  ;;  %6439 = vmatmul.msk.bf16.gmra.mxu0 %vm2507_vm5, %v8818_v43  ;;  %v4007_v26 = vrot.slane %v3937_v36, 7 }
 0x579   : > { %v3809_v20 = vpop.f32.mrf.mxu1 }
 0x57a   : > { %v3870_v12 = vadd.f32 %v3809_v20, %v3741_v14  ;;  %v4091_v61 = vsel %vm430_vm2, 0.0, %v4007_v26 }
 0x57b   : > { %v4210_v60 = vrot.slane %v4091_v61, 1  ;;  %v4614_v23 = vrot.slane %v4091_v61, 2 }
 0x57c   : > { %v3906_v51 = vadd.f32 %v8624_v6, %v3870_v12 }
 0x57d   : > { %v3723_v52 = vpop.f32.mrf.mxu0 }
 0x57e   : > { %v3938_v21 = vmax.f32 %v3906_v51, 0.0  ;;  %v8828_v38 = vadd.f32 %v3723_v52, %v8613_v45 }
 0x580   : > { %v4008_v40 = vrot.slane %v3938_v21, 7  ;;  %v3614_v21 = vadd.f32 %v8435_v34, %v3485_v57 }
 0x581   : > { %v3812_v54 = vpop.f32.mrf.mxu1 }
 0x582   : > { %v4009_v30 = vsel %vm430_vm2, %v4007_v26, %v4008_v40  ;;  %v4107_v36 = vsel %vm430_vm2, %v4008_v40, 0.0  ;;  %v3871_v14 = vadd.f32 %v3812_v54, %v8587_v63 }
 0x583   : > { %v4211_v20 = vrot.slane %v4009_v30, 1  ;;  %v4213_v12 = vrot.slane %v4107_v36, 1  ;;  %v4615_v35 = vrot.slane %v4009_v30, 2  ;;  %v4617_v25 = vrot.slane %v4107_v36, 2 }
 0x584   : > { %v3907_v45 = vadd.f32 %v8624_v6, %v3871_v14  ;;  %6389 = vmatmul.msk.bf16.gmra.mxu1 %vm2507_vm5, %v10100_v8  ;;  %v8838_v51 = vpack.c.bf16 %v4009_v30, %v4091_v61  ;;  %v3743_v30 = vadd.f32 %v8609_v13, %v3614_v21  ;;  %v10110_v13 = vld [vmem:[#allocation25_spill] sm:$0xff] }
 0x585   : > { %v8840_v16 = vpop.f32.mrf.mxu0  ;;  %v4212_v56 = vsel %vm615_vm3, %v4210_v60, %v4211_v20  ;;  %v4214_v26 = vsel %vm615_vm3, %v4211_v20, %v4213_v12  ;;  %v4616_v52 = vsel %vm1022_vm4, %v4614_v23, %v4615_v35  ;;  %v4618_v63 = vsel %vm1022_vm4, %v4615_v35, %v4617_v25 }
 0x586   : > { %v3939_v40 = vmax.f32 %v3907_v45, 0.0  ;;  %6420 = vmatmul.msk.bf16.gmra.mxu3 %vm2507_vm5, %v8838_v51  ;;  %v8849_v54 = vpack.c.bf16 %v4214_v26, %v4212_v56  ;;  %v8851_v61 = vpack.c.bf16 %v4618_v63, %v4616_v52  ;;  %v3487_v25 = vadd.f32 %v10110_v13, %v8451_v53 }
 0x588   : > { %10109 = vst [vmem:[#allocation5_spill] sm:$0xff] %v8851_v61  ;;  %6401 = vmatmul.msk.bf16.gmra.mxu2 %vm2507_vm5, %v8849_v54  ;;  %6440 = vmatmul.msk.bf16.gmra.mxu0 %vm2507_vm5, %v8851_v61  ;;  %v4010_v23 = vrot.slane %v3939_v40, 7 }
 0x589   : > { %v3814_v60 = vpop.f32.mrf.mxu1 }
 0x58a   : > { %v3872_v36 = vadd.f32 %v3814_v60, %v3743_v30  ;;  %v4092_v14 = vsel %vm430_vm2, 0.0, %v4010_v23 }
 0x58b   : > { %v4215_v45 = vrot.slane %v4092_v14, 1  ;;  %v4619_v26 = vrot.slane %v4092_v14, 2 }
 0x58c   : > { %v3908_v34 = vadd.f32 %v8624_v6, %v3872_v36 }
 0x58d   : > { %v4766_v57 = vpop.f32.mrf.mxu0 }
 0x58e   : > { %v3940_v20 = vmax.f32 %v3908_v34, 0.0  ;;  %v8860_v12 = vadd.f32 %v4766_v57, %v4505_v47 }
 0x590   : > { %v4011_v35 = vrot.slane %v3940_v20, 7 }
 0x591   : > { %v3817_v56 = vpop.f32.mrf.mxu1 }
 0x592   : > { %v4012_v52 = vsel %vm430_vm2, %v4010_v23, %v4011_v35  ;;  %v4108_v63 = vsel %vm430_vm2, %v4011_v35, 0.0  ;;  %v3873_v21 = vadd.f32 %v3817_v56, %v8619_v41  ;;  %v10111_v41 = vld [vmem:[#allocation28_spill] sm:$0xff] }
 0x593   : > { %v4216_v40 = vrot.slane %v4012_v52, 1  ;;  %v4218_v30 = vrot.slane %v4108_v63, 1  ;;  %v4620_v60 = vrot.slane %v4012_v52, 2  ;;  %v4622_v36 = vrot.slane %v4108_v63, 2 }
 0x594   : > { %v3909_v47 = vadd.f32 %v8624_v6, %v3873_v21  ;;  %6453 = vmatmul.msk.bf16.vlgmr.msrb.gmra.mxu1 %vm2507_vm5, %v8646_v27  ;;  %v8870_v34 = vpack.c.bf16 %v4012_v52, %v4092_v14  ;;  %v3616_v35 = vadd.f32 %v10111_v41, %v3487_v25 }
 0x595   : > { %v4217_v53 = vsel %vm615_vm3, %v4215_v45, %v4216_v40  ;;  %v4219_v57 = vsel %vm615_vm3, %v4216_v40, %v4218_v30  ;;  %v4621_v23 = vsel %vm1022_vm4, %v4619_v26, %v4620_v60  ;;  %v4623_v20 = vsel %vm1022_vm4, %v4620_v60, %v4622_v36  ;;  %v8888_v25 = vpop.f32.mrf.mxu0  ;;  %v8894_v36 = vpop.f32.mrf.mxu3 }
 0x596   : > { %v3941_v13 = vmax.f32 %v3909_v47, 0.0  ;;  %6421 = vmatmul.msk.bf16.gmra.mxu3 %vm2507_vm5, %v8870_v34  ;;  %v8879_v56 = vpack.c.bf16 %v4219_v57, %v4217_v53  ;;  %v8881_v63 = vpack.c.bf16 %v4623_v20, %v4621_v23  ;;  %v3745_v27 = vadd.f32 %v8632_v7, %v3616_v35  ;;  %10114 = vst [vmem:[#allocation13_spill] sm:$0xff] %v8888_v25 }
 0x597   : > { %v3489_v7 = vadd.f32 %v8473_v59, %v8471_v37  ;;  %10115 = vst [vmem:[#allocation25_spill] sm:$0xff] %v8894_v36 }
 0x598   : > { %10112 = vst [vmem:[#allocation9_spill] sm:$0xff] %v8879_v56  ;;  %6402 = vmatmul.msk.bf16.gmra.mxu2 %vm2507_vm5, %v8879_v56  ;;  %6441 = vmatmul.msk.bf16.gmra.mxu0 %vm2507_vm5, %v8881_v63  ;;  %v4013_v45 = vrot.slane %v3941_v13, 7 }
 0x599   : > { %10113 = vst [vmem:[#allocation8_spill] sm:$0xff] %v8881_v63  ;;  %v3819_v14 = vpop.f32.mrf.mxu1 }
 0x59a   : > { %v3874_v26 = vadd.f32 %v3819_v14, %v3745_v27  ;;  %v4093_v21 = vsel %vm430_vm2, 0.0, %v4013_v45  ;;  %v8899_v14 = vpop.f32.mrf.mxu2 }
 0x59b   : > { %v4220_v60 = vrot.slane %v4093_v21, 1  ;;  %v4624_v53 = vrot.slane %v4093_v21, 2  ;;  %10116 = vst [vmem:[#allocation28_spill] sm:$0xff] %v8899_v14 }
 0x59c   : > { %v3910_v52 = vadd.f32 %v8624_v6, %v3874_v26 }
 0x59e   : > { %v3942_v40 = vmax.f32 %v3910_v52, 0.0 }
 0x5a0   : > { %v4014_v30 = vrot.slane %v3942_v40, 7 }
 0x5a1   : > { %v3822_v47 = vpop.f32.mrf.mxu1 }
 0x5a2   : > { %v4015_v57 = vsel %vm430_vm2, %v4013_v45, %v4014_v30  ;;  %v4109_v23 = vsel %vm430_vm2, %v4014_v30, 0.0  ;;  %v3875_v20 = vadd.f32 %v3822_v47, %v8638_v31  ;;  %v10117_v30 = vld [vmem:[#allocation30_spill] sm:$0xff] }
 0x5a3   : > { %v4221_v41 = vrot.slane %v4015_v57, 1  ;;  %v4223_v35 = vrot.slane %v4109_v23, 1  ;;  %v4625_v13 = vrot.slane %v4015_v57, 2  ;;  %v4627_v27 = vrot.slane %v4109_v23, 2 }
 0x5a4   : > { %v3911_v26 = vadd.f32 %v8624_v6, %v3875_v20  ;;  %6454 = vmatmul.msk.bf16.gmra.mxu1 %vm2507_vm5, %v8676_v3  ;;  %v8904_v37 = vpack.c.bf16 %v4015_v57, %v4093_v21  ;;  %v3618_v47 = vadd.f32 %v10117_v30, %v3489_v7 }
 0x5a5   : > { %v4771_v59 = vpop.f32.mrf.mxu0  ;;  %v4222_v45 = vsel %vm615_vm3, %v4220_v60, %v4221_v41  ;;  %v4224_v52 = vsel %vm615_vm3, %v4221_v41, %v4223_v35  ;;  %v4626_v31 = vsel %vm1022_vm4, %v4624_v53, %v4625_v13  ;;  %v4628_v40 = vsel %vm1022_vm4, %v4625_v13, %v4627_v27 }
 0x5a6   : > { %v3943_v23 = vmax.f32 %v3911_v26, 0.0  ;;  %6422 = vmatmul.msk.bf16.gmra.mxu3 %vm2507_vm5, %v8904_v37  ;;  %v8913_v20 = vpack.c.bf16 %v4224_v52, %v4222_v45  ;;  %v8915_v8 = vpack.c.bf16 %v4628_v40, %v4626_v31  ;;  %v3747_v21 = vadd.f32 %v8648_v11, %v3618_v47 }
 0x5a7   : > { %v3491_v11 = vadd.f32 %v8493_v17, %v8491_v0 }
 0x5a8   : > { %10118 = vst [vmem:[#allocation30_spill] sm:$0xff] %v8913_v20  ;;  %6403 = vmatmul.msk.bf16.gmra.mxu2 %vm2507_vm5, %v8913_v20  ;;  %6442 = vmatmul.msk.bf16.gmra.mxu0 %vm2507_vm5, %v8915_v8  ;;  %v4016_v57 = vrot.slane %v3943_v23, 7 }
 0x5a9   : > { %10119 = vst [vmem:[#allocation32_spill] sm:$0xff] %v8915_v8  ;;  %v4509_v60 = vpop.f32.mrf.mxu3  ;;  %v3824_v53 = vpop.f32.mrf.mxu1 }
 0x5aa   : > { %v3876_v7 = vadd.f32 %v3824_v53, %v3747_v21  ;;  %v4094_v26 = vsel %vm430_vm2, 0.0, %v4016_v57 }
 0x5ab   : > { %v4367_v41 = vpop.f32.mrf.mxu2  ;;  %v4225_v40 = vrot.slane %v4094_v26, 1  ;;  %v4629_v25 = vrot.slane %v4094_v26, 2 }
 0x5ac   : > { %v3912_v35 = vadd.f32 %v8624_v6, %v3876_v7  ;;  %v4510_v13 = vadd.f32 %v4509_v60, %v4367_v41 }
 0x5ad   : > { %v4773_v27 = vpop.f32.mrf.mxu0 }
 0x5ae   : > { %v3944_v45 = vmax.f32 %v3912_v35, 0.0  ;;  %v8924_v52 = vadd.f32 %v4771_v59, %v4510_v13  ;;  %v10120_v13 = vld [vmem:[#allocation6_spill] sm:$0xff] }
 0x5af   : > { %v3620_v36 = vadd.f32 %v10120_v13, %v3491_v11 }
 0x5b0   : > { %v4017_v31 = vrot.slane %v3944_v45, 7 }
 0x5b1   : > { %v4511_v30 = vpop.f32.mrf.mxu3  ;;  %v3827_v47 = vpop.f32.mrf.mxu1 }
 0x5b2   : > { %v4018_v23 = vsel %vm430_vm2, %v4016_v57, %v4017_v31  ;;  %v4110_v21 = vsel %vm430_vm2, %v4017_v31, 0.0  ;;  %v3877_v60 = vadd.f32 %v3827_v47, %v8668_v4 }
 0x5b3   : > { %v4226_v53 = vrot.slane %v4018_v23, 1  ;;  %v4228_v7 = vrot.slane %v4110_v21, 1  ;;  %v4630_v41 = vrot.slane %v4018_v23, 2  ;;  %v4632_v35 = vrot.slane %v4110_v21, 2  ;;  %v4369_v59 = vpop.f32.mrf.mxu2 }
 0x5b4   : > { %v3913_v0 = vadd.f32 %v8624_v6, %v3877_v60  ;;  %v4512_v17 = vadd.f32 %v4511_v30, %v4369_v59  ;;  %6455 = vmatmul.msk.bf16.gmra.mxu1 %vm2507_vm5, %v8706_v48  ;;  %v8935_v45 = vpack.c.bf16 %v4018_v23, %v4094_v26  ;;  %v3749_v26 = vadd.f32 %v8678_v46, %v3620_v36  ;;  %v10123_v46 = vld [vmem:[#allocation7_spill] sm:$0xff] }
 0x5b5   : > { %v4776_v57 = vpop.f32.mrf.mxu0  ;;  %v4227_v31 = vsel %vm615_vm3, %v4225_v40, %v4226_v53  ;;  %v4229_v4 = vsel %vm615_vm3, %v4226_v53, %v4228_v7  ;;  %v4631_v47 = vsel %vm1022_vm4, %v4629_v25, %v4630_v41  ;;  %v4633_v21 = vsel %vm1022_vm4, %v4630_v41, %v4632_v35 }
 0x5b6   : > { %v3945_v14 = vmax.f32 %v3913_v0, 0.0  ;;  %6423 = vmatmul.msk.bf16.gmra.mxu3 %vm2507_vm5, %v8935_v45  ;;  %v8943_v11 = vpack.c.bf16 %v4229_v4, %v4227_v31  ;;  %v8945_v30 = vpack.c.bf16 %v4633_v21, %v4631_v47  ;;  %v8947_v60 = vadd.f32 %v4773_v27, %v4512_v17 }
 0x5b7   : > { %v3493_v36 = vadd.f32 %v10123_v46, %v8511_v19 }
 0x5b8   : > { %10121 = vst [vmem:[#allocation6_spill] sm:$0xff] %v8943_v11  ;;  %6404 = vmatmul.msk.bf16.gmra.mxu2 %vm2507_vm5, %v8943_v11  ;;  %6443 = vmatmul.msk.bf16.gmra.mxu0 %vm2507_vm5, %v8945_v30  ;;  %v4019_v23 = vrot.slane %v3945_v14, 7 }
 0x5b9   : > { %10122 = vst [vmem:[#allocation33_spill] sm:$0xff] %v8945_v30  ;;  %v4514_v25 = vpop.f32.mrf.mxu3  ;;  %v3829_v40 = vpop.f32.mrf.mxu1 }
 0x5ba   : > { %v3878_v53 = vadd.f32 %v3829_v40, %v3749_v26  ;;  %v4095_v27 = vsel %vm430_vm2, 0.0, %v4019_v23 }
 0x5bb   : > { %v4372_v7 = vpop.f32.mrf.mxu2  ;;  %v4230_v31 = vrot.slane %v4095_v27, 1  ;;  %v4634_v21 = vrot.slane %v4095_v27, 2 }
 0x5bc   : > { %v3914_v41 = vadd.f32 %v8624_v6, %v3878_v53  ;;  %v4515_v35 = vadd.f32 %v4514_v25, %v4372_v7 }
 0x5bd   : > { %v4778_v59 = vpop.f32.mrf.mxu0 }
 0x5be   : > { %v3946_v13 = vmax.f32 %v3914_v41, 0.0  ;;  %v8956_v0 = vadd.f32 %v4776_v57, %v4515_v35  ;;  %v10124_v35 = vld [vmem:[#allocation11_spill] sm:$0xff] }
 0x5bf   : > { %v3622_v11 = vadd.f32 %v10124_v35, %v3493_v36 }
 0x5c0   : > { %v4020_v17 = vrot.slane %v3946_v13, 7 }
 0x5c1   : > { %v4516_v4 = vpop.f32.mrf.mxu3  ;;  %v3832_v47 = vpop.f32.mrf.mxu1 }
 0x5c2   : > { %v4021_v14 = vsel %vm430_vm2, %v4019_v23, %v4020_v17  ;;  %v4111_v26 = vsel %vm430_vm2, %v4020_v17, 0.0  ;;  %v3879_v25 = vadd.f32 %v3832_v47, %v8698_v62 }
 0x5c3   : > { %v4231_v40 = vrot.slane %v4021_v14, 1  ;;  %v4233_v53 = vrot.slane %v4111_v26, 1  ;;  %v4635_v7 = vrot.slane %v4021_v14, 2  ;;  %v4637_v41 = vrot.slane %v4111_v26, 2  ;;  %v4374_v57 = vpop.f32.mrf.mxu2 }
 0x5c4   : > { %v3915_v19 = vadd.f32 %v8624_v6, %v3879_v25  ;;  %v4517_v13 = vadd.f32 %v4516_v4, %v4374_v57  ;;  %6456 = vmatmul.msk.bf16.gmra.mxu1 %vm2507_vm5, %v8736_v42  ;;  %v8967_v46 = vpack.c.bf16 %v4021_v14, %v4095_v27  ;;  %v3751_v27 = vadd.f32 %v8708_v1, %v3622_v11  ;;  %v10127_v1 = vld [vmem:[#allocation10_spill] sm:$0xff] }
 0x5c5   : > { %v4781_v23 = vpop.f32.mrf.mxu0  ;;  %v4232_v17 = vsel %vm615_vm3, %v4230_v31, %v4231_v40  ;;  %v4234_v62 = vsel %vm615_vm3, %v4231_v40, %v4233_v53  ;;  %v4636_v47 = vsel %vm1022_vm4, %v4634_v21, %v4635_v7  ;;  %v4638_v26 = vsel %vm1022_vm4, %v4635_v7, %v4637_v41  ;;  %v10128_v11 = vld [vmem:[#allocation14_spill] sm:$0xff] }
 0x5c6   : > { %v3947_v30 = vmax.f32 %v3915_v19, 0.0  ;;  %6424 = vmatmul.msk.bf16.gmra.mxu3 %vm2507_vm5, %v8967_v46  ;;  %v8975_v36 = vpack.c.bf16 %v4234_v62, %v4232_v17  ;;  %v8977_v4 = vpack.c.bf16 %v4638_v26, %v4636_v47  ;;  %v8979_v25 = vadd.f32 %v4778_v59, %v4517_v13 }
 0x5c7   : > { %v3495_v13 = vadd.f32 %v10128_v11, %v10127_v1 }
 0x5c8   : > { %10125 = vst [vmem:[#allocation7_spill] sm:$0xff] %v8975_v36  ;;  %6405 = vmatmul.msk.bf16.gmra.mxu2 %vm2507_vm5, %v8975_v36  ;;  %6444 = vmatmul.msk.bf16.gmra.mxu0 %vm2507_vm5, %v8977_v4  ;;  %v4022_v14 = vrot.slane %v3947_v30, 7 }
 0x5c9   : > { %10126 = vst [vmem:[#allocation11_spill] sm:$0xff] %v8977_v4  ;;  %v4519_v31 = vpop.f32.mrf.mxu3  ;;  %v3834_v21 = vpop.f32.mrf.mxu1 }
 0x5ca   : > { %v3880_v40 = vadd.f32 %v3834_v21, %v3751_v27  ;;  %v4096_v59 = vsel %vm430_vm2, 0.0, %v4022_v14 }
 0x5cb   : > { %v4377_v53 = vpop.f32.mrf.mxu2  ;;  %v4235_v62 = vrot.slane %v4096_v59, 1  ;;  %v4639_v36 = vrot.slane %v4096_v59, 2 }
 0x5cc   : > { %v3916_v7 = vadd.f32 %v8624_v6, %v3880_v40  ;;  %v4520_v41 = vadd.f32 %v4519_v31, %v4377_v53 }
 0x5cd   : > { %v4783_v57 = vpop.f32.mrf.mxu0 }
 0x5ce   : > { %v3948_v35 = vmax.f32 %v3916_v7, 0.0  ;;  %v8988_v19 = vadd.f32 %v4781_v23, %v4520_v41  ;;  %v10129_v41 = vld [vmem:[#allocation12_spill] sm:$0xff] }
 0x5cf   : > { %v3624_v4 = vadd.f32 %v10129_v41, %v3495_v13 }
 0x5d0   : > { %v4023_v17 = vrot.slane %v3948_v35, 7 }
 0x5d1   : > { %v4521_v47 = vpop.f32.mrf.mxu3  ;;  %v3837_v26 = vpop.f32.mrf.mxu1 }
 0x5d2   : > { %v4024_v30 = vsel %vm430_vm2, %v4022_v14, %v4023_v17  ;;  %v4112_v27 = vsel %vm430_vm2, %v4023_v17, 0.0  ;;  %v3881_v31 = vadd.f32 %v3837_v26, %v8728_v55 }
 0x5d3   : > { %v4236_v21 = vrot.slane %v4024_v30, 1  ;;  %v4238_v40 = vrot.slane %v4112_v27, 1  ;;  %v4640_v53 = vrot.slane %v4024_v30, 2  ;;  %v4642_v7 = vrot.slane %v4112_v27, 2  ;;  %v4379_v23 = vpop.f32.mrf.mxu2 }
 0x5d4   : > { %v3917_v1 = vadd.f32 %v8624_v6, %v3881_v31  ;;  %v4522_v35 = vadd.f32 %v4521_v47, %v4379_v23  ;;  %6457 = vmatmul.msk.bf16.gmra.mxu1 %vm2507_vm5, %v8768_v28  ;;  %v8999_v11 = vpack.c.bf16 %v4024_v30, %v4096_v59  ;;  %v3753_v59 = vadd.f32 %v8738_v2, %v3624_v4  ;;  %v10132_v2 = vld [vmem:[#allocation16_spill] sm:$0xff]  ;;  %v10133_v4 = vld [vmem:[#allocation15_spill] sm:$0xff] }
 0x5d5   : > { %v4786_v14 = vpop.f32.mrf.mxu0  ;;  %v4237_v17 = vsel %vm615_vm3, %v4235_v62, %v4236_v21  ;;  %v4239_v55 = vsel %vm615_vm3, %v4236_v21, %v4238_v40  ;;  %v4641_v26 = vsel %vm1022_vm4, %v4639_v36, %v4640_v53  ;;  %v4643_v27 = vsel %vm1022_vm4, %v4640_v53, %v4642_v7 }
 0x5d6   : > { %v3949_v20 = vmax.f32 %v3917_v1, 0.0  ;;  %6425 = vmatmul.msk.bf16.gmra.mxu3 %vm2507_vm5, %v8999_v11  ;;  %v9007_v13 = vpack.c.bf16 %v4239_v55, %v4237_v17  ;;  %v9009_v47 = vpack.c.bf16 %v4643_v27, %v4641_v26  ;;  %v9011_v31 = vadd.f32 %v4783_v57, %v4522_v35 }
 0x5d7   : > { %v3497_v35 = vadd.f32 %v10133_v4, %v10132_v2 }
 0x5d8   : > { %10130 = vst [vmem:[#allocation10_spill] sm:$0xff] %v9007_v13  ;;  %6406 = vmatmul.msk.bf16.gmra.mxu2 %vm2507_vm5, %v9007_v13  ;;  %6445 = vmatmul.msk.bf16.gmra.mxu0 %vm2507_vm5, %v9009_v47  ;;  %v4025_v30 = vrot.slane %v3949_v20, 7 }
 0x5d9   : > { %10131 = vst [vmem:[#allocation14_spill] sm:$0xff] %v9009_v47  ;;  %v4524_v36 = vpop.f32.mrf.mxu3  ;;  %v3839_v62 = vpop.f32.mrf.mxu1 }
 0x5da   : > { %v3882_v21 = vadd.f32 %v3839_v62, %v3753_v59  ;;  %v4097_v57 = vsel %vm430_vm2, 0.0, %v4025_v30 }
 0x5db   : > { %v4382_v40 = vpop.f32.mrf.mxu2  ;;  %v4240_v55 = vrot.slane %v4097_v57, 1  ;;  %v4644_v13 = vrot.slane %v4097_v57, 2 }
 0x5dc   : > { %v3918_v53 = vadd.f32 %v8624_v6, %v3882_v21  ;;  %v4525_v7 = vadd.f32 %v4524_v36, %v4382_v40 }
 0x5dd   : > { %v4788_v23 = vpop.f32.mrf.mxu0 }
 0x5de   : > { %v3950_v41 = vmax.f32 %v3918_v53, 0.0  ;;  %v9020_v1 = vadd.f32 %v4786_v14, %v4525_v7  ;;  %v10134_v7 = vld [vmem:[#allocation18_spill] sm:$0xff] }
 0x5df   : > { %v3626_v47 = vadd.f32 %v10134_v7, %v3497_v35 }
 0x5e0   : > { %v4026_v17 = vrot.slane %v3950_v41, 7 }
 0x5e1   : > { %v4526_v26 = vpop.f32.mrf.mxu3  ;;  %v3842_v27 = vpop.f32.mrf.mxu1 }
 0x5e2   : > { %v4027_v20 = vsel %vm430_vm2, %v4025_v30, %v4026_v17  ;;  %v4113_v59 = vsel %vm430_vm2, %v4026_v17, 0.0  ;;  %v3883_v36 = vadd.f32 %v3842_v27, %v8758_v5 }
 0x5e3   : > { %v4241_v62 = vrot.slane %v4027_v20, 1  ;;  %v4243_v21 = vrot.slane %v4113_v59, 1  ;;  %v4645_v40 = vrot.slane %v4027_v20, 2  ;;  %v4647_v53 = vrot.slane %v4113_v59, 2  ;;  %v4384_v14 = vpop.f32.mrf.mxu2 }
 0x5e4   : > { %v3919_v2 = vadd.f32 %v8624_v6, %v3883_v36  ;;  %v4527_v41 = vadd.f32 %v4526_v26, %v4384_v14  ;;  %6458 = vmatmul.msk.bf16.gmra.mxu1 %vm2507_vm5, %v8805_v58  ;;  %v9031_v4 = vpack.c.bf16 %v4027_v20, %v4097_v57  ;;  %v3755_v57 = vadd.f32 %v8770_v49, %v3626_v47  ;;  %v10137_v49 = vld [vmem:[#allocation17_spill] sm:$0xff]  ;;  %v10138_v47 = vld [vmem:[#allocation20_spill] sm:$0xff] }
 0x5e5   : > { %v4791_v30 = vpop.f32.mrf.mxu0  ;;  %v4242_v17 = vsel %vm615_vm3, %v4240_v55, %v4241_v62  ;;  %v4244_v5 = vsel %vm615_vm3, %v4241_v62, %v4243_v21  ;;  %v4646_v27 = vsel %vm1022_vm4, %v4644_v13, %v4645_v40  ;;  %v4648_v59 = vsel %vm1022_vm4, %v4645_v40, %v4647_v53 }
 0x5e6   : > { %v3951_v8 = vmax.f32 %v3919_v2, 0.0  ;;  %6426 = vmatmul.msk.bf16.gmra.mxu3 %vm2507_vm5, %v9031_v4  ;;  %v9039_v35 = vpack.c.bf16 %v4244_v5, %v4242_v17  ;;  %v9041_v26 = vpack.c.bf16 %v4648_v59, %v4646_v27  ;;  %v9043_v36 = vadd.f32 %v4788_v23, %v4527_v41 }
 0x5e7   : > { %v3499_v41 = vadd.f32 %v10138_v47, %v10137_v49  ;;  %v9066_v49 = vld [vmem:[%s9844_s4] ss:$0 sm:$0xff] }
 0x5e8   : > { %10135 = vst [vmem:[#allocation12_spill] sm:$0xff] %v9039_v35  ;;  %6407 = vmatmul.msk.bf16.gmra.mxu2 %vm2507_vm5, %v9039_v35  ;;  %6446 = vmatmul.msk.bf16.gmra.mxu0 %vm2507_vm5, %v9041_v26  ;;  %v4028_v20 = vrot.slane %v3951_v8, 7 }
 0x5e9   : > { %10136 = vst [vmem:[#allocation16_spill] sm:$0xff] %v9041_v26  ;;  %v4529_v13 = vpop.f32.mrf.mxu3  ;;  %v3844_v55 = vpop.f32.mrf.mxu1 }
 0x5ea   : > { %v3884_v62 = vadd.f32 %v3844_v55, %v3755_v57  ;;  %v4098_v23 = vsel %vm430_vm2, 0.0, %v4028_v20 }
 0x5eb   : > { %v4387_v21 = vpop.f32.mrf.mxu2  ;;  %v4245_v5 = vrot.slane %v4098_v23, 1  ;;  %v4649_v35 = vrot.slane %v4098_v23, 2 }
 0x5ec   : > { %v3920_v40 = vadd.f32 %v8624_v6, %v3884_v62  ;;  %v4530_v53 = vadd.f32 %v4529_v13, %v4387_v21 }
 0x5ed   : > { %v4793_v14 = vpop.f32.mrf.mxu0 }
 0x5ee   : > { %v3952_v7 = vmax.f32 %v3920_v40, 0.0  ;;  %v9052_v2 = vadd.f32 %v4791_v30, %v4530_v53  ;;  %v6511_v40 = vld [vmem:[%s9845_s5 + $0x30] sm:$0xf]  ;;  %v10139_v53 = vld [vmem:[#allocation19_spill] sm:$0xff] }
 0x5f0   : > { %v4029_v17 = vrot.slane %v3952_v7, 7  ;;  %v3628_v7 = vadd.f32 %v10139_v53, %v3499_v41 }
 0x5f1   : > { %v4531_v27 = vpop.f32.mrf.mxu3  ;;  %v3847_v59 = vpop.f32.mrf.mxu1 }
 0x5f2   : > { %v4030_v8 = vsel %vm430_vm2, %v4028_v20, %v4029_v17  ;;  %v4114_v57 = vsel %vm430_vm2, %v4029_v17, 0.0  ;;  %v3885_v6 = vadd.f32 %v3847_v59, %v8791_v50  ;;  %v6603_v17 = vld [vmem:[%s9845_s5 + $0x30] sm:$0x30]  ;;  %v3757_v56 = vadd.f32 %v8807_v24, %v3628_v7 }
 0x5f3   : > { %v4246_v13 = vrot.slane %v4030_v8, 1  ;;  %v4248_v55 = vrot.slane %v4114_v57, 1  ;;  %v4650_v62 = vrot.slane %v4030_v8, 2  ;;  %v4652_v21 = vrot.slane %v4114_v57, 2  ;;  %v4389_v30 = vpop.f32.mrf.mxu2 }
 0x5f4   : > { %v3921_v20 = vadd.f32 %v9066_v49, %v3885_v6  ;;  %v4532_v47 = vadd.f32 %v4531_v27, %v4389_v30  ;;  %6459 = vmatmul.msk.bf16.gmra.mxu1 %vm2507_vm5, %v8838_v51  ;;  %v9071_v50 = vpack.c.bf16 %v4030_v8, %v4098_v23  ;;  %v6512_v8 = vor.u32 %v6603_v17, %v6511_v40 }
 0x5f5   : > { %v4796_v59 = vpop.f32.mrf.mxu0  ;;  %v4247_v41 = vsel %vm615_vm3, %v4245_v5, %v4246_v13  ;;  %v4249_v57 = vsel %vm615_vm3, %v4246_v13, %v4248_v55  ;;  %v4651_v53 = vsel %vm1022_vm4, %v4649_v35, %v4650_v62  ;;  %v4653_v26 = vsel %vm1022_vm4, %v4650_v62, %v4652_v21  ;;  %v5764_v21 = vld [vmem:[%s9847_s7] sm:$0x3] }
 0x5f6   : > { %v3953_v6 = vmax.f32 %v3921_v20, 0.0  ;;  %6427 = vmatmul.msk.bf16.gmra.mxu3 %vm2507_vm5, %v9071_v50  ;;  %v9082_v27 = vpack.c.bf16 %v4249_v57, %v4247_v41  ;;  %v9084_v23 = vpack.c.bf16 %v4653_v26, %v4651_v53  ;;  %v9086_v30 = vadd.f32 %v4793_v14, %v4532_v47  ;;  %v6550_v26 = vld [vmem:[%s9845_s5 + $0x40] sm:$0xf]  ;;  %v6605_v14 = vld [vmem:[%s9845_s5 + $0x40] sm:$0x30] }
 0x5f7   : > { %v5299_v35 = vsel %vm1022_vm4, %v6512_v8, 0  ;;  %v6551_v62 = vor.u32 %v6605_v14, %v6550_v26  ;;  %v5818_v7 = vsel %vm789_vm0, %v5764_v21, 0  ;;  %v6530_v41 = vld [vmem:[%s9845_s5 + $0x38] sm:$0xf] }
 0x5f8   : > { %10140 = vst [vmem:[#allocation15_spill] sm:$0xff] %v9082_v27  ;;  %6408 = vmatmul.msk.bf16.gmra.mxu2 %vm2507_vm5, %v9082_v27  ;;  %6447 = vmatmul.msk.bf16.gmra.mxu0 %vm2507_vm5, %v9084_v23  ;;  %v4031_v24 = vrot.slane %v3953_v6, 7 }
 0x5f9   : > { %v4534_v5 = vpop.f32.mrf.mxu3  ;;  %v3849_v13 = vpop.f32.mrf.mxu1  ;;  %5308 = vmatpush.bf16.msra.mxu0 %v5299_v35  ;;  %v5557_v17 = vsel %vm1022_vm4, %v6551_v62, 0  ;;  %5827 = vmatpush.bf16.msra.mxu3 %v5818_v7 }
 0x5fa   : > { %v3886_v55 = vadd.f32 %v3849_v13, %v3757_v56  ;;  %v6604_v56 = vld [vmem:[%s9845_s5 + $0x38] sm:$0x30]  ;;  %5566 = vmatpush.bf16.msra.mxu2 %v5557_v17  ;;  %v4099_v6 = vsel %vm430_vm2, 0.0, %v4031_v24  ;;  %v10141_v13 = vld [vmem:[#allocation23_spill] sm:$0xff] }
 0x5fb   : > { %v4392_v40 = vpop.f32.mrf.mxu2  ;;  %v6531_v53 = vor.u32 %v6604_v56, %v6530_v41  ;;  %v3501_v26 = vadd.f32 %v8795_v32, %v10141_v13 }
 0x5fc   : > { %v3922_v20 = vadd.f32 %v9066_v49, %v3886_v55  ;;  %v4535_v47 = vadd.f32 %v4534_v5, %v4392_v40  ;;  %v4250_v55 = vrot.slane %v4099_v6, 1  ;;  %v4654_v40 = vrot.slane %v4099_v6, 2 }
 0x5fd   : > { %v4798_v57 = vpop.f32.mrf.mxu0  ;;  %v5428_v5 = vsel %vm1022_vm4, %v6531_v53, 0  ;;  %v3630_v27 = vadd.f32 %v8797_v44, %v3501_v26 }
 0x5fe   : > { %v3954_v8 = vmax.f32 %v3922_v20, 0.0  ;;  %v9113_v35 = vadd.f32 %v4796_v59, %v4535_v47  ;;  %5437 = vmatpush.bf16.msra.mxu1 %v5428_v5 }
 0x600   : > { %v4032_v14 = vrot.slane %v3954_v8, 7 }
 0x601   : > { %v4536_v62 = vpop.f32.mrf.mxu3  ;;  %v3852_v21 = vpop.f32.mrf.mxu1 }
 0x602   : > { %v4033_v7 = vsel %vm430_vm2, %v4031_v24, %v4032_v14  ;;  %v4115_v17 = vsel %vm430_vm2, %v4032_v14, 0.0  ;;  %v3887_v41 = vadd.f32 %v3852_v21, %v8828_v38 }
 0x603   : > { %v4251_v20 = vrot.slane %v4033_v7, 1  ;;  %v4253_v59 = vrot.slane %v4115_v17, 1  ;;  %v4655_v47 = vrot.slane %v4033_v7, 2  ;;  %v4657_v56 = vrot.slane %v4115_v17, 2  ;;  %v4394_v53 = vpop.f32.mrf.mxu2 }
 0x604   : > { %v3923_v32 = vadd.f32 %v9066_v49, %v3887_v41  ;;  %v4537_v8 = vadd.f32 %v4536_v62, %v4394_v53  ;;  %6460 = vmatmul.msk.bf16.gmra.mxu1 %vm2507_vm5, %v8870_v34  ;;  %v9125_v5 = vpack.c.bf16 %v4033_v7, %v4099_v6  ;;  %v3759_v6 = vadd.f32 %v8840_v16, %v3630_v27 }
 0x605   : > { %v4801_v24 = vpop.f32.mrf.mxu0  ;;  %v4252_v13 = vsel %vm615_vm3, %v4250_v55, %v4251_v20  ;;  %v4254_v38 = vsel %vm615_vm3, %v4251_v20, %v4253_v59  ;;  %v4656_v14 = vsel %vm1022_vm4, %v4654_v40, %v4655_v47  ;;  %v4658_v21 = vsel %vm1022_vm4, %v4655_v47, %v4657_v56 }
 0x606   : > { %v3955_v17 = vmax.f32 %v3923_v32, 0.0  ;;  %6428 = vmatmul.msk.bf16.gmra.mxu3 %vm2507_vm5, %v9125_v5  ;;  %v9133_v44 = vpack.c.bf16 %v4254_v38, %v4252_v13  ;;  %v9135_v26 = vpack.c.bf16 %v4658_v21, %v4656_v14  ;;  %v9137_v62 = vadd.f32 %v4798_v57, %v4537_v8 }
 0x608   : > { %6409 = vmatmul.msk.bf16.gmra.mxu2 %vm2507_vm5, %v9133_v44  ;;  %6448 = vmatmul.msk.bf16.gmra.mxu0 %vm2507_vm5, %v9135_v26  ;;  %v4034_v7 = vrot.slane %v3955_v17, 7 }
 0x609   : > { %v4539_v55 = vpop.f32.mrf.mxu3  ;;  %v3854_v40 = vpop.f32.mrf.mxu1 }
 0x60a   : > { %v3888_v41 = vadd.f32 %v3854_v40, %v3759_v6  ;;  %v4100_v57 = vsel %vm430_vm2, 0.0, %v4034_v7 }
 0x60b   : > { %v4397_v20 = vpop.f32.mrf.mxu2  ;;  %v5013_v27 = vrot.slane %v4100_v57, 1  ;;  %v5153_v38 = vrot.slane %v4100_v57, 2 }
 0x60c   : > { %v3924_v59 = vadd.f32 %v9066_v49, %v3888_v41  ;;  %v4540_v47 = vadd.f32 %v4539_v55, %v4397_v20 }
 0x60d   : > { %v4803_v56 = vpop.f32.mrf.mxu0 }
 0x60e   : > { %v3956_v53 = vmax.f32 %v3924_v59, 0.0  ;;  %v9146_v32 = vadd.f32 %v4801_v24, %v4540_v47 }
 0x610   : > { %v4035_v16 = vrot.slane %v3956_v53, 7 }
 0x611   : > { %v4541_v8 = vpop.f32.mrf.mxu3  ;;  %v4899_v13 = vpop.f32.mrf.mxu1 }
 0x612   : > { %v4036_v14 = vsel %vm430_vm2, %v4034_v7, %v4035_v16  ;;  %v4116_v21 = vsel %vm430_vm2, %v4035_v16, 0.0  ;;  %v9151_v17 = vadd.f32 %v4899_v13, %v8860_v12 }
 0x613   : > { %v5014_v49 = vrot.slane %v4036_v14, 1  ;;  %v5016_v6 = vrot.slane %v4116_v21, 1  ;;  %v5154_v55 = vrot.slane %v4036_v14, 2  ;;  %v5156_v40 = vrot.slane %v4116_v21, 2  ;;  %v4399_v41 = vpop.f32.mrf.mxu2 }
 0x614   : > { %v4542_v20 = vadd.f32 %v4541_v8, %v4399_v41  ;;  %6461 = vmatmul.msk.bf16.gmra.mxu1 %vm2507_vm5, %v8904_v37  ;;  %v9155_v24 = vpack.c.bf16 %v4036_v14, %v4100_v57  ;;  %v10142_v57 = vld [vmem:[#allocation22_spill] sm:$0xff] }
 0x615   : > { %v4806_v59 = vpop.f32.mrf.mxu0  ;;  %v5155_v47 = vsel %vm1022_vm4, %v5153_v38, %v5154_v55  ;;  %v5157_v7 = vsel %vm1022_vm4, %v5154_v55, %v5156_v40  ;;  %v5015_v53 = vsel %vm615_vm3, %v5013_v27, %v5014_v49  ;;  %v5017_v12 = vsel %vm615_vm3, %v5014_v49, %v5016_v6 }
 0x616   : > { %6493 = vmatmul.msk.bf16.vlgmr.msrb.gmra.mxu3 %vm2507_vm5, %v8658_v18  ;;  %v9163_v16 = vadd.f32 %v4803_v56, %v4542_v20  ;;  %v9165_v8 = vpack.c.bf16 %v5157_v7, %v5155_v47  ;;  %v9167_v13 = vpack.c.bf16 %v5017_v12, %v5015_v53  ;;  %v10143_v47 = vld [vmem:[#allocation26_spill] sm:$0xff] }
 0x618   : > { %6473 = vmatmul.msk.bf16.vlgmr.msrb.gmra.mxu2 %vm2507_vm5, %v10142_v57  ;;  %6513 = vmatmul.msk.bf16.vlgmr.msra.gmra.mxu0 %vm2507_vm5, %v8676_v3 }
 0x619   : > { %v4544_v38 = vpop.f32.mrf.mxu3  ;;  %v9173_v14 = vpop.f32.mrf.mxu1 }
 0x61b   : > { %v4402_v27 = vpop.f32.mrf.mxu2 }
 0x61c   : > { %v4545_v21 = vadd.f32 %v4544_v38, %v4402_v27 }
 0x61d   : > { %v4808_v49 = vpop.f32.mrf.mxu0 }
 0x61e   : > { %v9175_v6 = vadd.f32 %v4806_v59, %v4545_v21 }
 0x621   : > { %v4546_v18 = vpop.f32.mrf.mxu3  ;;  %v4904_v56 = vpop.f32.mrf.mxu1 }
 0x622   : > { %v9178_v55 = vadd.f32 %v4904_v56, %v8924_v52 }
 0x623   : > { %v4404_v40 = vpop.f32.mrf.mxu2 }
 0x624   : > { %v4547_v41 = vadd.f32 %v4546_v18, %v4404_v40  ;;  %6462 = vmatmul.msk.bf16.gmra.mxu1 %vm2507_vm5, %v8935_v45  ;;  %v10144_v40 = vld [vmem:[#allocation24_spill] sm:$0xff] }
 0x625   : > { %v4811_v20 = vpop.f32.mrf.mxu0 }
 0x626   : > { %6494 = vmatmul.msk.bf16.gmra.mxu3 %vm2507_vm5, %v8688_v39  ;;  %v9184_v3 = vadd.f32 %v4808_v49, %v4547_v41  ;;  %v10149_v39 = vld [vmem:[#allocation32_spill] sm:$0xff] }
 0x628   : > { %6474 = vmatmul.msk.bf16.gmra.mxu2 %vm2507_vm5, %v10143_v47  ;;  %6514 = vmatmul.msk.bf16.gmra.mxu0 %vm2507_vm5, %v8706_v48 }
 0x629   : > { %v4549_v59 = vpop.f32.mrf.mxu3  ;;  %v4906_v52 = vpop.f32.mrf.mxu1 }
 0x62a   : > { %v9191_v7 = vadd.f32 %v4906_v52, %v8947_v60 }
 0x62b   : > { %v4407_v53 = vpop.f32.mrf.mxu2 }
 0x62c   : > { %v4550_v12 = vadd.f32 %v4549_v59, %v4407_v53 }
 0x62d   : > { %v4813_v57 = vpop.f32.mrf.mxu0 }
 0x62e   : > { %v9193_v38 = vadd.f32 %v4811_v20, %v4550_v12 }
 0x631   : > { %v4551_v27 = vpop.f32.mrf.mxu3  ;;  %v4909_v21 = vpop.f32.mrf.mxu1 }
 0x632   : > { %v9196_v49 = vadd.f32 %v4909_v21, %v8956_v0 }
 0x633   : > { %v4409_v18 = vpop.f32.mrf.mxu2 }
 0x634   : > { %v4552_v56 = vadd.f32 %v4551_v27, %v4409_v18  ;;  %6463 = vmatmul.msk.bf16.gmra.mxu1 %vm2507_vm5, %v8967_v46 }
 0x635   : > { %v4816_v48 = vpop.f32.mrf.mxu0 }
 0x636   : > { %6495 = vmatmul.msk.bf16.gmra.mxu3 %vm2507_vm5, %v8718_v15  ;;  %v9202_v60 = vadd.f32 %v4813_v57, %v4552_v56 }
 0x638   : > { %6475 = vmatmul.msk.bf16.gmra.mxu2 %vm2507_vm5, %v10144_v40  ;;  %6515 = vmatmul.msk.bf16.gmra.mxu0 %vm2507_vm5, %v8736_v42 }
 0x639   : > { %v4554_v41 = vpop.f32.mrf.mxu3  ;;  %v4911_v0 = vpop.f32.mrf.mxu1 }
 0x63a   : > { %v9209_v20 = vadd.f32 %v4911_v0, %v8979_v25 }
 0x63b   : > { %v4412_v59 = vpop.f32.mrf.mxu2 }
 0x63c   : > { %v4555_v52 = vadd.f32 %v4554_v41, %v4412_v59 }
 0x63d   : > { %v4818_v53 = vpop.f32.mrf.mxu0 }
 0x63e   : > { %v9211_v12 = vadd.f32 %v4816_v48, %v4555_v52 }
 0x641   : > { %v4556_v27 = vpop.f32.mrf.mxu3  ;;  %v4914_v21 = vpop.f32.mrf.mxu1 }
 0x642   : > { %v9214_v57 = vadd.f32 %v4914_v21, %v8988_v19 }
 0x643   : > { %v4414_v18 = vpop.f32.mrf.mxu2 }
 0x644   : > { %v4557_v56 = vadd.f32 %v4556_v27, %v4414_v18  ;;  %6464 = vmatmul.msk.bf16.gmra.mxu1 %vm2507_vm5, %v8999_v11 }
 0x645   : > { %v4821_v42 = vpop.f32.mrf.mxu0 }
 0x646   : > { %6496 = vmatmul.msk.bf16.gmra.mxu3 %vm2507_vm5, %v8748_v22  ;;  %v9220_v25 = vadd.f32 %v4818_v53, %v4557_v56 }
 0x648   : > { %6476 = vmatmul.msk.bf16.gmra.mxu2 %vm2507_vm5, %v8746_v9  ;;  %6516 = vmatmul.msk.bf16.gmra.mxu0 %vm2507_vm5, %v8768_v28 }
 0x649   : > { %v4559_v48 = vpop.f32.mrf.mxu3  ;;  %v4916_v19 = vpop.f32.mrf.mxu1 }
 0x64a   : > { %v9227_v41 = vadd.f32 %v4916_v19, %v9011_v31 }
 0x64b   : > { %v4417_v0 = vpop.f32.mrf.mxu2 }
 0x64c   : > { %v4560_v59 = vadd.f32 %v4559_v48, %v4417_v0 }
 0x64d   : > { %v4823_v52 = vpop.f32.mrf.mxu0 }
 0x64e   : > { %v9229_v27 = vadd.f32 %v4821_v42, %v4560_v59 }
 0x651   : > { %v4561_v21 = vpop.f32.mrf.mxu3  ;;  %v4919_v18 = vpop.f32.mrf.mxu1 }
 0x652   : > { %v9232_v53 = vadd.f32 %v4919_v18, %v9020_v1 }
 0x653   : > { %v4419_v56 = vpop.f32.mrf.mxu2 }
 0x654   : > { %v4562_v22 = vadd.f32 %v4561_v21, %v4419_v56  ;;  %6465 = vmatmul.msk.bf16.gmra.mxu1 %vm2507_vm5, %v9031_v4 }
 0x655   : > { %v4826_v28 = vpop.f32.mrf.mxu0 }
 0x656   : > { %6497 = vmatmul.msk.bf16.gmra.mxu3 %vm2507_vm5, %v8781_v29  ;;  %v9238_v31 = vadd.f32 %v4823_v52, %v4562_v22 }
 0x658   : > { %6477 = vmatmul.msk.bf16.gmra.mxu2 %vm2507_vm5, %v8779_v10  ;;  %6517 = vmatmul.msk.bf16.gmra.mxu0 %vm2507_vm5, %v8805_v58 }
 0x659   : > { %v4564_v42 = vpop.f32.mrf.mxu3  ;;  %v4921_v1 = vpop.f32.mrf.mxu1 }
 0x65a   : > { %v9245_v48 = vadd.f32 %v4921_v1, %v9043_v36 }
 0x65b   : > { %v4422_v19 = vpop.f32.mrf.mxu2 }
 0x65c   : > { %v4565_v0 = vadd.f32 %v4564_v42, %v4422_v19 }
 0x65d   : > { %v4828_v59 = vpop.f32.mrf.mxu0 }
 0x65e   : > { %v9247_v21 = vadd.f32 %v4826_v28, %v4565_v0 }
 0x661   : > { %v4566_v18 = vpop.f32.mrf.mxu3  ;;  %v4924_v56 = vpop.f32.mrf.mxu1 }
 0x662   : > { %v9250_v22 = vadd.f32 %v4924_v56, %v9052_v2 }
 0x663   : > { %v4424_v52 = vpop.f32.mrf.mxu2 }
 0x664   : > { %v4567_v29 = vadd.f32 %v4566_v18, %v4424_v52  ;;  %6466 = vmatmul.msk.bf16.gmra.mxu1 %vm2507_vm5, %v9071_v50 }
 0x665   : > { %v4831_v58 = vpop.f32.mrf.mxu0 }
 0x666   : > { %6498 = vmatmul.msk.bf16.gmra.mxu3 %vm2507_vm5, %v8818_v43  ;;  %v9256_v36 = vadd.f32 %v4828_v59, %v4567_v29 }
 0x668   : > { %6478 = vmatmul.msk.bf16.gmra.mxu2 %vm2507_vm5, %v8816_v33  ;;  %6518 = vmatmul.msk.bf16.gmra.mxu0 %vm2507_vm5, %v8838_v51 }
 0x669   : > { %v4569_v28 = vpop.f32.mrf.mxu3  ;;  %v4926_v2 = vpop.f32.mrf.mxu1 }
 0x66a   : > { %v9263_v42 = vadd.f32 %v4926_v2, %v9086_v30 }
 0x66b   : > { %v4427_v1 = vpop.f32.mrf.mxu2 }
 0x66c   : > { %v4570_v19 = vadd.f32 %v4569_v28, %v4427_v1 }
 0x66d   : > { %v4833_v0 = vpop.f32.mrf.mxu0 }
 0x66e   : > { %v9265_v18 = vadd.f32 %v4831_v58, %v4570_v19 }
 0x671   : > { %v4571_v56 = vpop.f32.mrf.mxu3  ;;  %v4929_v52 = vpop.f32.mrf.mxu1 }
 0x672   : > { %v9268_v29 = vadd.f32 %v4929_v52, %v9113_v35 }
 0x673   : > { %v4429_v59 = vpop.f32.mrf.mxu2 }
 0x674   : > { %v4572_v43 = vadd.f32 %v4571_v56, %v4429_v59  ;;  %6467 = vmatmul.msk.bf16.gmra.mxu1 %vm2507_vm5, %v9125_v5 }
 0x675   : > { %v4836_v51 = vpop.f32.mrf.mxu0 }
 0x676   : > { %6499 = vmatmul.msk.bf16.gmra.mxu3 %vm2507_vm5, %v8851_v61  ;;  %v9274_v30 = vadd.f32 %v4833_v0, %v4572_v43 }
 0x678   : > { %6479 = vmatmul.msk.bf16.gmra.mxu2 %vm2507_vm5, %v8849_v54  ;;  %6519 = vmatmul.msk.bf16.gmra.mxu0 %vm2507_vm5, %v8870_v34 }
 0x679   : > { %v4574_v58 = vpop.f32.mrf.mxu3  ;;  %v4931_v35 = vpop.f32.mrf.mxu1 }
 0x67a   : > { %v9281_v28 = vadd.f32 %v4931_v35, %v9137_v62 }
 0x67b   : > { %v4432_v2 = vpop.f32.mrf.mxu2 }
 0x67c   : > { %v4575_v1 = vadd.f32 %v4574_v58, %v4432_v2  ;;  %v10146_v58 = vld [vmem:[#allocation9_spill] sm:$0xff] }
 0x67d   : > { %v4838_v19 = vpop.f32.mrf.mxu0 }
 0x67e   : > { %v9283_v56 = vadd.f32 %v4836_v51, %v4575_v1 }
 0x681   : > { %v4576_v52 = vpop.f32.mrf.mxu3  ;;  %v4934_v59 = vpop.f32.mrf.mxu1 }
 0x682   : > { %v9286_v43 = vadd.f32 %v4934_v59, %v9146_v32 }
 0x683   : > { %v4434_v0 = vpop.f32.mrf.mxu2 }
 0x684   : > { %10145 = vst [vmem:[#allocation18_spill] sm:$0xff] %v9286_v43  ;;  %v4577_v61 = vadd.f32 %v4576_v52, %v4434_v0  ;;  %6468 = vmatmul.msk.bf16.gmra.mxu1 %vm2507_vm5, %v9155_v24 }
 0x685   : > { %v4841_v34 = vpop.f32.mrf.mxu0 }
 0x686   : > { %6500 = vmatmul.msk.bf16.gmra.mxu3 %vm2507_vm5, %v8881_v63  ;;  %v9292_v62 = vadd.f32 %v4838_v19, %v4577_v61 }
 0x688   : > { %6480 = vmatmul.msk.bf16.gmra.mxu2 %vm2507_vm5, %v10146_v58  ;;  %6520 = vmatmul.msk.bf16.gmra.mxu0 %vm2507_vm5, %v8904_v37 }
 0x689   : > { %v4579_v51 = vpop.f32.mrf.mxu3  ;;  %v4936_v32 = vpop.f32.mrf.mxu1 }
 0x68a   : > { %v9299_v35 = vadd.f32 %v4936_v32, %v9163_v16 }
 0x68b   : > { %v4437_v2 = vpop.f32.mrf.mxu2 }
 0x68c   : > { %10147 = vst [vmem:[#allocation17_spill] sm:$0xff] %v9299_v35  ;;  %v4580_v1 = vadd.f32 %v4579_v51, %v4437_v2  ;;  %v10151_v51 = vld [vmem:[#allocation30_spill] sm:$0xff]  ;;  %v10152_v2 = vld [vmem:[#allocation28_spill] sm:$0xff] }
 0x68d   : > { %v4843_v52 = vpop.f32.mrf.mxu0 }
 0x68e   : > { %v9301_v59 = vadd.f32 %v4841_v34, %v4580_v1 }
 0x691   : > { %v4581_v0 = vpop.f32.mrf.mxu3  ;;  %v4939_v63 = vpop.f32.mrf.mxu1 }
 0x692   : > { %v9304_v61 = vadd.f32 %v4939_v63, %v9175_v6 }
 0x693   : > { %v4439_v19 = vpop.f32.mrf.mxu2 }
 0x694   : > { %10148 = vst [vmem:[#allocation20_spill] sm:$0xff] %v9304_v61  ;;  %v4582_v15 = vadd.f32 %v4581_v0, %v4439_v19  ;;  %6532 = vmatmul.msk.bf16.vlgmr.msra.gmra.mxu1 %vm2507_vm5, %v10143_v47  ;;  %v10153_v47 = vld [vmem:[#allocation25_spill] sm:$0xff] }
 0x695   : > { %v5310_v37 = vpop.f32.mrf.mxu0  ;;  %v4507_v1 = vadd.f32 %v10153_v47, %v10152_v2 }
 0x696   : > { %6501 = vmatmul.msk.bf16.gmra.mxu3 %vm2507_vm5, %v10149_v39  ;;  %v9310_v16 = vadd.f32 %v4843_v52, %v4582_v15  ;;  %v10154_v52 = vld [vmem:[#allocation13_spill] sm:$0xff] }
 0x697   : > { %v4847_v39 = vadd.f32 %v10154_v52, %v4507_v1 }
 0x698   : > { %10150 = vst [vmem:[#allocation19_spill] sm:$0xff] %v9310_v16  ;;  %6481 = vmatmul.msk.bf16.gmra.mxu2 %vm2507_vm5, %v10151_v51  ;;  %6521 = vmatmul.msk.bf16.gmra.mxu0 %vm2507_vm5, %v8935_v45 }
 0x699   : > { %v5181_v34 = vpop.f32.mrf.mxu3  ;;  %v4941_v63 = vpop.f32.mrf.mxu1  ;;  %v4980_v45 = vadd.f32 %v9173_v14, %v4847_v39 }
 0x69a   : > { %v9317_v6 = vadd.f32 %v4941_v63, %v9184_v3 }
 0x69b   : > { %v5041_v32 = vpop.f32.mrf.mxu2 }
 0x69c   : > { %v5121_v0 = vadd.f32 %v5041_v32, %v9151_v17  ;;  %v10155_v32 = vld [vmem:[#allocation33_spill] sm:$0xff] }
 0x69d   : > { %v5312_v19 = vpop.f32.mrf.mxu0 }
 0x69e   : > { %v5261_v15 = vadd.f32 %v5181_v34, %v5121_v0  ;;  %v10156_v34 = vld [vmem:[#allocation6_spill] sm:$0xff] }
 0x6a0   : > { %v9323_v61 = vadd.f32 %v5310_v37, %v5261_v15 }
 0x6a1   : > { %v5183_v35 = vpop.f32.mrf.mxu3  ;;  %v4944_v43 = vpop.f32.mrf.mxu1 }
 0x6a2   : > { %v9327_v16 = vadd.f32 %v4944_v43, %v9193_v38 }
 0x6a3   : > { %v5043_v3 = vpop.f32.mrf.mxu2 }
 0x6a4   : > { %v5122_v63 = vadd.f32 %v5043_v3, %v4980_v45  ;;  %6533 = vmatmul.msk.bf16.gmra.mxu1 %vm2507_vm5, %v10144_v40  ;;  %v10157_v45 = vld [vmem:[#allocation11_spill] sm:$0xff] }
 0x6a5   : > { %v5315_v2 = vpop.f32.mrf.mxu0  ;;  %v10158_v3 = vld [vmem:[#allocation7_spill] sm:$0xff] }
 0x6a6   : > { %v5262_v17 = vadd.f32 %v5183_v35, %v5122_v63  ;;  %6502 = vmatmul.msk.bf16.gmra.mxu3 %vm2507_vm5, %v10155_v32 }
 0x6a8   : > { %6482 = vmatmul.msk.bf16.gmra.mxu2 %vm2507_vm5, %v10156_v34  ;;  %6522 = vmatmul.msk.bf16.gmra.mxu0 %vm2507_vm5, %v8967_v46  ;;  %v9337_v39 = vadd.f32 %v5312_v19, %v5262_v17 }
 0x6a9   : > { %v5186_v14 = vpop.f32.mrf.mxu3  ;;  %v4946_v38 = vpop.f32.mrf.mxu1 }
 0x6aa   : > { %v9340_v43 = vadd.f32 %v4946_v38, %v9202_v60 }
 0x6ab   : > { %v5046_v37 = vpop.f32.mrf.mxu2 }
 0x6ac   : > { %v5123_v40 = vadd.f32 %v5046_v37, %v9178_v55 }
 0x6ad   : > { %v5317_v47 = vpop.f32.mrf.mxu0 }
 0x6ae   : > { %v5263_v35 = vadd.f32 %v5186_v14, %v5123_v40 }
 0x6b0   : > { %v9343_v1 = vadd.f32 %v5315_v2, %v5263_v35 }
 0x6b1   : > { %v5188_v0 = vpop.f32.mrf.mxu3  ;;  %v4949_v15 = vpop.f32.mrf.mxu1 }
 0x6b2   : > { %v9346_v52 = vadd.f32 %v4949_v15, %v9211_v12  ;;  %v10159_v15 = vld [vmem:[#allocation14_spill] sm:$0xff] }
 0x6b3   : > { %v5048_v46 = vpop.f32.mrf.mxu2 }
 0x6b4   : > { %v5124_v19 = vadd.f32 %v5048_v46, %v9191_v7  ;;  %6534 = vmatmul.msk.bf16.gmra.mxu1 %vm2507_vm5, %v8746_v9 }
 0x6b5   : > { %v5320_v55 = vpop.f32.mrf.mxu0 }
 0x6b6   : > { %v5264_v60 = vadd.f32 %v5188_v0, %v5124_v19  ;;  %6503 = vmatmul.msk.bf16.gmra.mxu3 %vm2507_vm5, %v10157_v45 }
 0x6b8   : > { %6483 = vmatmul.msk.bf16.gmra.mxu2 %vm2507_vm5, %v10158_v3  ;;  %6523 = vmatmul.msk.bf16.gmra.mxu0 %vm2507_vm5, %v8999_v11  ;;  %v9357_v63 = vadd.f32 %v5317_v47, %v5264_v60 }
 0x6b9   : > { %v5191_v12 = vpop.f32.mrf.mxu3  ;;  %v4951_v2 = vpop.f32.mrf.mxu1 }
 0x6ba   : > { %v9360_v7 = vadd.f32 %v4951_v2, %v9220_v25 }
 0x6bb   : > { %v5051_v17 = vpop.f32.mrf.mxu2 }
 0x6bc   : > { %v5125_v9 = vadd.f32 %v5051_v17, %v9196_v49  ;;  %v10160_v49 = vld [vmem:[#allocation10_spill] sm:$0xff] }
 0x6bd   : > { %v5322_v0 = vpop.f32.mrf.mxu0 }
 0x6be   : > { %v5265_v14 = vadd.f32 %v5191_v12, %v5125_v9 }
 0x6c0   : > { %v9363_v38 = vadd.f32 %v5320_v55, %v5265_v14 }
 0x6c1   : > { %v5193_v37 = vpop.f32.mrf.mxu3  ;;  %v4954_v40 = vpop.f32.mrf.mxu1 }
 0x6c2   : > { %v9366_v35 = vadd.f32 %v4954_v40, %v9229_v27  ;;  %v10161_v40 = vld [vmem:[#allocation16_spill] sm:$0xff] }
 0x6c3   : > { %v5053_v11 = vpop.f32.mrf.mxu2 }
 0x6c4   : > { %v5126_v47 = vadd.f32 %v5053_v11, %v9209_v20  ;;  %6535 = vmatmul.msk.bf16.gmra.mxu1 %vm2507_vm5, %v8779_v10 }
 0x6c5   : > { %v5325_v55 = vpop.f32.mrf.mxu0 }
 0x6c6   : > { %v5266_v25 = vadd.f32 %v5193_v37, %v5126_v47  ;;  %6504 = vmatmul.msk.bf16.gmra.mxu3 %vm2507_vm5, %v10159_v15 }
 0x6c8   : > { %6484 = vmatmul.msk.bf16.gmra.mxu2 %vm2507_vm5, %v10160_v49  ;;  %6524 = vmatmul.msk.bf16.gmra.mxu0 %vm2507_vm5, %v9031_v4  ;;  %v9377_v46 = vadd.f32 %v5322_v0, %v5266_v25  ;;  %v10162_v0 = vld [vmem:[#allocation12_spill] sm:$0xff] }
 0x6c9   : > { %v5196_v27 = vpop.f32.mrf.mxu3  ;;  %v4956_v19 = vpop.f32.mrf.mxu1 }
 0x6ca   : > { %v9380_v60 = vadd.f32 %v4956_v19, %v9238_v31 }
 0x6cb   : > { %v5056_v20 = vpop.f32.mrf.mxu2 }
 0x6cc   : > { %v5127_v10 = vadd.f32 %v5056_v20, %v9214_v57 }
 0x6cd   : > { %v5327_v57 = vpop.f32.mrf.mxu0 }
 0x6ce   : > { %v5267_v12 = vadd.f32 %v5196_v27, %v5127_v10 }
 0x6d0   : > { %v9383_v2 = vadd.f32 %v5325_v55, %v5267_v12 }
 0x6d1   : > { %v5198_v17 = vpop.f32.mrf.mxu3  ;;  %v4959_v9 = vpop.f32.mrf.mxu1 }
 0x6d2   : > { %v9386_v14 = vadd.f32 %v4959_v9, %v9247_v21 }
 0x6d3   : > { %v5058_v4 = vpop.f32.mrf.mxu2 }
 0x6d4   : > { %v5128_v37 = vadd.f32 %v5058_v4, %v9227_v41  ;;  %6536 = vmatmul.msk.bf16.gmra.mxu1 %vm2507_vm5, %v8816_v33 }
 0x6d6   : > { %v5268_v31 = vadd.f32 %v5198_v17, %v5128_v37  ;;  %6505 = vmatmul.msk.bf16.gmra.mxu3 %vm2507_vm5, %v10161_v40 }
 0x6d8   : > { %6485 = vmatmul.msk.bf16.gmra.mxu2 %vm2507_vm5, %v10162_v0  ;;  %6525 = vmatmul.msk.bf16.gmra.mxu0 %vm2507_vm5, %v9071_v50  ;;  %v9397_v11 = vadd.f32 %v5327_v57, %v5268_v31 }
 0x6d9   : > { %v5201_v21 = vpop.f32.mrf.mxu3  ;;  %v4961_v47 = vpop.f32.mrf.mxu1 }
 0x6da   : > { %v9400_v41 = vadd.f32 %v4961_v47, %v9256_v36  ;;  %v10163_v36 = vld [vmem:[#allocation15_spill] sm:$0xff] }
 0x6db   : > { %v5061_v25 = vpop.f32.mrf.mxu2 }
 0x6dc   : > { %v5129_v33 = vadd.f32 %v5061_v25, %v9232_v53 }
 0x6de   : > { %v9403_v27 = vadd.f32 %v5201_v21, %v5129_v33 }
 0x6e1   : > { %v5203_v19 = vpop.f32.mrf.mxu3  ;;  %v4964_v20 = vpop.f32.mrf.mxu1 }
 0x6e2   : > { %v9406_v10 = vadd.f32 %v4964_v20, %v9265_v18 }
 0x6e3   : > { %v5063_v55 = vpop.f32.mrf.mxu2 }
 0x6e4   : > { %v5130_v50 = vadd.f32 %v5063_v55, %v9245_v48  ;;  %6537 = vmatmul.msk.bf16.gmra.mxu1 %vm2507_vm5, %v8849_v54 }
 0x6e6   : > { %v9411_v12 = vadd.f32 %v5203_v19, %v5130_v50  ;;  %6506 = vmatmul.msk.bf16.gmra.mxu3 %vm2507_vm5, %v9084_v23  ;;  %v10165_v50 = vld [vmem:[#allocation19_spill] sm:$0xff] }
 0x6e8   : > { %6486 = vmatmul.msk.bf16.gmra.mxu2 %vm2507_vm5, %v10163_v36  ;;  %6526 = vmatmul.msk.bf16.gmra.mxu0 %vm2507_vm5, %v9125_v5 }
 0x6e9   : > { %v5206_v53 = vpop.f32.mrf.mxu3  ;;  %v4966_v18 = vpop.f32.mrf.mxu1 }
 0x6ea   : > { %v9420_v17 = vadd.f32 %v4966_v18, %v9274_v30  ;;  %v10166_v18 = vld [vmem:[#allocation18_spill] sm:$0xff] }
 0x6eb   : > { %v5066_v48 = vpop.f32.mrf.mxu2 }
 0x6ec   : > { %v5131_v9 = vadd.f32 %v5066_v48, %v9250_v22 }
 0x6ee   : > { %v9423_v54 = vadd.f32 %v5206_v53, %v5131_v9 }
 0x6f1   : > { %v5208_v4 = vpop.f32.mrf.mxu3  ;;  %v4969_v37 = vpop.f32.mrf.mxu1 }
 0x6f2   : > { %v9426_v31 = vadd.f32 %v4969_v37, %v9283_v56 }
 0x6f3   : > { %v5068_v57 = vpop.f32.mrf.mxu2 }
 0x6f4   : > { %v5132_v21 = vadd.f32 %v5068_v57, %v9263_v42  ;;  %6538 = vmatmul.msk.bf16.gmra.mxu1 %vm2507_vm5, %v10146_v58 }
 0x6f6   : > { %v9431_v5 = vadd.f32 %v5208_v4, %v5132_v21  ;;  %6507 = vmatmul.msk.bf16.gmra.mxu3 %vm2507_vm5, %v9135_v26  ;;  %v10167_v21 = vld [vmem:[#allocation17_spill] sm:$0xff] }
 0x6f8   : > { %6487 = vmatmul.msk.bf16.gmra.mxu2 %vm2507_vm5, %v9133_v44  ;;  %6527 = vmatmul.msk.bf16.gmra.mxu0 %vm2507_vm5, %v9155_v24 }
 0x6f9   : > { %v5211_v22 = vpop.f32.mrf.mxu3  ;;  %v4971_v30 = vpop.f32.mrf.mxu1 }
 0x6fa   : > { %v9440_v56 = vadd.f32 %v4971_v30, %v9292_v62 }
 0x6fb   : > { %v5071_v42 = vpop.f32.mrf.mxu2 }
 0x6fc   : > { %v5133_v47 = vadd.f32 %v5071_v42, %v9268_v29  ;;  %v10164_v29 = vmov 0.0|0.0   ;;  %v6701_v42 = vld [vmem:[%s6820_s24] sm:$0xff]  }
 0x6fe   : > { %v9443_v58 = vadd.f32 %v5211_v22, %v5133_v47  ;;  %v10168_v47 = vld [vmem:[#allocation21_spill] sm:$0xff] }
 0x701   : > { %v5213_v25 = vpop.f32.mrf.mxu3  ;;  %v4974_v33 = vpop.f32.mrf.mxu1 }
 0x702   : > { %v9446_v19 = vadd.f32 %v4974_v33, %v9301_v59 }
 0x703   : > { %v5073_v20 = vpop.f32.mrf.mxu2 }
 0x704   : > { %v5134_v55 = vadd.f32 %v5073_v20, %v9281_v28  ;;  %6539 = vmatmul.msk.bf16.gmra.mxu1 %vm2507_vm5, %v10151_v51 }
 0x706   : > { %v9451_v24 = vadd.f32 %v5213_v25, %v5134_v55  ;;  %6508 = vmatmul.msk.bf16.gmra.mxu3 %vm2507_vm5, %v9165_v8  ;;  %v10169_v55 = vld [vmem:[#allocation20_spill] sm:$0xff] }
 0x708   : > { %6488 = vmatmul.msk.bf16.gmra.mxu2 %vm2507_vm5, %v9167_v13  ;;  %5384 = vmatmul.bf16.gmra.mxu0 %v10164_v29 }
 0x709   : > { %v5216_v62 = vpop.f32.mrf.mxu3  ;;  %v4976_v59 = vpop.f32.mrf.mxu1 }
 0x70a   : > { %v9459_v53 = vadd.f32 %v4976_v59, %v10165_v50 }
 0x70b   : > { %v5076_v28 = vpop.f32.mrf.mxu2 }
 0x70c   : > { %v5135_v48 = vadd.f32 %v5076_v28, %v10166_v18 }
 0x70e   : > { %v9462_v51 = vadd.f32 %v5216_v62, %v5135_v48 }
 0x711   : > { %v5218_v9 = vpop.f32.mrf.mxu3  ;;  %v5439_v4 = vpop.f32.mrf.mxu1 }
 0x712   : > { %v9465_v37 = vadd.f32 %v5439_v4, %v9323_v61 }
 0x713   : > { %v5078_v57 = vpop.f32.mrf.mxu2 }
 0x714   : > { %v5136_v22 = vadd.f32 %v5078_v57, %v10167_v21  ;;  %6540 = vmatmul.msk.bf16.gmra.mxu1 %vm2507_vm5, %v10156_v34 }
 0x716   : > { %v9470_v30 = vadd.f32 %v5218_v9, %v5136_v22  ;;  %6568 = vmatmul.msk.bf16.vlgmr.msra.gmra.mxu3 %vm740_vm1, %v6701_v42  ;;  %v10170_v9 = vld [vmem:[#allocation27_spill] sm:$0xff] }
 0x718   : > { %6552 = vmatmul.msk.bf16.vlgmr.msra.gmra.mxu2 %vm2507_vm5, %v10168_v47 }
 0x719   : > { %v5221_v25 = vpop.f32.mrf.mxu3  ;;  %v5441_v33 = vpop.f32.mrf.mxu1 }
 0x71a   : > { %v9477_v61 = vadd.f32 %v5441_v33, %v9337_v39  ;;  %v6702_v39 = vld [vmem:[%s6820_s24 + $0x8] sm:$0xff]  }
 0x71b   : > { %v5081_v20 = vpop.f32.mrf.mxu2 }
 0x71c   : > { %v5137_v29 = vadd.f32 %v5081_v20, %v10169_v55 }
 0x71e   : > { %v9480_v62 = vadd.f32 %v5221_v25, %v5137_v29 }
 0x721   : > { %v5223_v34 = vpop.f32.mrf.mxu3  ;;  %v5444_v59 = vpop.f32.mrf.mxu1 }
 0x722   : > { %v9483_v50 = vadd.f32 %v5444_v59, %v9343_v1 }
 0x723   : > { %v5083_v28 = vpop.f32.mrf.mxu2 }
 0x724   : > { %v5138_v18 = vadd.f32 %v5083_v28, %v9317_v6  ;;  %6541 = vmatmul.msk.bf16.gmra.mxu1 %vm2507_vm5, %v10158_v3 }
 0x726   : > { %v9488_v48 = vadd.f32 %v5223_v34, %v5138_v18  ;;  %6569 = vmatmul.msk.bf16.gmra.mxu3 %vm740_vm1, %v6702_v39 }
 0x728   : > { %6553 = vmatmul.msk.bf16.gmra.mxu2 %vm2507_vm5, %v10170_v9 }
 0x729   : > { %v5226_v4 = vpop.f32.mrf.mxu3  ;;  %v5446_v57 = vpop.f32.mrf.mxu1 }
 0x72a   : > { %v9495_v1 = vadd.f32 %v5446_v57, %v9357_v63  ;;  %v6703_v63 = vld [vmem:[%s6820_s24 + $0x10] sm:$0xff]  }
 0x72b   : > { %v5086_v21 = vpop.f32.mrf.mxu2 }
 0x72c   : > { %v5139_v6 = vadd.f32 %v5086_v21, %v9327_v16  ;;  %v10171_v16 = vld [vmem:[#allocation29_spill] sm:$0xff] }
 0x72e   : > { %v9498_v22 = vadd.f32 %v5226_v4, %v5139_v6 }
 0x731   : > { %v5228_v3 = vpop.f32.mrf.mxu3  ;;  %v5449_v42 = vpop.f32.mrf.mxu1 }
 0x732   : > { %v9501_v47 = vadd.f32 %v5449_v42, %v9363_v38 }
 0x733   : > { %v5088_v25 = vpop.f32.mrf.mxu2 }
 0x734   : > { %v5140_v33 = vadd.f32 %v5088_v25, %v9340_v43  ;;  %6542 = vmatmul.msk.bf16.gmra.mxu1 %vm2507_vm5, %v10160_v49 }
 0x736   : > { %v9506_v20 = vadd.f32 %v5228_v3, %v5140_v33  ;;  %6570 = vmatmul.msk.bf16.gmra.mxu3 %vm740_vm1, %v6703_v63  ;;  %v6705_v63 = vld [vmem:[%s6820_s24 + $0x20] sm:$0xff]  }
 0x738   : > { %6554 = vmatmul.msk.bf16.gmra.mxu2 %vm2507_vm5, %v10171_v16 }
 0x739   : > { %v5231_v55 = vpop.f32.mrf.mxu3  ;;  %v5451_v29 = vpop.f32.mrf.mxu1 }
 0x73a   : > { %v9513_v38 = vadd.f32 %v5451_v29, %v9377_v46  ;;  %v6704_v46 = vld [vmem:[%s6820_s24 + $0x18] sm:$0xff]  }
 0x73b   : > { %v5091_v34 = vpop.f32.mrf.mxu2 }
 0x73c   : > { %v5141_v43 = vadd.f32 %v5091_v34, %v9346_v52  ;;  %v10172_v52 = vld [vmem:[#allocation4_spill] sm:$0xff] }
 0x73e   : > { %v9516_v59 = vadd.f32 %v5231_v55, %v5141_v43 }
 0x741   : > { %v5233_v49 = vpop.f32.mrf.mxu3  ;;  %v5454_v28 = vpop.f32.mrf.mxu1 }
 0x742   : > { %v9519_v18 = vadd.f32 %v5454_v28, %v9383_v2  ;;  %v10174_v28 = vld [vmem:[#allocation5_spill] sm:$0xff] }
 0x743   : > { %v5093_v39 = vpop.f32.mrf.mxu2 }
 0x744   : > { %v5142_v9 = vadd.f32 %v5093_v39, %v9360_v7  ;;  %6543 = vmatmul.msk.bf16.gmra.mxu1 %vm2507_vm5, %v10162_v0 }
 0x746   : > { %v9524_v4 = vadd.f32 %v5233_v49, %v5142_v9  ;;  %6571 = vmatmul.msk.bf16.gmra.mxu3 %vm740_vm1, %v6704_v46  ;;  %v6706_v49 = vld [vmem:[%s6820_s24 + $0x28] sm:$0xff]  }
 0x748   : > { %6555 = vmatmul.msk.bf16.gmra.mxu2 %vm2507_vm5, %v10172_v52 }
 0x749   : > { %v5236_v57 = vpop.f32.mrf.mxu3  ;;  %v5456_v21 = vpop.f32.mrf.mxu1 }
 0x74a   : > { %v9531_v2 = vadd.f32 %v5456_v21, %v9397_v11  ;;  %v10173_v11 = vld [vmem:[#allocation31_spill] sm:$0xff]  ;;  %v6707_v21 = vld [vmem:[%s6820_s24 + $0x30] sm:$0xff]  }
 0x74b   : > { %v5096_v6 = vpop.f32.mrf.mxu2 }
 0x74c   : > { %v5143_v7 = vadd.f32 %v5096_v6, %v9366_v35  ;;  %v10175_v6 = vld [vmem:[#allocation8_spill] sm:$0xff] }
 0x74e   : > { %v9534_v3 = vadd.f32 %v5236_v57, %v5143_v7 }
 0x751   : > { %v5238_v0 = vpop.f32.mrf.mxu3 }
 0x753   : > { %v5098_v42 = vpop.f32.mrf.mxu2 }
 0x754   : > { %v5144_v25 = vadd.f32 %v5098_v42, %v9380_v60  ;;  %6544 = vmatmul.msk.bf16.gmra.mxu1 %vm2507_vm5, %v10163_v36 }
 0x756   : > { %v9539_v33 = vadd.f32 %v5238_v0, %v5144_v25  ;;  %6572 = vmatmul.msk.bf16.gmra.mxu3 %vm740_vm1, %v6705_v63 }
 0x758   : > { %6556 = vmatmul.msk.bf16.gmra.mxu2 %vm2507_vm5, %v10173_v11 }
 0x759   : > { %v5241_v16 = vpop.f32.mrf.mxu3 }
 0x75b   : > { %v5101_v35 = vpop.f32.mrf.mxu2 }
 0x75c   : > { %v5145_v55 = vadd.f32 %v5101_v35, %v9386_v14  ;;  %v10177_v35 = vld [vmem:[#allocation32_spill] sm:$0xff] }
 0x75e   : > { %v9546_v29 = vadd.f32 %v5241_v16, %v5145_v55  ;;  %v6708_v16 = vld [vmem:[%s6820_s24 + $0x38] sm:$0xff]  }
 0x761   : > { %v5243_v34 = vpop.f32.mrf.mxu3 }
 0x763   : > { %v5103_v43 = vpop.f32.mrf.mxu2 }
 0x764   : > { %v5146_v60 = vadd.f32 %v5103_v43, %v9400_v41  ;;  %6545 = vmatmul.msk.bf16.gmra.mxu1 %vm2507_vm5, %v9133_v44 }
 0x766   : > { %v9551_v36 = vadd.f32 %v5243_v34, %v5146_v60  ;;  %6573 = vmatmul.msk.bf16.gmra.mxu3 %vm740_vm1, %v6706_v49 }
 0x768   : > { %6557 = vmatmul.msk.bf16.gmra.mxu2 %vm2507_vm5, %v10174_v28  ;;  %v6709_v28 = vld [vmem:[%s6820_s24 + $0x40] sm:$0xff]  }
 0x769   : > { %v5246_v39 = vpop.f32.mrf.mxu3 }
 0x76b   : > { %v5106_v14 = vpop.f32.mrf.mxu2 }
 0x76c   : > { %v5147_v9 = vadd.f32 %v5106_v14, %v9406_v10  ;;  %v9592_v14 = vld [vmem:[%s9848_s8] ss:$0 sm:$0xff] }
 0x76e   : > { %v9558_v46 = vadd.f32 %v5246_v39, %v5147_v9 }
 0x771   : > { %v5248_v52 = vpop.f32.mrf.mxu3 }
 0x773   : > { %v5108_v57 = vpop.f32.mrf.mxu2 }
 0x774   : > { %v5148_v41 = vadd.f32 %v5108_v57, %v9420_v17  ;;  %6546 = vmatmul.msk.bf16.gmra.mxu1 %vm2507_vm5, %v9167_v13  ;;  %v10176_v13 = vld [vmem:[#allocation2_spill] sm:$0xff] }
 0x776   : > { %v9563_v44 = vadd.f32 %v5248_v52, %v5148_v41  ;;  %6574 = vmatmul.msk.bf16.gmra.mxu3 %vm740_vm1, %v6707_v21 }
 0x778   : > { %6558 = vmatmul.msk.bf16.gmra.mxu2 %vm2507_vm5, %v10175_v6 }
 0x779   : > { %v5251_v7 = vpop.f32.mrf.mxu3 }
 0x77b   : > { %v5111_v10 = vpop.f32.mrf.mxu2 }
 0x77c   : > { %v5149_v0 = vadd.f32 %v5111_v10, %v9426_v31 }
 0x77e   : > { %v9570_v42 = vadd.f32 %v5251_v7, %v5149_v0 }
 0x781   : > { %v5253_v25 = vpop.f32.mrf.mxu3 }
 0x783   : > { %v5113_v17 = vpop.f32.mrf.mxu2 }
 0x784   : > { %v5150_v63 = vadd.f32 %v5113_v17, %v9440_v56  ;;  %6547 = vmatmul.msk.bf16.gmra.mxu1 %vm2507_vm5, %v10176_v13  ;;  %v6710_v17 = vld [vmem:[%s6820_s24 + $0x48] sm:$0xff]  }
 0x786   : > { %v9575_v11 = vadd.f32 %v5253_v25, %v5150_v63  ;;  %6575 = vmatmul.msk.bf16.gmra.mxu3 %vm740_vm1, %v6708_v16  ;;  %v9617_v63 = vpop.f32.mrf.mxu0 }
 0x788   : > { %6559 = vmatmul.msk.bf16.gmra.mxu2 %vm2507_vm5, %v10177_v35  ;;  %v9621_v35 = vpop.f32.mrf.mxu1 }
 0x789   : > { %v5256_v55 = vpop.f32.mrf.mxu3 }
 0x78b   : > { %v5116_v31 = vpop.f32.mrf.mxu2 }
 0x78c   : > { %v5151_v34 = vadd.f32 %v5116_v31, %v9446_v19 }
 0x78e   : > { %v9582_v43 = vadd.f32 %v5256_v55, %v5151_v34 }
 0x791   : > { %v5258_v60 = vpop.f32.mrf.mxu3 }
 0x793   : > { %v5118_v56 = vpop.f32.mrf.mxu2 }
 0x794   : > { %v5152_v49 = vadd.f32 %v5118_v56, %v9459_v53  ;;  %v9600_v53 = vld [vmem:[%s9846_s6] ss:$0 sm:$0xff] }
 0x796   : > { %6576 = vmatmul.msk.bf16.gmra.mxu3 %vm740_vm1, %v6709_v28  ;;  %v9587_v39 = vadd.f32 %v5258_v60, %v5152_v49 }
 0x798   : > { %6560 = vmatmul.msk.bf16.gmra.mxu2 %vm2507_vm5, %v10155_v32 }
 0x799   : > { %v5829_v19 = vpop.f32.mrf.mxu3 }
 0x79a   : > { %v5830_v9 = vadd.f32 %v9592_v14, %v5829_v19 }
 0x79b   : > { %v5568_v52 = vpop.f32.mrf.mxu2 }
 0x79c   : > { %v5648_v57 = vadd.f32 %v5568_v52, %v9465_v37  ;;  %v5909_v41 = vmax.f32 %v5830_v9, 0.0  ;;  %v9628_v9 = vpop.f32.mrf.mxu0  ;;  %v9630_v52 = vpop.f32.mrf.mxu1 }
 0x79e   : > { %v5684_v21 = vadd.f32 %v9600_v53, %v5648_v57 }
 0x7a0   : > { %v5716_v6 = vmax.f32 %v5684_v21, 0.0 }
 0x7a1   : > { %v5831_v32 = vpop.f32.mrf.mxu3 }
 0x7a2   : > { %v5941_v7 = vadd.f32 %v5909_v41, %v5716_v6  ;;  %v5832_v37 = vadd.f32 %v9592_v14, %v5831_v32  ;;  %v6711_v6 = vld [vmem:[%s6820_s24 + $0x50] sm:$0xff]  }
 0x7a3   : > { %v5570_v10 = vpop.f32.mrf.mxu2 }
 0x7a4   : > { %5974 = vst.msk [vmem:[%s9608_s13] sm:$0xff] %vm5973_vm6, %v5941_v7  ;;  %v5649_v0 = vadd.f32 %v5570_v10, %v9477_v61  ;;  %v5910_v13 = vmax.f32 %v5832_v37, 0.0 }
 0x7a6   : > { %v5685_v25 = vadd.f32 %v9600_v53, %v5649_v0  ;;  %6577 = vmatmul.msk.bf16.gmra.mxu3 %vm740_vm1, %v6710_v17  ;;  %v9642_v17 = vpop.f32.mrf.mxu0 }
 0x7a8   : > { %v5717_v16 = vmax.f32 %v5685_v25, 0.0  ;;  %6561 = vmatmul.msk.bf16.gmra.mxu2 %vm2507_vm5, %v10157_v45 }
 0x7a9   : > { %v5834_v55 = vpop.f32.mrf.mxu3 }
 0x7aa   : > { %v5942_v31 = vadd.f32 %v5910_v13, %v5717_v16  ;;  %v5835_v34 = vadd.f32 %v9592_v14, %v5834_v55  ;;  %v9647_v13 = vpop.f32.mrf.mxu1 }
 0x7ab   : > { %v5573_v61 = vpop.f32.mrf.mxu2 }
 0x7ac   : > { %5975 = vst.msk [vmem:[%s9608_s13 + $0x8] sm:$0xff] %vm5973_vm6, %v5942_v31  ;;  %v5650_v60 = vadd.f32 %v5573_v61, %v9483_v50  ;;  %v5911_v56 = vmax.f32 %v5835_v34, 0.0 }
 0x7ae   : > { %v5686_v49 = vadd.f32 %v9600_v53, %v5650_v60 }
 0x7b0   : > { %v5718_v28 = vmax.f32 %v5686_v49, 0.0  ;;  %v9654_v49 = vpop.f32.mrf.mxu0 }
 0x7b1   : > { %v5836_v19 = vpop.f32.mrf.mxu3 }
 0x7b2   : > { %v5943_v45 = vadd.f32 %v5911_v56, %v5718_v28  ;;  %v5837_v41 = vadd.f32 %v9592_v14, %v5836_v19  ;;  %v6712_v28 = vld [vmem:[%s6820_s24 + $0x58] sm:$0xff]   ;;  %v9659_v19 = vpop.f32.mrf.mxu1 }
 0x7b3   : > { %v5575_v57 = vpop.f32.mrf.mxu2 }
 0x7b4   : > { %5976 = vst.msk [vmem:[%s9608_s13 + $0x10] sm:$0xff] %vm5973_vm6, %v5943_v45  ;;  %v5651_v21 = vadd.f32 %v5575_v57, %v9495_v1  ;;  %v5912_v32 = vmax.f32 %v5837_v41, 0.0 }
 0x7b6   : > { %v5687_v50 = vadd.f32 %v9600_v53, %v5651_v21  ;;  %6578 = vmatmul.msk.bf16.gmra.mxu3 %vm740_vm1, %v6711_v6 }
 0x7b8   : > { %v5719_v7 = vmax.f32 %v5687_v50, 0.0  ;;  %6562 = vmatmul.msk.bf16.gmra.mxu2 %vm2507_vm5, %v10159_v15 }
 0x7b9   : > { %v5839_v10 = vpop.f32.mrf.mxu3 }
 0x7ba   : > { %v5944_v37 = vadd.f32 %v5912_v32, %v5719_v7  ;;  %v5840_v0 = vadd.f32 %v9592_v14, %v5839_v10  ;;  %v9668_v10 = vpop.f32.mrf.mxu0 }
 0x7bb   : > { %v5578_v25 = vpop.f32.mrf.mxu2 }
 0x7bc   : > { %5977 = vst.msk [vmem:[%s9608_s13 + $0x18] sm:$0xff] %vm5973_vm6, %v5944_v37  ;;  %v5652_v1 = vadd.f32 %v5578_v25, %v9501_v47  ;;  %v5913_v16 = vmax.f32 %v5840_v0, 0.0  ;;  %v9670_v0 = vpop.f32.mrf.mxu1 }
 0x7be   : > { %v5688_v55 = vadd.f32 %v9600_v53, %v5652_v1 }
 0x7c0   : > { %v5720_v31 = vmax.f32 %v5688_v55, 0.0 }
 0x7c1   : > { %v5841_v34 = vpop.f32.mrf.mxu3 }
 0x7c2   : > { %v5945_v15 = vadd.f32 %v5913_v16, %v5720_v31  ;;  %v5842_v60 = vadd.f32 %v9592_v14, %v5841_v34  ;;  %v6713_v31 = vld [vmem:[%s6820_s24 + $0x60] sm:$0xff]   ;;  %v5398_v34 = vadd.f32 %v9617_v63, %v9403_v27 }
 0x7c3   : > { %v5580_v61 = vpop.f32.mrf.mxu2 }
 0x7c4   : > { %5978 = vst.msk [vmem:[%s9608_s13 + $0x20] sm:$0xff] %vm5973_vm6, %v5945_v15  ;;  %v5653_v56 = vadd.f32 %v5580_v61, %v9513_v38  ;;  %v5914_v45 = vmax.f32 %v5842_v60, 0.0 }
 0x7c6   : > { %v5689_v47 = vadd.f32 %v9600_v53, %v5653_v56  ;;  %6579 = vmatmul.msk.bf16.gmra.mxu3 %vm740_vm1, %v6712_v28  ;;  %v9683_v56 = vpop.f32.mrf.mxu0 }
 0x7c8   : > { %v5721_v57 = vmax.f32 %v5689_v47, 0.0  ;;  %6563 = vmatmul.msk.bf16.gmra.mxu2 %vm2507_vm5, %v10161_v40  ;;  %v5527_v47 = vadd.f32 %v9621_v35, %v5398_v34 }
 0x7c9   : > { %v5844_v41 = vpop.f32.mrf.mxu3 }
 0x7ca   : > { %v5946_v21 = vadd.f32 %v5914_v45, %v5721_v57  ;;  %v5845_v50 = vadd.f32 %v9592_v14, %v5844_v41  ;;  %v9687_v45 = vpop.f32.mrf.mxu1 }
 0x7cb   : > { %v5583_v38 = vpop.f32.mrf.mxu2 }
 0x7cc   : > { %5979 = vst.msk [vmem:[%s9608_s13 + $0x28] sm:$0xff] %vm5973_vm6, %v5946_v21  ;;  %v5654_v6 = vadd.f32 %v5583_v38, %v9519_v18  ;;  %v5915_v32 = vmax.f32 %v5845_v50, 0.0 }
 0x7ce   : > { %v5690_v7 = vadd.f32 %v9600_v53, %v5654_v6 }
 0x7d0   : > { %v5722_v37 = vmax.f32 %v5690_v7, 0.0 }
 0x7d1   : > { %v5846_v25 = vpop.f32.mrf.mxu3 }
 0x7d2   : > { %v5947_v40 = vadd.f32 %v5915_v32, %v5722_v37  ;;  %v5847_v16 = vadd.f32 %v9592_v14, %v5846_v25  ;;  %v9695_v32 = vpop.f32.mrf.mxu0  ;;  %v9700_v25 = vpop.f32.mrf.mxu1 }
 0x7d3   : > { %v5585_v1 = vpop.f32.mrf.mxu2 }
 0x7d4   : > { %5980 = vst.msk [vmem:[%s9608_s13 + $0x30] sm:$0xff] %vm5973_vm6, %v5947_v40  ;;  %v5655_v55 = vadd.f32 %v5585_v1, %v9531_v2  ;;  %v5916_v15 = vmax.f32 %v5847_v16, 0.0  ;;  %v6714_v1 = vld [vmem:[%s6820_s24 + $0x68] sm:$0xff]  }
 0x7d6   : > { %v5691_v18 = vadd.f32 %v9600_v53, %v5655_v55  ;;  %6580 = vmatmul.msk.bf16.gmra.mxu3 %vm740_vm1, %v6713_v31 }
 0x7d8   : > { %v5723_v61 = vmax.f32 %v5691_v18, 0.0  ;;  %6564 = vmatmul.msk.bf16.gmra.mxu2 %vm2507_vm5, %v9084_v23  ;;  %v5399_v23 = vadd.f32 %v9628_v9, %v9411_v12  ;;  %v5400_v12 = vadd.f32 %v9642_v17, %v9423_v54 }
 0x7d9   : > { %v5849_v60 = vpop.f32.mrf.mxu3 }
 0x7da   : > { %v5948_v2 = vadd.f32 %v5916_v15, %v5723_v61  ;;  %v5850_v28 = vadd.f32 %v9592_v14, %v5849_v60  ;;  %v5528_v35 = vadd.f32 %v9630_v52, %v5399_v23  ;;  %v5529_v55 = vadd.f32 %v9647_v13, %v5400_v12  ;;  %v5347_v61 = vpop.f32.mrf.mxu0  ;;  %v5476_v17 = vpop.f32.mrf.mxu1  ;;  %v6715_v23 = vld [vmem:[%s6820_s24 + $0x70] sm:$0xff]  }
 0x7db   : > { %v5588_v57 = vpop.f32.mrf.mxu2 }
 0x7dc   : > { %5981 = vst.msk [vmem:[%s9608_s13 + $0x38] sm:$0xff] %vm5973_vm6, %v5948_v2  ;;  %v5656_v27 = vadd.f32 %v5588_v57, %v5527_v47  ;;  %v5917_v63 = vmax.f32 %v5850_v28, 0.0 }
 0x7de   : > { %v5692_v41 = vadd.f32 %v9600_v53, %v5656_v27 }
 0x7e0   : > { %v5724_v21 = vmax.f32 %v5692_v41, 0.0 }
 0x7e1   : > { %v5851_v50 = vpop.f32.mrf.mxu3 }
 0x7e2   : > { %v5949_v38 = vadd.f32 %v5917_v63, %v5724_v21  ;;  %v5852_v7 = vadd.f32 %v9592_v14, %v5851_v50  ;;  %v5350_v21 = vpop.f32.mrf.mxu0 }
 0x7e3   : > { %v5590_v6 = vpop.f32.mrf.mxu2 }
 0x7e4   : > { %5982 = vst.msk [vmem:[%s9608_s13 + $0x40] sm:$0xff] %vm5973_vm6, %v5949_v38  ;;  %v5657_v37 = vadd.f32 %v5590_v6, %v5528_v35  ;;  %v5918_v9 = vmax.f32 %v5852_v7, 0.0 }
 0x7e6   : > { %v5693_v40 = vadd.f32 %v9600_v53, %v5657_v37  ;;  %6581 = vmatmul.msk.bf16.gmra.mxu3 %vm740_vm1, %v6714_v1 }
 0x7e8   : > { %v5725_v52 = vmax.f32 %v5693_v40, 0.0  ;;  %6565 = vmatmul.msk.bf16.gmra.mxu2 %vm2507_vm5, %v9135_v26  ;;  %v5401_v26 = vadd.f32 %v9654_v49, %v9431_v5  ;;  %v5402_v5 = vadd.f32 %v9668_v10, %v9443_v58  ;;  %v5403_v10 = vadd.f32 %v9683_v56, %v9451_v24 }
 0x7e9   : > { %v5854_v16 = vpop.f32.mrf.mxu3  ;;  %v5404_v24 = vadd.f32 %v9695_v32, %v9462_v51  ;;  %v5405_v32 = vadd.f32 %v5347_v61, %v9470_v30 }
 0x7ea   : > { %v5950_v18 = vadd.f32 %v5918_v9, %v5725_v52  ;;  %v5855_v31 = vadd.f32 %v9592_v14, %v5854_v16  ;;  %v5530_v13 = vadd.f32 %v9659_v19, %v5401_v26  ;;  %v5479_v19 = vpop.f32.mrf.mxu1  ;;  %v5531_v38 = vadd.f32 %v9670_v0, %v5402_v5  ;;  %v5352_v9 = vpop.f32.mrf.mxu0 }
 0x7eb   : > { %v5593_v34 = vpop.f32.mrf.mxu2  ;;  %v5532_v0 = vadd.f32 %v9687_v45, %v5403_v10  ;;  %v10178_v45 = vld [vmem:[#allocation3_spill] sm:$0xff]  ;;  %v5533_v26 = vadd.f32 %v9700_v25, %v5404_v24  ;;  %v5534_v5 = vadd.f32 %v5476_v17, %v5405_v32 }
 0x7ec   : > { %5983 = vst.msk [vmem:[%s9608_s13 + $0x48] sm:$0xff] %vm5973_vm6, %v5950_v18  ;;  %v5658_v15 = vadd.f32 %v5593_v34, %v5529_v55  ;;  %v5919_v60 = vmax.f32 %v5855_v31, 0.0 }
 0x7ee   : > { %v5694_v54 = vadd.f32 %v9600_v53, %v5658_v15  ;;  %v6716_v15 = vld [vmem:[%s6820_s24 + $0x78] sm:$0xff]  }
 0x7f0   : > { %v5726_v47 = vmax.f32 %v5694_v54, 0.0 }
 0x7f1   : > { %v5856_v2 = vpop.f32.mrf.mxu3 }
 0x7f2   : > { %v5951_v28 = vadd.f32 %v5919_v60, %v5726_v47  ;;  %v5857_v27 = vadd.f32 %v9592_v14, %v5856_v2  ;;  %v5481_v16 = vpop.f32.mrf.mxu1 }
 0x7f3   : > { %v5595_v57 = vpop.f32.mrf.mxu2 }
 0x7f4   : > { %5984 = vst.msk [vmem:[%s9608_s13 + $0x50] sm:$0xff] %vm5973_vm6, %v5951_v28  ;;  %v5659_v63 = vadd.f32 %v5595_v57, %v5530_v13  ;;  %v5920_v49 = vmax.f32 %v5857_v27, 0.0  ;;  %v5355_v28 = vpop.f32.mrf.mxu0 }
 0x7f6   : > { %v5695_v41 = vadd.f32 %v9600_v53, %v5659_v63  ;;  %6582 = vmatmul.msk.bf16.gmra.mxu3 %vm740_vm1, %v6715_v23 }
 0x7f8   : > { %v5727_v50 = vmax.f32 %v5695_v41, 0.0  ;;  %6566 = vmatmul.msk.bf16.gmra.mxu2 %vm2507_vm5, %v9165_v8 }
 0x7f9   : > { %v5859_v35 = vpop.f32.mrf.mxu3 }
 0x7fa   : > { %v5952_v6 = vadd.f32 %v5920_v49, %v5727_v50  ;;  %v5860_v7 = vadd.f32 %v9592_v14, %v5859_v35  ;;  %v5484_v27 = vpop.f32.mrf.mxu1 }
 0x7fb   : > { %v5598_v37 = vpop.f32.mrf.mxu2 }
 0x7fc   : > { %5985 = vst.msk [vmem:[%s9608_s13 + $0x58] sm:$0xff] %vm5973_vm6, %v5952_v6  ;;  %v5660_v40 = vadd.f32 %v5598_v37, %v5531_v38  ;;  %v5921_v1 = vmax.f32 %v5860_v7, 0.0  ;;  %v5357_v38 = vpop.f32.mrf.mxu0  ;;  %v5406_v37 = vadd.f32 %v5350_v21, %v9480_v62 }
 0x7fd   : > { %v5409_v32 = vadd.f32 %v5357_v38, %v9506_v20 }
 0x7fe   : > { %v5696_v58 = vadd.f32 %v9600_v53, %v5660_v40  ;;  %v5535_v61 = vadd.f32 %v5479_v19, %v5406_v37 }
 0x800   : > { %v5728_v8 = vmax.f32 %v5696_v58, 0.0 }
 0x801   : > { %v5861_v12 = vpop.f32.mrf.mxu3 }
 0x802   : > { %v5953_v52 = vadd.f32 %v5921_v1, %v5728_v8  ;;  %v5862_v18 = vadd.f32 %v9592_v14, %v5861_v12  ;;  %v5486_v7 = vpop.f32.mrf.mxu1 }
 0x803   : > { %v5600_v55 = vpop.f32.mrf.mxu2 }
 0x804   : > { %5986 = vst.msk [vmem:[%s9608_s13 + $0x60] sm:$0xff] %vm5973_vm6, %v5953_v52  ;;  %v5661_v31 = vadd.f32 %v5600_v55, %v5532_v0  ;;  %v5922_v56 = vmax.f32 %v5862_v18, 0.0  ;;  %v5360_v52 = vpop.f32.mrf.mxu0  ;;  %v5407_v55 = vadd.f32 %v5352_v9, %v9488_v48 }
 0x806   : > { %v5697_v34 = vadd.f32 %v9600_v53, %v5661_v31  ;;  %6583 = vmatmul.msk.bf16.gmra.mxu3 %vm740_vm1, %v6716_v15  ;;  %v5536_v31 = vadd.f32 %v5481_v16, %v5407_v55 }
 0x808   : > { %v5729_v60 = vmax.f32 %v5697_v34, 0.0  ;;  %6567 = vmatmul.msk.bf16.gmra.mxu2 %vm2507_vm5, %v10178_v45 }
 0x809   : > { %v5864_v54 = vpop.f32.mrf.mxu3 }
 0x80a   : > { %v5954_v47 = vadd.f32 %v5922_v56, %v5729_v60  ;;  %v5865_v2 = vadd.f32 %v9592_v14, %v5864_v54  ;;  %v5489_v62 = vpop.f32.mrf.mxu1  ;;  %v5408_v60 = vadd.f32 %v5355_v28, %v9498_v22 }
 0x80b   : > { %v5603_v13 = vpop.f32.mrf.mxu2 }
 0x80c   : > { %5987 = vst.msk [vmem:[%s9608_s13 + $0x68] sm:$0xff] %vm5973_vm6, %v5954_v47  ;;  %v5662_v57 = vadd.f32 %v5603_v13, %v5533_v26  ;;  %v5923_v63 = vmax.f32 %v5865_v2, 0.0  ;;  %v5362_v48 = vpop.f32.mrf.mxu0  ;;  %v5537_v9 = vadd.f32 %v5484_v27, %v5408_v60 }
 0x80e   : > { %v5698_v51 = vadd.f32 %v9600_v53, %v5662_v57 }
 0x810   : > { %v5730_v41 = vmax.f32 %v5698_v51, 0.0 }
 0x811   : > { %v5866_v23 = vpop.f32.mrf.mxu3 }
 0x812   : > { %v5955_v49 = vadd.f32 %v5923_v63, %v5730_v41  ;;  %v5867_v50 = vadd.f32 %v9592_v14, %v5866_v23  ;;  %v5491_v2 = vpop.f32.mrf.mxu1  ;;  %v5538_v41 = vadd.f32 %v5486_v7, %v5409_v32 }
 0x813   : > { %v5605_v25 = vpop.f32.mrf.mxu2 }
 0x814   : > { %5988 = vst.msk [vmem:[%s9608_s13 + $0x70] sm:$0xff] %vm5973_vm6, %v5955_v49  ;;  %v5663_v35 = vadd.f32 %v5605_v25, %v5534_v5  ;;  %v5924_v40 = vmax.f32 %v5867_v50, 0.0  ;;  %v5365_v5 = vpop.f32.mrf.mxu0 }
 0x816   : > { %v5699_v6 = vadd.f32 %v9600_v53, %v5663_v35 }
 0x818   : > { %v5731_v1 = vmax.f32 %v5699_v6, 0.0  ;;  %v5410_v6 = vadd.f32 %v5360_v52, %v9516_v59 }
 0x819   : > { %v5869_v30 = vpop.f32.mrf.mxu3 }
 0x81a   : > { %v5956_v17 = vadd.f32 %v5924_v40, %v5731_v1  ;;  %v5870_v58 = vadd.f32 %v9592_v14, %v5869_v30  ;;  %v5494_v50 = vpop.f32.mrf.mxu1  ;;  %v5539_v38 = vadd.f32 %v5489_v62, %v5410_v6 }
 0x81b   : > { %v5608_v10 = vpop.f32.mrf.mxu2 }
 0x81c   : > { %5989 = vst.msk [vmem:[%s9608_s13 + $0x78] sm:$0xff] %vm5973_vm6, %v5956_v17  ;;  %v5664_v8 = vadd.f32 %v5608_v10, %v5535_v61  ;;  %v5925_v12 = vmax.f32 %v5870_v58, 0.0  ;;  %v5367_v17 = vpop.f32.mrf.mxu0 }
 0x81e   : > { %v5700_v0 = vadd.f32 %v9600_v53, %v5664_v8 }
 0x820   : > { %v5732_v18 = vmax.f32 %v5700_v0, 0.0 }
 0x821   : > { %v5871_v21 = vpop.f32.mrf.mxu3 }
 0x822   : > { %v5957_v34 = vadd.f32 %v5925_v12, %v5732_v18  ;;  %v5872_v15 = vadd.f32 %v9592_v14, %v5871_v21  ;;  %v5496_v8 = vpop.f32.mrf.mxu1  ;;  %v5411_v12 = vadd.f32 %v5362_v48, %v9524_v4 }
 0x823   : > { %v5610_v19 = vpop.f32.mrf.mxu2 }
 0x824   : > { %5990 = vst.msk [vmem:[%s9608_s13 + $0x80] sm:$0xff] %vm5973_vm6, %v5957_v34  ;;  %v5665_v24 = vadd.f32 %v5610_v19, %v5536_v31  ;;  %v5926_v45 = vmax.f32 %v5872_v15, 0.0  ;;  %v5540_v52 = vadd.f32 %v5491_v2, %v5411_v12  ;;  %v5370_v34 = vpop.f32.mrf.mxu0  ;;  %v5412_v19 = vadd.f32 %v5365_v5, %v9534_v3 }
 0x826   : > { %v5701_v56 = vadd.f32 %v9600_v53, %v5665_v24  ;;  %v5541_v60 = vadd.f32 %v5494_v50, %v5412_v19 }
 0x828   : > { %v5733_v54 = vmax.f32 %v5701_v56, 0.0 }
 0x829   : > { %v5874_v26 = vpop.f32.mrf.mxu3 }
 0x82a   : > { %v5958_v47 = vadd.f32 %v5926_v45, %v5733_v54  ;;  %v5875_v16 = vadd.f32 %v9592_v14, %v5874_v26  ;;  %v5499_v56 = vpop.f32.mrf.mxu1 }
 0x82b   : > { %v5613_v13 = vpop.f32.mrf.mxu2 }
 0x82c   : > { %5991 = vst.msk [vmem:[%s9608_s13 + $0x88] sm:$0xff] %vm5973_vm6, %v5958_v47  ;;  %v5666_v57 = vadd.f32 %v5613_v13, %v5537_v9  ;;  %v5927_v63 = vmax.f32 %v5875_v16, 0.0  ;;  %v5413_v16 = vadd.f32 %v5367_v17, %v9539_v33  ;;  %v5372_v13 = vpop.f32.mrf.mxu0 }
 0x82e   : > { %v5702_v51 = vadd.f32 %v9600_v53, %v5666_v57  ;;  %v5542_v57 = vadd.f32 %v5496_v8, %v5413_v16 }
 0x830   : > { %v5734_v22 = vmax.f32 %v5702_v51, 0.0 }
 0x831   : > { %v5876_v28 = vpop.f32.mrf.mxu3 }
 0x832   : > { %v5959_v23 = vadd.f32 %v5927_v63, %v5734_v22  ;;  %v5877_v49 = vadd.f32 %v9592_v14, %v5876_v28  ;;  %v5501_v51 = vpop.f32.mrf.mxu1 }
 0x833   : > { %v5615_v27 = vpop.f32.mrf.mxu2 }
 0x834   : > { %5992 = vst.msk [vmem:[%s9608_s13 + $0x90] sm:$0xff] %vm5973_vm6, %v5959_v23  ;;  %v5667_v25 = vadd.f32 %v5615_v27, %v5538_v41  ;;  %v5928_v37 = vmax.f32 %v5877_v49, 0.0  ;;  %v5414_v23 = vadd.f32 %v5370_v34, %v9546_v29  ;;  %v5375_v6 = vpop.f32.mrf.mxu0 }
 0x836   : > { %v5703_v35 = vadd.f32 %v9600_v53, %v5667_v25  ;;  %v5543_v49 = vadd.f32 %v5499_v56, %v5414_v23 }
 0x838   : > { %v5735_v40 = vmax.f32 %v5703_v35, 0.0 }
 0x839   : > { %v5879_v20 = vpop.f32.mrf.mxu3 }
 0x83a   : > { %v5960_v7 = vadd.f32 %v5928_v37, %v5735_v40  ;;  %v5880_v1 = vadd.f32 %v9592_v14, %v5879_v20  ;;  %v5504_v40 = vpop.f32.mrf.mxu1 }
 0x83b   : > { %v5618_v30 = vpop.f32.mrf.mxu2 }
 0x83c   : > { %5993 = vst.msk [vmem:[%s9608_s13 + $0x98] sm:$0xff] %vm5973_vm6, %v5960_v7  ;;  %v5668_v61 = vadd.f32 %v5618_v30, %v5539_v38  ;;  %v5929_v58 = vmax.f32 %v5880_v1, 0.0  ;;  %v5415_v7 = vadd.f32 %v5372_v13, %v9551_v36  ;;  %v5377_v8 = vpop.f32.mrf.mxu0 }
 0x83d   : > { %v5417_v56 = vadd.f32 %v5377_v8, %v9563_v44 }
 0x83e   : > { %v5704_v10 = vadd.f32 %v9600_v53, %v5668_v61  ;;  %v5544_v30 = vadd.f32 %v5501_v51, %v5415_v7 }
 0x840   : > { %v5736_v59 = vmax.f32 %v5704_v10, 0.0 }
 0x841   : > { %v5881_v0 = vpop.f32.mrf.mxu3 }
 0x842   : > { %v5961_v55 = vadd.f32 %v5929_v58, %v5736_v59  ;;  %v5882_v62 = vadd.f32 %v9592_v14, %v5881_v0  ;;  %v5506_v59 = vpop.f32.mrf.mxu1  ;;  %v5416_v0 = vadd.f32 %v5375_v6, %v9558_v46 }
 0x843   : > { %v5620_v18 = vpop.f32.mrf.mxu2 }
 0x844   : > { %5994 = vst.msk [vmem:[%s9608_s13 + $0xa0] sm:$0xff] %vm5973_vm6, %v5961_v55  ;;  %v5669_v21 = vadd.f32 %v5620_v18, %v5540_v52  ;;  %v5930_v15 = vmax.f32 %v5882_v62, 0.0  ;;  %v5545_v18 = vadd.f32 %v5504_v40, %v5416_v0 }
 0x846   : > { %v5705_v31 = vadd.f32 %v9600_v53, %v5669_v21 }
 0x848   : > { %v5737_v24 = vmax.f32 %v5705_v31, 0.0 }
 0x849   : > { %v5884_v4 = vpop.f32.mrf.mxu3 }
 0x84a   : > { %v5962_v45 = vadd.f32 %v5930_v15, %v5737_v24  ;;  %v5885_v54 = vadd.f32 %v9592_v14, %v5884_v4  ;;  %v5380_v24 = vpop.f32.mrf.mxu0  ;;  %v5509_v46 = vpop.f32.mrf.mxu1 }
 0x84b   : > { %v5623_v26 = vpop.f32.mrf.mxu2  ;;  %v5418_v16 = vadd.f32 %v5380_v24, %v9570_v42 }
 0x84c   : > { %5995 = vst.msk [vmem:[%s9608_s13 + $0xa8] sm:$0xff] %vm5973_vm6, %v5962_v45  ;;  %v5670_v48 = vadd.f32 %v5623_v26, %v5541_v60  ;;  %v5931_v9 = vmax.f32 %v5885_v54, 0.0  ;;  %v5546_v45 = vadd.f32 %v5506_v59, %v5417_v56 }
 0x84e   : > { %v5706_v47 = vadd.f32 %v9600_v53, %v5670_v48 }
 0x850   : > { %v5738_v2 = vmax.f32 %v5706_v47, 0.0 }
 0x851   : > { %v5886_v3 = vpop.f32.mrf.mxu3 }
 0x852   : > { %v5963_v63 = vadd.f32 %v5931_v9, %v5738_v2  ;;  %v5887_v22 = vadd.f32 %v9592_v14, %v5886_v3  ;;  %v5382_v44 = vpop.f32.mrf.mxu0 }
 0x853   : > { %v5625_v32 = vpop.f32.mrf.mxu2 }
 0x854   : > { %5996 = vst.msk [vmem:[%s9608_s13 + $0xb0] sm:$0xff] %vm5973_vm6, %v5963_v63  ;;  %v5671_v28 = vadd.f32 %v5625_v32, %v5542_v57  ;;  %v5932_v27 = vmax.f32 %v5887_v22, 0.0  ;;  %v5547_v57 = vadd.f32 %v5509_v46, %v5418_v16  ;;  %v5511_v32 = vpop.f32.mrf.mxu1 }
 0x856   : > { %v5707_v41 = vadd.f32 %v9600_v53, %v5671_v28 }
 0x858   : > { %v5739_v5 = vmax.f32 %v5707_v41, 0.0 }
 0x859   : > { %v5889_v33 = vpop.f32.mrf.mxu3 }
 0x85a   : > { %v5964_v25 = vadd.f32 %v5932_v27, %v5739_v5  ;;  %v5890_v50 = vadd.f32 %v9592_v14, %v5889_v33  ;;  %v5419_v27 = vadd.f32 %v5382_v44, %v9575_v11 }
 0x85b   : > { %v5628_v35 = vpop.f32.mrf.mxu2 }
 0x85c   : > { %5997 = vst.msk [vmem:[%s9608_s13 + $0xb8] sm:$0xff] %vm5973_vm6, %v5964_v25  ;;  %v5672_v37 = vadd.f32 %v5628_v35, %v5543_v49  ;;  %v5933_v20 = vmax.f32 %v5890_v50, 0.0  ;;  %v5548_v33 = vadd.f32 %v5511_v32, %v5419_v27  ;;  %v5385_v25 = vpop.f32.mrf.mxu0 }
 0x85e   : > { %v5708_v38 = vadd.f32 %v9600_v53, %v5672_v37  ;;  %v5514_v37 = vpop.f32.mrf.mxu1 }
 0x860   : > { %v5740_v29 = vmax.f32 %v5708_v38, 0.0 }
 0x861   : > { %v5891_v1 = vpop.f32.mrf.mxu3 }
 0x862   : > { %v5965_v61 = vadd.f32 %v5933_v20, %v5740_v29  ;;  %v5892_v58 = vadd.f32 %v9592_v14, %v5891_v1  ;;  %v5420_v20 = vadd.f32 %v5385_v25, %v9582_v43 }
 0x863   : > { %v5630_v17 = vpop.f32.mrf.mxu2 }
 0x864   : > { %5998 = vst.msk [vmem:[%s9608_s13 + $0xc0] sm:$0xff] %vm5973_vm6, %v5965_v61  ;;  %v5673_v10 = vadd.f32 %v5630_v17, %v5544_v30  ;;  %v5934_v52 = vmax.f32 %v5892_v58, 0.0  ;;  %v5549_v29 = vadd.f32 %v5514_v37, %v5420_v20  ;;  %v5387_v58 = vpop.f32.mrf.mxu0 }
 0x865   : > { %v5421_v43 = vadd.f32 %v5387_v58, %v9587_v39 }
 0x866   : > { %v5709_v12 = vadd.f32 %v9600_v53, %v5673_v10 }
 0x868   : > { %v5741_v55 = vmax.f32 %v5709_v12, 0.0  ;;  %v5516_v12 = vpop.f32.mrf.mxu1 }
 0x869   : > { %v5894_v36 = vpop.f32.mrf.mxu3 }
 0x86a   : > { %v5966_v62 = vadd.f32 %v5934_v52, %v5741_v55  ;;  %v5895_v21 = vadd.f32 %v9592_v14, %v5894_v36  ;;  %v5550_v52 = vadd.f32 %v5516_v12, %v5421_v43 }
 0x86b   : > { %v5633_v31 = vpop.f32.mrf.mxu2 }
 0x86c   : > { %5999 = vst.msk [vmem:[%s9608_s13 + $0xc8] sm:$0xff] %vm5973_vm6, %v5966_v62  ;;  %v5674_v34 = vadd.f32 %v5633_v31, %v5545_v18  ;;  %v5935_v19 = vmax.f32 %v5895_v21, 0.0 }
 0x86e   : > { %v5710_v15 = vadd.f32 %v9600_v53, %v5674_v34 }
 0x870   : > { %v5742_v4 = vmax.f32 %v5710_v15, 0.0 }
 0x871   : > { %v5896_v60 = vpop.f32.mrf.mxu3 }
 0x872   : > { %v5967_v54 = vadd.f32 %v5935_v19, %v5742_v4  ;;  %v5897_v48 = vadd.f32 %v9592_v14, %v5896_v60 }
 0x873   : > { %v5635_v26 = vpop.f32.mrf.mxu2 }
 0x874   : > { %6000 = vst.msk [vmem:[%s9608_s13 + $0xd0] sm:$0xff] %vm5973_vm6, %v5967_v54  ;;  %v5675_v9 = vadd.f32 %v5635_v26, %v5546_v45  ;;  %v5936_v2 = vmax.f32 %v5897_v48, 0.0 }
 0x876   : > { %v5711_v47 = vadd.f32 %v9600_v53, %v5675_v9 }
 0x878   : > { %v5743_v3 = vmax.f32 %v5711_v47, 0.0 }
 0x879   : > { %v5899_v13 = vpop.f32.mrf.mxu3 }
 0x87a   : > { %v5968_v63 = vadd.f32 %v5936_v2, %v5743_v3  ;;  %v5900_v51 = vadd.f32 %v9592_v14, %v5899_v13 }
 0x87b   : > { %v5638_v22 = vpop.f32.mrf.mxu2 }
 0x87c   : > { %6001 = vst.msk [vmem:[%s9608_s13 + $0xd8] sm:$0xff] %vm5973_vm6, %v5968_v63  ;;  %v5676_v28 = vadd.f32 %v5638_v22, %v5547_v57  ;;  %v5937_v41 = vmax.f32 %v5900_v51, 0.0 }
 0x87e   : > { %v5712_v23 = vadd.f32 %v9600_v53, %v5676_v28 }
 0x880   : > { %v5744_v42 = vmax.f32 %v5712_v23, 0.0 }
 0x881   : > { %v5901_v5 = vpop.f32.mrf.mxu3 }
 0x882   : > { %v5969_v49 = vadd.f32 %v5937_v41, %v5744_v42  ;;  %v5902_v35 = vadd.f32 %v9592_v14, %v5901_v5 }
 0x883   : > { %v5640_v50 = vpop.f32.mrf.mxu2 }
 0x884   : > { %6002 = vst.msk [vmem:[%s9608_s13 + $0xe0] sm:$0xff] %vm5973_vm6, %v5969_v49  ;;  %v5677_v6 = vadd.f32 %v5640_v50, %v5548_v33  ;;  %v5938_v38 = vmax.f32 %v5902_v35, 0.0 }
 0x886   : > { %v5713_v40 = vadd.f32 %v9600_v53, %v5677_v6 }
 0x888   : > { %v5745_v7 = vmax.f32 %v5713_v40, 0.0 }
 0x889   : > { %v5904_v11 = vpop.f32.mrf.mxu3 }
 0x88a   : > { %v5970_v1 = vadd.f32 %v5938_v38, %v5745_v7  ;;  %v5905_v30 = vadd.f32 %v9592_v14, %v5904_v11 }
 0x88b   : > { %v5643_v61 = vpop.f32.mrf.mxu2 }
 0x88c   : > { %6003 = vst.msk [vmem:[%s9608_s13 + $0xe8] sm:$0xff] %vm5973_vm6, %v5970_v1  ;;  %v5678_v17 = vadd.f32 %v5643_v61, %v5549_v29  ;;  %v5939_v10 = vmax.f32 %v5905_v30, 0.0 }
 0x88e   : > { %v5714_v8 = vadd.f32 %v9600_v53, %v5678_v17 }
 0x890   : > { %v5746_v59 = vmax.f32 %v5714_v8, 0.0 }
 0x891   : > { %v5906_v0 = vpop.f32.mrf.mxu3 }
 0x892   : > { %v5971_v55 = vadd.f32 %v5939_v10, %v5746_v59  ;;  %v5907_v18 = vadd.f32 %v9592_v14, %v5906_v0 }
 0x893   : > { %v5645_v36 = vpop.f32.mrf.mxu2 }
 0x894   : > { %6004 = vst.msk [vmem:[%s9608_s13 + $0xf0] sm:$0xff] %vm5973_vm6, %v5971_v55  ;;  %v5679_v62 = vadd.f32 %v5645_v36, %v5550_v52  ;;  %v5940_v31 = vmax.f32 %v5907_v18, 0.0 }
 0x896   : > { %v5715_v21 = vadd.f32 %v9600_v53, %v5679_v62 }
 0x898   : > { %v5747_v34 = vmax.f32 %v5715_v21, 0.0 }
 0x89a   : > { %v5972_v19 = vadd.f32 %v5940_v31, %v5747_v34 }
 0x89c   : > { %6005 = vst.msk [vmem:[%s9608_s13 + $0xf8] sm:$0xff] %vm5973_vm6, %v5972_v19 }
 0x89d PF: > { %s19_s30 = sadd.s32 1, %s6723_s30  }
 0x89e   : > { %p16_p4 = scmp.ge.s32.totalorder %s19_s30, 4  }
 0x8a0   :  { %18 = sbr.rel (!%p16_p4) target bundleno = 1 (0x1), region = 86 }

</bundles_post_ra>
